<compile_context>
chip_gen: v6e
topology: v6e:2x2x1
jax: 0.10.0
libtpu: 0.0.40
codegen_flags: <defaults>
</compile_context>

<pallas_src>
import functools

import jax
import jax.numpy as jnp
from jax.experimental import pallas as pl
from jax.experimental.pallas import tpu as pltpu

LANE = 128


def _round_up(x, m):
    return (x + m - 1) // m * m


def _vmem_capacity_bytes():
    try:
        info = pltpu.get_tpu_info()
        cap = int(getattr(info, "vmem_capacity_bytes", 0) or 0)
        if cap > 0:
            return cap
    except Exception:
        pass
    return 128 * 1024 * 1024  # conservative fallback (v5e/v6e physical VMEM)


def _vmem_limit_bytes():
    cap = _vmem_capacity_bytes()
    # 70% of physical VMEM, clamped: ~45 MiB on v7x (64 MiB), 96 MiB on v5e/v6e.
    return max(32 * 1024 * 1024, min(int(cap * 0.70), 96 * 1024 * 1024))


# -----------------------------------------------------------------------------
# Kernels
# -----------------------------------------------------------------------------
def _conv_lrelu_kernel(xq_ref, w_ref, b_ref, y_ref, st_ref,
                       *, ho, wo, cin, cout_p, tn):
    """Conv2d(4,2,p=1) + bias -> LeakyReLU(0.2), plus per-tile BN partial stats.

    Input is in stride-2 space-to-depth layout:
        xq[q, n, i, j, c] = x_padded[n, 2*i + q//2, 2*j + q%2, c]
    so every (kh, kw) tap is a plain contiguous slice.  The 16 taps are packed
    into one (mt, 16*cin) VMEM im2col matrix and contracted with the stacked
    weight in a single K=16*cin matmul (good MXU fill even when cin is tiny).

    Outputs:
        y_ref  : (mt, cout_p) bf16 raw post-LeakyReLU activation (lane-dense).
        st_ref : (8, cout_p) f32  [row 0: per-tile sum, row 1: per-tile
                 centered sum-of-squares, rows 2-7: zero padding].
    """
    mt = tn * ho * wo
    taps = []
    for kh in range(4):
        for kw in range(4):
            q = 2 * (kh % 2) + (kw % 2)
            dh, dw = kh // 2, kw // 2
            tap = xq_ref[q, :, dh:dh + ho, dw:dw + wo, :]      # (tn, ho, wo, cin) bf16
            taps.append(tap.reshape(mt, cin))
    xcol = jnp.concatenate(taps, axis=-1)                      # (mt, 16*cin) bf16

    y = jnp.dot(xcol, w_ref[...], preferred_element_type=jnp.float32)
    y = y + b_ref[...]                                         # bias (1, cout_p)
    y = jnp.where(y > 0, y, 0.2 * y)                           # LeakyReLU(0.2)

    # Per-tile two-pass statistics (combined exactly across tiles in XLA).
    s = jnp.sum(y, axis=0, keepdims=True)                      # (1, cout_p)
    mu_t = s * (1.0 / mt)
    d = y - mu_t
    m2 = jnp.sum(d * d, axis=0, keepdims=True)

    y_ref[...] = y.astype(y_ref.dtype)
    st_ref[...] = jnp.concatenate(
        [s, m2, jnp.zeros((6, cout_p), jnp.float32)], axis=0)


def _vae_head_kernel(h_ref, sf_ref, tf_ref, w_ref, b_ref, noise_ref,
                     z_ref, mean_ref, logvar_ref, *, nz):
    """Last-layer BN affine (per-feature) + fused mean|logvar Linear heads +
    reparametrize.  The BN of conv layer 4 is folded in here as h*scale+shift."""
    h = h_ref[...].astype(jnp.float32) * sf_ref[...] + tf_ref[...]
    y = jnp.dot(h.astype(jnp.bfloat16), w_ref[...],
                preferred_element_type=jnp.float32) + b_ref[...]
    mean = y[:, :nz]
    logvar = y[:, nz:]
    std = jnp.exp(0.5 * logvar)
    mean_ref[...] = mean
    logvar_ref[...] = logvar
    # TODO(synk): head outputs are nz-wide (<128 lanes) -> masked stores; pad to
    # a 128-lane slab if the head ever becomes non-negligible.
    z_ref[...] = noise_ref[...] * std + mean


# -----------------------------------------------------------------------------
# Tiling helpers
# -----------------------------------------------------------------------------
def _pick_batch_tile(n, hq, wq, cin, ho, wo, cout_p, budget):
    """Largest batch tile whose working set (incl. double-buffered weights and
    in-kernel im2col / f32 temporaries) fits the generation-aware budget and
    whose output block keeps the (8, 128) divisibility rule."""
    k = 16 * cin
    fixed = 2 * (k * cout_p * 2 + cout_p * 4)            # weight + bias, 2x buffered

    def step_bytes(t):
        mt = t * ho * wo
        xq_b = 4 * t * hq * wq * cin * 2                 # bf16 input block
        y_b = mt * cout_p * 2                            # bf16 output block
        st_b = 8 * cout_p * 4
        tmp = mt * k * 2 + 2 * mt * cout_p * 4 + xq_b    # im2col + f32 y/centered + taps
        return fixed + 2 * (xq_b + y_b + st_b) + tmp

    smallest_legal = n
    for t in range(n, 0, -1):
        if n % t:
            continue
        if (t != n) and ((t * ho * wo) % 8 != 0):
            continue
        smallest_legal = t
        if step_bytes(t) <= budget:
            return t
    return smallest_legal


def _pick_row_tile(n, limit=512):
    if n <= limit:
        return n
    for t in range(limit, 0, -1):
        if n % t == 0 and t % 8 == 0:
            return t
    return n


# -----------------------------------------------------------------------------
# Layer wrappers
# -----------------------------------------------------------------------------
def conv_lrelu_layer(x_nhwc, w_cat, b, cout_p):
    """x_nhwc: (N, H, W, Cin) bf16 -> raw activation (N*Ho*Wo, cout_p) bf16 +
    per-tile BN partial stats.  cout_p is the 128-padded channel count."""
    n, h, w, cin = x_nhwc.shape
    ho, wo = h // 2, w // 2
    hq, wq = ho + 1, wo + 1
    m_total = n * ho * wo

    # Pad + stride-2 space-to-depth (fuses in XLA with the preceding BN affine):
    #   xq[2a+bq, n, i, j, c] = x_padded[n, 2i+a, 2j+bq, c]
    xp = jnp.pad(x_nhwc, ((0, 0), (1, 1), (1, 1), (0, 0)))
    xq = xp.reshape(n, hq, 2, wq, 2, cin)
    xq = jnp.transpose(xq, (2, 4, 0, 1, 3, 5)).reshape(4, n, hq, wq, cin)

    vmem_limit = _vmem_limit_bytes()
    tn = _pick_batch_tile(n, hq, wq, cin, ho, wo, cout_p,
                          budget=int(vmem_limit * 0.6))
    mt = tn * ho * wo
    num_tiles = n // tn

    kernel = functools.partial(_conv_lrelu_kernel, ho=ho, wo=wo, cin=cin,
                               cout_p=cout_p, tn=tn)
    flops = 2 * m_total * (16 * cin) * cout_p
    bytes_accessed = (xq.size * 2 + w_cat.size * 2 + m_total * cout_p * 2
                      + num_tiles * 8 * cout_p * 4)

    y, stats = pl.pallas_call(
        kernel,
        out_shape=(jax.ShapeDtypeStruct((m_total, cout_p), jnp.bfloat16),
                   jax.ShapeDtypeStruct((num_tiles * 8, cout_p), jnp.float32)),
        grid_spec=pltpu.PrefetchScalarGridSpec(
            num_scalar_prefetch=0,
            grid=(num_tiles,),
            in_specs=[
                pl.BlockSpec((4, tn, hq, wq, cin), lambda nb: (0, nb, 0, 0, 0)),
                pl.BlockSpec((16 * cin, cout_p), lambda nb: (0, 0)),
                pl.BlockSpec((1, cout_p), lambda nb: (0, 0)),
            ],
            out_specs=(pl.BlockSpec((mt, cout_p), lambda nb: (nb, 0)),
                       pl.BlockSpec((8, cout_p), lambda nb: (nb, 0))),
        ),
        compiler_params=pltpu.CompilerParams(
            # Batch tiles are fully independent (per-tile stats), so the grid
            # axis is parallel -> both TensorCores on v7x.
            dimension_semantics=("parallel",),
            vmem_limit_bytes=vmem_limit,
        ),
        cost_estimate=pl.CostEstimate(flops=flops, transcendentals=0,
                                      bytes_accessed=bytes_accessed),
    )(xq, w_cat, b)
    return y, stats, (ho, wo, mt, m_total)


def _finalize_bn(stats, gamma, beta, cout, m_tile, m_total):
    """Exact cross-tile combine of per-tile (sum, centered-SSQ) statistics
    (Chan parallel-variance formula) -> per-channel affine (scale, shift)."""
    cout_p = stats.shape[-1]
    st = stats.reshape(-1, 8, cout_p)
    tile_sum = st[:, 0, :cout]                       # (num_tiles, cout)
    tile_m2 = st[:, 1, :cout]
    total = jnp.sum(tile_sum, axis=0)
    mu = total / m_total
    mu_t = tile_sum / m_tile
    m2 = jnp.sum(tile_m2 + m_tile * jnp.square(mu_t - mu), axis=0)
    var = jnp.maximum(m2 / m_total, 0.0)             # biased variance (training BN)
    rstd = jax.lax.rsqrt(var + 1e-5)
    scale = gamma.reshape(-1) * rstd
    shift = beta.reshape(-1) - mu * scale
    return scale, shift


def vae_head(hidden, s_feat, t_feat, w_cat, b_cat, noise):
    """hidden: (N, feat_p) bf16 raw conv-4 output; s_feat/t_feat fold its BN."""
    n, feat_p = hidden.shape
    nz2 = w_cat.shape[1]
    nz = nz2 // 2
    tn = _pick_row_tile(n)
    vmem_limit = _vmem_limit_bytes()
    shp = jax.ShapeDtypeStruct((n, nz), jnp.float32)
    out_spec = pl.BlockSpec((tn, nz), lambda i: (i, 0))
    return pl.pallas_call(
        functools.partial(_vae_head_kernel, nz=nz),
        out_shape=(shp, shp, shp),
        grid_spec=pltpu.PrefetchScalarGridSpec(
            num_scalar_prefetch=0,
            grid=(n // tn,),
            in_specs=[
                pl.BlockSpec((tn, feat_p), lambda i: (i, 0)),
                pl.BlockSpec((1, feat_p), lambda i: (0, 0)),
                pl.BlockSpec((1, feat_p), lambda i: (0, 0)),
                pl.BlockSpec((feat_p, nz2), lambda i: (0, 0)),
                pl.BlockSpec((1, nz2), lambda i: (0, 0)),
                pl.BlockSpec((tn, nz), lambda i: (i, 0)),
            ],
            out_specs=(out_spec, out_spec, out_spec),
        ),
        compiler_params=pltpu.CompilerParams(
            dimension_semantics=("parallel",),
            vmem_limit_bytes=vmem_limit,
        ),
        cost_estimate=pl.CostEstimate(
            flops=2 * n * feat_p * nz2, transcendentals=n * nz,
            bytes_accessed=hidden.size * 2 + w_cat.size * 2 + 3 * n * nz * 4),
    )(hidden, s_feat, t_feat, w_cat, b_cat, noise)


# -----------------------------------------------------------------------------
# Parameters (PyTorch-native layout) + conversion to kernel layout
# -----------------------------------------------------------------------------
def init_torch_params(key, nc, nef, nz, isize):
    out_size = isize // 16
    chans = [nc, nef, nef * 2, nef * 4, nef * 8]
    keys = jax.random.split(key, 12)
    params = {"convs": []}
    ki = 0
    for layer in range(4):
        cin, cout = chans[layer], chans[layer + 1]
        w = 0.05 * jax.random.normal(keys[ki], (cout, cin, 4, 4), jnp.float32); ki += 1
        b = 0.05 * jax.random.normal(keys[ki], (1, cout), jnp.float32); ki += 1
        gamma = jnp.ones((1, cout), jnp.float32)   # BatchNorm2d affine init
        beta = jnp.zeros((1, cout), jnp.float32)
        params["convs"].append((w, b, gamma, beta))
    feat = nef * 8 * out_size * out_size
    params["wm"] = 0.05 * jax.random.normal(keys[ki], (feat, nz), jnp.float32); ki += 1
    params["bm"] = 0.05 * jax.random.normal(keys[ki], (1, nz), jnp.float32); ki += 1
    params["wv"] = 0.05 * jax.random.normal(keys[ki], (feat, nz), jnp.float32); ki += 1
    params["bv"] = 0.05 * jax.random.normal(keys[ki], (1, nz), jnp.float32); ki += 1
    params["dims"] = (nef * 8, out_size)
    return params


def convert_params(tparams):
    kparams = {"convs": []}
    for (w_oihw, b, gamma, beta) in tparams["convs"]:
        cout, cin, kh, kw = w_oihw.shape
        cout_p = _round_up(cout, LANE)
        # (Cout, Cin, kh, kw) -> stacked (16*Cin, Cout) in kh*4+kw row-block
        # order (matches the kernel's tap concat order); pad cout -> 128 mult.
        w_cat = jnp.transpose(w_oihw, (2, 3, 1, 0)).reshape(kh * kw * cin, cout)
        w_cat = jnp.pad(w_cat, ((0, 0), (0, cout_p - cout))).astype(jnp.bfloat16)
        b_p = jnp.pad(b, ((0, 0), (0, cout_p - cout)))
        kparams["convs"].append(dict(w=w_cat, b=b_p, gamma=gamma, beta=beta,
                                     cout=cout, cout_p=cout_p))
    # Fused head: concat mean|logvar weights; fold the NCHW-flatten permutation
    # AND the channel padding into the rows so the kernel consumes the
    # (N, spatial*cout_p) bf16 hidden slab directly (no transpose / slice).
    c, s_sz = tparams["dims"]
    cout_p = _round_up(c, LANE)
    spatial = s_sz * s_sz
    pos = jnp.arange(spatial)[:, None]
    ch = jnp.arange(c)[None, :]
    rows = (ch * spatial + pos).reshape(-1)        # NHWC feature -> torch NCHW row
    w_cat = jnp.concatenate([tparams["wm"][rows], tparams["wv"][rows]], axis=1)
    w_cat = jnp.pad(w_cat.reshape(spatial, c, -1),
                    ((0, 0), (0, cout_p - c), (0, 0))).reshape(spatial * cout_p, -1)
    kparams["w_head"] = w_cat.astype(jnp.bfloat16)
    kparams["b_head"] = jnp.concatenate([tparams["bm"], tparams["bv"]], axis=1)
    return kparams


# -----------------------------------------------------------------------------
# Forward passes
# -----------------------------------------------------------------------------
def encoder_forward(kparams, x_nchw, noise):
    """Pallas forward.  Returns (latent_z, mean, logvar)."""
    n = x_nchw.shape[0]
    act = jnp.transpose(x_nchw, (0, 2, 3, 1)).astype(jnp.bfloat16)  # NCHW -> NHWC once
    num_layers = len(kparams["convs"])
    y = scale = shift = None
    ho = wo = cout = cout_p = None
    for li, layer in enumerate(kparams["convs"]):
        y, stats, (ho, wo, m_tile, m_total) = conv_lrelu_layer(
            act, layer["w"], layer["b"], layer["cout_p"])
        scale, shift = _finalize_bn(stats, layer["gamma"], layer["beta"],
                                    layer["cout"], m_tile, m_total)
        cout, cout_p = layer["cout"], layer["cout_p"]
        if li + 1 < num_layers:
            # BN affine; fuses (under jit) with the next layer's pad +
            # space-to-depth repack, so no extra HBM pass.
            a = y[:, :cout].astype(jnp.float32).reshape(n, ho, wo, cout)
            act = (a * scale + shift).astype(jnp.bfloat16)
    # Final layer: fold BN into the head kernel as a per-feature affine.
    spatial = ho * wo
    s_pad = jnp.pad(scale, (0, cout_p - cout))
    t_pad = jnp.pad(shift, (0, cout_p - cout))
    s_feat = jnp.broadcast_to(s_pad[None, :], (spatial, cout_p)).reshape(1, spatial * cout_p)
    t_feat = jnp.broadcast_to(t_pad[None, :], (spatial, cout_p)).reshape(1, spatial * cout_p)
    hidden = y.reshape(n, spatial * cout_p)        # contiguous, no copy
    return vae_head(hidden, s_feat, t_feat, kparams["w_head"], kparams["b_head"], noise)


def reference_forward_bf16(tparams, x_nchw, noise):
    """Pure-JAX reference that emulates the kernel's bf16 storage/compute policy
    (so differences vs. the Pallas path are only accumulation-order noise)."""
    bf = lambda a: a.astype(jnp.bfloat16).astype(jnp.float32)
    x = bf(x_nchw)
    for (w_oihw, b, gamma, beta) in tparams["convs"]:
        x = jax.lax.conv_general_dilated(
            x, bf(w_oihw), (2, 2), ((1, 1), (1, 1)),
            dimension_numbers=("NCHW", "OIHW", "NCHW"),
            preferred_element_type=jnp.float32)
        x = x + b.reshape(1, -1, 1, 1)
        x = jnp.where(x > 0, x, 0.2 * x)
        mu = jnp.mean(x, axis=(0, 2, 3), keepdims=True)
        var = jnp.mean((x - mu) ** 2, axis=(0, 2, 3), keepdims=True)
        x = (x - mu) * jax.lax.rsqrt(var + 1e-5)
        x = bf(gamma.reshape(1, -1, 1, 1) * x + beta.reshape(1, -1, 1, 1))
    hidden = x.reshape(x.shape[0], -1)                      # NCHW flatten (torch .view)
    mean = hidden @ bf(tparams["wm"]) + tparams["bm"]
    logvar = hidden @ bf(tparams["wv"]) + tparams["bv"]
    z = noise * jnp.exp(0.5 * logvar) + mean
    return z, mean, logvar


if __name__ == "__main__":
    # Small shapes consistent with the module: nc=4, nef=8, nz=16, isize=16.
    nc, nef, nz, isize, batch = 4, 8, 16, 16, 2

    key = jax.random.PRNGKey(0)
    k_params, k_x, k_noise = jax.random.split(key, 3)

    tparams = init_torch_params(k_params, nc, nef, nz, isize)
    kparams = convert_params(tparams)

    x = jax.random.normal(k_x, (batch, nc, isize, isize), jnp.float32)
    # Deterministic stand-in for torch.FloatTensor(std.size()).normal_() in reparametrize.
    noise = jax.random.normal(k_noise, (batch, nz), jnp.float32)

    fwd = jax.jit(functools.partial(encoder_forward, kparams))
    z, mean, logvar = fwd(x, noise)
    jax.block_until_ready((z, mean, logvar))

    assert z.shape == (batch, nz) and mean.shape == (batch, nz) and logvar.shape == (batch, nz)
    assert bool(jnp.all(jnp.isfinite(z)) & jnp.all(jnp.isfinite(mean)) & jnp.all(jnp.isfinite(logvar)))

    # Numerical sanity check against the bf16-emulating pure-JAX reference.
    z_r, mean_r, logvar_r = jax.jit(functools.partial(reference_forward_bf16, tparams))(x, noise)
    for got, ref in ((z, z_r), (mean, mean_r), (logvar, logvar_r)):
        assert jnp.allclose(got, ref, atol=3e-2, rtol=3e-2), float(jnp.max(jnp.abs(got - ref)))

    print("KERNEL_OK")
</pallas_src>

<mosaic_0001>
module attributes {stable_mosaic.version = 11 : i64} {
  func.func @_conv_lrelu_kernel(%arg0: i32, %arg1: memref<4x2x9x9x4xbf16, #tpu.memory_space<vmem>>, %arg2: memref<64x128xbf16, #tpu.memory_space<vmem>>, %arg3: memref<1x128xf32, #tpu.memory_space<vmem>>, %arg4: memref<128x128xbf16, #tpu.memory_space<vmem>>, %arg5: memref<8x128xf32, #tpu.memory_space<vmem>>) attributes {dimension_semantics = [#tpu.dimension_semantics<parallel>], iteration_bounds = array<i64: 1>, scalar_prefetch = 0 : i64, scratch_operands = 0 : i64, tpu.core_type = #tpu.core_type<tc>, window_params = [{transform_indices = @transform_0, window_bounds = array<i64: 4, 2, 9, 9, 4>}, {pipeline_mode = #tpu.pipeline_mode<synchronous>, transform_indices = @transform_1, window_bounds = array<i64: 64, 128>}, {pipeline_mode = #tpu.pipeline_mode<synchronous>, transform_indices = @transform_2, window_bounds = array<i64: 1, 128>}, {transform_indices = @transform_3, window_bounds = array<i64: 128, 128>}, {transform_indices = @transform_4, window_bounds = array<i64: 8, 128>}]} {
    %c0 = arith.constant 0 : index
    %c0_0 = arith.constant 0 : index
    %c0_1 = arith.constant 0 : index
    %c0_2 = arith.constant 0 : index
    %c0_3 = arith.constant 0 : index
    %0 = vector.load %arg1[%c0, %c0_0, %c0_1, %c0_2, %c0_3] : memref<4x2x9x9x4xbf16, #tpu.memory_space<vmem>>, vector<1x2x8x8x4xbf16>
    %1 = vector.shape_cast %0 : vector<1x2x8x8x4xbf16> to vector<2x8x8x4xbf16>
    %2 = vector.shape_cast %1 : vector<2x8x8x4xbf16> to vector<128x4xbf16>
    %c1 = arith.constant 1 : index
    %c0_4 = arith.constant 0 : index
    %c0_5 = arith.constant 0 : index
    %c0_6 = arith.constant 0 : index
    %c0_7 = arith.constant 0 : index
    %3 = vector.load %arg1[%c1, %c0_4, %c0_5, %c0_6, %c0_7] : memref<4x2x9x9x4xbf16, #tpu.memory_space<vmem>>, vector<1x2x8x8x4xbf16>
    %4 = vector.shape_cast %3 : vector<1x2x8x8x4xbf16> to vector<2x8x8x4xbf16>
    %5 = vector.shape_cast %4 : vector<2x8x8x4xbf16> to vector<128x4xbf16>
    %c0_8 = arith.constant 0 : index
    %c0_9 = arith.constant 0 : index
    %c0_10 = arith.constant 0 : index
    %c1_11 = arith.constant 1 : index
    %c0_12 = arith.constant 0 : index
    %6 = vector.load %arg1[%c0_8, %c0_9, %c0_10, %c1_11, %c0_12] : memref<4x2x9x9x4xbf16, #tpu.memory_space<vmem>>, vector<1x2x8x8x4xbf16>
    %7 = vector.shape_cast %6 : vector<1x2x8x8x4xbf16> to vector<2x8x8x4xbf16>
    %8 = vector.shape_cast %7 : vector<2x8x8x4xbf16> to vector<128x4xbf16>
    %c1_13 = arith.constant 1 : index
    %c0_14 = arith.constant 0 : index
    %c0_15 = arith.constant 0 : index
    %c1_16 = arith.constant 1 : index
    %c0_17 = arith.constant 0 : index
    %9 = vector.load %arg1[%c1_13, %c0_14, %c0_15, %c1_16, %c0_17] : memref<4x2x9x9x4xbf16, #tpu.memory_space<vmem>>, vector<1x2x8x8x4xbf16>
    %10 = vector.shape_cast %9 : vector<1x2x8x8x4xbf16> to vector<2x8x8x4xbf16>
    %11 = vector.shape_cast %10 : vector<2x8x8x4xbf16> to vector<128x4xbf16>
    %c2 = arith.constant 2 : index
    %c0_18 = arith.constant 0 : index
    %c0_19 = arith.constant 0 : index
    %c0_20 = arith.constant 0 : index
    %c0_21 = arith.constant 0 : index
    %12 = vector.load %arg1[%c2, %c0_18, %c0_19, %c0_20, %c0_21] : memref<4x2x9x9x4xbf16, #tpu.memory_space<vmem>>, vector<1x2x8x8x4xbf16>
    %13 = vector.shape_cast %12 : vector<1x2x8x8x4xbf16> to vector<2x8x8x4xbf16>
    %14 = vector.shape_cast %13 : vector<2x8x8x4xbf16> to vector<128x4xbf16>
    %c3 = arith.constant 3 : index
    %c0_22 = arith.constant 0 : index
    %c0_23 = arith.constant 0 : index
    %c0_24 = arith.constant 0 : index
    %c0_25 = arith.constant 0 : index
    %15 = vector.load %arg1[%c3, %c0_22, %c0_23, %c0_24, %c0_25] : memref<4x2x9x9x4xbf16, #tpu.memory_space<vmem>>, vector<1x2x8x8x4xbf16>
    %16 = vector.shape_cast %15 : vector<1x2x8x8x4xbf16> to vector<2x8x8x4xbf16>
    %17 = vector.shape_cast %16 : vector<2x8x8x4xbf16> to vector<128x4xbf16>
    %c2_26 = arith.constant 2 : index
    %c0_27 = arith.constant 0 : index
    %c0_28 = arith.constant 0 : index
    %c1_29 = arith.constant 1 : index
    %c0_30 = arith.constant 0 : index
    %18 = vector.load %arg1[%c2_26, %c0_27, %c0_28, %c1_29, %c0_30] : memref<4x2x9x9x4xbf16, #tpu.memory_space<vmem>>, vector<1x2x8x8x4xbf16>
    %19 = vector.shape_cast %18 : vector<1x2x8x8x4xbf16> to vector<2x8x8x4xbf16>
    %20 = vector.shape_cast %19 : vector<2x8x8x4xbf16> to vector<128x4xbf16>
    %c3_31 = arith.constant 3 : index
    %c0_32 = arith.constant 0 : index
    %c0_33 = arith.constant 0 : index
    %c1_34 = arith.constant 1 : index
    %c0_35 = arith.constant 0 : index
    %21 = vector.load %arg1[%c3_31, %c0_32, %c0_33, %c1_34, %c0_35] : memref<4x2x9x9x4xbf16, #tpu.memory_space<vmem>>, vector<1x2x8x8x4xbf16>
    %22 = vector.shape_cast %21 : vector<1x2x8x8x4xbf16> to vector<2x8x8x4xbf16>
    %23 = vector.shape_cast %22 : vector<2x8x8x4xbf16> to vector<128x4xbf16>
    %c0_36 = arith.constant 0 : index
    %c0_37 = arith.constant 0 : index
    %c1_38 = arith.constant 1 : index
    %c0_39 = arith.constant 0 : index
    %c0_40 = arith.constant 0 : index
    %24 = vector.load %arg1[%c0_36, %c0_37, %c1_38, %c0_39, %c0_40] : memref<4x2x9x9x4xbf16, #tpu.memory_space<vmem>>, vector<1x2x8x8x4xbf16>
    %25 = vector.shape_cast %24 : vector<1x2x8x8x4xbf16> to vector<2x8x8x4xbf16>
    %26 = vector.shape_cast %25 : vector<2x8x8x4xbf16> to vector<128x4xbf16>
    %c1_41 = arith.constant 1 : index
    %c0_42 = arith.constant 0 : index
    %c1_43 = arith.constant 1 : index
    %c0_44 = arith.constant 0 : index
    %c0_45 = arith.constant 0 : index
    %27 = vector.load %arg1[%c1_41, %c0_42, %c1_43, %c0_44, %c0_45] : memref<4x2x9x9x4xbf16, #tpu.memory_space<vmem>>, vector<1x2x8x8x4xbf16>
    %28 = vector.shape_cast %27 : vector<1x2x8x8x4xbf16> to vector<2x8x8x4xbf16>
    %29 = vector.shape_cast %28 : vector<2x8x8x4xbf16> to vector<128x4xbf16>
    %c0_46 = arith.constant 0 : index
    %c0_47 = arith.constant 0 : index
    %c1_48 = arith.constant 1 : index
    %c1_49 = arith.constant 1 : index
    %c0_50 = arith.constant 0 : index
    %30 = vector.load %arg1[%c0_46, %c0_47, %c1_48, %c1_49, %c0_50] : memref<4x2x9x9x4xbf16, #tpu.memory_space<vmem>>, vector<1x2x8x8x4xbf16>
    %31 = vector.shape_cast %30 : vector<1x2x8x8x4xbf16> to vector<2x8x8x4xbf16>
    %32 = vector.shape_cast %31 : vector<2x8x8x4xbf16> to vector<128x4xbf16>
    %c1_51 = arith.constant 1 : index
    %c0_52 = arith.constant 0 : index
    %c1_53 = arith.constant 1 : index
    %c1_54 = arith.constant 1 : index
    %c0_55 = arith.constant 0 : index
    %33 = vector.load %arg1[%c1_51, %c0_52, %c1_53, %c1_54, %c0_55] : memref<4x2x9x9x4xbf16, #tpu.memory_space<vmem>>, vector<1x2x8x8x4xbf16>
    %34 = vector.shape_cast %33 : vector<1x2x8x8x4xbf16> to vector<2x8x8x4xbf16>
    %35 = vector.shape_cast %34 : vector<2x8x8x4xbf16> to vector<128x4xbf16>
    %c2_56 = arith.constant 2 : index
    %c0_57 = arith.constant 0 : index
    %c1_58 = arith.constant 1 : index
    %c0_59 = arith.constant 0 : index
    %c0_60 = arith.constant 0 : index
    %36 = vector.load %arg1[%c2_56, %c0_57, %c1_58, %c0_59, %c0_60] : memref<4x2x9x9x4xbf16, #tpu.memory_space<vmem>>, vector<1x2x8x8x4xbf16>
    %37 = vector.shape_cast %36 : vector<1x2x8x8x4xbf16> to vector<2x8x8x4xbf16>
    %38 = vector.shape_cast %37 : vector<2x8x8x4xbf16> to vector<128x4xbf16>
    %c3_61 = arith.constant 3 : index
    %c0_62 = arith.constant 0 : index
    %c1_63 = arith.constant 1 : index
    %c0_64 = arith.constant 0 : index
    %c0_65 = arith.constant 0 : index
    %39 = vector.load %arg1[%c3_61, %c0_62, %c1_63, %c0_64, %c0_65] : memref<4x2x9x9x4xbf16, #tpu.memory_space<vmem>>, vector<1x2x8x8x4xbf16>
    %40 = vector.shape_cast %39 : vector<1x2x8x8x4xbf16> to vector<2x8x8x4xbf16>
    %41 = vector.shape_cast %40 : vector<2x8x8x4xbf16> to vector<128x4xbf16>
    %c2_66 = arith.constant 2 : index
    %c0_67 = arith.constant 0 : index
    %c1_68 = arith.constant 1 : index
    %c1_69 = arith.constant 1 : index
    %c0_70 = arith.constant 0 : index
    %42 = vector.load %arg1[%c2_66, %c0_67, %c1_68, %c1_69, %c0_70] : memref<4x2x9x9x4xbf16, #tpu.memory_space<vmem>>, vector<1x2x8x8x4xbf16>
    %43 = vector.shape_cast %42 : vector<1x2x8x8x4xbf16> to vector<2x8x8x4xbf16>
    %44 = vector.shape_cast %43 : vector<2x8x8x4xbf16> to vector<128x4xbf16>
    %c3_71 = arith.constant 3 : index
    %c0_72 = arith.constant 0 : index
    %c1_73 = arith.constant 1 : index
    %c1_74 = arith.constant 1 : index
    %c0_75 = arith.constant 0 : index
    %45 = vector.load %arg1[%c3_71, %c0_72, %c1_73, %c1_74, %c0_75] : memref<4x2x9x9x4xbf16, #tpu.memory_space<vmem>>, vector<1x2x8x8x4xbf16>
    %46 = vector.shape_cast %45 : vector<1x2x8x8x4xbf16> to vector<2x8x8x4xbf16>
    %47 = vector.shape_cast %46 : vector<2x8x8x4xbf16> to vector<128x4xbf16>
    %48 = tpu.concatenate %2, %5, %8, %11, %14, %17, %20, %23, %26, %29, %32, %35, %38, %41, %44, %47 in 1 : vector<128x4xbf16>, vector<128x4xbf16>, vector<128x4xbf16>, vector<128x4xbf16>, vector<128x4xbf16>, vector<128x4xbf16>, vector<128x4xbf16>, vector<128x4xbf16>, vector<128x4xbf16>, vector<128x4xbf16>, vector<128x4xbf16>, vector<128x4xbf16>, vector<128x4xbf16>, vector<128x4xbf16>, vector<128x4xbf16>, vector<128x4xbf16> -> vector<128x64xbf16>
    %c0_76 = arith.constant 0 : index
    %c0_77 = arith.constant 0 : index
    %49 = vector.load %arg2[%c0_76, %c0_77] : memref<64x128xbf16, #tpu.memory_space<vmem>>, vector<64x128xbf16>
    %cst = arith.constant dense<0.000000e+00> : vector<128x128xf32>
    %50 = tpu.matmul %48, %49, %cst {dimension_numbers = #tpu.dot_dimension_numbers<[1], [0], [0], [1], [0, 0, 1, 1], [], []>} : vector<128x64xbf16>, vector<64x128xbf16>, vector<128x128xf32> -> vector<128x128xf32>
    %c0_78 = arith.constant 0 : index
    %c0_79 = arith.constant 0 : index
    %51 = vector.load %arg3[%c0_78, %c0_79] : memref<1x128xf32, #tpu.memory_space<vmem>>, vector<1x128xf32>
    %52 = vector.broadcast %51 : vector<1x128xf32> to vector<128x128xf32>
    %53 = arith.addf %50, %52 : vector<128x128xf32>
    %cst_80 = arith.constant 0.000000e+00 : f32
    %54 = vector.broadcast %cst_80 : f32 to vector<128x128xf32>
    %55 = arith.cmpf ogt, %53, %54 : vector<128x128xf32>
    %cst_81 = arith.constant 2.000000e-01 : f32
    %56 = vector.broadcast %cst_81 : f32 to vector<128x128xf32>
    %57 = arith.mulf %56, %53 : vector<128x128xf32>
    %58 = arith.select %55, %53, %57 : vector<128x128xi1>, vector<128x128xf32>
    %cst_82 = arith.constant dense<0.000000e+00> : vector<128xf32>
    %59 = vector.multi_reduction <add>, %58, %cst_82 [0] : vector<128x128xf32> to vector<128xf32>
    %60 = vector.shape_cast %59 : vector<128xf32> to vector<1x128xf32>
    %cst_83 = arith.constant 7.812500e-03 : f32
    %61 = vector.broadcast %cst_83 : f32 to vector<1x128xf32>
    %62 = arith.mulf %60, %61 : vector<1x128xf32>
    %63 = vector.broadcast %62 : vector<1x128xf32> to vector<128x128xf32>
    %64 = arith.subf %58, %63 : vector<128x128xf32>
    %65 = arith.mulf %64, %64 : vector<128x128xf32>
    %cst_84 = arith.constant dense<0.000000e+00> : vector<128xf32>
    %66 = vector.multi_reduction <add>, %65, %cst_84 [0] : vector<128x128xf32> to vector<128xf32>
    %67 = vector.shape_cast %66 : vector<128xf32> to vector<1x128xf32>
    %68 = arith.truncf %58 : vector<128x128xf32> to vector<128x128xbf16>
    %c0_85 = arith.constant 0 : index
    %c0_86 = arith.constant 0 : index
    %69 = vector.load %arg4[%c0_85, %c0_86] : memref<128x128xbf16, #tpu.memory_space<vmem>>, vector<128x128xbf16>
    tpu.vector_store %arg4[%c0_85, %c0_86], %68 {strides = array<i32>} : memref<128x128xbf16, #tpu.memory_space<vmem>>, vector<128x128xbf16>,
    %cst_87 = arith.constant 0.000000e+00 : f32
    %70 = vector.broadcast %cst_87 : f32 to vector<6x128xf32>
    %71 = tpu.concatenate %60, %67, %70 in 0 : vector<1x128xf32>, vector<1x128xf32>, vector<6x128xf32> -> vector<8x128xf32>
    %c0_88 = arith.constant 0 : index
    %c0_89 = arith.constant 0 : index
    %72 = vector.load %arg5[%c0_88, %c0_89] : memref<8x128xf32, #tpu.memory_space<vmem>>, vector<8x128xf32>
    tpu.vector_store %arg5[%c0_88, %c0_89], %71 {strides = array<i32>} : memref<8x128xf32, #tpu.memory_space<vmem>>, vector<8x128xf32>,
    return
  }
  func.func @transform_0(%arg0: i32) -> (i32, i32, i32, i32, i32) {
    %c0_i32 = arith.constant 0 : i32
    %c0_i32_0 = arith.constant 0 : i32
    %c0_i32_1 = arith.constant 0 : i32
    %c0_i32_2 = arith.constant 0 : i32
    %c0_i32_3 = arith.constant 0 : i32
    return %c0_i32, %arg0, %c0_i32_0, %c0_i32_1, %c0_i32_2 : i32, i32, i32, i32, i32
  }
  func.func @transform_1(%arg0: i32) -> (i32, i32) {
    %c0_i32 = arith.constant 0 : i32
    %c0_i32_0 = arith.constant 0 : i32
    %c0_i32_1 = arith.constant 0 : i32
    return %c0_i32, %c0_i32_0 : i32, i32
  }
  func.func @transform_2(%arg0: i32) -> (i32, i32) {
    %c0_i32 = arith.constant 0 : i32
    %c0_i32_0 = arith.constant 0 : i32
    %c0_i32_1 = arith.constant 0 : i32
    return %c0_i32, %c0_i32_0 : i32, i32
  }
  func.func @transform_3(%arg0: i32) -> (i32, i32) {
    %c0_i32 = arith.constant 0 : i32
    %c0_i32_0 = arith.constant 0 : i32
    return %arg0, %c0_i32 : i32, i32
  }
  func.func @transform_4(%arg0: i32) -> (i32, i32) {
    %c0_i32 = arith.constant 0 : i32
    %c0_i32_0 = arith.constant 0 : i32
    return %arg0, %c0_i32 : i32, i32
  }
}

module attributes {stable_mosaic.version = 11 : i64} {
  func.func @_conv_lrelu_kernel(%arg0: i32, %arg1: memref<4x2x5x5x8xbf16, #tpu.memory_space<vmem>>, %arg2: memref<128x128xbf16, #tpu.memory_space<vmem>>, %arg3: memref<1x128xf32, #tpu.memory_space<vmem>>, %arg4: memref<32x128xbf16, #tpu.memory_space<vmem>>, %arg5: memref<8x128xf32, #tpu.memory_space<vmem>>) attributes {dimension_semantics = [#tpu.dimension_semantics<parallel>], iteration_bounds = array<i64: 1>, scalar_prefetch = 0 : i64, scratch_operands = 0 : i64, tpu.core_type = #tpu.core_type<tc>, window_params = [{transform_indices = @transform_0, window_bounds = array<i64: 4, 2, 5, 5, 8>}, {pipeline_mode = #tpu.pipeline_mode<synchronous>, transform_indices = @transform_1, window_bounds = array<i64: 128, 128>}, {pipeline_mode = #tpu.pipeline_mode<synchronous>, transform_indices = @transform_2, window_bounds = array<i64: 1, 128>}, {transform_indices = @transform_3, window_bounds = array<i64: 32, 128>}, {transform_indices = @transform_4, window_bounds = array<i64: 8, 128>}]} {
    %c0 = arith.constant 0 : index
    %c0_0 = arith.constant 0 : index
    %c0_1 = arith.constant 0 : index
    %c0_2 = arith.constant 0 : index
    %c0_3 = arith.constant 0 : index
    %0 = vector.load %arg1[%c0, %c0_0, %c0_1, %c0_2, %c0_3] : memref<4x2x5x5x8xbf16, #tpu.memory_space<vmem>>, vector<1x2x4x4x8xbf16>
    %1 = vector.shape_cast %0 : vector<1x2x4x4x8xbf16> to vector<2x4x4x8xbf16>
    %2 = vector.shape_cast %1 : vector<2x4x4x8xbf16> to vector<32x8xbf16>
    %c1 = arith.constant 1 : index
    %c0_4 = arith.constant 0 : index
    %c0_5 = arith.constant 0 : index
    %c0_6 = arith.constant 0 : index
    %c0_7 = arith.constant 0 : index
    %3 = vector.load %arg1[%c1, %c0_4, %c0_5, %c0_6, %c0_7] : memref<4x2x5x5x8xbf16, #tpu.memory_space<vmem>>, vector<1x2x4x4x8xbf16>
    %4 = vector.shape_cast %3 : vector<1x2x4x4x8xbf16> to vector<2x4x4x8xbf16>
    %5 = vector.shape_cast %4 : vector<2x4x4x8xbf16> to vector<32x8xbf16>
    %c0_8 = arith.constant 0 : index
    %c0_9 = arith.constant 0 : index
    %c0_10 = arith.constant 0 : index
    %c1_11 = arith.constant 1 : index
    %c0_12 = arith.constant 0 : index
    %6 = vector.load %arg1[%c0_8, %c0_9, %c0_10, %c1_11, %c0_12] : memref<4x2x5x5x8xbf16, #tpu.memory_space<vmem>>, vector<1x2x4x4x8xbf16>
    %7 = vector.shape_cast %6 : vector<1x2x4x4x8xbf16> to vector<2x4x4x8xbf16>
    %8 = vector.shape_cast %7 : vector<2x4x4x8xbf16> to vector<32x8xbf16>
    %c1_13 = arith.constant 1 : index
    %c0_14 = arith.constant 0 : index
    %c0_15 = arith.constant 0 : index
    %c1_16 = arith.constant 1 : index
    %c0_17 = arith.constant 0 : index
    %9 = vector.load %arg1[%c1_13, %c0_14, %c0_15, %c1_16, %c0_17] : memref<4x2x5x5x8xbf16, #tpu.memory_space<vmem>>, vector<1x2x4x4x8xbf16>
    %10 = vector.shape_cast %9 : vector<1x2x4x4x8xbf16> to vector<2x4x4x8xbf16>
    %11 = vector.shape_cast %10 : vector<2x4x4x8xbf16> to vector<32x8xbf16>
    %c2 = arith.constant 2 : index
    %c0_18 = arith.constant 0 : index
    %c0_19 = arith.constant 0 : index
    %c0_20 = arith.constant 0 : index
    %c0_21 = arith.constant 0 : index
    %12 = vector.load %arg1[%c2, %c0_18, %c0_19, %c0_20, %c0_21] : memref<4x2x5x5x8xbf16, #tpu.memory_space<vmem>>, vector<1x2x4x4x8xbf16>
    %13 = vector.shape_cast %12 : vector<1x2x4x4x8xbf16> to vector<2x4x4x8xbf16>
    %14 = vector.shape_cast %13 : vector<2x4x4x8xbf16> to vector<32x8xbf16>
    %c3 = arith.constant 3 : index
    %c0_22 = arith.constant 0 : index
    %c0_23 = arith.constant 0 : index
    %c0_24 = arith.constant 0 : index
    %c0_25 = arith.constant 0 : index
    %15 = vector.load %arg1[%c3, %c0_22, %c0_23, %c0_24, %c0_25] : memref<4x2x5x5x8xbf16, #tpu.memory_space<vmem>>, vector<1x2x4x4x8xbf16>
    %16 = vector.shape_cast %15 : vector<1x2x4x4x8xbf16> to vector<2x4x4x8xbf16>
    %17 = vector.shape_cast %16 : vector<2x4x4x8xbf16> to vector<32x8xbf16>
    %c2_26 = arith.constant 2 : index
    %c0_27 = arith.constant 0 : index
    %c0_28 = arith.constant 0 : index
    %c1_29 = arith.constant 1 : index
    %c0_30 = arith.constant 0 : index
    %18 = vector.load %arg1[%c2_26, %c0_27, %c0_28, %c1_29, %c0_30] : memref<4x2x5x5x8xbf16, #tpu.memory_space<vmem>>, vector<1x2x4x4x8xbf16>
    %19 = vector.shape_cast %18 : vector<1x2x4x4x8xbf16> to vector<2x4x4x8xbf16>
    %20 = vector.shape_cast %19 : vector<2x4x4x8xbf16> to vector<32x8xbf16>
    %c3_31 = arith.constant 3 : index
    %c0_32 = arith.constant 0 : index
    %c0_33 = arith.constant 0 : index
    %c1_34 = arith.constant 1 : index
    %c0_35 = arith.constant 0 : index
    %21 = vector.load %arg1[%c3_31, %c0_32, %c0_33, %c1_34, %c0_35] : memref<4x2x5x5x8xbf16, #tpu.memory_space<vmem>>, vector<1x2x4x4x8xbf16>
    %22 = vector.shape_cast %21 : vector<1x2x4x4x8xbf16> to vector<2x4x4x8xbf16>
    %23 = vector.shape_cast %22 : vector<2x4x4x8xbf16> to vector<32x8xbf16>
    %c0_36 = arith.constant 0 : index
    %c0_37 = arith.constant 0 : index
    %c1_38 = arith.constant 1 : index
    %c0_39 = arith.constant 0 : index
    %c0_40 = arith.constant 0 : index
    %24 = vector.load %arg1[%c0_36, %c0_37, %c1_38, %c0_39, %c0_40] : memref<4x2x5x5x8xbf16, #tpu.memory_space<vmem>>, vector<1x2x4x4x8xbf16>
    %25 = vector.shape_cast %24 : vector<1x2x4x4x8xbf16> to vector<2x4x4x8xbf16>
    %26 = vector.shape_cast %25 : vector<2x4x4x8xbf16> to vector<32x8xbf16>
    %c1_41 = arith.constant 1 : index
    %c0_42 = arith.constant 0 : index
    %c1_43 = arith.constant 1 : index
    %c0_44 = arith.constant 0 : index
    %c0_45 = arith.constant 0 : index
    %27 = vector.load %arg1[%c1_41, %c0_42, %c1_43, %c0_44, %c0_45] : memref<4x2x5x5x8xbf16, #tpu.memory_space<vmem>>, vector<1x2x4x4x8xbf16>
    %28 = vector.shape_cast %27 : vector<1x2x4x4x8xbf16> to vector<2x4x4x8xbf16>
    %29 = vector.shape_cast %28 : vector<2x4x4x8xbf16> to vector<32x8xbf16>
    %c0_46 = arith.constant 0 : index
    %c0_47 = arith.constant 0 : index
    %c1_48 = arith.constant 1 : index
    %c1_49 = arith.constant 1 : index
    %c0_50 = arith.constant 0 : index
    %30 = vector.load %arg1[%c0_46, %c0_47, %c1_48, %c1_49, %c0_50] : memref<4x2x5x5x8xbf16, #tpu.memory_space<vmem>>, vector<1x2x4x4x8xbf16>
    %31 = vector.shape_cast %30 : vector<1x2x4x4x8xbf16> to vector<2x4x4x8xbf16>
    %32 = vector.shape_cast %31 : vector<2x4x4x8xbf16> to vector<32x8xbf16>
    %c1_51 = arith.constant 1 : index
    %c0_52 = arith.constant 0 : index
    %c1_53 = arith.constant 1 : index
    %c1_54 = arith.constant 1 : index
    %c0_55 = arith.constant 0 : index
    %33 = vector.load %arg1[%c1_51, %c0_52, %c1_53, %c1_54, %c0_55] : memref<4x2x5x5x8xbf16, #tpu.memory_space<vmem>>, vector<1x2x4x4x8xbf16>
    %34 = vector.shape_cast %33 : vector<1x2x4x4x8xbf16> to vector<2x4x4x8xbf16>
    %35 = vector.shape_cast %34 : vector<2x4x4x8xbf16> to vector<32x8xbf16>
    %c2_56 = arith.constant 2 : index
    %c0_57 = arith.constant 0 : index
    %c1_58 = arith.constant 1 : index
    %c0_59 = arith.constant 0 : index
    %c0_60 = arith.constant 0 : index
    %36 = vector.load %arg1[%c2_56, %c0_57, %c1_58, %c0_59, %c0_60] : memref<4x2x5x5x8xbf16, #tpu.memory_space<vmem>>, vector<1x2x4x4x8xbf16>
    %37 = vector.shape_cast %36 : vector<1x2x4x4x8xbf16> to vector<2x4x4x8xbf16>
    %38 = vector.shape_cast %37 : vector<2x4x4x8xbf16> to vector<32x8xbf16>
    %c3_61 = arith.constant 3 : index
    %c0_62 = arith.constant 0 : index
    %c1_63 = arith.constant 1 : index
    %c0_64 = arith.constant 0 : index
    %c0_65 = arith.constant 0 : index
    %39 = vector.load %arg1[%c3_61, %c0_62, %c1_63, %c0_64, %c0_65] : memref<4x2x5x5x8xbf16, #tpu.memory_space<vmem>>, vector<1x2x4x4x8xbf16>
    %40 = vector.shape_cast %39 : vector<1x2x4x4x8xbf16> to vector<2x4x4x8xbf16>
    %41 = vector.shape_cast %40 : vector<2x4x4x8xbf16> to vector<32x8xbf16>
    %c2_66 = arith.constant 2 : index
    %c0_67 = arith.constant 0 : index
    %c1_68 = arith.constant 1 : index
    %c1_69 = arith.constant 1 : index
    %c0_70 = arith.constant 0 : index
    %42 = vector.load %arg1[%c2_66, %c0_67, %c1_68, %c1_69, %c0_70] : memref<4x2x5x5x8xbf16, #tpu.memory_space<vmem>>, vector<1x2x4x4x8xbf16>
    %43 = vector.shape_cast %42 : vector<1x2x4x4x8xbf16> to vector<2x4x4x8xbf16>
    %44 = vector.shape_cast %43 : vector<2x4x4x8xbf16> to vector<32x8xbf16>
    %c3_71 = arith.constant 3 : index
    %c0_72 = arith.constant 0 : index
    %c1_73 = arith.constant 1 : index
    %c1_74 = arith.constant 1 : index
    %c0_75 = arith.constant 0 : index
    %45 = vector.load %arg1[%c3_71, %c0_72, %c1_73, %c1_74, %c0_75] : memref<4x2x5x5x8xbf16, #tpu.memory_space<vmem>>, vector<1x2x4x4x8xbf16>
    %46 = vector.shape_cast %45 : vector<1x2x4x4x8xbf16> to vector<2x4x4x8xbf16>
    %47 = vector.shape_cast %46 : vector<2x4x4x8xbf16> to vector<32x8xbf16>
    %48 = tpu.concatenate %2, %5, %8, %11, %14, %17, %20, %23, %26, %29, %32, %35, %38, %41, %44, %47 in 1 : vector<32x8xbf16>, vector<32x8xbf16>, vector<32x8xbf16>, vector<32x8xbf16>, vector<32x8xbf16>, vector<32x8xbf16>, vector<32x8xbf16>, vector<32x8xbf16>, vector<32x8xbf16>, vector<32x8xbf16>, vector<32x8xbf16>, vector<32x8xbf16>, vector<32x8xbf16>, vector<32x8xbf16>, vector<32x8xbf16>, vector<32x8xbf16> -> vector<32x128xbf16>
    %c0_76 = arith.constant 0 : index
    %c0_77 = arith.constant 0 : index
    %49 = vector.load %arg2[%c0_76, %c0_77] : memref<128x128xbf16, #tpu.memory_space<vmem>>, vector<128x128xbf16>
    %cst = arith.constant dense<0.000000e+00> : vector<32x128xf32>
    %50 = tpu.matmul %48, %49, %cst {dimension_numbers = #tpu.dot_dimension_numbers<[1], [0], [0], [1], [0, 0, 1, 1], [], []>} : vector<32x128xbf16>, vector<128x128xbf16>, vector<32x128xf32> -> vector<32x128xf32>
    %c0_78 = arith.constant 0 : index
    %c0_79 = arith.constant 0 : index
    %51 = vector.load %arg3[%c0_78, %c0_79] : memref<1x128xf32, #tpu.memory_space<vmem>>, vector<1x128xf32>
    %52 = vector.broadcast %51 : vector<1x128xf32> to vector<32x128xf32>
    %53 = arith.addf %50, %52 : vector<32x128xf32>
    %cst_80 = arith.constant 0.000000e+00 : f32
    %54 = vector.broadcast %cst_80 : f32 to vector<32x128xf32>
    %55 = arith.cmpf ogt, %53, %54 : vector<32x128xf32>
    %cst_81 = arith.constant 2.000000e-01 : f32
    %56 = vector.broadcast %cst_81 : f32 to vector<32x128xf32>
    %57 = arith.mulf %56, %53 : vector<32x128xf32>
    %58 = arith.select %55, %53, %57 : vector<32x128xi1>, vector<32x128xf32>
    %cst_82 = arith.constant dense<0.000000e+00> : vector<128xf32>
    %59 = vector.multi_reduction <add>, %58, %cst_82 [0] : vector<32x128xf32> to vector<128xf32>
    %60 = vector.shape_cast %59 : vector<128xf32> to vector<1x128xf32>
    %cst_83 = arith.constant 3.125000e-02 : f32
    %61 = vector.broadcast %cst_83 : f32 to vector<1x128xf32>
    %62 = arith.mulf %60, %61 : vector<1x128xf32>
    %63 = vector.broadcast %62 : vector<1x128xf32> to vector<32x128xf32>
    %64 = arith.subf %58, %63 : vector<32x128xf32>
    %65 = arith.mulf %64, %64 : vector<32x128xf32>
    %cst_84 = arith.constant dense<0.000000e+00> : vector<128xf32>
    %66 = vector.multi_reduction <add>, %65, %cst_84 [0] : vector<32x128xf32> to vector<128xf32>
    %67 = vector.shape_cast %66 : vector<128xf32> to vector<1x128xf32>
    %68 = arith.truncf %58 : vector<32x128xf32> to vector<32x128xbf16>
    %c0_85 = arith.constant 0 : index
    %c0_86 = arith.constant 0 : index
    %69 = vector.load %arg4[%c0_85, %c0_86] : memref<32x128xbf16, #tpu.memory_space<vmem>>, vector<32x128xbf16>
    tpu.vector_store %arg4[%c0_85, %c0_86], %68 {strides = array<i32>} : memref<32x128xbf16, #tpu.memory_space<vmem>>, vector<32x128xbf16>,
    %cst_87 = arith.constant 0.000000e+00 : f32
    %70 = vector.broadcast %cst_87 : f32 to vector<6x128xf32>
    %71 = tpu.concatenate %60, %67, %70 in 0 : vector<1x128xf32>, vector<1x128xf32>, vector<6x128xf32> -> vector<8x128xf32>
    %c0_88 = arith.constant 0 : index
    %c0_89 = arith.constant 0 : index
    %72 = vector.load %arg5[%c0_88, %c0_89] : memref<8x128xf32, #tpu.memory_space<vmem>>, vector<8x128xf32>
    tpu.vector_store %arg5[%c0_88, %c0_89], %71 {strides = array<i32>} : memref<8x128xf32, #tpu.memory_space<vmem>>, vector<8x128xf32>,
    return
  }
  func.func @transform_0(%arg0: i32) -> (i32, i32, i32, i32, i32) {
    %c0_i32 = arith.constant 0 : i32
    %c0_i32_0 = arith.constant 0 : i32
    %c0_i32_1 = arith.constant 0 : i32
    %c0_i32_2 = arith.constant 0 : i32
    %c0_i32_3 = arith.constant 0 : i32
    return %c0_i32, %arg0, %c0_i32_0, %c0_i32_1, %c0_i32_2 : i32, i32, i32, i32, i32
  }
  func.func @transform_1(%arg0: i32) -> (i32, i32) {
    %c0_i32 = arith.constant 0 : i32
    %c0_i32_0 = arith.constant 0 : i32
    %c0_i32_1 = arith.constant 0 : i32
    return %c0_i32, %c0_i32_0 : i32, i32
  }
  func.func @transform_2(%arg0: i32) -> (i32, i32) {
    %c0_i32 = arith.constant 0 : i32
    %c0_i32_0 = arith.constant 0 : i32
    %c0_i32_1 = arith.constant 0 : i32
    return %c0_i32, %c0_i32_0 : i32, i32
  }
  func.func @transform_3(%arg0: i32) -> (i32, i32) {
    %c0_i32 = arith.constant 0 : i32
    %c0_i32_0 = arith.constant 0 : i32
    return %arg0, %c0_i32 : i32, i32
  }
  func.func @transform_4(%arg0: i32) -> (i32, i32) {
    %c0_i32 = arith.constant 0 : i32
    %c0_i32_0 = arith.constant 0 : i32
    return %arg0, %c0_i32 : i32, i32
  }
}

module attributes {stable_mosaic.version = 11 : i64} {
  func.func @_conv_lrelu_kernel(%arg0: i32, %arg1: memref<4x2x3x3x16xbf16, #tpu.memory_space<vmem>>, %arg2: memref<256x128xbf16, #tpu.memory_space<vmem>>, %arg3: memref<1x128xf32, #tpu.memory_space<vmem>>, %arg4: memref<8x128xbf16, #tpu.memory_space<vmem>>, %arg5: memref<8x128xf32, #tpu.memory_space<vmem>>) attributes {dimension_semantics = [#tpu.dimension_semantics<parallel>], iteration_bounds = array<i64: 1>, scalar_prefetch = 0 : i64, scratch_operands = 0 : i64, tpu.core_type = #tpu.core_type<tc>, window_params = [{transform_indices = @transform_0, window_bounds = array<i64: 4, 2, 3, 3, 16>}, {pipeline_mode = #tpu.pipeline_mode<synchronous>, transform_indices = @transform_1, window_bounds = array<i64: 256, 128>}, {pipeline_mode = #tpu.pipeline_mode<synchronous>, transform_indices = @transform_2, window_bounds = array<i64: 1, 128>}, {transform_indices = @transform_3, window_bounds = array<i64: 8, 128>}, {transform_indices = @transform_4, window_bounds = array<i64: 8, 128>}]} {
    %c0 = arith.constant 0 : index
    %c0_0 = arith.constant 0 : index
    %c0_1 = arith.constant 0 : index
    %c0_2 = arith.constant 0 : index
    %c0_3 = arith.constant 0 : index
    %0 = vector.load %arg1[%c0, %c0_0, %c0_1, %c0_2, %c0_3] : memref<4x2x3x3x16xbf16, #tpu.memory_space<vmem>>, vector<1x2x2x2x16xbf16>
    %1 = vector.shape_cast %0 : vector<1x2x2x2x16xbf16> to vector<2x2x2x16xbf16>
    %2 = vector.shape_cast %1 : vector<2x2x2x16xbf16> to vector<8x16xbf16>
    %c1 = arith.constant 1 : index
    %c0_4 = arith.constant 0 : index
    %c0_5 = arith.constant 0 : index
    %c0_6 = arith.constant 0 : index
    %c0_7 = arith.constant 0 : index
    %3 = vector.load %arg1[%c1, %c0_4, %c0_5, %c0_6, %c0_7] : memref<4x2x3x3x16xbf16, #tpu.memory_space<vmem>>, vector<1x2x2x2x16xbf16>
    %4 = vector.shape_cast %3 : vector<1x2x2x2x16xbf16> to vector<2x2x2x16xbf16>
    %5 = vector.shape_cast %4 : vector<2x2x2x16xbf16> to vector<8x16xbf16>
    %c0_8 = arith.constant 0 : index
    %c0_9 = arith.constant 0 : index
    %c0_10 = arith.constant 0 : index
    %c1_11 = arith.constant 1 : index
    %c0_12 = arith.constant 0 : index
    %6 = vector.load %arg1[%c0_8, %c0_9, %c0_10, %c1_11, %c0_12] : memref<4x2x3x3x16xbf16, #tpu.memory_space<vmem>>, vector<1x2x2x2x16xbf16>
    %7 = vector.shape_cast %6 : vector<1x2x2x2x16xbf16> to vector<2x2x2x16xbf16>
    %8 = vector.shape_cast %7 : vector<2x2x2x16xbf16> to vector<8x16xbf16>
    %c1_13 = arith.constant 1 : index
    %c0_14 = arith.constant 0 : index
    %c0_15 = arith.constant 0 : index
    %c1_16 = arith.constant 1 : index
    %c0_17 = arith.constant 0 : index
    %9 = vector.load %arg1[%c1_13, %c0_14, %c0_15, %c1_16, %c0_17] : memref<4x2x3x3x16xbf16, #tpu.memory_space<vmem>>, vector<1x2x2x2x16xbf16>
    %10 = vector.shape_cast %9 : vector<1x2x2x2x16xbf16> to vector<2x2x2x16xbf16>
    %11 = vector.shape_cast %10 : vector<2x2x2x16xbf16> to vector<8x16xbf16>
    %c2 = arith.constant 2 : index
    %c0_18 = arith.constant 0 : index
    %c0_19 = arith.constant 0 : index
    %c0_20 = arith.constant 0 : index
    %c0_21 = arith.constant 0 : index
    %12 = vector.load %arg1[%c2, %c0_18, %c0_19, %c0_20, %c0_21] : memref<4x2x3x3x16xbf16, #tpu.memory_space<vmem>>, vector<1x2x2x2x16xbf16>
    %13 = vector.shape_cast %12 : vector<1x2x2x2x16xbf16> to vector<2x2x2x16xbf16>
    %14 = vector.shape_cast %13 : vector<2x2x2x16xbf16> to vector<8x16xbf16>
    %c3 = arith.constant 3 : index
    %c0_22 = arith.constant 0 : index
    %c0_23 = arith.constant 0 : index
    %c0_24 = arith.constant 0 : index
    %c0_25 = arith.constant 0 : index
    %15 = vector.load %arg1[%c3, %c0_22, %c0_23, %c0_24, %c0_25] : memref<4x2x3x3x16xbf16, #tpu.memory_space<vmem>>, vector<1x2x2x2x16xbf16>
    %16 = vector.shape_cast %15 : vector<1x2x2x2x16xbf16> to vector<2x2x2x16xbf16>
    %17 = vector.shape_cast %16 : vector<2x2x2x16xbf16> to vector<8x16xbf16>
    %c2_26 = arith.constant 2 : index
    %c0_27 = arith.constant 0 : index
    %c0_28 = arith.constant 0 : index
    %c1_29 = arith.constant 1 : index
    %c0_30 = arith.constant 0 : index
    %18 = vector.load %arg1[%c2_26, %c0_27, %c0_28, %c1_29, %c0_30] : memref<4x2x3x3x16xbf16, #tpu.memory_space<vmem>>, vector<1x2x2x2x16xbf16>
    %19 = vector.shape_cast %18 : vector<1x2x2x2x16xbf16> to vector<2x2x2x16xbf16>
    %20 = vector.shape_cast %19 : vector<2x2x2x16xbf16> to vector<8x16xbf16>
    %c3_31 = arith.constant 3 : index
    %c0_32 = arith.constant 0 : index
    %c0_33 = arith.constant 0 : index
    %c1_34 = arith.constant 1 : index
    %c0_35 = arith.constant 0 : index
    %21 = vector.load %arg1[%c3_31, %c0_32, %c0_33, %c1_34, %c0_35] : memref<4x2x3x3x16xbf16, #tpu.memory_space<vmem>>, vector<1x2x2x2x16xbf16>
    %22 = vector.shape_cast %21 : vector<1x2x2x2x16xbf16> to vector<2x2x2x16xbf16>
    %23 = vector.shape_cast %22 : vector<2x2x2x16xbf16> to vector<8x16xbf16>
    %c0_36 = arith.constant 0 : index
    %c0_37 = arith.constant 0 : index
    %c1_38 = arith.constant 1 : index
    %c0_39 = arith.constant 0 : index
    %c0_40 = arith.constant 0 : index
    %24 = vector.load %arg1[%c0_36, %c0_37, %c1_38, %c0_39, %c0_40] : memref<4x2x3x3x16xbf16, #tpu.memory_space<vmem>>, vector<1x2x2x2x16xbf16>
    %25 = vector.shape_cast %24 : vector<1x2x2x2x16xbf16> to vector<2x2x2x16xbf16>
    %26 = vector.shape_cast %25 : vector<2x2x2x16xbf16> to vector<8x16xbf16>
    %c1_41 = arith.constant 1 : index
    %c0_42 = arith.constant 0 : index
    %c1_43 = arith.constant 1 : index
    %c0_44 = arith.constant 0 : index
    %c0_45 = arith.constant 0 : index
    %27 = vector.load %arg1[%c1_41, %c0_42, %c1_43, %c0_44, %c0_45] : memref<4x2x3x3x16xbf16, #tpu.memory_space<vmem>>, vector<1x2x2x2x16xbf16>
    %28 = vector.shape_cast %27 : vector<1x2x2x2x16xbf16> to vector<2x2x2x16xbf16>
    %29 = vector.shape_cast %28 : vector<2x2x2x16xbf16> to vector<8x16xbf16>
    %c0_46 = arith.constant 0 : index
    %c0_47 = arith.constant 0 : index
    %c1_48 = arith.constant 1 : index
    %c1_49 = arith.constant 1 : index
    %c0_50 = arith.constant 0 : index
    %30 = vector.load %arg1[%c0_46, %c0_47, %c1_48, %c1_49, %c0_50] : memref<4x2x3x3x16xbf16, #tpu.memory_space<vmem>>, vector<1x2x2x2x16xbf16>
    %31 = vector.shape_cast %30 : vector<1x2x2x2x16xbf16> to vector<2x2x2x16xbf16>
    %32 = vector.shape_cast %31 : vector<2x2x2x16xbf16> to vector<8x16xbf16>
    %c1_51 = arith.constant 1 : index
    %c0_52 = arith.constant 0 : index
    %c1_53 = arith.constant 1 : index
    %c1_54 = arith.constant 1 : index
    %c0_55 = arith.constant 0 : index
    %33 = vector.load %arg1[%c1_51, %c0_52, %c1_53, %c1_54, %c0_55] : memref<4x2x3x3x16xbf16, #tpu.memory_space<vmem>>, vector<1x2x2x2x16xbf16>
    %34 = vector.shape_cast %33 : vector<1x2x2x2x16xbf16> to vector<2x2x2x16xbf16>
    %35 = vector.shape_cast %34 : vector<2x2x2x16xbf16> to vector<8x16xbf16>
    %c2_56 = arith.constant 2 : index
    %c0_57 = arith.constant 0 : index
    %c1_58 = arith.constant 1 : index
    %c0_59 = arith.constant 0 : index
    %c0_60 = arith.constant 0 : index
    %36 = vector.load %arg1[%c2_56, %c0_57, %c1_58, %c0_59, %c0_60] : memref<4x2x3x3x16xbf16, #tpu.memory_space<vmem>>, vector<1x2x2x2x16xbf16>
    %37 = vector.shape_cast %36 : vector<1x2x2x2x16xbf16> to vector<2x2x2x16xbf16>
    %38 = vector.shape_cast %37 : vector<2x2x2x16xbf16> to vector<8x16xbf16>
    %c3_61 = arith.constant 3 : index
    %c0_62 = arith.constant 0 : index
    %c1_63 = arith.constant 1 : index
    %c0_64 = arith.constant 0 : index
    %c0_65 = arith.constant 0 : index
    %39 = vector.load %arg1[%c3_61, %c0_62, %c1_63, %c0_64, %c0_65] : memref<4x2x3x3x16xbf16, #tpu.memory_space<vmem>>, vector<1x2x2x2x16xbf16>
    %40 = vector.shape_cast %39 : vector<1x2x2x2x16xbf16> to vector<2x2x2x16xbf16>
    %41 = vector.shape_cast %40 : vector<2x2x2x16xbf16> to vector<8x16xbf16>
    %c2_66 = arith.constant 2 : index
    %c0_67 = arith.constant 0 : index
    %c1_68 = arith.constant 1 : index
    %c1_69 = arith.constant 1 : index
    %c0_70 = arith.constant 0 : index
    %42 = vector.load %arg1[%c2_66, %c0_67, %c1_68, %c1_69, %c0_70] : memref<4x2x3x3x16xbf16, #tpu.memory_space<vmem>>, vector<1x2x2x2x16xbf16>
    %43 = vector.shape_cast %42 : vector<1x2x2x2x16xbf16> to vector<2x2x2x16xbf16>
    %44 = vector.shape_cast %43 : vector<2x2x2x16xbf16> to vector<8x16xbf16>
    %c3_71 = arith.constant 3 : index
    %c0_72 = arith.constant 0 : index
    %c1_73 = arith.constant 1 : index
    %c1_74 = arith.constant 1 : index
    %c0_75 = arith.constant 0 : index
    %45 = vector.load %arg1[%c3_71, %c0_72, %c1_73, %c1_74, %c0_75] : memref<4x2x3x3x16xbf16, #tpu.memory_space<vmem>>, vector<1x2x2x2x16xbf16>
    %46 = vector.shape_cast %45 : vector<1x2x2x2x16xbf16> to vector<2x2x2x16xbf16>
    %47 = vector.shape_cast %46 : vector<2x2x2x16xbf16> to vector<8x16xbf16>
    %48 = tpu.concatenate %2, %5, %8, %11, %14, %17, %20, %23, %26, %29, %32, %35, %38, %41, %44, %47 in 1 : vector<8x16xbf16>, vector<8x16xbf16>, vector<8x16xbf16>, vector<8x16xbf16>, vector<8x16xbf16>, vector<8x16xbf16>, vector<8x16xbf16>, vector<8x16xbf16>, vector<8x16xbf16>, vector<8x16xbf16>, vector<8x16xbf16>, vector<8x16xbf16>, vector<8x16xbf16>, vector<8x16xbf16>, vector<8x16xbf16>, vector<8x16xbf16> -> vector<8x256xbf16>
    %c0_76 = arith.constant 0 : index
    %c0_77 = arith.constant 0 : index
    %49 = vector.load %arg2[%c0_76, %c0_77] : memref<256x128xbf16, #tpu.memory_space<vmem>>, vector<256x128xbf16>
    %cst = arith.constant dense<0.000000e+00> : vector<8x128xf32>
    %50 = tpu.matmul %48, %49, %cst {dimension_numbers = #tpu.dot_dimension_numbers<[1], [0], [0], [1], [0, 0, 1, 1], [], []>} : vector<8x256xbf16>, vector<256x128xbf16>, vector<8x128xf32> -> vector<8x128xf32>
    %c0_78 = arith.constant 0 : index
    %c0_79 = arith.constant 0 : index
    %51 = vector.load %arg3[%c0_78, %c0_79] : memref<1x128xf32, #tpu.memory_space<vmem>>, vector<1x128xf32>
    %52 = vector.broadcast %51 : vector<1x128xf32> to vector<8x128xf32>
    %53 = arith.addf %50, %52 : vector<8x128xf32>
    %cst_80 = arith.constant 0.000000e+00 : f32
    %54 = vector.broadcast %cst_80 : f32 to vector<8x128xf32>
    %55 = arith.cmpf ogt, %53, %54 : vector<8x128xf32>
    %cst_81 = arith.constant 2.000000e-01 : f32
    %56 = vector.broadcast %cst_81 : f32 to vector<8x128xf32>
    %57 = arith.mulf %56, %53 : vector<8x128xf32>
    %58 = arith.select %55, %53, %57 : vector<8x128xi1>, vector<8x128xf32>
    %cst_82 = arith.constant dense<0.000000e+00> : vector<128xf32>
    %59 = vector.multi_reduction <add>, %58, %cst_82 [0] : vector<8x128xf32> to vector<128xf32>
    %60 = vector.shape_cast %59 : vector<128xf32> to vector<1x128xf32>
    %cst_83 = arith.constant 1.250000e-01 : f32
    %61 = vector.broadcast %cst_83 : f32 to vector<1x128xf32>
    %62 = arith.mulf %60, %61 : vector<1x128xf32>
    %63 = vector.broadcast %62 : vector<1x128xf32> to vector<8x128xf32>
    %64 = arith.subf %58, %63 : vector<8x128xf32>
    %65 = arith.mulf %64, %64 : vector<8x128xf32>
    %cst_84 = arith.constant dense<0.000000e+00> : vector<128xf32>
    %66 = vector.multi_reduction <add>, %65, %cst_84 [0] : vector<8x128xf32> to vector<128xf32>
    %67 = vector.shape_cast %66 : vector<128xf32> to vector<1x128xf32>
    %68 = arith.truncf %58 : vector<8x128xf32> to vector<8x128xbf16>
    %c0_85 = arith.constant 0 : index
    %c0_86 = arith.constant 0 : index
    %69 = vector.load %arg4[%c0_85, %c0_86] : memref<8x128xbf16, #tpu.memory_space<vmem>>, vector<8x128xbf16>
    tpu.vector_store %arg4[%c0_85, %c0_86], %68 {strides = array<i32>} : memref<8x128xbf16, #tpu.memory_space<vmem>>, vector<8x128xbf16>,
    %cst_87 = arith.constant 0.000000e+00 : f32
    %70 = vector.broadcast %cst_87 : f32 to vector<6x128xf32>
    %71 = tpu.concatenate %60, %67, %70 in 0 : vector<1x128xf32>, vector<1x128xf32>, vector<6x128xf32> -> vector<8x128xf32>
    %c0_88 = arith.constant 0 : index
    %c0_89 = arith.constant 0 : index
    %72 = vector.load %arg5[%c0_88, %c0_89] : memref<8x128xf32, #tpu.memory_space<vmem>>, vector<8x128xf32>
    tpu.vector_store %arg5[%c0_88, %c0_89], %71 {strides = array<i32>} : memref<8x128xf32, #tpu.memory_space<vmem>>, vector<8x128xf32>,
    return
  }
  func.func @transform_0(%arg0: i32) -> (i32, i32, i32, i32, i32) {
    %c0_i32 = arith.constant 0 : i32
    %c0_i32_0 = arith.constant 0 : i32
    %c0_i32_1 = arith.constant 0 : i32
    %c0_i32_2 = arith.constant 0 : i32
    %c0_i32_3 = arith.constant 0 : i32
    return %c0_i32, %arg0, %c0_i32_0, %c0_i32_1, %c0_i32_2 : i32, i32, i32, i32, i32
  }
  func.func @transform_1(%arg0: i32) -> (i32, i32) {
    %c0_i32 = arith.constant 0 : i32
    %c0_i32_0 = arith.constant 0 : i32
    %c0_i32_1 = arith.constant 0 : i32
    return %c0_i32, %c0_i32_0 : i32, i32
  }
  func.func @transform_2(%arg0: i32) -> (i32, i32) {
    %c0_i32 = arith.constant 0 : i32
    %c0_i32_0 = arith.constant 0 : i32
    %c0_i32_1 = arith.constant 0 : i32
    return %c0_i32, %c0_i32_0 : i32, i32
  }
  func.func @transform_3(%arg0: i32) -> (i32, i32) {
    %c0_i32 = arith.constant 0 : i32
    %c0_i32_0 = arith.constant 0 : i32
    return %arg0, %c0_i32 : i32, i32
  }
  func.func @transform_4(%arg0: i32) -> (i32, i32) {
    %c0_i32 = arith.constant 0 : i32
    %c0_i32_0 = arith.constant 0 : i32
    return %arg0, %c0_i32 : i32, i32
  }
}

module attributes {stable_mosaic.version = 11 : i64} {
  func.func @_conv_lrelu_kernel(%arg0: i32, %arg1: memref<4x2x2x2x32xbf16, #tpu.memory_space<vmem>>, %arg2: memref<512x128xbf16, #tpu.memory_space<vmem>>, %arg3: memref<1x128xf32, #tpu.memory_space<vmem>>, %arg4: memref<2x128xbf16, #tpu.memory_space<vmem>>, %arg5: memref<8x128xf32, #tpu.memory_space<vmem>>) attributes {dimension_semantics = [#tpu.dimension_semantics<parallel>], iteration_bounds = array<i64: 1>, scalar_prefetch = 0 : i64, scratch_operands = 0 : i64, tpu.core_type = #tpu.core_type<tc>, window_params = [{transform_indices = @transform_0, window_bounds = array<i64: 4, 2, 2, 2, 32>}, {pipeline_mode = #tpu.pipeline_mode<synchronous>, transform_indices = @transform_1, window_bounds = array<i64: 512, 128>}, {pipeline_mode = #tpu.pipeline_mode<synchronous>, transform_indices = @transform_2, window_bounds = array<i64: 1, 128>}, {transform_indices = @transform_3, window_bounds = array<i64: 2, 128>}, {transform_indices = @transform_4, window_bounds = array<i64: 8, 128>}]} {
    %c0 = arith.constant 0 : index
    %c0_0 = arith.constant 0 : index
    %c0_1 = arith.constant 0 : index
    %c0_2 = arith.constant 0 : index
    %c0_3 = arith.constant 0 : index
    %0 = vector.load %arg1[%c0, %c0_0, %c0_1, %c0_2, %c0_3] : memref<4x2x2x2x32xbf16, #tpu.memory_space<vmem>>, vector<1x2x1x1x32xbf16>
    %1 = vector.shape_cast %0 : vector<1x2x1x1x32xbf16> to vector<2x1x1x32xbf16>
    %2 = vector.shape_cast %1 : vector<2x1x1x32xbf16> to vector<2x32xbf16>
    %c1 = arith.constant 1 : index
    %c0_4 = arith.constant 0 : index
    %c0_5 = arith.constant 0 : index
    %c0_6 = arith.constant 0 : index
    %c0_7 = arith.constant 0 : index
    %3 = vector.load %arg1[%c1, %c0_4, %c0_5, %c0_6, %c0_7] : memref<4x2x2x2x32xbf16, #tpu.memory_space<vmem>>, vector<1x2x1x1x32xbf16>
    %4 = vector.shape_cast %3 : vector<1x2x1x1x32xbf16> to vector<2x1x1x32xbf16>
    %5 = vector.shape_cast %4 : vector<2x1x1x32xbf16> to vector<2x32xbf16>
    %c0_8 = arith.constant 0 : index
    %c0_9 = arith.constant 0 : index
    %c0_10 = arith.constant 0 : index
    %c1_11 = arith.constant 1 : index
    %c0_12 = arith.constant 0 : index
    %6 = vector.load %arg1[%c0_8, %c0_9, %c0_10, %c1_11, %c0_12] : memref<4x2x2x2x32xbf16, #tpu.memory_space<vmem>>, vector<1x2x1x1x32xbf16>
    %7 = vector.shape_cast %6 : vector<1x2x1x1x32xbf16> to vector<2x1x1x32xbf16>
    %8 = vector.shape_cast %7 : vector<2x1x1x32xbf16> to vector<2x32xbf16>
    %c1_13 = arith.constant 1 : index
    %c0_14 = arith.constant 0 : index
    %c0_15 = arith.constant 0 : index
    %c1_16 = arith.constant 1 : index
    %c0_17 = arith.constant 0 : index
    %9 = vector.load %arg1[%c1_13, %c0_14, %c0_15, %c1_16, %c0_17] : memref<4x2x2x2x32xbf16, #tpu.memory_space<vmem>>, vector<1x2x1x1x32xbf16>
    %10 = vector.shape_cast %9 : vector<1x2x1x1x32xbf16> to vector<2x1x1x32xbf16>
    %11 = vector.shape_cast %10 : vector<2x1x1x32xbf16> to vector<2x32xbf16>
    %c2 = arith.constant 2 : index
    %c0_18 = arith.constant 0 : index
    %c0_19 = arith.constant 0 : index
    %c0_20 = arith.constant 0 : index
    %c0_21 = arith.constant 0 : index
    %12 = vector.load %arg1[%c2, %c0_18, %c0_19, %c0_20, %c0_21] : memref<4x2x2x2x32xbf16, #tpu.memory_space<vmem>>, vector<1x2x1x1x32xbf16>
    %13 = vector.shape_cast %12 : vector<1x2x1x1x32xbf16> to vector<2x1x1x32xbf16>
    %14 = vector.shape_cast %13 : vector<2x1x1x32xbf16> to vector<2x32xbf16>
    %c3 = arith.constant 3 : index
    %c0_22 = arith.constant 0 : index
    %c0_23 = arith.constant 0 : index
    %c0_24 = arith.constant 0 : index
    %c0_25 = arith.constant 0 : index
    %15 = vector.load %arg1[%c3, %c0_22, %c0_23, %c0_24, %c0_25] : memref<4x2x2x2x32xbf16, #tpu.memory_space<vmem>>, vector<1x2x1x1x32xbf16>
    %16 = vector.shape_cast %15 : vector<1x2x1x1x32xbf16> to vector<2x1x1x32xbf16>
    %17 = vector.shape_cast %16 : vector<2x1x1x32xbf16> to vector<2x32xbf16>
    %c2_26 = arith.constant 2 : index
    %c0_27 = arith.constant 0 : index
    %c0_28 = arith.constant 0 : index
    %c1_29 = arith.constant 1 : index
    %c0_30 = arith.constant 0 : index
    %18 = vector.load %arg1[%c2_26, %c0_27, %c0_28, %c1_29, %c0_30] : memref<4x2x2x2x32xbf16, #tpu.memory_space<vmem>>, vector<1x2x1x1x32xbf16>
    %19 = vector.shape_cast %18 : vector<1x2x1x1x32xbf16> to vector<2x1x1x32xbf16>
    %20 = vector.shape_cast %19 : vector<2x1x1x32xbf16> to vector<2x32xbf16>
    %c3_31 = arith.constant 3 : index
    %c0_32 = arith.constant 0 : index
    %c0_33 = arith.constant 0 : index
    %c1_34 = arith.constant 1 : index
    %c0_35 = arith.constant 0 : index
    %21 = vector.load %arg1[%c3_31, %c0_32, %c0_33, %c1_34, %c0_35] : memref<4x2x2x2x32xbf16, #tpu.memory_space<vmem>>, vector<1x2x1x1x32xbf16>
    %22 = vector.shape_cast %21 : vector<1x2x1x1x32xbf16> to vector<2x1x1x32xbf16>
    %23 = vector.shape_cast %22 : vector<2x1x1x32xbf16> to vector<2x32xbf16>
    %c0_36 = arith.constant 0 : index
    %c0_37 = arith.constant 0 : index
    %c1_38 = arith.constant 1 : index
    %c0_39 = arith.constant 0 : index
    %c0_40 = arith.constant 0 : index
    %24 = vector.load %arg1[%c0_36, %c0_37, %c1_38, %c0_39, %c0_40] : memref<4x2x2x2x32xbf16, #tpu.memory_space<vmem>>, vector<1x2x1x1x32xbf16>
    %25 = vector.shape_cast %24 : vector<1x2x1x1x32xbf16> to vector<2x1x1x32xbf16>
    %26 = vector.shape_cast %25 : vector<2x1x1x32xbf16> to vector<2x32xbf16>
    %c1_41 = arith.constant 1 : index
    %c0_42 = arith.constant 0 : index
    %c1_43 = arith.constant 1 : index
    %c0_44 = arith.constant 0 : index
    %c0_45 = arith.constant 0 : index
    %27 = vector.load %arg1[%c1_41, %c0_42, %c1_43, %c0_44, %c0_45] : memref<4x2x2x2x32xbf16, #tpu.memory_space<vmem>>, vector<1x2x1x1x32xbf16>
    %28 = vector.shape_cast %27 : vector<1x2x1x1x32xbf16> to vector<2x1x1x32xbf16>
    %29 = vector.shape_cast %28 : vector<2x1x1x32xbf16> to vector<2x32xbf16>
    %c0_46 = arith.constant 0 : index
    %c0_47 = arith.constant 0 : index
    %c1_48 = arith.constant 1 : index
    %c1_49 = arith.constant 1 : index
    %c0_50 = arith.constant 0 : index
    %30 = vector.load %arg1[%c0_46, %c0_47, %c1_48, %c1_49, %c0_50] : memref<4x2x2x2x32xbf16, #tpu.memory_space<vmem>>, vector<1x2x1x1x32xbf16>
    %31 = vector.shape_cast %30 : vector<1x2x1x1x32xbf16> to vector<2x1x1x32xbf16>
    %32 = vector.shape_cast %31 : vector<2x1x1x32xbf16> to vector<2x32xbf16>
    %c1_51 = arith.constant 1 : index
    %c0_52 = arith.constant 0 : index
    %c1_53 = arith.constant 1 : index
    %c1_54 = arith.constant 1 : index
    %c0_55 = arith.constant 0 : index
    %33 = vector.load %arg1[%c1_51, %c0_52, %c1_53, %c1_54, %c0_55] : memref<4x2x2x2x32xbf16, #tpu.memory_space<vmem>>, vector<1x2x1x1x32xbf16>
    %34 = vector.shape_cast %33 : vector<1x2x1x1x32xbf16> to vector<2x1x1x32xbf16>
    %35 = vector.shape_cast %34 : vector<2x1x1x32xbf16> to vector<2x32xbf16>
    %c2_56 = arith.constant 2 : index
    %c0_57 = arith.constant 0 : index
    %c1_58 = arith.constant 1 : index
    %c0_59 = arith.constant 0 : index
    %c0_60 = arith.constant 0 : index
    %36 = vector.load %arg1[%c2_56, %c0_57, %c1_58, %c0_59, %c0_60] : memref<4x2x2x2x32xbf16, #tpu.memory_space<vmem>>, vector<1x2x1x1x32xbf16>
    %37 = vector.shape_cast %36 : vector<1x2x1x1x32xbf16> to vector<2x1x1x32xbf16>
    %38 = vector.shape_cast %37 : vector<2x1x1x32xbf16> to vector<2x32xbf16>
    %c3_61 = arith.constant 3 : index
    %c0_62 = arith.constant 0 : index
    %c1_63 = arith.constant 1 : index
    %c0_64 = arith.constant 0 : index
    %c0_65 = arith.constant 0 : index
    %39 = vector.load %arg1[%c3_61, %c0_62, %c1_63, %c0_64, %c0_65] : memref<4x2x2x2x32xbf16, #tpu.memory_space<vmem>>, vector<1x2x1x1x32xbf16>
    %40 = vector.shape_cast %39 : vector<1x2x1x1x32xbf16> to vector<2x1x1x32xbf16>
    %41 = vector.shape_cast %40 : vector<2x1x1x32xbf16> to vector<2x32xbf16>
    %c2_66 = arith.constant 2 : index
    %c0_67 = arith.constant 0 : index
    %c1_68 = arith.constant 1 : index
    %c1_69 = arith.constant 1 : index
    %c0_70 = arith.constant 0 : index
    %42 = vector.load %arg1[%c2_66, %c0_67, %c1_68, %c1_69, %c0_70] : memref<4x2x2x2x32xbf16, #tpu.memory_space<vmem>>, vector<1x2x1x1x32xbf16>
    %43 = vector.shape_cast %42 : vector<1x2x1x1x32xbf16> to vector<2x1x1x32xbf16>
    %44 = vector.shape_cast %43 : vector<2x1x1x32xbf16> to vector<2x32xbf16>
    %c3_71 = arith.constant 3 : index
    %c0_72 = arith.constant 0 : index
    %c1_73 = arith.constant 1 : index
    %c1_74 = arith.constant 1 : index
    %c0_75 = arith.constant 0 : index
    %45 = vector.load %arg1[%c3_71, %c0_72, %c1_73, %c1_74, %c0_75] : memref<4x2x2x2x32xbf16, #tpu.memory_space<vmem>>, vector<1x2x1x1x32xbf16>
    %46 = vector.shape_cast %45 : vector<1x2x1x1x32xbf16> to vector<2x1x1x32xbf16>
    %47 = vector.shape_cast %46 : vector<2x1x1x32xbf16> to vector<2x32xbf16>
    %48 = tpu.concatenate %2, %5, %8, %11, %14, %17, %20, %23, %26, %29, %32, %35, %38, %41, %44, %47 in 1 : vector<2x32xbf16>, vector<2x32xbf16>, vector<2x32xbf16>, vector<2x32xbf16>, vector<2x32xbf16>, vector<2x32xbf16>, vector<2x32xbf16>, vector<2x32xbf16>, vector<2x32xbf16>, vector<2x32xbf16>, vector<2x32xbf16>, vector<2x32xbf16>, vector<2x32xbf16>, vector<2x32xbf16>, vector<2x32xbf16>, vector<2x32xbf16> -> vector<2x512xbf16>
    %c0_76 = arith.constant 0 : index
    %c0_77 = arith.constant 0 : index
    %49 = vector.load %arg2[%c0_76, %c0_77] : memref<512x128xbf16, #tpu.memory_space<vmem>>, vector<512x128xbf16>
    %cst = arith.constant dense<0.000000e+00> : vector<2x128xf32>
    %50 = tpu.matmul %48, %49, %cst {dimension_numbers = #tpu.dot_dimension_numbers<[1], [0], [0], [1], [0, 0, 1, 1], [], []>} : vector<2x512xbf16>, vector<512x128xbf16>, vector<2x128xf32> -> vector<2x128xf32>
    %c0_78 = arith.constant 0 : index
    %c0_79 = arith.constant 0 : index
    %51 = vector.load %arg3[%c0_78, %c0_79] : memref<1x128xf32, #tpu.memory_space<vmem>>, vector<1x128xf32>
    %52 = vector.broadcast %51 : vector<1x128xf32> to vector<2x128xf32>
    %53 = arith.addf %50, %52 : vector<2x128xf32>
    %cst_80 = arith.constant 0.000000e+00 : f32
    %54 = vector.broadcast %cst_80 : f32 to vector<2x128xf32>
    %55 = arith.cmpf ogt, %53, %54 : vector<2x128xf32>
    %cst_81 = arith.constant 2.000000e-01 : f32
    %56 = vector.broadcast %cst_81 : f32 to vector<2x128xf32>
    %57 = arith.mulf %56, %53 : vector<2x128xf32>
    %58 = arith.select %55, %53, %57 : vector<2x128xi1>, vector<2x128xf32>
    %cst_82 = arith.constant dense<0.000000e+00> : vector<128xf32>
    %59 = vector.multi_reduction <add>, %58, %cst_82 [0] : vector<2x128xf32> to vector<128xf32>
    %60 = vector.shape_cast %59 : vector<128xf32> to vector<1x128xf32>
    %cst_83 = arith.constant 5.000000e-01 : f32
    %61 = vector.broadcast %cst_83 : f32 to vector<1x128xf32>
    %62 = arith.mulf %60, %61 : vector<1x128xf32>
    %63 = vector.broadcast %62 : vector<1x128xf32> to vector<2x128xf32>
    %64 = arith.subf %58, %63 : vector<2x128xf32>
    %65 = arith.mulf %64, %64 : vector<2x128xf32>
    %cst_84 = arith.constant dense<0.000000e+00> : vector<128xf32>
    %66 = vector.multi_reduction <add>, %65, %cst_84 [0] : vector<2x128xf32> to vector<128xf32>
    %67 = vector.shape_cast %66 : vector<128xf32> to vector<1x128xf32>
    %68 = arith.truncf %58 : vector<2x128xf32> to vector<2x128xbf16>
    %c0_85 = arith.constant 0 : index
    %c0_86 = arith.constant 0 : index
    %69 = vector.load %arg4[%c0_85, %c0_86] : memref<2x128xbf16, #tpu.memory_space<vmem>>, vector<2x128xbf16>
    tpu.vector_store %arg4[%c0_85, %c0_86], %68 {strides = array<i32>} : memref<2x128xbf16, #tpu.memory_space<vmem>>, vector<2x128xbf16>,
    %cst_87 = arith.constant 0.000000e+00 : f32
    %70 = vector.broadcast %cst_87 : f32 to vector<6x128xf32>
    %71 = tpu.concatenate %60, %67, %70 in 0 : vector<1x128xf32>, vector<1x128xf32>, vector<6x128xf32> -> vector<8x128xf32>
    %c0_88 = arith.constant 0 : index
    %c0_89 = arith.constant 0 : index
    %72 = vector.load %arg5[%c0_88, %c0_89] : memref<8x128xf32, #tpu.memory_space<vmem>>, vector<8x128xf32>
    tpu.vector_store %arg5[%c0_88, %c0_89], %71 {strides = array<i32>} : memref<8x128xf32, #tpu.memory_space<vmem>>, vector<8x128xf32>,
    return
  }
  func.func @transform_0(%arg0: i32) -> (i32, i32, i32, i32, i32) {
    %c0_i32 = arith.constant 0 : i32
    %c0_i32_0 = arith.constant 0 : i32
    %c0_i32_1 = arith.constant 0 : i32
    %c0_i32_2 = arith.constant 0 : i32
    %c0_i32_3 = arith.constant 0 : i32
    return %c0_i32, %arg0, %c0_i32_0, %c0_i32_1, %c0_i32_2 : i32, i32, i32, i32, i32
  }
  func.func @transform_1(%arg0: i32) -> (i32, i32) {
    %c0_i32 = arith.constant 0 : i32
    %c0_i32_0 = arith.constant 0 : i32
    %c0_i32_1 = arith.constant 0 : i32
    return %c0_i32, %c0_i32_0 : i32, i32
  }
  func.func @transform_2(%arg0: i32) -> (i32, i32) {
    %c0_i32 = arith.constant 0 : i32
    %c0_i32_0 = arith.constant 0 : i32
    %c0_i32_1 = arith.constant 0 : i32
    return %c0_i32, %c0_i32_0 : i32, i32
  }
  func.func @transform_3(%arg0: i32) -> (i32, i32) {
    %c0_i32 = arith.constant 0 : i32
    %c0_i32_0 = arith.constant 0 : i32
    return %arg0, %c0_i32 : i32, i32
  }
  func.func @transform_4(%arg0: i32) -> (i32, i32) {
    %c0_i32 = arith.constant 0 : i32
    %c0_i32_0 = arith.constant 0 : i32
    return %arg0, %c0_i32 : i32, i32
  }
}

module attributes {stable_mosaic.version = 11 : i64} {
  func.func @_vae_head_kernel(%arg0: i32, %arg1: memref<2x128xbf16, #tpu.memory_space<vmem>>, %arg2: memref<1x128xf32, #tpu.memory_space<vmem>>, %arg3: memref<1x128xf32, #tpu.memory_space<vmem>>, %arg4: memref<128x32xbf16, #tpu.memory_space<vmem>>, %arg5: memref<1x32xf32, #tpu.memory_space<vmem>>, %arg6: memref<2x16xf32, #tpu.memory_space<vmem>>, %arg7: memref<2x16xf32, #tpu.memory_space<vmem>>, %arg8: memref<2x16xf32, #tpu.memory_space<vmem>>, %arg9: memref<2x16xf32, #tpu.memory_space<vmem>>) attributes {dimension_semantics = [#tpu.dimension_semantics<parallel>], iteration_bounds = array<i64: 1>, scalar_prefetch = 0 : i64, scratch_operands = 0 : i64, tpu.core_type = #tpu.core_type<tc>, window_params = [{transform_indices = @transform_0, window_bounds = array<i64: 2, 128>}, {pipeline_mode = #tpu.pipeline_mode<synchronous>, transform_indices = @transform_1, window_bounds = array<i64: 1, 128>}, {pipeline_mode = #tpu.pipeline_mode<synchronous>, transform_indices = @transform_2, window_bounds = array<i64: 1, 128>}, {pipeline_mode = #tpu.pipeline_mode<synchronous>, transform_indices = @transform_3, window_bounds = array<i64: 128, 32>}, {pipeline_mode = #tpu.pipeline_mode<synchronous>, transform_indices = @transform_4, window_bounds = array<i64: 1, 32>}, {transform_indices = @transform_5, window_bounds = array<i64: 2, 16>}, {transform_indices = @transform_6, window_bounds = array<i64: 2, 16>}, {transform_indices = @transform_7, window_bounds = array<i64: 2, 16>}, {transform_indices = @transform_8, window_bounds = array<i64: 2, 16>}]} {
    %c0 = arith.constant 0 : index
    %c0_0 = arith.constant 0 : index
    %0 = vector.load %arg1[%c0, %c0_0] : memref<2x128xbf16, #tpu.memory_space<vmem>>, vector<2x128xbf16>
    %1 = arith.extf %0 : vector<2x128xbf16> to vector<2x128xf32>
    %c0_1 = arith.constant 0 : index
    %c0_2 = arith.constant 0 : index
    %2 = vector.load %arg2[%c0_1, %c0_2] : memref<1x128xf32, #tpu.memory_space<vmem>>, vector<1x128xf32>
    %3 = vector.broadcast %2 : vector<1x128xf32> to vector<2x128xf32>
    %4 = arith.mulf %1, %3 : vector<2x128xf32>
    %c0_3 = arith.constant 0 : index
    %c0_4 = arith.constant 0 : index
    %5 = vector.load %arg3[%c0_3, %c0_4] : memref<1x128xf32, #tpu.memory_space<vmem>>, vector<1x128xf32>
    %6 = vector.broadcast %5 : vector<1x128xf32> to vector<2x128xf32>
    %7 = arith.addf %4, %6 : vector<2x128xf32>
    %8 = arith.truncf %7 : vector<2x128xf32> to vector<2x128xbf16>
    %c0_5 = arith.constant 0 : index
    %c0_6 = arith.constant 0 : index
    %9 = vector.load %arg4[%c0_5, %c0_6] : memref<128x32xbf16, #tpu.memory_space<vmem>>, vector<128x32xbf16>
    %cst = arith.constant dense<0.000000e+00> : vector<2x32xf32>
    %10 = tpu.matmul %8, %9, %cst {dimension_numbers = #tpu.dot_dimension_numbers<[1], [0], [0], [1], [0, 0, 1, 1], [], []>} : vector<2x128xbf16>, vector<128x32xbf16>, vector<2x32xf32> -> vector<2x32xf32>
    %c0_7 = arith.constant 0 : index
    %c0_8 = arith.constant 0 : index
    %11 = vector.load %arg5[%c0_7, %c0_8] : memref<1x32xf32, #tpu.memory_space<vmem>>, vector<1x32xf32>
    %12 = vector.broadcast %11 : vector<1x32xf32> to vector<2x32xf32>
    %13 = arith.addf %10, %12 : vector<2x32xf32>
    %14 = vector.extract_strided_slice %13 {offsets = [0, 0], sizes = [2, 16], strides = [1, 1]} : vector<2x32xf32> to vector<2x16xf32>
    %15 = vector.extract_strided_slice %13 {offsets = [0, 16], sizes = [2, 16], strides = [1, 1]} : vector<2x32xf32> to vector<2x16xf32>
    %cst_9 = arith.constant 5.000000e-01 : f32
    %16 = vector.broadcast %cst_9 : f32 to vector<2x16xf32>
    %17 = arith.mulf %16, %15 : vector<2x16xf32>
    %18 = math.exp %17 : vector<2x16xf32>
    %c0_10 = arith.constant 0 : index
    %c0_11 = arith.constant 0 : index
    %19 = vector.load %arg8[%c0_10, %c0_11] : memref<2x16xf32, #tpu.memory_space<vmem>>, vector<2x16xf32>
    tpu.vector_store %arg8[%c0_10, %c0_11], %14 {strides = array<i32>} : memref<2x16xf32, #tpu.memory_space<vmem>>, vector<2x16xf32>,
    %c0_12 = arith.constant 0 : index
    %c0_13 = arith.constant 0 : index
    %20 = vector.load %arg9[%c0_12, %c0_13] : memref<2x16xf32, #tpu.memory_space<vmem>>, vector<2x16xf32>
    tpu.vector_store %arg9[%c0_12, %c0_13], %15 {strides = array<i32>} : memref<2x16xf32, #tpu.memory_space<vmem>>, vector<2x16xf32>,
    %c0_14 = arith.constant 0 : index
    %c0_15 = arith.constant 0 : index
    %21 = vector.load %arg6[%c0_14, %c0_15] : memref<2x16xf32, #tpu.memory_space<vmem>>, vector<2x16xf32>
    %22 = arith.mulf %21, %18 : vector<2x16xf32>
    %23 = arith.addf %22, %14 : vector<2x16xf32>
    %c0_16 = arith.constant 0 : index
    %c0_17 = arith.constant 0 : index
    %24 = vector.load %arg7[%c0_16, %c0_17] : memref<2x16xf32, #tpu.memory_space<vmem>>, vector<2x16xf32>
    tpu.vector_store %arg7[%c0_16, %c0_17], %23 {strides = array<i32>} : memref<2x16xf32, #tpu.memory_space<vmem>>, vector<2x16xf32>,
    return
  }
  func.func @transform_0(%arg0: i32) -> (i32, i32) {
    %c0_i32 = arith.constant 0 : i32
    %c0_i32_0 = arith.constant 0 : i32
    return %arg0, %c0_i32 : i32, i32
  }
  func.func @transform_1(%arg0: i32) -> (i32, i32) {
    %c0_i32 = arith.constant 0 : i32
    %c0_i32_0 = arith.constant 0 : i32
    %c0_i32_1 = arith.constant 0 : i32
    return %c0_i32, %c0_i32_0 : i32, i32
  }
  func.func @transform_2(%arg0: i32) -> (i32, i32) {
    %c0_i32 = arith.constant 0 : i32
    %c0_i32_0 = arith.constant 0 : i32
    %c0_i32_1 = arith.constant 0 : i32
    return %c0_i32, %c0_i32_0 : i32, i32
  }
  func.func @transform_3(%arg0: i32) -> (i32, i32) {
    %c0_i32 = arith.constant 0 : i32
    %c0_i32_0 = arith.constant 0 : i32
    %c0_i32_1 = arith.constant 0 : i32
    return %c0_i32, %c0_i32_0 : i32, i32
  }
  func.func @transform_4(%arg0: i32) -> (i32, i32) {
    %c0_i32 = arith.constant 0 : i32
    %c0_i32_0 = arith.constant 0 : i32
    %c0_i32_1 = arith.constant 0 : i32
    return %c0_i32, %c0_i32_0 : i32, i32
  }
  func.func @transform_5(%arg0: i32) -> (i32, i32) {
    %c0_i32 = arith.constant 0 : i32
    %c0_i32_0 = arith.constant 0 : i32
    return %arg0, %c0_i32 : i32, i32
  }
  func.func @transform_6(%arg0: i32) -> (i32, i32) {
    %c0_i32 = arith.constant 0 : i32
    %c0_i32_0 = arith.constant 0 : i32
    return %arg0, %c0_i32 : i32, i32
  }
  func.func @transform_7(%arg0: i32) -> (i32, i32) {
    %c0_i32 = arith.constant 0 : i32
    %c0_i32_0 = arith.constant 0 : i32
    return %arg0, %c0_i32 : i32, i32
  }
  func.func @transform_8(%arg0: i32) -> (i32, i32) {
    %c0_i32 = arith.constant 0 : i32
    %c0_i32_0 = arith.constant 0 : i32
    return %arg0, %c0_i32 : i32, i32
  }
}

</mosaic_0001>

<bundles_post_ra>
// kernel: encoder_forward.8
= control target key start
LH: loop header
LB: loop body
LE: loop exit
PB: predicated region body
PF: predicated region fallthrough
CT: control target
= control target key end

     0   :  { %v52_v0 = vlaneseq  ;;  %v925_v1 = vmov 1966171168   ;;  %vm73_vm0 = vcmask 1041409   ;;  %s926_s27 = smov 32   ;;  %s927_s28 = smov 64   ;;  %vm369_vm1 = vcmask 261120   ;;  %s1220_s0 = inlined_call_operand.vmem [shape: bf16[4,2,2,2,32], index: 0, kind: input, shape index: {}]   ;;  %s1221_s1 = inlined_call_operand.vmem [shape: bf16[512,128], index: 1, kind: input, shape index: {}]   ;;  %s1222_s2 = inlined_call_operand.vmem [shape: f32[1,128], index: 2, kind: input, shape index: {}]   ;;  %s1223_s3 = inlined_call_operand.vmem [shape: bf16[2,128], index: 3, kind: output, shape index: {0}]   ;;  %s1224_s4 = inlined_call_operand.vmem [shape: f32[8,128], index: 4, kind: output, shape index: {1}]  }
   0x1   :  { %v50_v2 = vunpack.c.l.s4 %v925_v1  ;;  %v893_v3 = vld [vmem:[%s1221_s1 + $0x78] sm:$0xff]   ;;  %v802_v4 = vld.sshfl [vmem:[%s1220_s0 + $0xc] sm:$0x1 pattern:$0x75316420]  ;;  %v895_v28 = vld [vmem:[%s1221_s1 + $0x70] sm:$0xff]  }
   0x2   :  { %v803_v5 = vld.sshfl [vmem:[%s1220_s0 + $0xe] sm:$0x1 pattern:$0x75316420]  ;;  %v53_v6 = vshrl.u32 %v52_v0, 7  ;;  %v894_v7 = vld [vmem:[%s1221_s1 + $0x38] sm:$0xff]   ;;  %845 = vmatprep.subr.bf16.mxu0 %v893_v3 }
   0x3   :  { %v51_v8 = vunpack.c.0.s8 %v50_v2  ;;  %v800_v9 = vld.sshfl [vmem:[%s1220_s0 + $0x8] sm:$0x1 pattern:$0x75316420]  ;;  %846 = vmatpush3.bf16.msra.mxu0 %v894_v7  ;;  %v896_v29 = vld [vmem:[%s1221_s1 + $0x30] sm:$0xff]   ;;  %s928_s16 = smov 96  }
   0x4   :  { %v801_v10 = vld.sshfl [vmem:[%s1220_s0 + $0xa] sm:$0x1 pattern:$0x75316420]  ;;  %847 = vmatprep.subr.bf16.mxu0 %v895_v28  ;;  %v902_v28 = vld [vmem:[%s1221_s1 + $0x20] sm:$0xff]   ;;  %vm373_vm2 = vcmask 523264  }
   0x5   :  { %v972_v11 = vsub.s32 %v51_v8, %v53_v6  ;;  %v798_v12 = vld.sshfl [vmem:[%s1220_s0 + $0x4] sm:$0x1 pattern:$0x75316420]  ;;  %v897_v53 = vld [vmem:[%s1221_s1 + $0x68] sm:$0xff]   ;;  %v899_v8 = vld [vmem:[%s1221_s1 + $0xf8] sm:$0xff]  }
   0x6   :  { %v799_v13 = vld.sshfl [vmem:[%s1220_s0 + $0x6] sm:$0x1 pattern:$0x75316420]  ;;  %v898_v0 = vld [vmem:[%s1221_s1 + $0x28] sm:$0xff]   ;;  %867 = vmatprep.subr.bf16.mxu1 %v899_v8  ;;  %vm376_vm3 = vcmask 785408  }
   0x7   :  { %v173_v14 = vrot.slane %v802_v4, %v972_v11  ;;  %v187_v15 = vrot.slane %v803_v5, %v972_v11  ;;  %v138_v16 = vrot.slane %v800_v9, %v972_v11  ;;  %v152_v17 = vrot.slane %v801_v10, %v972_v11  ;;  %v796_v18 = vld.sshfl [vmem:[%s1220_s0] sm:$0x1 pattern:$0x75316420]  ;;  %848 = vmatpush3.bf16.msra.mxu0 %v896_v29 }
   0x8   :  { %v91_v19 = vrot.slane %v798_v12, %v972_v11  ;;  %v105_v20 = vrot.slane %v799_v13, %v972_v11  ;;  %v797_v21 = vld.sshfl [vmem:[%s1220_s0 + $0x2] sm:$0x1 pattern:$0x75316420]  ;;  %v55_v22 = vrot.slane %v796_v18, %v972_v11  ;;  %849 = vmatprep.subr.bf16.mxu0 %v897_v53  ;;  %vm750_vm5 = vcmask 1041408  }
   0x9   :  { %v188_v23 = vunpack.c.l.b16 %v173_v14  ;;  %v189_v24 = vunpack.c.l.b16 %v187_v15  ;;  %v993_v25 = vunpack.c.l.b16 %v138_v16  ;;  %v995_v26 = vunpack.c.l.b16 %v152_v17  ;;  %v810_v27 = vld.sshfl [vmem:[%s1220_s0 + $0xd] sm:$0x1 pattern:$0x75316420]  ;;  %v912_v53 = vld [vmem:[%s1221_s1 + $0xa0] sm:$0xff]  }
   0xa   :  { %v1006_v30 = vunpack.c.l.b16 %v91_v19  ;;  %v1008_v31 = vunpack.c.l.b16 %v105_v20  ;;  %v69_v32 = vrot.slane %v797_v21, %v972_v11  ;;  %v1011_v33 = vunpack.c.l.b16 %v55_v22  ;;  %v811_v34 = vld.sshfl [vmem:[%s1220_s0 + $0xf] sm:$0x1 pattern:$0x75316420]  ;;  %v901_v22 = vld [vmem:[%s1221_s1 + $0x60] sm:$0xff]  }
   0xb   :  { %v190_v35 = vrot.slane %v189_v24, 7  ;;  %v200_v36 = vrot.slane %v188_v23, 1  ;;  %v155_v37 = vrot.slane %v995_v26, 7  ;;  %v195_v38 = vrot.slane %v993_v25, 1  ;;  %850 = vmatpush3.bf16.msra.mxu0 %v898_v0  ;;  %v923_v0 = vld [vmem:[%s1221_s1 + $0xc0] sm:$0xff]  }
   0xc   :  { %v108_v39 = vrot.slane %v1008_v31, 7  ;;  %v1019_v40 = vunpack.c.l.b16 %v69_v32  ;;  %v113_v41 = vrot.slane %v1011_v33, 1  ;;  %v337_v42 = vrot.slane %v810_v27, %v972_v11  ;;  %v806_v43 = vld.sshfl [vmem:[%s1220_s0 + $0x5] sm:$0x1 pattern:$0x75316420]  ;;  %851 = vmatprep.subr.bf16.mxu0 %v901_v22 }
   0xd   :  { %v191_v44 = vsel %vm73_vm0, %v190_v35, %v188_v23  ;;  %v196_v45 = vsel %vm73_vm0, %v995_v26, %v195_v38  ;;  %v351_v46 = vrot.slane %v811_v34, %v972_v11  ;;  %v807_v47 = vld.sshfl [vmem:[%s1220_s0 + $0x7] sm:$0x1 pattern:$0x75316420]  ;;  %v201_v56 = vsel %vm73_vm0, %v189_v24, %v200_v36  ;;  %v903_v35 = vld [vmem:[%s1221_s1 + $0xf0] sm:$0xff]  }
   0xe   :  { %v192_v48 = vpack.c.b16 %v191_v44, %v191_v44  ;;  %v197_v49 = vpack.c.b16 %v196_v45, %v196_v45  ;;  %v109_v50 = vsel %vm73_vm0, %v108_v39, %v1006_v30  ;;  %v72_v51 = vrot.slane %v1019_v40, 7  ;;  %v808_v52 = vld.sshfl [vmem:[%s1220_s0 + $0x9] sm:$0x1 pattern:$0x75316420]  ;;  %v905_v39 = vld [vmem:[%s1221_s1 + $0x58] sm:$0xff]  }
   0xf   :  { %v110_v54 = vpack.c.b16 %v109_v50, %v109_v50  ;;  %v114_v55 = vsel %vm73_vm0, %v1019_v40, %v113_v41  ;;  %v1045_v57 = vunpack.c.l.b16 %v337_v42  ;;  %v809_v58 = vld.sshfl [vmem:[%s1220_s0 + $0xb] sm:$0x1 pattern:$0x75316420]  ;;  %v1052_v60 = vunpack.c.l.b16 %v351_v46  ;;  %852 = vmatpush3.bf16.msra.mxu0 %v902_v28  ;;  %v906_v42 = vld [vmem:[%s1221_s1 + $0x18] sm:$0xff]  }
  0x10   :  { %193 = vrot.lane.b32.xlu0 %v192_v48, %s926_s27  ;;  %198 = vrot.lane.b32.xlu1 %v197_v49, %s927_s28  ;;  %v115_v59 = vpack.c.b16 %v114_v55, %v114_v55  ;;  %v118_v61 = vrot.slane %v1006_v30, 1  ;;  %v255_v62 = vrot.slane %v806_v43, %v972_v11  ;;  %v804_v63 = vld.sshfl [vmem:[%s1220_s0 + $0x1] sm:$0x1 pattern:$0x75316420]  ;;  %v269_v1 = vrot.slane %v807_v47, %v972_v11  ;;  %v907_v44 = vld [vmem:[%s1221_s1 + $0xe8] sm:$0xff]  }
  0x11   :  { %v302_v2 = vrot.slane %v808_v52, %v972_v11  ;;  %v316_v3 = vrot.slane %v809_v58, %v972_v11  ;;  %v805_v4 = vld.sshfl [vmem:[%s1220_s0 + $0x3] sm:$0x1 pattern:$0x75316420]  ;;  %v220_v5 = vrot.slane %v804_v63, %v972_v11  ;;  %v354_v6 = vrot.slane %v1052_v60, 7  ;;  %853 = vmatprep.subr.bf16.mxu0 %v905_v39  ;;  %v908_v47 = vld [vmem:[%s1221_s1 + $0xa8] sm:$0xff]  }
  0x12   :  { %v234_v7 = vrot.slane %v805_v4, %v972_v11  ;;  %v202_v9 = vpack.c.b16 %v201_v56, %v201_v56  ;;  %v270_v10 = vunpack.c.l.b16 %v255_v62  ;;  %v271_v12 = vunpack.c.l.b16 %v269_v1  ;;  %v900_v11 = vld [vmem:[%s1221_s1 + $0xb8] sm:$0xff]   ;;  %v909_v48 = vld [vmem:[%s1221_s1 + $0x50] sm:$0xff]   ;;  %v911_v52 = vld [vmem:[%s1221_s1 + $0xe0] sm:$0xff]  }
  0x13   :  { %v317_v13 = vunpack.c.l.b16 %v302_v2  ;;  %v355_v14 = vsel %vm73_vm0, %v354_v6, %v1045_v57  ;;  %v318_v15 = vunpack.c.l.b16 %v316_v3  ;;  %v235_v16 = vunpack.c.l.b16 %v220_v5  ;;  %868 = vmatpush3.bf16.msra.mxu1 %v900_v11  ;;  %854 = vmatpush3.bf16.msra.mxu0 %v906_v42  ;;  %v910_v49 = vld [vmem:[%s1221_s1 + $0x10] sm:$0xff]   ;;  %v914_v55 = vld [vmem:[%s1221_s1 + $0x8] sm:$0xff]   ;;  %v915_v56 = vld [vmem:[%s1221_s1 + $0xd8] sm:$0xff]  }
  0x14   :  { %111 = vrot.lane.b32.xlu0 %v110_v54, %s926_s27  ;;  %116 = vrot.lane.b32.xlu1 %v115_v59, %s927_s28  ;;  %v236_v17 = vunpack.c.l.b16 %v234_v7  ;;  %v356_v18 = vpack.c.b16 %v355_v14, %v355_v14  ;;  %v119_v19 = vsel %vm73_vm0, %v1008_v31, %v118_v61  ;;  %v272_v20 = vrot.slane %v271_v12, 7  ;;  %v913_v54 = vld [vmem:[%s1221_s1 + $0x48] sm:$0xff]   ;;  %v917_v58 = vld [vmem:[%s1221_s1 + $0x40] sm:$0xff]  }
  0x15   :  { %v359_v21 = vrot.slane %v317_v13, 1  ;;  %v319_v23 = vrot.slane %v318_v15, 7  ;;  %v277_v27 = vrot.slane %v235_v16, 1  ;;  %v1094_v30 = vsel %vm73_vm0, %v155_v37, %v993_v25  ;;  %v904_v25 = vld [vmem:[%s1221_s1 + $0xb0] sm:$0xff]   ;;  %869 = vmatprep.subr.bf16.mxu1 %v903_v35  ;;  %855 = vmatprep.subr.bf16.mxu0 %v909_v48  ;;  %v918_v59 = vld [vmem:[%s1221_s1] sm:$0xff]   ;;  %v921_v62 = vld [vmem:[%s1221_s1 + $0xc8] sm:$0xff]  }
  0x16   :  { %v237_v24 = vrot.slane %v236_v17, 7  ;;  %v273_v29 = vsel %vm73_vm0, %v272_v20, %v270_v10  ;;  %v120_v31 = vpack.c.b16 %v119_v19, %v119_v19  ;;  %v364_v34 = vrot.slane %v1045_v57, 1  ;;  %v916_v57 = vld [vmem:[%s1221_s1 + $0x98] sm:$0xff]   ;;  %v920_v61 = vld [vmem:[%s1221_s1 + $0x90] sm:$0xff]   ;;  %v922_v63 = vld [vmem:[%s1221_s1 + $0x88] sm:$0xff]  }
  0x17   :  { %v274_v32 = vpack.c.b16 %v273_v29, %v273_v29  ;;  %v360_v36 = vsel %vm73_vm0, %v318_v15, %v359_v21  ;;  %v278_v26 = vsel %vm73_vm0, %v236_v17, %v277_v27  ;;  %v282_v38 = vrot.slane %v270_v10, 1  ;;  %870 = vmatpush3.bf16.msra.mxu1 %v904_v25  ;;  %856 = vmatpush3.bf16.msra.mxu0 %v910_v49  ;;  %v924_v1 = vld [vmem:[%s1221_s1 + $0x80] sm:$0xff]  }
  0x18   :  { %203 = vrot.lane.b32.xlu0 %v202_v9, %s928_s16  ;;  %357 = vrot.lane.b32.xlu1 %v356_v18, %s926_s27  ;;  %v1111_v37 = vsel %vm73_vm0, %v72_v51, %v1011_v33  ;;  %v1117_v41 = vsel %vm73_vm0, %v319_v23, %v317_v13  ;;  %v1123_v43 = vsel %vm73_vm0, %v237_v24, %v235_v16  ;;  %vm770_vm6 = vcmask 1040384  }
  0x19   :  { %v361_v33 = vpack.c.b16 %v360_v36, %v360_v36  ;;  %v279_v40 = vpack.c.b16 %v278_v26, %v278_v26  ;;  %v365_v45 = vsel %vm73_vm0, %v1052_v60, %v364_v34  ;;  %v283_v46 = vsel %vm73_vm0, %v271_v12, %v282_v38  ;;  %871 = vmatprep.subr.bf16.mxu1 %v907_v44  ;;  %v919_v60 = vld [vmem:[%s1221_s1 + $0xd0] sm:$0xff]   ;;  %v812_v38 = vld [vmem:[%s1222_s2] ss:$0 sm:$0xff] }
  0x1a   :  { %v366_v50 = vpack.c.b16 %v365_v45, %v365_v45  ;;  %v284_v51 = vpack.c.b16 %v283_v46, %v283_v46  ;;  %857 = vmatprep.subr.bf16.mxu0 %v913_v54  ;;  %v157_v4 = vpack.c.b16 %v1094_v30, %v1094_v30  ;;  %v75_v8 = vpack.c.b16 %v1111_v37, %v1111_v37 }
  0x1b   :  { %872 = vmatpush3.bf16.msra.mxu1 %v908_v47  ;;  %858 = vmatpush3.bf16.msra.mxu0 %v914_v55  ;;  %v321_v18 = vpack.c.b16 %v1117_v41, %v1117_v41  ;;  %v239_v19 = vpack.c.b16 %v1123_v43, %v1123_v43 }
  0x1c   :  { %121 = vrot.lane.b32.xlu0 %v120_v31, %s928_s16  ;;  %275 = vrot.lane.b32.xlu1 %v274_v32, %s926_s27 }
  0x1d   :  { %873 = vmatprep.subr.bf16.mxu1 %v911_v52  ;;  %859 = vmatprep.subr.bf16.mxu0 %v917_v58 }
  0x1f   :  { %874 = vmatpush3.bf16.msra.mxu1 %v912_v53  ;;  %860 = vmatpush3.bf16.msra.mxu0 %v918_v59 }
  0x20   :  { %362 = vrot.lane.b32.xlu0 %v361_v33, %s927_s28  ;;  %280 = vrot.lane.b32.xlu1 %v279_v40, %s927_s28 }
  0x21   :  { %875 = vmatprep.subr.bf16.mxu1 %v915_v56 }
  0x23   :  { %876 = vmatpush3.bf16.msra.mxu1 %v916_v57 }
  0x24   :  { %367 = vrot.lane.b32.xlu0 %v366_v50, %s928_s16  ;;  %285 = vrot.lane.b32.xlu1 %v284_v51, %s928_s16 }
  0x25   :  { %877 = vmatprep.subr.bf16.mxu1 %v919_v60 }
  0x27   :  { %878 = vmatpush3.bf16.msra.mxu1 %v920_v61 }
  0x28   :  { %879 = vmatprep.subr.bf16.mxu1 %v921_v62 }
  0x2b   :  { %880 = vmatpush3.bf16.msra.mxu1 %v922_v63 }
  0x2c   :  { %881 = vmatprep.subr.bf16.mxu1 %v923_v0 }
  0x2f   :  { %882 = vmatpush3.bf16.msra.mxu1 %v924_v1 }
  0x82   :  { %v194_v2 = vpop.permute.xlu0 %193  ;;  %v199_v3 = vpop.permute.xlu1 %198 }
  0x83   :  { %v382_v7 = vsel %vm369_vm1, %v157_v4, %v194_v2 }
  0x84   :  { %v384_v9 = vsel %vm373_vm2, %v382_v7, %v199_v3 }
  0x86   :  { %v112_v5 = vpop.permute.xlu0 %111  ;;  %v117_v6 = vpop.permute.xlu1 %116 }
  0x87   :  { %v372_v13 = vsel %vm369_vm1, %v75_v8, %v112_v5 }
  0x88   :  { %v375_v15 = vsel %vm373_vm2, %v372_v13, %v117_v6 }
  0x8a   :  { %v204_v10 = vpop.permute.xlu0 %203  ;;  %v358_v12 = vpop.permute.xlu1 %357 }
  0x8b   :  { %v386_v14 = vsel %vm376_vm3, %v384_v9, %v204_v10  ;;  %v398_v22 = vsel %vm369_vm1, %v321_v18, %v358_v12 }
  0x8c   :  { %699 = vmatprep.mubr.bf16.mxu0 %v386_v14 }
  0x8e   :  { %v122_v16 = vpop.permute.xlu0 %121  ;;  %v276_v17 = vpop.permute.xlu1 %275 }
  0x8f   :  { %v378_v11 = vsel %vm376_vm3, %v375_v15, %v122_v16  ;;  %v390_v23 = vsel %vm369_vm1, %v239_v19, %v276_v17 }
  0x90   :  { %700 = vmatmul.mubr.bf16.vlgmr.msra.gmra.mxu0 %v378_v11 }
  0x92   :  { %v363_v20 = vpop.permute.xlu0 %362  ;;  %v281_v21 = vpop.permute.xlu1 %280 }
  0x93   :  { %v400_v24 = vsel %vm373_vm2, %v398_v22, %v363_v20  ;;  %v392_v27 = vsel %vm373_vm2, %v390_v23, %v281_v21 }
  0x96   :  { %v368_v28 = vpop.permute.xlu0 %367  ;;  %v286_v29 = vpop.permute.xlu1 %285 }
  0x97   :  { %v402_v30 = vsel %vm376_vm3, %v400_v24, %v368_v28  ;;  %v394_v31 = vsel %vm376_vm3, %v392_v27, %v286_v29 }
  0x98   :  { %739 = vmatprep.mubr.bf16.mxu1 %v402_v30 }
  0x99   :  { %740 = vmatmul.mubr.bf16.vlgmr.msra.gmra.mxu1 %v394_v31 }
 0x150   :  { %v861_v32 = vpop.f32.mrf.mxu0 }
 0x152   :  { %v862_v34 = vpop.f32.mrf.mxu0 }
 0x153   :  { %v863_v26 = vadd.f32 %v862_v34, %v861_v32 }
 0x154   :  { %v864_v35 = vpop.f32.mrf.mxu0 }
 0x155   :  { %v702_v39 = vadd.f32 %v863_v26, %v812_v38 }
 0x156   :  { %v865_v36 = vpop.f32.mrf.mxu0 }
 0x159   :  { %v883_v25 = vpop.f32.mrf.mxu1 }
 0x15b   :  { %v884_v37 = vpop.f32.mrf.mxu1 }
 0x15c   :  { %v885_v41 = vadd.f32 %v884_v37, %v883_v25 }
 0x15d   :  { %v886_v42 = vpop.f32.mrf.mxu1 }
 0x15e   :  { %v742_v43 = vadd.f32 %v885_v41, %v702_v39 }
 0x15f   :  { %v887_v33 = vpop.f32.mrf.mxu1 }
 0x160   :  { %vm747_vm4 = vcmp.gt.f32.partialorder %v742_v43, 0.0  ;;  %v748_v40 = vmul.f32 0.2, %v742_v43 }
 0x162   :  { %v749_v44 = vsel %vm747_vm4, %v742_v43, %v748_v40 }
 0x163   :  { %v751_v45 = vsel %vm750_vm5, %v749_v44, 0.0  ;;  %v768_v46 = vpack.c.bf16 %v749_v44, %v749_v44 }
 0x164   :  { %v752_v47 = vrot.slane %v751_v45, 4 }
 0x165   :  { %769 = vst [vmem:[%s1223_s3] sm:$0x1] %v768_v46 }
 0x166   :  { %v753_v48 = vadd.f32 %v752_v47, %v751_v45 }
 0x168   :  { %v754_v49 = vrot.slane %v753_v48, 2 }
 0x16a   :  { %v755_v50 = vadd.f32 %v754_v49, %v753_v48 }
 0x16c   :  { %v756_v51 = vrot.slane %v755_v50, 1 }
 0x16e   :  { %v757_v52 = vadd.f32 %v756_v51, %v755_v50 }
 0x170   :  { %v758_v53 = vmul.f32 0.5, %v757_v52 }
 0x172   :  { %v759_v54 = vsub.f32 %v749_v44, %v758_v53 }
 0x174   :  { %v760_v55 = vmul.f32 %v759_v54, %v759_v54 }
 0x176   :  { %v761_v56 = vsel %vm750_vm5, %v760_v55, 0.0 }
 0x177   :  { %v762_v57 = vrot.slane %v761_v56, 4 }
 0x179   :  { %v763_v58 = vadd.f32 %v762_v57, %v761_v56 }
 0x17b   :  { %v764_v59 = vrot.slane %v763_v58, 2 }
 0x17d   :  { %v765_v60 = vadd.f32 %v764_v59, %v763_v58 }
 0x17f   :  { %v766_v61 = vrot.slane %v765_v60, 1 }
 0x181   :  { %v767_v62 = vadd.f32 %v766_v61, %v765_v60 }
 0x183   :  { %v771_v63 = vsel %vm770_vm6, %v757_v52, %v767_v62 }
 0x184   :  { %v772_v0 = vsel %vm750_vm5, %v771_v63, 0.0 }
 0x185   :  { %773 = vst [vmem:[%s1224_s4] sm:$0xff] %v772_v0 }

// kernel: encoder_forward.7
= control target key start
LH: loop header
LB: loop body
LE: loop exit
PB: predicated region body
PF: predicated region fallthrough
CT: control target
= control target key end

     0   :  { %v688_v0 = vlaneseq  ;;  %vm66_vm0 = vsmask.f32 256  ;;  %v1553_v4 = vmov 1966171168   ;;  %vm67_vm1 = vsmask.f32 1284  ;;  %s1933_s0 = inlined_call_operand.vmem [shape: bf16[4,2,3,3,16], index: 0, kind: input, shape index: {}]   ;;  %s1934_s1 = inlined_call_operand.vmem [shape: bf16[256,128], index: 1, kind: input, shape index: {}]   ;;  %s1935_s2 = inlined_call_operand.vmem [shape: f32[1,128], index: 2, kind: input, shape index: {}]   ;;  %s1936_s3 = inlined_call_operand.vmem [shape: bf16[8,128], index: 3, kind: output, shape index: {0}]   ;;  %s1937_s4 = inlined_call_operand.vmem [shape: f32[8,128], index: 4, kind: output, shape index: {1}]  }
   0x1   :  { %v1430_v1 = vld [vmem:[%s1933_s0 + $0xe] sm:$0x1]  ;;  %v1431_v2 = vld [vmem:[%s1933_s0 + $0x10] sm:$0x1]  ;;  %v1432_v3 = vld [vmem:[%s1933_s0 + $0x14] sm:$0x1]  ;;  %v686_v5 = vunpack.c.l.s4 %v1553_v4 }
   0x2   :  { %v1433_v6 = vld [vmem:[%s1933_s0 + $0x16] sm:$0x1]  ;;  %v689_v7 = vshrl.u32 %v688_v0, 7  ;;  %v1394_v8 = vld [vmem:[%s1933_s0 + $0x18] sm:$0x1]  ;;  %v933_v10 = vcombine.low %v1430_v1, %v1431_v2  ;;  %vm68_vm2 = vmor %vm66_vm0, %vm67_vm1  ;;  %s1554_s9 = smov 16  }
   0x3   :  { %v687_v9 = vunpack.c.0.s8 %v686_v5  ;;  %v934_v11 = vcombine.low %v1432_v3, %v1433_v6  ;;  %v1395_v12 = vld [vmem:[%s1933_s0 + $0x1a] sm:$0x1]  ;;  %v1396_v13 = vld [vmem:[%s1933_s0 + $0x1e] sm:$0x1]  ;;  %v1397_v14 = vld [vmem:[%s1933_s0 + $0x20] sm:$0x1] }
   0x4   :  { %v793_v15 = vcombine.low %v1394_v8, %v1395_v12  ;;  %v794_v16 = vcombine.low %v1396_v13, %v1397_v14  ;;  %v1398_v17 = vld [vmem:[%s1933_s0 + $0x24] sm:$0x1]  ;;  %v1399_v18 = vld [vmem:[%s1933_s0 + $0x26] sm:$0x1]  ;;  %v1400_v19 = vld [vmem:[%s1933_s0 + $0x2a] sm:$0x1] }
   0x5   :  { %v1619_v20 = vsub.s32 %v687_v9, %v689_v7  ;;  %v1401_v21 = vld [vmem:[%s1933_s0 + $0x2c] sm:$0x1]  ;;  %v823_v22 = vcombine.low %v1398_v17, %v1399_v18  ;;  %v1371_v24 = vld [vmem:[%s1933_s0 + $0xe] sm:$0x1]  ;;  %v1372_v26 = vld [vmem:[%s1933_s0 + $0x12] sm:$0x1] }
   0x6   :  { %v1370_v23 = vld [vmem:[%s1933_s0 + $0xc] sm:$0x1]  ;;  %v824_v25 = vcombine.low %v1400_v19, %v1401_v21  ;;  %v1373_v27 = vld [vmem:[%s1933_s0 + $0x14] sm:$0x1]  ;;  %vm69_vm3 = vsmask.f32 2312 }
   0x7   :  { %v711_v28 = vcombine.low %v1370_v23, %v1371_v24  ;;  %v941_v29 = vrot.slane %v933_v10, %v1619_v20  ;;  %v948_v30 = vrot.slane %v934_v11, %v1619_v20  ;;  %v801_v31 = vrot.slane %v793_v15, %v1619_v20  ;;  %v1438_v33 = vld.sshfl [vmem:[%s1933_s0 + $0x2] sm:$0x11 pattern:$0x75316420]  ;;  %v1458_v41 = vld [vmem:[%s1933_s0 + $0x1a] sm:$0x1]  ;;  %vm70_vm5 = vmor %vm68_vm2, %vm69_vm3 }
   0x8   :  { %v808_v32 = vrot.slane %v794_v16, %v1619_v20  ;;  %v831_v34 = vrot.slane %v823_v22, %v1619_v20  ;;  %v838_v35 = vrot.slane %v824_v25, %v1619_v20  ;;  %v712_v36 = vcombine.low %v1372_v26, %v1373_v27  ;;  %v1439_v38 = vld.sshfl [vmem:[%s1933_s0 + $0x4] sm:$0x11 pattern:$0x75316420]  ;;  %v1459_v44 = vld [vmem:[%s1933_s0 + $0x1c] sm:$0x1] }
   0x9   :  { %v719_v37 = vrot.slane %v711_v28, %v1619_v20  ;;  %v949_v39 = vcombine.low %v941_v29, %v948_v30  ;;  %vm71_vm4 = vsmask.f32 3340  ;;  %vm73_vm6 = vsmask.f32 4368  ;;  %v1460_v47 = vld [vmem:[%s1933_s0 + $0x20] sm:$0x1] }
   0xa   :  { %v809_v40 = vcombine.low %v801_v31, %v808_v32  ;;  %v839_v42 = vcombine.low %v831_v34, %v838_v35  ;;  %v726_v43 = vrot.slane %v712_v36, %v1619_v20  ;;  %vm75_vm7 = vsmask.f32 5396  ;;  %vm72_vm8 = vmor %vm70_vm5, %vm71_vm4  ;;  %v1440_v50 = vld.sshfl [vmem:[%s1933_s0 + $0x8] sm:$0x11 pattern:$0x75316420] }
   0xb   :  { %v956_v45 = vrot.slane %v949_v39, %v1619_v20  ;;  %vm77_vm9 = vsmask.f32 6424  ;;  %vm79_vm10 = vsmask.f32 7452  ;;  %vm74_vm11 = vmor %vm72_vm8, %vm73_vm6  ;;  %v380_v51 = vcombine.high %v1438_v33, %v1438_v33  ;;  %v1461_v53 = vld [vmem:[%s1933_s0 + $0x22] sm:$0x1] }
   0xc   :  { %v816_v46 = vrot.slane %v809_v40, %v1619_v20  ;;  %v846_v48 = vrot.slane %v839_v42, %v1619_v20  ;;  %v727_v49 = vcombine.low %v719_v37, %v726_v43  ;;  %v388_v52 = vcombine.high %v1439_v38, %v1439_v38  ;;  %s1555_s10 = smov 64   ;;  %vm76_vm12 = vmor %vm74_vm11, %vm75_vm7  ;;  %v1441_v54 = vld.sshfl [vmem:[%s1933_s0 + $0xa] sm:$0x11 pattern:$0x75316420]  ;;  %s1556_s21 = smov 80  }
   0xd   :  { %957 = vrot.lane.b32.xlu0 %v956_v45, %s1554_s9  ;;  %v396_v55 = vcombine.high %v1440_v50, %v1440_v50  ;;  %v406_v56 = vshrl.u32 %v1438_v33, 16  ;;  %v415_v57 = vshrl.u32 %v1439_v38, 16  ;;  %v1015_v58 = vcombine.low %v1458_v41, %v1459_v44  ;;  %vm78_vm13 = vmor %vm76_vm12, %vm77_vm9  ;;  %v1374_v63 = vld.sshfl [vmem:[%s1933_s0] sm:$0x11 pattern:$0x75316420] }
   0xe   :  { %817 = vrot.lane.b32.xlu1 %v816_v46, %s1555_s10  ;;  %v734_v59 = vrot.slane %v727_v49, %v1619_v20  ;;  %v404_v60 = vcombine.high %v1441_v54, %v1441_v54  ;;  %v411_v61 = vshll.u32 %v380_v51, 16  ;;  %v420_v62 = vshll.u32 %v388_v52, 16  ;;  %v1462_v0 = vld [vmem:[%s1933_s0 + $0x26] sm:$0x1]  ;;  %vm1684_vm14 = vmor %vm78_vm13, %vm79_vm10  ;;  %v1463_v6 = vld [vmem:[%s1933_s0 + $0x28] sm:$0x1] }
   0xf   :  { %v424_v2 = vshrl.u32 %v1440_v50, 16  ;;  %v429_v3 = vshll.u32 %v396_v55, 16  ;;  %v433_v4 = vshrl.u32 %v1441_v54, 16  ;;  %v1016_v5 = vcombine.low %v1460_v47, %v1461_v53  ;;  %v1464_v16 = vld [vmem:[%s1933_s0 + $0x2c] sm:$0x1]  ;;  %v1537_v24 = vld [vmem:[%s1934_s1 + $0x78] sm:$0xff]  }
  0x10   :  { %v413_v7 = vsel %vm1684_vm14, %v406_v56, %v411_v61  ;;  %v422_v8 = vsel %vm1684_vm14, %v415_v57, %v420_v62  ;;  %v438_v9 = vshll.u32 %v404_v60, 16  ;;  %v1023_v10 = vrot.slane %v1015_v58, %v1619_v20  ;;  %v1376_v11 = vld.sshfl [vmem:[%s1933_s0 + $0x6] sm:$0x11 pattern:$0x75316420]  ;;  %1507 = vmatprep.subr.bf16.mxu0 %v1537_v24  ;;  %v1538_v53 = vld [vmem:[%s1934_s1 + $0x38] sm:$0xff]  }
  0x11   :  { %735 = vrot.lane.b32.xlu0 %v734_v59, %s1554_s9  ;;  %v431_v12 = vsel %vm1684_vm14, %v424_v2, %v429_v3  ;;  %v959_v13 = vcombine.low %v413_v7, %v422_v8  ;;  %v1030_v14 = vrot.slane %v1016_v5, %v1619_v20  ;;  %v82_v15 = vshrl.u32 %v1374_v63, 16  ;;  %v1465_v17 = vld [vmem:[%s1933_s0 + $0x2e] sm:$0x1]  ;;  %v1539_v59 = vld [vmem:[%s1934_s1 + $0x70] sm:$0xff]   ;;  %1508 = vmatpush3.bf16.msra.mxu0 %v1538_v53  ;;  %s1557_s23 = smov 32   ;;  %s1558_s22 = smov 48  }
  0x12   :  { %847 = vrot.lane.b32.xlu1 %v846_v48, %s1556_s21  ;;  %v440_v18 = vsel %vm1684_vm14, %v433_v4, %v438_v9  ;;  %v41_v19 = vcombine.high %v1374_v63, %v1374_v63  ;;  %v57_v21 = vcombine.high %v1376_v11, %v1376_v11  ;;  %v100_v22 = vshrl.u32 %v1376_v11, 16  ;;  %v1386_v23 = vld.sshfl [vmem:[%s1933_s0 + $0xc] sm:$0x11 pattern:$0x75316420]  ;;  %1509 = vmatprep.subr.bf16.mxu0 %v1539_v59  ;;  %s1559_s27 = smov 96  }
  0x13   :  { %v960_v25 = vcombine.low %v431_v12, %v440_v18  ;;  %v967_v26 = vrot.slane %v959_v13, %v1619_v20  ;;  %v1031_v27 = vcombine.low %v1023_v10, %v1030_v14  ;;  %v1045_v28 = vcombine.low %v1462_v0, %v1463_v6  ;;  %v1387_v29 = vld.sshfl [vmem:[%s1933_s0 + $0xe] sm:$0x11 pattern:$0x75316420]  ;;  %s1560_s8 = smov 112  }
  0x14   :  { %v87_v30 = vshll.u32 %v41_v19, 16  ;;  %v105_v31 = vshll.u32 %v57_v21, 16  ;;  %v1046_v32 = vcombine.low %v1464_v16, %v1465_v17  ;;  %v1388_v33 = vld.sshfl [vmem:[%s1933_s0 + $0x12] sm:$0x11 pattern:$0x75316420]  ;;  %v132_v34 = vcombine.high %v1386_v23, %v1386_v23 }
  0x15   :  { %v974_v35 = vrot.slane %v960_v25, %v1619_v20  ;;  %v1038_v36 = vrot.slane %v1031_v27, %v1619_v20  ;;  %v1053_v37 = vrot.slane %v1045_v28, %v1619_v20  ;;  %v1389_v38 = vld.sshfl [vmem:[%s1933_s0 + $0x14] sm:$0x11 pattern:$0x75316420]  ;;  %v140_v39 = vcombine.high %v1387_v29, %v1387_v29 }
  0x16   :  { %v89_v40 = vsel %vm1684_vm14, %v82_v15, %v87_v30  ;;  %v107_v41 = vsel %vm1684_vm14, %v100_v22, %v105_v31  ;;  %v1060_v42 = vrot.slane %v1046_v32, %v1619_v20  ;;  %v148_v43 = vcombine.high %v1388_v33, %v1388_v33  ;;  %v1451_v48 = vld.sshfl [vmem:[%s1933_s0 + $0x10] sm:$0x11 pattern:$0x75316420] }
  0x17   :  { %v975_v44 = vcombine.low %v967_v26, %v974_v35  ;;  %1039 = vrot.lane.b32.xlu0 %v1038_v36, %s1555_s10  ;;  %v737_v45 = vcombine.low %v89_v40, %v413_v7  ;;  %v738_v46 = vcombine.low %v107_v41, %v431_v12  ;;  %v156_v47 = vcombine.high %v1389_v38, %v1389_v38  ;;  %v1453_v58 = vld.sshfl [vmem:[%s1933_s0 + $0x16] sm:$0x11 pattern:$0x75316420] }
  0x18   :  { %v1061_v49 = vcombine.low %v1053_v37, %v1060_v42  ;;  %v158_v50 = vshrl.u32 %v1386_v23, 16  ;;  %v163_v51 = vshll.u32 %v132_v34, 16  ;;  %v167_v52 = vshrl.u32 %v1387_v29, 16  ;;  %v1540_v32 = vld [vmem:[%s1934_s1 + $0x30] sm:$0xff]   ;;  %v1541_v42 = vld [vmem:[%s1934_s1 + $0x68] sm:$0xff]  }
  0x19   :  { %v982_v54 = vrot.slane %v975_v44, %v1619_v20  ;;  %v745_v55 = vrot.slane %v737_v45, %v1619_v20  ;;  %v752_v56 = vrot.slane %v738_v46, %v1619_v20  ;;  %v172_v57 = vshll.u32 %v140_v39, 16  ;;  %v1406_v0 = vld.sshfl [vmem:[%s1933_s0 + $0x18] sm:$0x11 pattern:$0x75316420]  ;;  %1510 = vmatpush3.bf16.msra.mxu0 %v1540_v32 }
  0x1a   :  { %v1068_v60 = vrot.slane %v1061_v49, %v1619_v20  ;;  %v165_v61 = vsel %vm1684_vm14, %v158_v50, %v163_v51  ;;  %v176_v62 = vshrl.u32 %v1388_v33, 16  ;;  %v181_v63 = vshll.u32 %v148_v43, 16  ;;  %v1407_v2 = vld.sshfl [vmem:[%s1933_s0 + $0x1a] sm:$0x11 pattern:$0x75316420]  ;;  %1511 = vmatprep.subr.bf16.mxu0 %v1541_v42 }
  0x1b   :  { %983 = vrot.lane.b32.xlu1 %v982_v54, %s1557_s23  ;;  %v753_v3 = vcombine.low %v745_v55, %v752_v56  ;;  %v174_v4 = vsel %vm1684_vm14, %v167_v52, %v172_v57  ;;  %v185_v5 = vshrl.u32 %v1389_v38, 16  ;;  %v190_v6 = vshll.u32 %v156_v47, 16  ;;  %v1408_v7 = vld.sshfl [vmem:[%s1933_s0 + $0x1e] sm:$0x11 pattern:$0x75316420] }
  0x1c   :  { %1069 = vrot.lane.b32.xlu0 %v1068_v60, %s1556_s21  ;;  %v183_v8 = vsel %vm1684_vm14, %v176_v62, %v181_v63  ;;  %v763_v9 = vcombine.low %v165_v61, %v174_v4  ;;  %v464_v10 = vcombine.high %v1451_v48, %v1451_v48  ;;  %v480_v11 = vcombine.high %v1453_v58, %v1453_v58  ;;  %v1409_v12 = vld.sshfl [vmem:[%s1933_s0 + $0x20] sm:$0x11 pattern:$0x75316420]  ;;  %v1427_v32 = vld [vmem:[%s1933_s0 + $0x4] sm:$0x1] }
  0x1d   :  { %v760_v13 = vrot.slane %v753_v3, %v1619_v20  ;;  %v192_v14 = vsel %vm1684_vm14, %v185_v5, %v190_v6  ;;  %v491_v15 = vshrl.u32 %v1451_v48, 16  ;;  %v509_v16 = vshrl.u32 %v1453_v58, 16  ;;  %v1471_v30 = vld.sshfl [vmem:[%s1933_s0 + $0x1c] sm:$0x11 pattern:$0x75316420] }
  0x1e   :  { %v764_v17 = vcombine.low %v183_v8, %v192_v14  ;;  %v771_v18 = vrot.slane %v763_v9, %v1619_v20  ;;  %v496_v19 = vshll.u32 %v464_v10, 16  ;;  %v514_v21 = vshll.u32 %v480_v11, 16  ;;  %v1473_v31 = vld.sshfl [vmem:[%s1933_s0 + $0x22] sm:$0x11 pattern:$0x75316420] }
  0x1f   :  { %761 = vrot.lane.b32.xlu1 %v760_v13, %s1557_s23  ;;  %v218_v22 = vcombine.high %v1406_v0, %v1406_v0  ;;  %v226_v23 = vcombine.high %v1407_v2, %v1407_v2  ;;  %v234_v24 = vcombine.high %v1408_v7, %v1408_v7  ;;  %v242_v25 = vcombine.high %v1409_v12, %v1409_v12  ;;  %v1418_v37 = vld.sshfl [vmem:[%s1933_s0 + $0x24] sm:$0x11 pattern:$0x75316420]  ;;  %v1542_v48 = vld [vmem:[%s1934_s1 + $0x28] sm:$0xff]   ;;  %v1545_v10 = vld [vmem:[%s1934_s1 + $0x58] sm:$0xff]  }
  0x20   :  { %v778_v26 = vrot.slane %v764_v17, %v1619_v20  ;;  %v498_v27 = vsel %vm1684_vm14, %v491_v15, %v496_v19  ;;  %v516_v28 = vsel %vm1684_vm14, %v509_v16, %v514_v21  ;;  %v244_v29 = vshrl.u32 %v1406_v0, 16  ;;  %v1419_v47 = vld.sshfl [vmem:[%s1933_s0 + $0x26] sm:$0x11 pattern:$0x75316420]  ;;  %1512 = vmatpush3.bf16.msra.mxu0 %v1542_v48  ;;  %v1548_v48 = vld [vmem:[%s1934_s1 + $0x10] sm:$0xff]  }
  0x21   :  { %v985_v33 = vcombine.low %v174_v4, %v498_v27  ;;  %v986_v34 = vcombine.low %v192_v14, %v516_v28  ;;  %v249_v35 = vshll.u32 %v218_v22, 16  ;;  %v253_v36 = vshrl.u32 %v1407_v2, 16  ;;  %v1814_v53 = vld.sshfl [vmem:[%s1933_s0 + $0x2a] sm:$0x11 pattern:$0x75316420] }
  0x22   :  { %v779_v38 = vcombine.low %v771_v18, %v778_v26  ;;  %v258_v39 = vshll.u32 %v226_v23, 16  ;;  %v262_v40 = vshrl.u32 %v1408_v7, 16  ;;  %v267_v41 = vshll.u32 %v234_v24, 16  ;;  %v1543_v54 = vld [vmem:[%s1934_s1 + $0x60] sm:$0xff]   ;;  %v1546_v26 = vld [vmem:[%s1934_s1 + $0x18] sm:$0xff]  }
  0x23   :  { %v993_v43 = vrot.slane %v985_v33, %v1619_v20  ;;  %v1000_v44 = vrot.slane %v986_v34, %v1619_v20  ;;  %v251_v45 = vsel %vm1684_vm14, %v244_v29, %v249_v35  ;;  %v271_v46 = vshrl.u32 %v1409_v12, 16  ;;  %v1822_v59 = vld.sshfl [vmem:[%s1933_s0 + $0x2c] sm:$0x11 pattern:$0x75316420]  ;;  %1513 = vmatprep.subr.bf16.mxu0 %v1543_v54  ;;  %v1544_v5 = vld [vmem:[%s1934_s1 + $0x20] sm:$0xff]  }
  0x24   :  { %v786_v49 = vrot.slane %v779_v38, %v1619_v20  ;;  %v260_v50 = vsel %vm1684_vm14, %v253_v36, %v258_v39  ;;  %v269_v51 = vsel %vm1684_vm14, %v262_v40, %v267_v41  ;;  %v276_v52 = vshll.u32 %v242_v25, 16  ;;  %v1483_v15 = vld.sshfl [vmem:[%s1933_s0 + $0x28] sm:$0x11 pattern:$0x75316420]  ;;  %1514 = vmatpush3.bf16.msra.mxu0 %v1544_v5 }
  0x25   :  { %v1001_v55 = vcombine.low %v993_v43, %v1000_v44  ;;  %v849_v56 = vcombine.low %v251_v45, %v260_v50  ;;  %v550_v57 = vcombine.high %v1471_v30, %v1471_v30  ;;  %v566_v58 = vcombine.high %v1473_v31, %v1473_v31  ;;  %v1485_v21 = vld.sshfl [vmem:[%s1933_s0 + $0x2e] sm:$0x11 pattern:$0x75316420]  ;;  %1515 = vmatprep.subr.bf16.mxu0 %v1545_v10  ;;  %v1428_v33 = vld [vmem:[%s1933_s0 + $0x8] sm:$0x1] }
  0x26   :  { %787 = vrot.lane.b32.xlu1 %v786_v49, %s1558_s22  ;;  %v278_v60 = vsel %vm1684_vm14, %v271_v46, %v276_v52  ;;  %v577_v61 = vshrl.u32 %v1471_v30, 16  ;;  %v595_v62 = vshrl.u32 %v1473_v31, 16  ;;  %v294_v63 = vcombine.high %v1418_v37, %v1418_v37  ;;  %v1426_v31 = vld [vmem:[%s1933_s0 + $0x2] sm:$0x1]  ;;  %v1429_v34 = vld [vmem:[%s1933_s0 + $0xa] sm:$0x1] }
  0x27   :  { %v1008_v0 = vrot.slane %v1001_v55, %v1619_v20  ;;  %v850_v2 = vcombine.low %v269_v51, %v278_v60  ;;  %v857_v3 = vrot.slane %v849_v56, %v1619_v20  ;;  %v582_v4 = vshll.u32 %v550_v57, 16  ;;  %v17_v35 = vld [vmem:[%s1933_s0] sm:$0x1]  ;;  %v18_v36 = vld [vmem:[%s1933_s0 + $0x2] sm:$0x1]  ;;  %v1547_v43 = vld [vmem:[%s1934_s1 + $0x50] sm:$0xff]  }
  0x28   :  { %v600_v6 = vshll.u32 %v566_v58, 16  ;;  %v302_v7 = vcombine.high %v1419_v47, %v1419_v47  ;;  %v310_v8 = vcombine.high %v1814_v53, %v1814_v53  ;;  %v318_v9 = vcombine.high %v1822_v59, %v1822_v59  ;;  %v19_v41 = vld [vmem:[%s1933_s0 + $0x6] sm:$0x1]  ;;  %v20_v42 = vld [vmem:[%s1933_s0 + $0x8] sm:$0x1]  ;;  %1516 = vmatpush3.bf16.msra.mxu0 %v1546_v26 }
  0x29   :  { %1009 = vrot.lane.b32.xlu0 %v1008_v0, %s1558_s22  ;;  %v864_v11 = vrot.slane %v850_v2, %v1619_v20  ;;  %v584_v12 = vsel %vm1684_vm14, %v577_v61, %v582_v4  ;;  %v320_v13 = vshrl.u32 %v1418_v37, 16  ;;  %v325_v14 = vshll.u32 %v294_v63, 16  ;;  %1517 = vmatprep.subr.bf16.mxu0 %v1547_v43  ;;  %v1549_v56 = vld [vmem:[%s1934_s1 + $0x48] sm:$0xff]  }
  0x2a   :  { %v602_v16 = vsel %vm1684_vm14, %v595_v62, %v600_v6  ;;  %v1071_v17 = vcombine.low %v260_v50, %v584_v12  ;;  %v329_v18 = vshrl.u32 %v1419_v47, 16  ;;  %v334_v19 = vshll.u32 %v302_v7, 16  ;;  %v1550_v57 = vld [vmem:[%s1934_s1 + $0x8] sm:$0xff]   ;;  %v1551_v7 = vld [vmem:[%s1934_s1 + $0x40] sm:$0xff]  }
  0x2b   :  { %v865_v22 = vcombine.low %v857_v3, %v864_v11  ;;  %v1072_v23 = vcombine.low %v278_v60, %v602_v16  ;;  %v327_v24 = vsel %vm1684_vm14, %v320_v13, %v325_v14  ;;  %v338_v25 = vshrl.u32 %v1814_v53, 16 }
  0x2c   :  { %v1079_v27 = vrot.slane %v1071_v17, %v1619_v20  ;;  %v336_v28 = vsel %vm1684_vm14, %v329_v18, %v334_v19  ;;  %v343_v29 = vshll.u32 %v310_v8, 16  ;;  %v347_v30 = vshrl.u32 %v1822_v59, 16  ;;  %1518 = vmatpush3.bf16.msra.mxu0 %v1548_v48 }
  0x2d   :  { %v872_v37 = vrot.slane %v865_v22, %v1619_v20  ;;  %v1086_v38 = vrot.slane %v1072_v23, %v1619_v20  ;;  %v352_v39 = vshll.u32 %v318_v9, 16  ;;  %v875_v40 = vcombine.low %v327_v24, %v336_v28  ;;  %1519 = vmatprep.subr.bf16.mxu0 %v1549_v56 }
  0x2e   :  { %v345_v44 = vsel %vm1684_vm14, %v338_v25, %v343_v29  ;;  %v626_v45 = vcombine.high %v1483_v15, %v1483_v15  ;;  %v642_v46 = vcombine.high %v1485_v21, %v1485_v21  ;;  %v653_v47 = vshrl.u32 %v1483_v15, 16  ;;  %v1552_v15 = vld [vmem:[%s1934_s1] sm:$0xff]  }
  0x2f   :  { %873 = vrot.lane.b32.xlu1 %v872_v37, %s1559_s27  ;;  %v1087_v49 = vcombine.low %v1079_v27, %v1086_v38  ;;  %v354_v50 = vsel %vm1684_vm14, %v347_v30, %v352_v39  ;;  %v671_v51 = vshrl.u32 %v1485_v21, 16  ;;  %v883_v53 = vrot.slane %v875_v40, %v1619_v20 }
  0x30   :  { %v876_v52 = vcombine.low %v345_v44, %v354_v50  ;;  %v658_v54 = vshll.u32 %v626_v45, 16  ;;  %v676_v55 = vshll.u32 %v642_v46, 16  ;;  %v905_v59 = vcombine.low %v1426_v31, %v1427_v32  ;;  %1520 = vmatpush3.bf16.msra.mxu0 %v1550_v57 }
  0x31   :  { %v1094_v58 = vrot.slane %v1087_v49, %v1619_v20  ;;  %v906_v60 = vcombine.low %v1428_v33, %v1429_v34  ;;  %v683_v61 = vcombine.low %v17_v35, %v18_v36  ;;  %v684_v2 = vcombine.low %v19_v41, %v20_v42  ;;  %1521 = vmatprep.subr.bf16.mxu0 %v1551_v7  ;;  %v1490_v49 = vld [vmem:[%s1935_s2] ss:$0 sm:$0xff] }
  0x32   :  { %v890_v62 = vrot.slane %v876_v52, %v1619_v20  ;;  %v660_v63 = vsel %vm1684_vm14, %v653_v47, %v658_v54  ;;  %v678_v0 = vsel %vm1684_vm14, %v671_v51, %v676_v55  ;;  %v913_v5 = vrot.slane %v905_v59, %v1619_v20 }
  0x33   :  { %1095 = vrot.lane.b32.xlu0 %v1094_v58, %s1559_s27  ;;  %v1097_v3 = vcombine.low %v336_v28, %v660_v63  ;;  %v1098_v4 = vcombine.low %v354_v50, %v678_v0  ;;  %v920_v6 = vrot.slane %v906_v60, %v1619_v20  ;;  %v691_v9 = vrot.slane %v683_v61, %v1619_v20 }
  0x34   :  { %v891_v8 = vcombine.low %v883_v53, %v890_v62  ;;  %v698_v10 = vrot.slane %v684_v2, %v1619_v20  ;;  %1522 = vmatpush3.bf16.msra.mxu0 %v1552_v15  ;;  %vm1123_vm15 = vcmask 130048   ;;  %vm1127_vm0 = vcmask 261120  }
  0x35   :  { %v1105_v1 = vrot.slane %v1097_v3, %v1619_v20  ;;  %v1112_v11 = vrot.slane %v1098_v4, %v1619_v20  ;;  %v921_v12 = vcombine.low %v913_v5, %v920_v6  ;;  %vm1130_vm1 = vcmask 392192  }
  0x36   :  { %v898_v13 = vrot.slane %v891_v8, %v1619_v20  ;;  %v699_v14 = vcombine.low %v691_v9, %v698_v10  ;;  %vm1133_vm2 = vcmask 523264   ;;  %vm1136_vm3 = vcmask 654336  }
  0x37   :  { %v1113_v16 = vcombine.low %v1105_v1, %v1112_v11  ;;  %v928_v17 = vrot.slane %v921_v12, %v1619_v20  ;;  %vm1139_vm4 = vcmask 785408   ;;  %vm1142_vm5 = vcmask 916480  }
  0x38   :  { %899 = vrot.lane.b32.xlu1 %v898_v13, %s1560_s8  ;;  %v706_v18 = vrot.slane %v699_v14, %v1619_v20  ;;  %vm1357_vm7 = vcmask 1040384   ;;  %vm1359_vm8 = vcmask 1041408  }
  0x39   :  { %v1120_v19 = vrot.slane %v1113_v16, %v1619_v20 }
  0x3b   :  { %1121 = vrot.lane.b32.xlu0 %v1120_v19, %s1560_s8 }
  0x7f   :  { %v958_v22 = vpop.permute.xlu0 %957 }
  0x80   :  { %v818_v21 = vpop.permute.xlu1 %817  ;;  %v1148_v32 = vsel %vm1123_vm15, %v928_v17, %v958_v22 }
  0x83   :  { %v736_v24 = vpop.permute.xlu0 %735 }
  0x84   :  { %v848_v23 = vpop.permute.xlu1 %847  ;;  %v1126_v30 = vsel %vm1123_vm15, %v706_v18, %v736_v24 }
  0x89   :  { %v1040_v26 = vpop.permute.xlu0 %1039 }
  0x8d   :  { %v984_v25 = vpop.permute.xlu1 %983 }
  0x8e   :  { %v1070_v28 = vpop.permute.xlu0 %1069  ;;  %v1150_v34 = vsel %vm1127_vm0, %v1148_v32, %v984_v25 }
  0x91   :  { %v762_v27 = vpop.permute.xlu1 %761 }
  0x92   :  { %v1129_v33 = vsel %vm1127_vm0, %v1126_v30, %v762_v27 }
  0x98   :  { %v788_v29 = vpop.permute.xlu1 %787 }
  0x99   :  { %v1132_v20 = vsel %vm1130_vm1, %v1129_v33, %v788_v29 }
  0x9a   :  { %v1135_v37 = vsel %vm1133_vm2, %v1132_v20, %v818_v21 }
  0x9b   :  { %v1010_v31 = vpop.permute.xlu0 %1009  ;;  %v1138_v40 = vsel %vm1136_vm3, %v1135_v37, %v848_v23 }
  0x9c   :  { %v1152_v35 = vsel %vm1130_vm1, %v1150_v34, %v1010_v31 }
  0x9d   :  { %v1154_v38 = vsel %vm1133_vm2, %v1152_v35, %v1040_v26 }
  0x9e   :  { %v1156_v41 = vsel %vm1136_vm3, %v1154_v38, %v1070_v28 }
  0xa1   :  { %v874_v36 = vpop.permute.xlu1 %873 }
  0xa2   :  { %v1141_v43 = vsel %vm1139_vm4, %v1138_v40, %v874_v36 }
  0xa5   :  { %v1096_v39 = vpop.permute.xlu0 %1095 }
  0xa6   :  { %v1158_v44 = vsel %vm1139_vm4, %v1156_v41, %v1096_v39 }
  0xaa   :  { %v900_v42 = vpop.permute.xlu1 %899 }
  0xab   :  { %v1144_v46 = vsel %vm1142_vm5, %v1141_v43, %v900_v42 }
  0xad   :  { %v1122_v45 = vpop.permute.xlu0 %1121 }
  0xae   :  { %v1160_v47 = vsel %vm1142_vm5, %v1158_v44, %v1122_v45 }
  0xaf   :  { %1329 = vmatprep.mubr.bf16.mxu0 %v1160_v47 }
  0xb0   :  { %1330 = vmatmul.mubr.bf16.vlgmr.msra.gmra.mxu0 %v1144_v46 }
 0x170   :  { %v1523_v48 = vpop.f32.mrf.mxu0 }
 0x172   :  { %v1524_v50 = vpop.f32.mrf.mxu0 }
 0x173   :  { %v1525_v51 = vadd.f32 %v1524_v50, %v1523_v48 }
 0x174   :  { %v1526_v52 = vpop.f32.mrf.mxu0 }
 0x175   :  { %v1332_v53 = vadd.f32 %v1525_v51, %v1490_v49 }
 0x176   :  { %v1527_v54 = vpop.f32.mrf.mxu0 }
 0x177   :  { %vm1337_vm6 = vcmp.gt.f32.partialorder %v1332_v53, 0.0  ;;  %v1338_v55 = vmul.f32 0.2, %v1332_v53 }
 0x179   :  { %v1339_v56 = vsel %vm1337_vm6, %v1332_v53, %v1338_v55 }
 0x17a   :  { %v1340_v57 = vrot.slane %v1339_v56, 4  ;;  %v1355_v58 = vpack.c.bf16 %v1339_v56, %v1339_v56 }
 0x17c   :  { %v1341_v59 = vadd.f32 %v1340_v57, %v1339_v56  ;;  %1356 = vst [vmem:[%s1936_s3] sm:$0xf] %v1355_v58 }
 0x17e   :  { %v1342_v60 = vrot.slane %v1341_v59, 2 }
 0x180   :  { %v1343_v61 = vadd.f32 %v1342_v60, %v1341_v59 }
 0x182   :  { %v1344_v62 = vrot.slane %v1343_v61, 1 }
 0x184   :  { %v1345_v63 = vadd.f32 %v1344_v62, %v1343_v61 }
 0x186   :  { %v1346_v0 = vmul.f32 0.125, %v1345_v63 }
 0x188   :  { %v1347_v2 = vsub.f32 %v1339_v56, %v1346_v0 }
 0x18a   :  { %v1348_v3 = vmul.f32 %v1347_v2, %v1347_v2 }
 0x18c   :  { %v1349_v4 = vrot.slane %v1348_v3, 4 }
 0x18e   :  { %v1350_v5 = vadd.f32 %v1349_v4, %v1348_v3 }
 0x190   :  { %v1351_v6 = vrot.slane %v1350_v5, 2 }
 0x192   :  { %v1352_v7 = vadd.f32 %v1351_v6, %v1350_v5 }
 0x194   :  { %v1353_v8 = vrot.slane %v1352_v7, 1 }
 0x196   :  { %v1354_v9 = vadd.f32 %v1353_v8, %v1352_v7 }
 0x198   :  { %v1358_v10 = vsel %vm1357_vm7, %v1345_v63, %v1354_v9 }
 0x199   :  { %v1360_v1 = vsel %vm1359_vm8, %v1358_v10, 0.0 }
 0x19a   :  { %1361 = vst [vmem:[%s1937_s4] sm:$0xff] %v1360_v1 }

// kernel: encoder_forward.6
= control target key start
LH: loop header
LB: loop body
LE: loop exit
PB: predicated region body
PF: predicated region fallthrough
CT: control target
= control target key end

     0   :  { %v1644_v0 = vlaneseq  ;;  %v2892_v1 = vmov 1983009808   ;;  %vm114_vm0 = vsmask.f32 1280  ;;  %vm115_vm1 = vsmask.f32 3336  ;;  %s3462_s0 = inlined_call_operand.vmem [shape: bf16[4,2,5,5,8], index: 0, kind: input, shape index: {}]   ;;  %s3463_s1 = inlined_call_operand.vmem [shape: bf16[128,128], index: 1, kind: input, shape index: {}]   ;;  %s3464_s2 = inlined_call_operand.vmem [shape: f32[1,128], index: 2, kind: input, shape index: {}]   ;;  %s3465_s3 = inlined_call_operand.vmem [shape: bf16[32,128], index: 3, kind: output, shape index: {0}]   ;;  %s3466_s4 = inlined_call_operand.vmem [shape: f32[8,128], index: 4, kind: output, shape index: {1}]  }
   0x1   :  { %v1642_v2 = vunpack.c.l.s4 %v2892_v1  ;;  %v2860_v4 = vld.sshfl [vmem:[%s3462_s0 + $0x64] sm:$0xf pattern:$0x76325410]  ;;  %s2893_s9 = smov 32   ;;  %s2894_s10 = smov 8   ;;  %vm116_vm3 = vmor %vm114_vm0, %vm115_vm1 }
   0x2   :  { %v1645_v3 = vshrl.u32 %v1644_v0, 7  ;;  %v2861_v6 = vld.sshfl [vmem:[%s3462_s0 + $0x6c] sm:$0xf pattern:$0x76325410]  ;;  %s2895_s15 = smov 40  }
   0x3   :  { %v1643_v5 = vunpack.c.0.s8 %v1642_v2  ;;  %v2862_v7 = vld.sshfl [vmem:[%s3462_s0 + $0x28] sm:$0xf pattern:$0x76325410]  ;;  %v1836_v13 = vcombine.low %v2860_v4, %v2861_v6  ;;  %vm117_vm2 = vsmask.f32 5392 }
   0x4   :  { %v2863_v9 = vld.sshfl [vmem:[%s3462_s0 + $0x30] sm:$0xf pattern:$0x76325410]  ;;  %vm119_vm4 = vsmask.f32 7448  ;;  %vm118_vm5 = vmor %vm116_vm3, %vm117_vm2 }
   0x5   :  { %v2942_v8 = vsub.s32 %v1643_v5, %v1645_v3  ;;  %v2864_v10 = vld.sshfl [vmem:[%s3462_s0 + $0x8c] sm:$0xf pattern:$0x76325410]  ;;  %v1697_v14 = vcombine.low %v2862_v7, %v2863_v9  ;;  %1839 = vrot.lane.b32.xlu1 %v1836_v13, %s2893_s9  ;;  %vm2979_vm6 = vmor %vm118_vm5, %vm119_vm4  ;;  %s2897_s5 = smov 24   ;;  %s2898_s22 = smov 48  }
   0x6   :  { %v2865_v11 = vld.sshfl [vmem:[%s3462_s0 + $0x94] sm:$0xf pattern:$0x76325410]  ;;  %s2899_s23 = smov 56   ;;  %s2900_s6 = smov 64  }
   0x7   :  { %v2866_v12 = vld.sshfl [vmem:[%s3462_s0 + $0x3c] sm:$0xf pattern:$0x76325410]  ;;  %1715 = vrot.lane.b32.xlu0 %v1697_v14, %s2894_s10  ;;  %v1882_v19 = vcombine.low %v2864_v10, %v2865_v11  ;;  %s2901_s13 = smov 72   ;;  %s2902_s20 = smov 80  }
   0x8   :  { %v2867_v15 = vld.sshfl [vmem:[%s3462_s0 + $0x44] sm:$0xf pattern:$0x76325410]  ;;  %s2904_s28 = smov 96   ;;  %s2906_s29 = smov 112  }
   0x9   :  { %v2578_v16 = vld.sshfl [vmem:[%s3462_s0] sm:$0x13 pattern:$0x76325410]  ;;  %v1714_v24 = vcombine.low %v2866_v12, %v2867_v15  ;;  %1885 = vrot.lane.b32.xlu1 %v1882_v19, %s2895_s15  ;;  %s2907_s30 = smov 120   ;;  %vm2299_vm7 = vcmask 64512  }
   0xa   :  { %v2579_v17 = vld.sshfl [vmem:[%s3462_s0 + $0x4] sm:$0x13 pattern:$0x76325410]  ;;  %v57_v18 = vcombine.high %v2578_v16, %v2578_v16  ;;  %v122_v26 = vshrl.u32 %v2578_v16, 16  ;;  %v125_v27 = vshll.u32 %v2578_v16, 16 }
   0xb   :  { %v2580_v20 = vld.sshfl [vmem:[%s3462_s0 + $0x8] sm:$0x13 pattern:$0x76325410]  ;;  %v65_v21 = vcombine.high %v2579_v17, %v2579_v17  ;;  %v136_v29 = vshrl.u32 %v2579_v17, 16  ;;  %v139_v30 = vshll.u32 %v2579_v17, 16  ;;  %1717 = vrot.lane.b32.xlu0 %v1714_v24, %s2894_s10 }
   0xc   :  { %v2581_v22 = vld.sshfl [vmem:[%s3462_s0 + $0xc] sm:$0x13 pattern:$0x76325410]  ;;  %v73_v23 = vcombine.high %v2580_v20, %v2580_v20  ;;  %v131_v28 = vshll.u32 %v57_v18, 16  ;;  %v124_v32 = vrot.slane %v122_v26, 6 }
   0xd   :  { %v81_v25 = vcombine.high %v2581_v22, %v2581_v22  ;;  %v145_v31 = vshll.u32 %v65_v21, 16  ;;  %v127_v33 = vrot.slane %v125_v27, 7  ;;  %v150_v34 = vshrl.u32 %v2580_v20, 16  ;;  %s2896_s10 = smov 16  }
   0xe   :  { %v153_v35 = vshll.u32 %v2580_v20, 16  ;;  %v133_v36 = vrot.slane %v131_v28, 7  ;;  %v138_v37 = vrot.slane %v136_v29, 6  ;;  %v141_v38 = vrot.slane %v139_v30, 7 }
   0xf   :  { %v147_v39 = vrot.slane %v145_v31, 7  ;;  %v128_v40 = vor.u32 %v127_v33, %v124_v32  ;;  %v152_v41 = vrot.slane %v150_v34, 6  ;;  %v159_v43 = vshll.u32 %v73_v23, 16 }
  0x10   :  { %v155_v42 = vrot.slane %v153_v35, 7  ;;  %v2868_v44 = vld.sshfl [vmem:[%s3462_s0 + $0x50] sm:$0xf pattern:$0x76325410]  ;;  %v142_v46 = vor.u32 %v141_v38, %v138_v37  ;;  %v164_v47 = vshrl.u32 %v2581_v22, 16 }
  0x11   :  { %v167_v48 = vshll.u32 %v2581_v22, 16  ;;  %v173_v49 = vshll.u32 %v81_v25, 16  ;;  %v2869_v50 = vld.sshfl [vmem:[%s3462_s0 + $0x58] sm:$0xf pattern:$0x76325410] }
  0x12   :  { %v129_v51 = vrot.slane %v128_v40, 2  ;;  %v156_v52 = vor.u32 %v155_v42, %v152_v41  ;;  %v161_v53 = vrot.slane %v159_v43, 7  ;;  %v2582_v54 = vld.sshfl [vmem:[%s3462_s0 + $0x14] sm:$0x13 pattern:$0x76325410]  ;;  %v1819_v6 = vcombine.low %v2868_v44, %v2869_v50 }
  0x13   :  { %v143_v55 = vrot.slane %v142_v46, 2  ;;  %v166_v56 = vrot.slane %v164_v47, 6  ;;  %v169_v57 = vrot.slane %v167_v48, 7  ;;  %v175_v58 = vrot.slane %v173_v49, 7 }
  0x14   :  { %v134_v59 = vsel %vm2979_vm6, %v129_v51, %v133_v36  ;;  %v157_v60 = vrot.slane %v156_v52, 2  ;;  %v2583_v61 = vld.sshfl [vmem:[%s3462_s0 + $0x18] sm:$0x13 pattern:$0x76325410]  ;;  %v89_v62 = vcombine.high %v2582_v54, %v2582_v54  ;;  %v178_v3 = vshrl.u32 %v2582_v54, 16  ;;  %1837 = vrot.lane.b32.xlu0 %v1819_v6, %s2893_s9 }
  0x15   :  { %v148_v63 = vsel %vm2979_vm6, %v143_v55, %v147_v39  ;;  %v170_v0 = vor.u32 %v169_v57, %v166_v56  ;;  %v2584_v1 = vld.sshfl [vmem:[%s3462_s0 + $0x1c] sm:$0x13 pattern:$0x76325410]  ;;  %v97_v2 = vcombine.high %v2583_v61, %v2583_v61  ;;  %v181_v13 = vshll.u32 %v2582_v54, 16 }
  0x16   :  { %v162_v4 = vsel %vm2979_vm6, %v157_v60, %v161_v53  ;;  %v1719_v5 = vcombine.low %v134_v59, %v148_v63  ;;  %v2585_v7 = vld.sshfl [vmem:[%s3462_s0 + $0x20] sm:$0x13 pattern:$0x76325410]  ;;  %v105_v9 = vcombine.high %v2584_v1, %v2584_v1  ;;  %v180_v12 = vrot.slane %v178_v3, 6 }
  0x17   :  { %v171_v10 = vrot.slane %v170_v0, 2  ;;  %v113_v11 = vcombine.high %v2585_v7, %v2585_v7  ;;  %v187_v15 = vshll.u32 %v89_v62, 16  ;;  %v192_v16 = vshrl.u32 %v2583_v61, 16 }
  0x18   :  { %v1727_v14 = vrot.slane %v1719_v5, %v2942_v8  ;;  %v195_v17 = vshll.u32 %v2583_v61, 16  ;;  %v183_v19 = vrot.slane %v181_v13, 7  ;;  %v201_v20 = vshll.u32 %v97_v2, 16 }
  0x19   :  { %v176_v18 = vsel %vm2979_vm6, %v171_v10, %v175_v58  ;;  %v206_v21 = vshrl.u32 %v2584_v1, 16  ;;  %v189_v23 = vrot.slane %v187_v15, 7  ;;  %v194_v24 = vrot.slane %v192_v16, 6 }
  0x1a   :  { %v1720_v22 = vcombine.low %v162_v4, %v176_v18  ;;  %v197_v25 = vrot.slane %v195_v17, 7  ;;  %v184_v26 = vor.u32 %v183_v19, %v180_v12  ;;  %v203_v27 = vrot.slane %v201_v20, 7  ;;  %v2870_v34 = vld.sshfl [vmem:[%s3462_s0 + $0x78] sm:$0xf pattern:$0x76325410] }
  0x1b   :  { %v208_v28 = vrot.slane %v206_v21, 6  ;;  %v209_v29 = vshll.u32 %v2584_v1, 16  ;;  %v215_v32 = vshll.u32 %v105_v9, 16  ;;  %v220_v33 = vshrl.u32 %v2585_v7, 16 }
  0x1c   :  { %v1734_v30 = vrot.slane %v1720_v22, %v2942_v8  ;;  %v198_v31 = vor.u32 %v197_v25, %v194_v24  ;;  %v2871_v35 = vld.sshfl [vmem:[%s3462_s0 + $0x80] sm:$0xf pattern:$0x76325410]  ;;  %v185_v36 = vrot.slane %v184_v26, 2  ;;  %v223_v38 = vshll.u32 %v2585_v7, 16 }
  0x1d   :  { %v211_v37 = vrot.slane %v209_v29, 7  ;;  %v229_v39 = vshll.u32 %v113_v11, 16  ;;  %v2598_v40 = vld.sshfl [vmem:[%s3462_s0 + $0x3c] sm:$0x13 pattern:$0x76325410]  ;;  %v1865_v59 = vcombine.low %v2870_v34, %v2871_v35 }
  0x1e   :  { %v1735_v41 = vcombine.low %v1727_v14, %v1734_v30  ;;  %v199_v42 = vrot.slane %v198_v31, 2  ;;  %v217_v43 = vrot.slane %v215_v32, 7  ;;  %v222_v44 = vrot.slane %v220_v33, 6 }
  0x1f   :  { %v190_v46 = vsel %vm2979_vm6, %v185_v36, %v189_v23  ;;  %v212_v47 = vor.u32 %v211_v37, %v208_v28  ;;  %v225_v48 = vrot.slane %v223_v38, 7  ;;  %v231_v49 = vrot.slane %v229_v39, 7  ;;  %v2599_v50 = vld.sshfl [vmem:[%s3462_s0 + $0x40] sm:$0x13 pattern:$0x76325410]  ;;  %1883 = vrot.lane.b32.xlu0 %v1865_v59, %s2895_s15 }
  0x20   :  { %1753 = vrot.lane.b32.xlu1 %v1735_v41, %s2896_s10  ;;  %v3026_v51 = vsel %vm2979_vm6, %v199_v42, %v203_v27  ;;  %v2600_v52 = vld.sshfl [vmem:[%s3462_s0 + $0x44] sm:$0x13 pattern:$0x76325410]  ;;  %v288_v53 = vcombine.high %v2598_v40, %v2598_v40  ;;  %v296_v58 = vcombine.high %v2599_v50, %v2599_v50  ;;  %v370_v62 = vshrl.u32 %v2598_v40, 16 }
  0x21   :  { %v213_v54 = vrot.slane %v212_v47, 2  ;;  %v226_v55 = vor.u32 %v225_v48, %v222_v44  ;;  %v1736_v56 = vcombine.low %v190_v46, %v3026_v51  ;;  %v2601_v57 = vld.sshfl [vmem:[%s3462_s0 + $0x48] sm:$0x13 pattern:$0x76325410]  ;;  %v304_v60 = vcombine.high %v2600_v52, %v2600_v52 }
  0x22   :  { %v312_v61 = vcombine.high %v2601_v57, %v2601_v57  ;;  %v373_v2 = vshll.u32 %v2598_v40, 16  ;;  %v372_v3 = vrot.slane %v370_v62, 6  ;;  %v379_v4 = vshll.u32 %v288_v53, 16 }
  0x23   :  { %v3037_v63 = vsel %vm2979_vm6, %v213_v54, %v217_v43  ;;  %v227_v0 = vrot.slane %v226_v55, 2  ;;  %v1744_v1 = vrot.slane %v1736_v56, %v2942_v8  ;;  %v384_v5 = vshrl.u32 %v2599_v50, 16  ;;  %v2594_v28 = vld.sshfl [vmem:[%s3462_s0 + $0x28] sm:$0x13 pattern:$0x76325410] }
  0x24   :  { %v387_v6 = vshll.u32 %v2599_v50, 16  ;;  %v375_v9 = vrot.slane %v373_v2, 7  ;;  %v393_v10 = vshll.u32 %v296_v58, 16  ;;  %v398_v11 = vshrl.u32 %v2600_v52, 16 }
  0x25   :  { %v3043_v7 = vsel %vm2979_vm6, %v227_v0, %v231_v49  ;;  %v381_v13 = vrot.slane %v379_v4, 7  ;;  %v386_v14 = vrot.slane %v384_v5, 6  ;;  %v401_v19 = vshll.u32 %v2600_v52, 16 }
  0x26   :  { %v1737_v12 = vcombine.low %v3037_v63, %v3043_v7  ;;  %v389_v15 = vrot.slane %v387_v6, 7  ;;  %v376_v16 = vor.u32 %v375_v9, %v372_v3  ;;  %v395_v17 = vrot.slane %v393_v10, 7  ;;  %v2595_v29 = vld.sshfl [vmem:[%s3462_s0 + $0x2c] sm:$0x13 pattern:$0x76325410] }
  0x27   :  { %v400_v18 = vrot.slane %v398_v11, 6  ;;  %v407_v22 = vshll.u32 %v304_v60, 16  ;;  %v412_v23 = vshrl.u32 %v2601_v57, 16  ;;  %v403_v25 = vrot.slane %v401_v19, 7 }
  0x28   :  { %v1751_v20 = vrot.slane %v1737_v12, %v2942_v8  ;;  %v390_v21 = vor.u32 %v389_v15, %v386_v14  ;;  %v377_v24 = vrot.slane %v376_v16, 2  ;;  %v415_v26 = vshll.u32 %v2601_v57, 16  ;;  %v2596_v38 = vld.sshfl [vmem:[%s3462_s0 + $0x30] sm:$0x13 pattern:$0x76325410] }
  0x29   :  { %v421_v27 = vshll.u32 %v312_v61, 16  ;;  %v409_v32 = vrot.slane %v407_v22, 7  ;;  %v414_v33 = vrot.slane %v412_v23, 6  ;;  %v404_v35 = vor.u32 %v403_v25, %v400_v18 }
  0x2a   :  { %v1752_v30 = vcombine.low %v1744_v1, %v1751_v20  ;;  %v391_v31 = vrot.slane %v390_v21, 2  ;;  %v382_v34 = vsel %vm2979_vm6, %v377_v24, %v381_v13  ;;  %v417_v36 = vrot.slane %v415_v26, 7  ;;  %v2597_v40 = vld.sshfl [vmem:[%s3462_s0 + $0x34] sm:$0x13 pattern:$0x76325410] }
  0x2b   :  { %v423_v37 = vrot.slane %v421_v27, 7  ;;  %v256_v41 = vcombine.high %v2594_v28, %v2594_v28  ;;  %v264_v42 = vcombine.high %v2595_v29, %v2595_v29  ;;  %v272_v43 = vcombine.high %v2596_v38, %v2596_v38  ;;  %v2630_v13 = vld.sshfl [vmem:[%s3462_s0 + $0x64] sm:$0x13 pattern:$0x76325410] }
  0x2c   :  { %1755 = vrot.lane.b32.xlu1 %v1752_v30, %s2896_s10  ;;  %v3062_v39 = vsel %vm2979_vm6, %v391_v31, %v395_v17  ;;  %v405_v44 = vrot.slane %v404_v35, 2  ;;  %v418_v46 = vor.u32 %v417_v36, %v414_v33  ;;  %v280_v48 = vcombine.high %v2597_v40, %v2597_v40  ;;  %v2631_v18 = vld.sshfl [vmem:[%s3462_s0 + $0x68] sm:$0x13 pattern:$0x76325410] }
  0x2d   :  { %v1774_v47 = vcombine.low %v382_v34, %v3062_v39  ;;  %v314_v49 = vshrl.u32 %v2594_v28, 16  ;;  %v317_v50 = vshll.u32 %v2594_v28, 16  ;;  %v323_v52 = vshll.u32 %v256_v41, 16 }
  0x2e   :  { %v328_v53 = vshrl.u32 %v2595_v29, 16  ;;  %v3070_v54 = vsel %vm2979_vm6, %v405_v44, %v409_v32  ;;  %v419_v55 = vrot.slane %v418_v46, 2  ;;  %v331_v57 = vshll.u32 %v2595_v29, 16 }
  0x2f   :  { %v1782_v56 = vrot.slane %v1774_v47, %v2942_v8  ;;  %v316_v58 = vrot.slane %v314_v49, 6  ;;  %v319_v59 = vrot.slane %v317_v50, 7  ;;  %v325_v60 = vrot.slane %v323_v52, 7 }
  0x30   :  { %v330_v61 = vrot.slane %v328_v53, 6  ;;  %v3075_v62 = vsel %vm2979_vm6, %v419_v55, %v423_v37  ;;  %v333_v0 = vrot.slane %v331_v57, 7  ;;  %v337_v1 = vshll.u32 %v264_v42, 16 }
  0x31   :  { %v342_v2 = vshrl.u32 %v2596_v38, 16  ;;  %v1775_v3 = vcombine.low %v3070_v54, %v3075_v62  ;;  %v320_v4 = vor.u32 %v319_v59, %v316_v58  ;;  %v345_v5 = vshll.u32 %v2596_v38, 16  ;;  %v2632_v26 = vld.sshfl [vmem:[%s3462_s0 + $0x6c] sm:$0x13 pattern:$0x76325410] }
  0x32   :  { %v351_v6 = vshll.u32 %v272_v43, 16  ;;  %v334_v9 = vor.u32 %v333_v0, %v330_v61  ;;  %v339_v10 = vrot.slane %v337_v1, 7  ;;  %v356_v12 = vshrl.u32 %v2597_v40, 16 }
  0x33   :  { %v344_v11 = vrot.slane %v342_v2, 6  ;;  %v1789_v14 = vrot.slane %v1775_v3, %v2942_v8  ;;  %v321_v15 = vrot.slane %v320_v4, 2  ;;  %v347_v16 = vrot.slane %v345_v5, 7 }
  0x34   :  { %v353_v17 = vrot.slane %v351_v6, 7  ;;  %v335_v19 = vrot.slane %v334_v9, 2  ;;  %v358_v20 = vrot.slane %v356_v12, 6  ;;  %v359_v21 = vshll.u32 %v2597_v40, 16 }
  0x35   :  { %v365_v22 = vshll.u32 %v280_v48, 16  ;;  %v1790_v23 = vcombine.low %v1782_v56, %v1789_v14  ;;  %v326_v24 = vsel %vm2979_vm6, %v321_v15, %v325_v60  ;;  %v348_v25 = vor.u32 %v347_v16, %v344_v11  ;;  %v2633_v31 = vld.sshfl [vmem:[%s3462_s0 + $0x70] sm:$0x13 pattern:$0x76325410] }
  0x36   :  { %v498_v27 = vcombine.high %v2630_v13, %v2630_v13  ;;  %v3093_v28 = vsel %vm2979_vm6, %v335_v19, %v339_v10  ;;  %v361_v29 = vrot.slane %v359_v21, 7  ;;  %v506_v32 = vcombine.high %v2631_v18, %v2631_v18  ;;  %v2626_v3 = vld.sshfl [vmem:[%s3462_s0 + $0x50] sm:$0x13 pattern:$0x76325410] }
  0x37   :  { %v367_v30 = vrot.slane %v365_v22, 7  ;;  %1793 = vrot.lane.b32.xlu1 %v1790_v23, %s2897_s5  ;;  %v349_v33 = vrot.slane %v348_v25, 2  ;;  %v1757_v34 = vcombine.low %v326_v24, %v3093_v28  ;;  %v514_v35 = vcombine.high %v2632_v26, %v2632_v26  ;;  %v2628_v23 = vld.sshfl [vmem:[%s3462_s0 + $0x58] sm:$0x13 pattern:$0x76325410] }
  0x38   :  { %v522_v36 = vcombine.high %v2633_v31, %v2633_v31  ;;  %v362_v37 = vor.u32 %v361_v29, %v358_v20  ;;  %v580_v38 = vshrl.u32 %v2630_v13, 16  ;;  %v583_v40 = vshll.u32 %v2630_v13, 16 }
  0x39   :  { %v589_v41 = vshll.u32 %v498_v27, 16  ;;  %v3102_v42 = vsel %vm2979_vm6, %v349_v33, %v353_v17  ;;  %v1765_v43 = vrot.slane %v1757_v34, %v2942_v8  ;;  %v594_v44 = vshrl.u32 %v2631_v18, 16  ;;  %v2627_v17 = vld.sshfl [vmem:[%s3462_s0 + $0x54] sm:$0x13 pattern:$0x76325410] }
  0x3a   :  { %v597_v46 = vshll.u32 %v2631_v18, 16  ;;  %v363_v47 = vrot.slane %v362_v37, 2  ;;  %v582_v48 = vrot.slane %v580_v38, 6  ;;  %v585_v49 = vrot.slane %v583_v40, 7 }
  0x3b   :  { %v591_v50 = vrot.slane %v589_v41, 7  ;;  %v596_v52 = vrot.slane %v594_v44, 6  ;;  %v603_v55 = vshll.u32 %v506_v32, 16  ;;  %v608_v56 = vshrl.u32 %v2632_v26, 16 }
  0x3c   :  { %v599_v53 = vrot.slane %v597_v46, 7  ;;  %v3107_v57 = vsel %vm2979_vm6, %v363_v47, %v367_v30  ;;  %v586_v58 = vor.u32 %v585_v49, %v582_v48  ;;  %v611_v59 = vshll.u32 %v2632_v26, 16  ;;  %v2629_v26 = vld.sshfl [vmem:[%s3462_s0 + $0x5c] sm:$0x13 pattern:$0x76325410] }
  0x3d   :  { %v617_v60 = vshll.u32 %v514_v35, 16  ;;  %v1758_v61 = vcombine.low %v3102_v42, %v3107_v57  ;;  %v605_v1 = vrot.slane %v603_v55, 7  ;;  %v610_v2 = vrot.slane %v608_v56, 6 }
  0x3e   :  { %v600_v0 = vor.u32 %v599_v53, %v596_v52  ;;  %v587_v4 = vrot.slane %v586_v58, 2  ;;  %v613_v5 = vrot.slane %v611_v59, 7  ;;  %v622_v9 = vshrl.u32 %v2633_v31, 16 }
  0x3f   :  { %v619_v6 = vrot.slane %v617_v60, 7  ;;  %v1772_v10 = vrot.slane %v1758_v61, %v2942_v8  ;;  %v625_v12 = vshll.u32 %v2633_v31, 16  ;;  %v631_v13 = vshll.u32 %v522_v36, 16 }
  0x40   :  { %v601_v11 = vrot.slane %v600_v0, 2  ;;  %v592_v14 = vsel %vm2979_vm6, %v587_v4, %v591_v50  ;;  %v614_v15 = vor.u32 %v613_v5, %v610_v2  ;;  %v624_v16 = vrot.slane %v622_v9, 6  ;;  %v2646_v2 = vld.sshfl [vmem:[%s3462_s0 + $0x8c] sm:$0x13 pattern:$0x76325410] }
  0x41   :  { %v466_v18 = vcombine.high %v2626_v3, %v2626_v3  ;;  %v1773_v19 = vcombine.low %v1765_v43, %v1772_v10  ;;  %v627_v21 = vrot.slane %v625_v12, 7  ;;  %v633_v22 = vrot.slane %v631_v13, 7  ;;  %v2647_v13 = vld.sshfl [vmem:[%s3462_s0 + $0x90] sm:$0x13 pattern:$0x76325410] }
  0x42   :  { %v3122_v20 = vsel %vm2979_vm6, %v601_v11, %v605_v1  ;;  %v615_v24 = vrot.slane %v614_v15, 2  ;;  %v474_v27 = vcombine.high %v2627_v17, %v2627_v17  ;;  %v482_v29 = vcombine.high %v2628_v23, %v2628_v23 }
  0x43   :  { %v1904_v25 = vcombine.low %v592_v14, %v3122_v20  ;;  %1791 = vrot.lane.b32.xlu0 %v1773_v19, %s2897_s5  ;;  %v628_v30 = vor.u32 %v627_v21, %v624_v16  ;;  %v490_v31 = vcombine.high %v2629_v26, %v2629_v26  ;;  %v524_v32 = vshrl.u32 %v2626_v3, 16 }
  0x44   :  { %v527_v33 = vshll.u32 %v2626_v3, 16  ;;  %v3134_v34 = vsel %vm2979_vm6, %v615_v24, %v619_v6  ;;  %v533_v36 = vshll.u32 %v466_v18, 16  ;;  %v538_v37 = vshrl.u32 %v2627_v17, 16 }
  0x45   :  { %v1912_v35 = vrot.slane %v1904_v25, %v2942_v8  ;;  %v629_v38 = vrot.slane %v628_v30, 2  ;;  %v526_v40 = vrot.slane %v524_v32, 6  ;;  %v541_v43 = vshll.u32 %v2627_v17, 16 }
  0x46   :  { %v529_v41 = vrot.slane %v527_v33, 7  ;;  %v535_v44 = vrot.slane %v533_v36, 7  ;;  %v540_v46 = vrot.slane %v538_v37, 6  ;;  %v547_v47 = vshll.u32 %v474_v27, 16 }
  0x47   :  { %v552_v48 = vshrl.u32 %v2628_v23, 16  ;;  %v3139_v49 = vsel %vm2979_vm6, %v629_v38, %v633_v22  ;;  %v543_v52 = vrot.slane %v541_v43, 7  ;;  %v555_v53 = vshll.u32 %v2628_v23, 16 }
  0x48   :  { %v530_v50 = vor.u32 %v529_v41, %v526_v40  ;;  %v1905_v55 = vcombine.low %v3134_v34, %v3139_v49  ;;  %v549_v56 = vrot.slane %v547_v47, 7  ;;  %v561_v59 = vshll.u32 %v482_v29, 16  ;;  %v2648_v17 = vld.sshfl [vmem:[%s3462_s0 + $0x94] sm:$0x13 pattern:$0x76325410] }
  0x49   :  { %v554_v58 = vrot.slane %v552_v48, 6  ;;  %v544_v61 = vor.u32 %v543_v52, %v540_v46  ;;  %v557_v0 = vrot.slane %v555_v53, 7  ;;  %v566_v1 = vshrl.u32 %v2629_v26, 16 }
  0x4a   :  { %v531_v60 = vrot.slane %v530_v50, 2  ;;  %v1919_v3 = vrot.slane %v1905_v55, %v2942_v8  ;;  %v563_v4 = vrot.slane %v561_v59, 7  ;;  %v569_v5 = vshll.u32 %v2629_v26, 16 }
  0x4b   :  { %v575_v6 = vshll.u32 %v490_v31, 16  ;;  %v545_v10 = vrot.slane %v544_v61, 2  ;;  %v558_v11 = vor.u32 %v557_v0, %v554_v58  ;;  %v568_v12 = vrot.slane %v566_v1, 6 }
  0x4c   :  { %v536_v9 = vsel %vm2979_vm6, %v531_v60, %v535_v44  ;;  %v1920_v14 = vcombine.low %v1912_v35, %v1919_v3  ;;  %v571_v15 = vrot.slane %v569_v5, 7  ;;  %v690_v18 = vcombine.high %v2646_v2, %v2646_v2  ;;  %v2649_v22 = vld.sshfl [vmem:[%s3462_s0 + $0x98] sm:$0x13 pattern:$0x76325410] }
  0x4d   :  { %v577_v16 = vrot.slane %v575_v6, 7  ;;  %v3157_v19 = vsel %vm2979_vm6, %v545_v10, %v549_v56  ;;  %v559_v21 = vrot.slane %v558_v11, 2  ;;  %v698_v23 = vcombine.high %v2647_v13, %v2647_v13  ;;  %v2642_v0 = vld.sshfl [vmem:[%s3462_s0 + $0x78] sm:$0x13 pattern:$0x76325410] }
  0x4e   :  { %v706_v24 = vcombine.high %v2648_v17, %v2648_v17  ;;  %1923 = vrot.lane.b32.xlu1 %v1920_v14, %s2898_s22  ;;  %v572_v25 = vor.u32 %v571_v15, %v568_v12  ;;  %v1887_v26 = vcombine.low %v536_v9, %v3157_v19  ;;  %v714_v27 = vcombine.high %v2649_v22, %v2649_v22  ;;  %v2643_v5 = vld.sshfl [vmem:[%s3462_s0 + $0x7c] sm:$0x13 pattern:$0x76325410] }
  0x4f   :  { %v772_v29 = vshrl.u32 %v2646_v2, 16  ;;  %v3166_v30 = vsel %vm2979_vm6, %v559_v21, %v563_v4  ;;  %v775_v31 = vshll.u32 %v2646_v2, 16  ;;  %v781_v32 = vshll.u32 %v690_v18, 16 }
  0x50   :  { %v786_v33 = vshrl.u32 %v2647_v13, 16  ;;  %v573_v35 = vrot.slane %v572_v25, 2  ;;  %v1895_v36 = vrot.slane %v1887_v26, %v2942_v8  ;;  %v789_v38 = vshll.u32 %v2647_v13, 16 }
  0x51   :  { %v774_v37 = vrot.slane %v772_v29, 6  ;;  %v777_v40 = vrot.slane %v775_v31, 7  ;;  %v783_v41 = vrot.slane %v781_v32, 7  ;;  %v795_v44 = vshll.u32 %v698_v23, 16 }
  0x52   :  { %v788_v43 = vrot.slane %v786_v33, 6  ;;  %v3171_v46 = vsel %vm2979_vm6, %v573_v35, %v577_v16  ;;  %v791_v47 = vrot.slane %v789_v38, 7  ;;  %v800_v48 = vshrl.u32 %v2648_v17, 16 }
  0x53   :  { %v803_v50 = vshll.u32 %v2648_v17, 16  ;;  %v1888_v52 = vcombine.low %v3166_v30, %v3171_v46  ;;  %v778_v53 = vor.u32 %v777_v40, %v774_v37  ;;  %v797_v55 = vrot.slane %v795_v44, 7  ;;  %v2644_v15 = vld.sshfl [vmem:[%s3462_s0 + $0x80] sm:$0x13 pattern:$0x76325410] }
  0x54   :  { %v809_v56 = vshll.u32 %v706_v24, 16  ;;  %v792_v58 = vor.u32 %v791_v47, %v788_v43  ;;  %v802_v59 = vrot.slane %v800_v48, 6  ;;  %v814_v61 = vshrl.u32 %v2649_v22, 16 }
  0x55   :  { %v805_v60 = vrot.slane %v803_v50, 7  ;;  %v1902_v1 = vrot.slane %v1888_v52, %v2942_v8  ;;  %v779_v2 = vrot.slane %v778_v53, 2  ;;  %v817_v4 = vshll.u32 %v2649_v22, 16 }
  0x56   :  { %v811_v3 = vrot.slane %v809_v56, 7  ;;  %v793_v6 = vrot.slane %v792_v58, 2  ;;  %v816_v10 = vrot.slane %v814_v61, 6  ;;  %v823_v11 = vshll.u32 %v714_v27, 16 }
  0x57   :  { %v806_v9 = vor.u32 %v805_v60, %v802_v59  ;;  %v1903_v12 = vcombine.low %v1895_v36, %v1902_v1  ;;  %v784_v13 = vsel %vm2979_vm6, %v779_v2, %v783_v41  ;;  %v819_v14 = vrot.slane %v817_v4, 7  ;;  %v2645_v22 = vld.sshfl [vmem:[%s3462_s0 + $0x84] sm:$0x13 pattern:$0x76325410] }
  0x58   :  { %v658_v16 = vcombine.high %v2642_v0, %v2642_v0  ;;  %v3189_v17 = vsel %vm2979_vm6, %v793_v6, %v797_v55  ;;  %v825_v21 = vrot.slane %v823_v11, 7  ;;  %v666_v23 = vcombine.high %v2643_v5, %v2643_v5  ;;  %v2872_v53 = vld.sshfl [vmem:[%s3462_s0 + $0x18] sm:$0xf pattern:$0x76325410] }
  0x59   :  { %v807_v18 = vrot.slane %v806_v9, 2  ;;  %1921 = vrot.lane.b32.xlu0 %v1903_v12, %s2898_s22  ;;  %v820_v24 = vor.u32 %v819_v14, %v816_v10  ;;  %v1942_v25 = vcombine.low %v784_v13, %v3189_v17  ;;  %v674_v26 = vcombine.high %v2644_v15, %v2644_v15  ;;  %v2873_v55 = vld.sshfl [vmem:[%s3462_s0 + $0x20] sm:$0xf pattern:$0x76325410] }
  0x5a   :  { %v682_v27 = vcombine.high %v2645_v22, %v2645_v22  ;;  %v716_v31 = vshrl.u32 %v2642_v0, 16  ;;  %v719_v32 = vshll.u32 %v2642_v0, 16  ;;  %v725_v33 = vshll.u32 %v658_v16, 16 }
  0x5b   :  { %v3198_v29 = vsel %vm2979_vm6, %v807_v18, %v811_v3  ;;  %v821_v35 = vrot.slane %v820_v24, 2  ;;  %v1950_v36 = vrot.slane %v1942_v25, %v2942_v8  ;;  %v730_v37 = vshrl.u32 %v2643_v5, 16  ;;  %v3216_v61 = vld.sshfl [vmem:[%s3462_s0 + $0x4] sm:$0xf pattern:$0x76325410] }
  0x5c   :  { %v733_v38 = vshll.u32 %v2643_v5, 16  ;;  %v718_v40 = vrot.slane %v716_v31, 6  ;;  %v721_v41 = vrot.slane %v719_v32, 7  ;;  %v727_v43 = vrot.slane %v725_v33, 7  ;;  %v2852_v31 = vld [vmem:[%s3463_s1 + $0x38] sm:$0xff]  }
  0x5d   :  { %v739_v44 = vshll.u32 %v666_v23, 16  ;;  %v3203_v47 = vsel %vm2979_vm6, %v821_v35, %v825_v21  ;;  %v732_v48 = vrot.slane %v730_v37, 6  ;;  %v744_v52 = vshrl.u32 %v2644_v15, 16  ;;  %2784 = vmatprep.subr.bf16.mxu0 %v2852_v31 }
  0x5e   :  { %v735_v50 = vrot.slane %v733_v38, 7  ;;  %v1943_v56 = vcombine.low %v3198_v29, %v3203_v47  ;;  %v722_v58 = vor.u32 %v721_v41, %v718_v40  ;;  %v747_v60 = vshll.u32 %v2644_v15, 16  ;;  %v3221_v4 = vld.sshfl [vmem:[%s3462_s0 + $0xc] sm:$0xf pattern:$0x76325410]  ;;  %2785 = vmatpush3.bf16.msra.mxu0 %v2852_v31 }
  0x5f   :  { %v741_v59 = vrot.slane %v739_v44, 7  ;;  %v746_v1 = vrot.slane %v744_v52, 6  ;;  %v753_v2 = vshll.u32 %v674_v26, 16  ;;  %v758_v3 = vshrl.u32 %v2645_v22, 16  ;;  %v2853_v44 = vld [vmem:[%s3463_s1 + $0x30] sm:$0xff]  }
  0x60   :  { %v736_v0 = vor.u32 %v735_v50, %v732_v48  ;;  %v2876_v5 = vld.sshfl [vmem:[%s3462_s0 + $0x40] sm:$0xf pattern:$0x76325410]  ;;  %v1957_v6 = vrot.slane %v1943_v56, %v2942_v8  ;;  %v723_v9 = vrot.slane %v722_v58, 2  ;;  %v749_v10 = vrot.slane %v747_v60, 7  ;;  %2786 = vmatprep.subr.bf16.mxu0 %v2853_v44 }
  0x61   :  { %v761_v11 = vshll.u32 %v2645_v22, 16  ;;  %v755_v13 = vrot.slane %v753_v2, 7  ;;  %v760_v14 = vrot.slane %v758_v3, 6  ;;  %v767_v15 = vshll.u32 %v682_v27, 16 }
  0x62   :  { %v737_v12 = vrot.slane %v736_v0, 2  ;;  %v2877_v16 = vld.sshfl [vmem:[%s3462_s0 + $0x48] sm:$0xf pattern:$0x76325410]  ;;  %v1958_v18 = vcombine.low %v1950_v36, %v1957_v6  ;;  %v728_v21 = vsel %vm2979_vm6, %v723_v9, %v727_v43  ;;  %v750_v23 = vor.u32 %v749_v10, %v746_v1  ;;  %2787 = vmatpush3.bf16.msra.mxu0 %v2853_v44 }
  0x63   :  { %v763_v24 = vrot.slane %v761_v11, 7  ;;  %v3235_v25 = vld.sshfl [vmem:[%s3462_s0 + $0x2c] sm:$0xf pattern:$0x76325410]  ;;  %v769_v26 = vrot.slane %v767_v15, 7  ;;  %v2004_v36 = vcombine.low %v2872_v53, %v2873_v55  ;;  %v1987_v48 = vcombine.low %v3216_v61, %v3221_v4 }
  0x64   :  { %v3239_v22 = vsel %vm2979_vm6, %v737_v12, %v741_v59  ;;  %v3244_v27 = vld.sshfl [vmem:[%s3462_s0 + $0x34] sm:$0xf pattern:$0x76325410]  ;;  %1961 = vrot.lane.b32.xlu1 %v1958_v18, %s2899_s23  ;;  %v751_v32 = vrot.slane %v750_v23, 2  ;;  %v2050_v50 = vcombine.low %v2876_v5, %v2877_v16  ;;  %v2072_v59 = vcombine.low %v3026_v51, %v3037_v63  ;;  %v2854_v12 = vld [vmem:[%s3463_s1 + $0x28] sm:$0xff]  }
  0x65   :  { %v764_v33 = vor.u32 %v763_v24, %v760_v14  ;;  %v1925_v35 = vcombine.low %v728_v21, %v3239_v22  ;;  %v2681_v37 = vld.sshfl [vmem:[%s3462_s0 + $0x24] sm:$0x13 pattern:$0x76325410]  ;;  %v2033_v1 = vcombine.low %v3235_v25, %v3244_v27  ;;  %2788 = vmatprep.subr.bf16.mxu0 %v2854_v12  ;;  %vm2306_vm8 = vcmask 130048  }
  0x66   :  { %v3256_v38 = vsel %vm2979_vm6, %v751_v32, %v755_v13  ;;  %v2674_v43 = vld.sshfl [vmem:[%s3462_s0 + $0x4] sm:$0x13 pattern:$0x76325410]  ;;  %v924_v52 = vcombine.high %v2681_v37, %v2681_v37  ;;  %v1024_v56 = vshrl.u32 %v2681_v37, 16  ;;  %v1027_v58 = vshll.u32 %v2681_v37, 16  ;;  %2789 = vmatpush3.bf16.msra.mxu0 %v2854_v12 }
  0x67   :  { %v765_v40 = vrot.slane %v764_v33, 2  ;;  %v1933_v41 = vrot.slane %v1925_v35, %v2942_v8  ;;  %v2675_v53 = vld.sshfl [vmem:[%s3462_s0 + $0x8] sm:$0x13 pattern:$0x76325410]  ;;  %v868_v3 = vcombine.high %v2674_v43, %v2674_v43  ;;  %v3288_v51 = vrot.slane %v2072_v59, %v2942_v8 }
  0x68   :  { %2007 = vrot.lane.b32.xlu1 %v2004_v36, %s2900_s6  ;;  %v2676_v60 = vld.sshfl [vmem:[%s3462_s0 + $0xc] sm:$0x13 pattern:$0x76325410]  ;;  %v1033_v2 = vshll.u32 %v924_v52, 16  ;;  %v1026_v4 = vrot.slane %v1024_v56, 6  ;;  %v876_v63 = vcombine.high %v2675_v53, %v2675_v53 }
  0x69   :  { %v3272_v55 = vsel %vm2979_vm6, %v765_v40, %v769_v26  ;;  %v2677_v61 = vld.sshfl [vmem:[%s3462_s0 + $0x10] sm:$0x13 pattern:$0x76325410]  ;;  %v1029_v5 = vrot.slane %v1027_v58, 7  ;;  %v884_v10 = vcombine.high %v2676_v60, %v2676_v60  ;;  %v926_v14 = vshrl.u32 %v2674_v43, 16 }
  0x6a   :  { %v1926_v0 = vcombine.low %v3256_v38, %v3272_v55  ;;  %v1035_v9 = vrot.slane %v1033_v2, 7  ;;  %v892_v11 = vcombine.high %v2677_v61, %v2677_v61  ;;  %v929_v15 = vshll.u32 %v2674_v43, 16  ;;  %v2697_v52 = vld.sshfl [vmem:[%s3462_s0 + $0x4c] sm:$0x13 pattern:$0x76325410] }
  0x6b   :  { %v1030_v13 = vor.u32 %v1029_v5, %v1026_v4  ;;  %v935_v16 = vshll.u32 %v868_v3, 16  ;;  %v940_v21 = vshrl.u32 %v2675_v53, 16  ;;  %v943_v23 = vshll.u32 %v2675_v53, 16 }
  0x6c   :  { %v1940_v6 = vrot.slane %v1926_v0, %v2942_v8  ;;  %2053 = vrot.lane.b32.xlu1 %v2050_v50, %s2901_s13  ;;  %v949_v24 = vshll.u32 %v876_v63, 16  ;;  %v928_v31 = vrot.slane %v926_v14, 6  ;;  %v931_v32 = vrot.slane %v929_v15, 7 }
  0x6d   :  { %v1031_v26 = vrot.slane %v1030_v13, 2  ;;  %v937_v33 = vrot.slane %v935_v16, 7  ;;  %v942_v35 = vrot.slane %v940_v21, 6  ;;  %v945_v36 = vrot.slane %v943_v23, 7 }
  0x6e   :  { %v1941_v18 = vcombine.low %v1933_v41, %v1940_v6  ;;  %v951_v37 = vrot.slane %v949_v24, 7  ;;  %v954_v40 = vshrl.u32 %v2676_v60, 16  ;;  %v932_v44 = vor.u32 %v931_v32, %v928_v31  ;;  %v2693_v13 = vld.sshfl [vmem:[%s3462_s0 + $0x38] sm:$0x13 pattern:$0x76325410] }
  0x6f   :  { %v1036_v43 = vsel %vm2979_vm6, %v1031_v26, %v1035_v9  ;;  %v957_v41 = vshll.u32 %v2676_v60, 16  ;;  %v963_v50 = vshll.u32 %v884_v10, 16  ;;  %v946_v56 = vor.u32 %v945_v36, %v942_v35  ;;  %v3327_v27 = vld.sshfl [vmem:[%s3462_s0 + $0x68] sm:$0xf pattern:$0x76325410] }
  0x70   :  { %1959 = vrot.lane.b32.xlu0 %v1941_v18, %s2899_s23  ;;  %v2073_v53 = vcombine.low %v3043_v7, %v1036_v43  ;;  %v956_v58 = vrot.slane %v954_v40, 6  ;;  %v968_v59 = vshrl.u32 %v2677_v61, 16  ;;  %v933_v0 = vrot.slane %v932_v44, 2  ;;  %s2903_s23 = smov 88  }
  0x71   :  { %v959_v2 = vrot.slane %v957_v41, 7  ;;  %v965_v3 = vrot.slane %v963_v50, 7  ;;  %v971_v4 = vshll.u32 %v2677_v61, 16  ;;  %v947_v63 = vrot.slane %v946_v56, 2  ;;  %v2855_v61 = vld [vmem:[%s3463_s1 + $0x20] sm:$0xff]  }
  0x72   :  { %v2087_v5 = vrot.slane %v2073_v53, %v2942_v8  ;;  %v970_v60 = vrot.slane %v968_v59, 6  ;;  %v977_v6 = vshll.u32 %v892_v11, 16  ;;  %v938_v9 = vsel %vm2979_vm6, %v933_v0, %v937_v33  ;;  %2790 = vmatprep.subr.bf16.mxu0 %v2855_v61  ;;  %v3336_v41 = vld.sshfl [vmem:[%s3462_s0 + $0x70] sm:$0xf pattern:$0x76325410] }
  0x73   :  { %v960_v10 = vor.u32 %v959_v2, %v956_v58  ;;  %v973_v12 = vrot.slane %v971_v4, 7  ;;  %v1116_v7 = vcombine.high %v2697_v52, %v2697_v52  ;;  %v952_v14 = vsel %vm2979_vm6, %v947_v63, %v951_v37  ;;  %2791 = vmatpush3.bf16.msra.mxu0 %v2855_v61  ;;  %v3347_v56 = vld.sshfl [vmem:[%s3462_s0 + $0x5c] sm:$0xf pattern:$0x76325410] }
  0x74   :  { %2005 = vrot.lane.b32.xlu0 %v1987_v48, %s2900_s6  ;;  %v2088_v48 = vcombine.low %v3288_v51, %v2087_v5  ;;  %v1216_v11 = vshrl.u32 %v2697_v52, 16  ;;  %v979_v18 = vrot.slane %v977_v6, 7  ;;  %v1219_v21 = vshll.u32 %v2697_v52, 16 }
  0x75   :  { %v961_v15 = vrot.slane %v960_v10, 2  ;;  %v974_v16 = vor.u32 %v973_v12, %v970_v60  ;;  %v2055_v23 = vcombine.low %v938_v9, %v952_v14  ;;  %v1225_v51 = vshll.u32 %v1116_v7, 16  ;;  %v3355_v58 = vld.sshfl [vmem:[%s3462_s0 + $0x90] sm:$0xf pattern:$0x76325410] }
  0x76   :  { %2091 = vrot.lane.b32.xlu1 %v2088_v48, %s2902_s20  ;;  %v1218_v24 = vrot.slane %v1216_v11, 6  ;;  %v1084_v26 = vcombine.high %v2693_v13, %v2693_v13  ;;  %v1221_v33 = vrot.slane %v1219_v21, 7  ;;  %v2110_v36 = vcombine.low %v3062_v39, %v3070_v54  ;;  %v3341_v39 = vld.sshfl [vmem:[%s3462_s0 + $0x54] sm:$0xf pattern:$0x76325410] }
  0x77   :  { %v966_v31 = vsel %vm2979_vm6, %v961_v15, %v965_v3  ;;  %v975_v32 = vrot.slane %v974_v16, 2  ;;  %v1227_v35 = vrot.slane %v1225_v51, 7  ;;  %v1160_v37 = vshrl.u32 %v2693_v13, 16  ;;  %v2857_v12 = vld [vmem:[%s3463_s1 + $0x10] sm:$0xff]  }
  0x78   :  { %2051 = vrot.lane.b32.xlu0 %v2033_v1, %s2901_s13  ;;  %v1163_v25 = vshll.u32 %v2693_v13, 16  ;;  %v1222_v40 = vor.u32 %v1221_v33, %v1218_v24  ;;  %v1169_v43 = vshll.u32 %v1084_v26, 16  ;;  %v2093_v44 = vcombine.low %v3093_v28, %v3102_v42  ;;  %v2856_v28 = vld [vmem:[%s3463_s1 + $0x18] sm:$0xff]  }
  0x79   :  { %v980_v1 = vsel %vm2979_vm6, %v975_v32, %v979_v18  ;;  %v2063_v50 = vrot.slane %v2055_v23, %v2942_v8  ;;  %v1162_v52 = vrot.slane %v1160_v37, 6  ;;  %v3360_v59 = vld.sshfl [vmem:[%s3462_s0 + $0x98] sm:$0xf pattern:$0x76325410]  ;;  %v2118_v2 = vrot.slane %v2110_v36, %v2942_v8  ;;  %2792 = vmatprep.subr.bf16.mxu0 %v2856_v28  ;;  %v2858_v32 = vld [vmem:[%s3463_s1 + $0x8] sm:$0xff]  }
  0x7a   :  { %v2056_v54 = vcombine.low %v966_v31, %v980_v1  ;;  %v1165_v53 = vrot.slane %v1163_v25, 7  ;;  %v1223_v42 = vrot.slane %v1222_v40, 2  ;;  %v1171_v4 = vrot.slane %v1169_v43, 7  ;;  %2793 = vmatpush3.bf16.msra.mxu0 %v2856_v28 }
  0x7b   :  { %v2101_v63 = vrot.slane %v2093_v44, %v2942_v8  ;;  %v2729_v60 = vld.sshfl [vmem:[%s3462_s0 + $0x74] sm:$0x13 pattern:$0x76325410]  ;;  %2794 = vmatprep.subr.bf16.mxu0 %v2857_v12  ;;  %v2172_v16 = vcombine.low %v3327_v27, %v3336_v41  ;;  %v2240_v21 = vcombine.low %v3122_v20, %v3134_v34  ;;  %v2155_v20 = vcombine.low %v3341_v39, %v3347_v56 }
  0x7c   :  { %v2070_v0 = vrot.slane %v2056_v54, %v2942_v8  ;;  %v1166_v3 = vor.u32 %v1165_v53, %v1162_v52  ;;  %v1228_v5 = vsel %vm2979_vm6, %v1223_v42, %v1227_v35  ;;  %v1326_v7 = vcombine.high %v2729_v60, %v2729_v60  ;;  %v3381_v48 = vld.sshfl [vmem:[%s3462_s0 + $0x7c] sm:$0xf pattern:$0x76325410] }
  0x7d   :  { %v2111_v9 = vcombine.low %v3075_v62, %v1228_v5  ;;  %v1426_v14 = vshrl.u32 %v2729_v60, 16  ;;  %v1429_v62 = vshll.u32 %v2729_v60, 16  ;;  %v2725_v11 = vld.sshfl [vmem:[%s3462_s0 + $0x60] sm:$0x13 pattern:$0x76325410]  ;;  %v2218_v34 = vcombine.low %v3355_v58, %v3360_v59 }
  0x7e   :  { %v2071_v6 = vcombine.low %v2063_v50, %v2070_v0  ;;  %v1167_v10 = vrot.slane %v1166_v3, 2  ;;  %v1435_v18 = vshll.u32 %v1326_v7, 16  ;;  %v2745_v23 = vld.sshfl [vmem:[%s3462_s0 + $0x9c] sm:$0x13 pattern:$0x76325410]  ;;  %2795 = vmatpush3.bf16.msra.mxu0 %v2857_v12  ;;  %v2248_v3 = vrot.slane %v2240_v21, %v2942_v8 }
  0x7f   :  { %v2125_v13 = vrot.slane %v2111_v9, %v2942_v8  ;;  %v2887_v51 = vld.sshfl [vmem:[%s3462_s0 + $0x84] sm:$0xf pattern:$0x76325410]  ;;  %v1428_v26 = vrot.slane %v1426_v14, 6  ;;  %v1431_v31 = vrot.slane %v1429_v62, 7  ;;  %2796 = vmatprep.subr.bf16.mxu0 %v2858_v32  ;;  %v1518_v43 = vcombine.high %v2745_v23, %v2745_v23 }
  0x80   :  { %2089 = vrot.lane.b32.xlu0 %v2071_v6, %s2902_s20  ;;  %v1172_v61 = vsel %vm2979_vm6, %v1167_v10, %v1171_v4  ;;  %v1370_v35 = vshrl.u32 %v2725_v11, 16  ;;  %v1437_v37 = vrot.slane %v1435_v18, 7  ;;  %v1373_v25 = vshll.u32 %v2725_v11, 16  ;;  %v2859_v50 = vld [vmem:[%s3463_s1] sm:$0xff]   ;;  %s2905_s1 = smov 104  }
  0x81   :  { %v2094_v15 = vcombine.low %v3107_v57, %v1172_v61  ;;  %v2126_v24 = vcombine.low %v2118_v2, %v2125_v13  ;;  %v1294_v57 = vcombine.high %v2725_v11, %v2725_v11  ;;  %v1432_v36 = vor.u32 %v1431_v31, %v1428_v26  ;;  %v2741_v41 = vld.sshfl [vmem:[%s3462_s0 + $0x88] sm:$0x13 pattern:$0x76325410] }
  0x82   :  { %v1372_v40 = vrot.slane %v1370_v35, 6  ;;  %v1618_v44 = vshrl.u32 %v2745_v23, 16  ;;  %2797 = vmatpush3.bf16.msra.mxu0 %v2858_v32  ;;  %v1375_v54 = vrot.slane %v1373_v25, 7  ;;  %v1621_v56 = vshll.u32 %v2745_v23, 16  ;;  %v1716_v32 = vpop.permute.xlu0 %1715 }
  0x83   :  { %v2108_v33 = vrot.slane %v2094_v15, %v2942_v8  ;;  %2129 = vrot.lane.b32.xlu1 %v2126_v24, %s2903_s23  ;;  %v1379_v27 = vshll.u32 %v1294_v57, 16  ;;  %v1433_v39 = vrot.slane %v1432_v36, 2  ;;  %v1627_v28 = vshll.u32 %v1518_v43, 16  ;;  %2798 = vmatprep.subr.bf16.mxu0 %v2859_v50 }
  0x84   :  { %v1620_v53 = vrot.slane %v1618_v44, 6  ;;  %v1376_v58 = vor.u32 %v1375_v54, %v1372_v40  ;;  %v1486_v59 = vcombine.high %v2741_v41, %v2741_v41  ;;  %v1562_v0 = vshrl.u32 %v2741_v41, 16  ;;  %v2890_v54 = vld.sshfl [vmem:[%s3462_s0] sm:$0xf pattern:$0x76325410] }
  0x85   :  { %v2109_v1 = vcombine.low %v2101_v63, %v2108_v33  ;;  %v1381_v52 = vrot.slane %v1379_v27, 7  ;;  %v1438_v42 = vsel %vm2979_vm6, %v1433_v39, %v1437_v37  ;;  %v2223_v4 = vcombine.low %v3157_v19, %v3166_v30  ;;  %v2889_v39 = vld.sshfl [vmem:[%s3462_s0 + $0x1c] sm:$0xf pattern:$0x76325410] }
  0x86   :  { %v2241_v2 = vcombine.low %v3139_v49, %v1438_v42  ;;  %v1623_v5 = vrot.slane %v1621_v56, 7  ;;  %2799 = vmatpush3.bf16.msra.mxu0 %v2859_v50  ;;  %v1377_v63 = vrot.slane %v1376_v58, 2  ;;  %v1564_v60 = vrot.slane %v1562_v0, 6 }
  0x87   :  { %2127 = vrot.lane.b32.xlu0 %v2109_v1, %s2903_s23  ;;  %2175 = vrot.lane.b32.xlu1 %v2172_v16, %s2904_s28  ;;  %v1565_v6 = vshll.u32 %v2741_v41, 16  ;;  %v1571_v9 = vshll.u32 %v1486_v59, 16  ;;  %v2201_v10 = vcombine.low %v3381_v48, %v2887_v51  ;;  %v1629_v13 = vrot.slane %v1627_v28, 7 }
  0x88   :  { %v2255_v12 = vrot.slane %v2241_v2, %v2942_v8  ;;  %v1624_v7 = vor.u32 %v1623_v5, %v1620_v53  ;;  %v1382_v49 = vsel %vm2979_vm6, %v1377_v63, %v1381_v52  ;;  %v2278_v19 = vcombine.low %v3189_v17, %v3198_v29  ;;  %v2888_v41 = vld.sshfl [vmem:[%s3462_s0 + $0x14] sm:$0xf pattern:$0x76325410] }
  0x89   :  { %v1567_v30 = vrot.slane %v1565_v6, 7  ;;  %v2224_v14 = vcombine.low %v3171_v46, %v1382_v49  ;;  %v2231_v62 = vrot.slane %v2223_v4, %v2942_v8  ;;  %v1573_v15 = vrot.slane %v1571_v9, 7  ;;  %v2891_v50 = vld.sshfl [vmem:[%s3462_s0 + $0x8] sm:$0xf pattern:$0x76325410] }
  0x8a   :  { %v2256_v61 = vcombine.low %v2248_v3, %v2255_v12  ;;  %v1625_v11 = vrot.slane %v1624_v7, 2  ;;  %v2261_v21 = vcombine.low %v3239_v22, %v3256_v38  ;;  %v2286_v46 = vrot.slane %v2278_v19, %v2942_v8  ;;  %v1840_v38 = vpop.permute.xlu1 %1839 }
  0x8b   :  { %2173 = vrot.lane.b32.xlu0 %v2155_v20, %s2904_s28  ;;  %2221 = vrot.lane.b32.xlu1 %v2218_v34, %s2905_s1  ;;  %v1568_v48 = vor.u32 %v1567_v30, %v1564_v60  ;;  %v2238_v16 = vrot.slane %v2224_v14, %v2942_v8  ;;  %v1718_v20 = vpop.permute.xlu0 %1717  ;;  %v1672_v56 = vcombine.low %v2888_v41, %v2889_v39  ;;  %vm2311_vm9 = vcmask 195584  }
  0x8c   :  { %v1630_v18 = vsel %vm2979_vm6, %v1625_v11, %v1629_v13  ;;  %v2269_v31 = vrot.slane %v2261_v21, %v2942_v8  ;;  %v1655_v42 = vcombine.low %v2890_v54, %v2891_v50  ;;  %vm2316_vm10 = vcmask 261120  }
  0x8d   :  { %v2279_v17 = vcombine.low %v3203_v47, %v1630_v18  ;;  %v1569_v29 = vrot.slane %v1568_v48, 2  ;;  %v2239_v23 = vcombine.low %v2231_v62, %v2238_v16  ;;  %v2305_v59 = vsel %vm2299_vm7, %v1672_v56, %v1718_v20 }
  0x8e   :  { %v1886_v33 = vpop.permute.xlu1 %1885  ;;  %v2302_v0 = vsel %vm2299_vm7, %v1655_v42, %v1716_v32  ;;  %vm2321_vm11 = vcmask 326656   ;;  %vm2326_vm12 = vcmask 392192   ;;  %vm2331_vm13 = vcmask 457728  }
  0x8f   :  { %2219 = vrot.lane.b32.xlu0 %v2201_v10, %s2905_s1  ;;  %2259 = vrot.lane.b32.xlu1 %v2256_v61, %s2906_s29  ;;  %v2293_v24 = vrot.slane %v2279_v17, %v2942_v8  ;;  %v1574_v51 = vsel %vm2979_vm6, %v1569_v29, %v1573_v15  ;;  %v1838_v35 = vpop.permute.xlu0 %1837  ;;  %vm2336_vm14 = vcmask 523264   ;;  %vm2341_vm15 = vcmask 588800  }
  0x90   :  { %v2262_v26 = vcombine.low %v3272_v55, %v1574_v51  ;;  %vm2346_vm0 = vcmask 654336   ;;  %vm2351_vm1 = vcmask 719872   ;;  %vm2356_vm2 = vcmask 785408  }
  0x91   :  { %v2294_v57 = vcombine.low %v2286_v46, %v2293_v24  ;;  %vm2361_vm3 = vcmask 850944   ;;  %vm2366_vm4 = vcmask 916480   ;;  %vm2371_vm5 = vcmask 982016  }
  0x92   :  { %v2276_v22 = vrot.slane %v2262_v26, %v2942_v8  ;;  %v1754_v34 = vpop.permute.xlu1 %1753 }
  0x93   :  { %2257 = vrot.lane.b32.xlu0 %v2239_v23, %s2906_s29  ;;  %2297 = vrot.lane.b32.xlu1 %v2294_v57, %s2907_s30  ;;  %v1884_v36 = vpop.permute.xlu0 %1883  ;;  %v2308_v3 = vsel %vm2306_vm8, %v2302_v0, %v1754_v34 }
  0x94   :  { %v2277_v47 = vcombine.low %v2269_v31, %v2276_v22 }
  0x97   :  { %2295 = vrot.lane.b32.xlu0 %v2277_v47, %s2907_s30 }
  0x9e   :  { %v1756_v45 = vpop.permute.xlu1 %1755 }
  0x9f   :  { %v2310_v2 = vsel %vm2306_vm8, %v2305_v59, %v1756_v45 }
  0xa9   :  { %v1794_v37 = vpop.permute.xlu1 %1793 }
  0xaa   :  { %v2315_v4 = vsel %vm2311_vm9, %v2310_v2, %v1794_v37 }
  0xab   :  { %v2320_v6 = vsel %vm2316_vm10, %v2315_v4, %v1840_v38 }
  0xac   :  { %v2325_v7 = vsel %vm2321_vm11, %v2320_v6, %v1886_v33  ;;  %v2746_v33 = vld [vmem:[%s3464_s2] ss:$0 sm:$0xff] }
  0xb5   :  { %v1792_v25 = vpop.permute.xlu0 %1791 }
  0xb6   :  { %v2313_v63 = vsel %vm2311_vm9, %v2308_v3, %v1792_v25 }
  0xb7   :  { %v2318_v9 = vsel %vm2316_vm10, %v2313_v63, %v1838_v35  ;;  %vm2557_vm10 = vcmask 1040384  }
  0xb8   :  { %v2323_v13 = vsel %vm2321_vm11, %v2318_v9, %v1884_v36  ;;  %vm2559_vm11 = vcmask 1041408  }
  0xc0   :  { %v1924_v55 = vpop.permute.xlu1 %1923 }
  0xc1   :  { %v2330_v19 = vsel %vm2326_vm12, %v2325_v7, %v1924_v55 }
  0xcb   :  { %v1922_v27 = vpop.permute.xlu0 %1921 }
  0xcc   :  { %v2328_v61 = vsel %vm2326_vm12, %v2323_v13, %v1922_v27 }
  0xd6   :  { %v1962_v1 = vpop.permute.xlu1 %1961 }
  0xd7   :  { %v2335_v14 = vsel %vm2331_vm13, %v2330_v19, %v1962_v1 }
  0xda   :  { %v2008_v43 = vpop.permute.xlu1 %2007 }
  0xdb   :  { %v2340_v11 = vsel %vm2336_vm14, %v2335_v14, %v2008_v43 }
  0xde   :  { %v2054_v44 = vpop.permute.xlu1 %2053 }
  0xdf   :  { %v2345_v15 = vsel %vm2341_vm15, %v2340_v11, %v2054_v44 }
  0xe2   :  { %v1960_v40 = vpop.permute.xlu0 %1959 }
  0xe3   :  { %v2333_v62 = vsel %vm2331_vm13, %v2328_v61, %v1960_v40 }
  0xe6   :  { %v2006_v8 = vpop.permute.xlu0 %2005 }
  0xe7   :  { %v2338_v48 = vsel %vm2336_vm14, %v2333_v62, %v2006_v8 }
  0xe8   :  { %v2092_v53 = vpop.permute.xlu1 %2091 }
  0xe9   :  { %v2350_v21 = vsel %vm2346_vm0, %v2345_v15, %v2092_v53 }
  0xea   :  { %v2052_v52 = vpop.permute.xlu0 %2051 }
  0xeb   :  { %v2343_v18 = vsel %vm2341_vm15, %v2338_v48, %v2052_v52 }
  0xf2   :  { %v2090_v28 = vpop.permute.xlu0 %2089 }
  0xf3   :  { %v2348_v17 = vsel %vm2346_vm0, %v2343_v18, %v2090_v28 }
  0xf5   :  { %v2130_v58 = vpop.permute.xlu1 %2129 }
  0xf6   :  { %v2355_v46 = vsel %vm2351_vm1, %v2350_v21, %v2130_v58 }
  0xf9   :  { %v2128_v5 = vpop.permute.xlu0 %2127  ;;  %v2176_v60 = vpop.permute.xlu1 %2175 }
  0xfa   :  { %v2353_v29 = vsel %vm2351_vm1, %v2348_v17, %v2128_v5  ;;  %v2360_v23 = vsel %vm2356_vm2, %v2355_v46, %v2176_v60 }
  0xfd   :  { %v2174_v10 = vpop.permute.xlu0 %2173  ;;  %v2222_v12 = vpop.permute.xlu1 %2221 }
  0xfe   :  { %v2358_v51 = vsel %vm2356_vm2, %v2353_v29, %v2174_v10  ;;  %v2365_v26 = vsel %vm2361_vm3, %v2360_v23, %v2222_v12 }
 0x101   :  { %v2220_v49 = vpop.permute.xlu0 %2219  ;;  %v2260_v30 = vpop.permute.xlu1 %2259 }
 0x102   :  { %v2363_v31 = vsel %vm2361_vm3, %v2358_v51, %v2220_v49  ;;  %v2370_v57 = vsel %vm2366_vm4, %v2365_v26, %v2260_v30 }
 0x105   :  { %v2258_v16 = vpop.permute.xlu0 %2257  ;;  %v2298_v24 = vpop.permute.xlu1 %2297 }
 0x106   :  { %v2368_v22 = vsel %vm2366_vm4, %v2363_v31, %v2258_v16  ;;  %v2376_v38 = vsel %vm2371_vm5, %v2370_v57, %v2298_v24 }
 0x109   :  { %v2296_v47 = vpop.permute.xlu0 %2295 }
 0x10a   :  { %v2373_v32 = vsel %vm2371_vm5, %v2368_v22, %v2296_v47 }
 0x10b   :  { %2800 = vmatprep.mubr.bf16.mxu0 %v2373_v32 }
 0x10c   :  { %2801 = vmatmul.mubr.bf16.vlgmr.msra.gmra.mxu0 %v2376_v38 }
 0x1cc   :  { %v2802_v20 = vpop.f32.mrf.mxu0 }
 0x1cd   :  { %v2492_v34 = vadd.f32 %v2802_v20, %v2746_v33 }
 0x1ce   :  { %v2483_v35 = vpop.f32.mrf.mxu0 }
 0x1cf   :  { %v2484_v45 = vadd.f32 %v2746_v33, %v2483_v35  ;;  %v2504_v37 = vmul.f32 0.2, %v2492_v34  ;;  %vm2500_vm6 = vcmp.gt.f32.partialorder %v2492_v34, 0.0 }
 0x1d0   :  { %v2803_v36 = vpop.f32.mrf.mxu0 }
 0x1d1   :  { %v2495_v25 = vadd.f32 %v2803_v36, %v2746_v33  ;;  %v2502_v27 = vmul.f32 0.2, %v2484_v45  ;;  %vm2498_vm8 = vcmp.gt.f32.partialorder %v2484_v45, 0.0  ;;  %v2508_v43 = vsel %vm2500_vm6, %v2492_v34, %v2504_v37 }
 0x1d2   :  { %v2486_v55 = vpop.f32.mrf.mxu0 }
 0x1d3   :  { %vm2501_vm7 = vcmp.gt.f32.partialorder %v2495_v25, 0.0  ;;  %v2505_v1 = vmul.f32 0.2, %v2495_v25  ;;  %v2487_v40 = vadd.f32 %v2746_v33, %v2486_v55  ;;  %v2506_v39 = vsel %vm2498_vm8, %v2484_v45, %v2502_v27 }
 0x1d5   :  { %v2509_v8 = vsel %vm2501_vm7, %v2495_v25, %v2505_v1  ;;  %vm2499_vm9 = vcmp.gt.f32.partialorder %v2487_v40, 0.0  ;;  %v2503_v44 = vmul.f32 0.2, %v2487_v40 }
 0x1d6   :  { %v2771_v41 = vpack.c.bf16 %v2509_v8, %v2508_v43 }
 0x1d7   :  { %v2507_v54 = vsel %vm2499_vm9, %v2487_v40, %v2503_v44 }
 0x1d8   :  { %2773 = vst [vmem:[%s3465_s3 + $0x8] sm:$0xff] %v2771_v41   ;;  %v2510_v50 = vadd.f32 %v2507_v54, %v2506_v39  ;;  %v2766_v52 = vpack.c.bf16 %v2507_v54, %v2506_v39 }
 0x1da   :  { %v2511_v53 = vadd.f32 %v2510_v50, %v2508_v43  ;;  %2767 = vst [vmem:[%s3465_s3] sm:$0xff] %v2766_v52  }
 0x1dc   :  { %v2512_v56 = vadd.f32 %v2511_v53, %v2509_v8 }
 0x1de   :  { %v2513_v28 = vrot.slane %v2512_v56, 4 }
 0x1e0   :  { %v2514_v42 = vadd.f32 %v2513_v28, %v2512_v56 }
 0x1e2   :  { %v2515_v58 = vrot.slane %v2514_v42, 2 }
 0x1e4   :  { %v2516_v59 = vadd.f32 %v2515_v58, %v2514_v42 }
 0x1e6   :  { %v2517_v0 = vrot.slane %v2516_v59, 1 }
 0x1e8   :  { %v2518_v2 = vadd.f32 %v2517_v0, %v2516_v59 }
 0x1ea   :  { %v2519_v3 = vmul.f32 0.03125, %v2518_v2 }
 0x1ec   :  { %v2520_v4 = vsub.f32 %v2506_v39, %v2519_v3  ;;  %v2521_v5 = vsub.f32 %v2507_v54, %v2519_v3  ;;  %v2522_v63 = vsub.f32 %v2508_v43, %v2519_v3  ;;  %v2523_v60 = vsub.f32 %v2509_v8, %v2519_v3 }
 0x1ee   :  { %v2524_v6 = vmul.f32 %v2520_v4, %v2520_v4  ;;  %v2525_v9 = vmul.f32 %v2521_v5, %v2521_v5  ;;  %v2526_v10 = vmul.f32 %v2522_v63, %v2522_v63  ;;  %v2527_v7 = vmul.f32 %v2523_v60, %v2523_v60 }
 0x1f0   :  { %v2528_v12 = vadd.f32 %v2525_v9, %v2524_v6 }
 0x1f2   :  { %v2529_v13 = vadd.f32 %v2528_v12, %v2526_v10 }
 0x1f4   :  { %v2530_v49 = vadd.f32 %v2529_v13, %v2527_v7 }
 0x1f6   :  { %v2531_v19 = vrot.slane %v2530_v49, 4 }
 0x1f8   :  { %v2532_v30 = vadd.f32 %v2531_v19, %v2530_v49 }
 0x1fa   :  { %v2533_v61 = vrot.slane %v2532_v30, 2 }
 0x1fc   :  { %v2534_v14 = vadd.f32 %v2533_v61, %v2532_v30 }
 0x1fe   :  { %v2535_v62 = vrot.slane %v2534_v14, 1 }
 0x200   :  { %v2536_v11 = vadd.f32 %v2535_v62, %v2534_v14 }
 0x202   :  { %v2558_v48 = vsel %vm2557_vm10, %v2518_v2, %v2536_v11 }
 0x203   :  { %v2560_v15 = vsel %vm2559_vm11, %v2558_v48, 0.0 }
 0x204   :  { %2561 = vst [vmem:[%s3466_s4] sm:$0xff] %v2560_v15 }

// kernel: encoder_forward.5
= control target key start
LH: loop header
LB: loop body
LE: loop exit
PB: predicated region body
PF: predicated region fallthrough
CT: control target
= control target key end

     0   :  { %s4046_s25 = smov 4   ;;  %vm66_vm0 = vsmask.f32 3328  ;;  %vm67_vm1 = vsmask.f32 7440  ;;  %s4047_s8 = smov 16   ;;  %s6368_s0 = inlined_call_operand.vmem [shape: bf16[4,2,9,9,4], index: 0, kind: input, shape index: {}]   ;;  %s6369_s1 = inlined_call_operand.vmem [shape: bf16[64,128], index: 1, kind: input, shape index: {}]   ;;  %s6370_s2 = inlined_call_operand.vmem [shape: f32[1,128], index: 2, kind: input, shape index: {}]   ;;  %s6371_s3 = inlined_call_operand.vmem [shape: bf16[128,128], index: 3, kind: output, shape index: {0}]   ;;  %s6372_s4 = inlined_call_operand.vmem [shape: f32[8,128], index: 4, kind: output, shape index: {1}]  }
   0x1   :  { %v3459_v0 = vld [vmem:[%s6368_s0 + $0x90] sm:$0xf]  ;;  %v3460_v1 = vld [vmem:[%s6368_s0 + $0x98] sm:$0xf]  ;;  %v3461_v2 = vld [vmem:[%s6368_s0 + $0xa0] sm:$0xf] }
   0x2   :  { %v324_v3 = vshrl.u32 %v3460_v1, 16  ;;  %v327_v4 = vshll.u32 %v3460_v1, 16  ;;  %v3691_v5 = vcombine.low %v3459_v0, %v3460_v1  ;;  %v310_v6 = vshrl.u32 %v3459_v0, 16  ;;  %v3462_v7 = vld [vmem:[%s6368_s0 + $0xa8] sm:$0xf]  ;;  %vm4165_vm2 = vmor %vm66_vm0, %vm67_vm1  ;;  %s4048_s6 = smov 12  }
   0x3   :  { %v313_v8 = vshll.u32 %v3459_v0, 16  ;;  %v338_v9 = vshrl.u32 %v3461_v2, 16  ;;  %v341_v10 = vshll.u32 %v3461_v2, 16  ;;  %v352_v11 = vshrl.u32 %v3462_v7, 16  ;;  %v3493_v12 = vld [vmem:[%s6368_s0 + $0x130] sm:$0xf] }
   0x4   :  { %v326_v13 = vrot.slane %v324_v3, 4  ;;  %v329_v14 = vrot.slane %v327_v4, 5  ;;  %2155 = vrot.lane.b32.xlu0 %v3691_v5, %s4046_s25  ;;  %v312_v15 = vrot.slane %v310_v6, 4  ;;  %v355_v16 = vshll.u32 %v3462_v7, 16  ;;  %v3494_v17 = vld [vmem:[%s6368_s0 + $0x138] sm:$0xf] }
   0x5   :  { %v315_v18 = vrot.slane %v313_v8, 5  ;;  %v4105_v19 = vrot.slane %v338_v9, 4  ;;  %v4107_v20 = vrot.slane %v341_v10, 5  ;;  %v4109_v21 = vrot.slane %v352_v11, 4  ;;  %v3491_v30 = vld [vmem:[%s6368_s0 + $0x120] sm:$0xf] }
   0x6   :  { %v330_v22 = vor.u32 %v329_v14, %v326_v13  ;;  %v4111_v23 = vrot.slane %v355_v16, 5  ;;  %v3692_v24 = vcombine.low %v3461_v2, %v3462_v7  ;;  %v626_v25 = vshrl.u32 %v3494_v17, 16  ;;  %v3492_v31 = vld [vmem:[%s6368_s0 + $0x128] sm:$0xf]  ;;  %v17_v36 = vld [vmem:[%s6368_s0] sm:$0xf] }
   0x7   :  { %v316_v26 = vor.u32 %v315_v18, %v312_v15  ;;  %v629_v27 = vshll.u32 %v3494_v17, 16  ;;  %v3716_v28 = vcombine.low %v3493_v12, %v3494_v17  ;;  %v612_v29 = vshrl.u32 %v3493_v12, 16  ;;  %v18_v41 = vld [vmem:[%s6368_s0 + $0x8] sm:$0xf]  ;;  %v50_v46 = vld [vmem:[%s6368_s0 + $0x4] sm:$0x1] }
   0x8   :  { %v4119_v32 = vrot.slane %v330_v22, 4  ;;  %2157 = vrot.lane.b32.xlu0 %v3692_v24, %s4046_s25  ;;  %v628_v33 = vrot.slane %v626_v25, 4  ;;  %v615_v34 = vshll.u32 %v3493_v12, 16  ;;  %v584_v35 = vshrl.u32 %v3491_v30, 16  ;;  %v51_v50 = vld [vmem:[%s6368_s0 + $0xc] sm:$0x1] }
   0x9   :  { %v317_v37 = vrot.slane %v316_v26, 4  ;;  %v631_v38 = vrot.slane %v629_v27, 5  ;;  %2293 = vrot.lane.b32.xlu1 %v3716_v28, %s4047_s8  ;;  %v614_v39 = vrot.slane %v612_v29, 4  ;;  %v587_v40 = vshll.u32 %v3491_v30, 16  ;;  %v3475_v52 = vld [vmem:[%s6368_s0 + $0x94] sm:$0x1] }
   0xa   :  { %v617_v42 = vrot.slane %v615_v34, 5  ;;  %v4129_v43 = vrot.slane %v584_v35, 4  ;;  %v598_v44 = vshrl.u32 %v3492_v31, 16  ;;  %v601_v45 = vshll.u32 %v3492_v31, 16  ;;  %v3476_v57 = vld [vmem:[%s6368_s0 + $0x9c] sm:$0x1] }
   0xb   :  { %v632_v47 = vor.u32 %v631_v38, %v628_v33  ;;  %v4134_v48 = vrot.slane %v587_v40, 5  ;;  %v3715_v49 = vcombine.low %v3491_v30, %v3492_v31  ;;  %v70_v51 = vshrl.u32 %v17_v36, 16  ;;  %v19_v62 = vld [vmem:[%s6368_s0 + $0x10] sm:$0xf]  ;;  %v52_v3 = vld [vmem:[%s6368_s0 + $0x14] sm:$0x1] }
   0xc   :  { %v618_v53 = vor.u32 %v617_v42, %v614_v39  ;;  %v4142_v54 = vrot.slane %v598_v44, 4  ;;  %v4144_v55 = vrot.slane %v601_v45, 5  ;;  %v73_v56 = vshll.u32 %v17_v36, 16  ;;  %v20_v8 = vld [vmem:[%s6368_s0 + $0x18] sm:$0xf]  ;;  %s4049_s14 = smov 8  }
   0xd   :  { %v4149_v58 = vrot.slane %v632_v47, 4  ;;  %2291 = vrot.lane.b32.xlu0 %v3715_v49, %s4047_s8  ;;  %v72_v59 = vrot.slane %v70_v51, 4  ;;  %v79_v60 = vshll.u32 %v50_v46, 16  ;;  %v84_v61 = vshrl.u32 %v18_v41, 16  ;;  %v53_v16 = vld [vmem:[%s6368_s0 + $0x1c] sm:$0x1] }
   0xe   :  { %v4155_v63 = vrot.slane %v618_v53, 4  ;;  %v75_v0 = vrot.slane %v73_v56, 5  ;;  %v87_v1 = vshll.u32 %v18_v41, 16  ;;  %v93_v2 = vshll.u32 %v51_v50, 16  ;;  %v3507_v27 = vld [vmem:[%s6368_s0 + $0x1b0] sm:$0xf] }
   0xf   :  { %v81_v4 = vrot.slane %v79_v60, 5  ;;  %v86_v5 = vrot.slane %v84_v61, 4  ;;  %v319_v6 = vshll.u32 %v3475_v52, 16  ;;  %v333_v7 = vshll.u32 %v3476_v57, 16  ;;  %v3508_v33 = vld [vmem:[%s6368_s0 + $0x1b8] sm:$0xf] }
  0x10   :  { %v76_v9 = vor.u32 %v75_v0, %v72_v59  ;;  %v89_v10 = vrot.slane %v87_v1, 5  ;;  %v95_v11 = vrot.slane %v93_v2, 5  ;;  %v98_v12 = vshrl.u32 %v19_v62, 16  ;;  %v3477_v46 = vld [vmem:[%s6368_s0 + $0xa4] sm:$0x1]  ;;  %s4050_s17 = smov 20  }
  0x11   :  { %v321_v14 = vrot.slane %v319_v6, 5  ;;  %v335_v15 = vrot.slane %v333_v7, 5  ;;  %v101_v17 = vshll.u32 %v19_v62, 16  ;;  %v107_v18 = vshll.u32 %v52_v3, 16  ;;  %v3478_v52 = vld [vmem:[%s6368_s0 + $0xac] sm:$0x1] }
  0x12   :  { %v77_v22 = vrot.slane %v76_v9, 4  ;;  %v90_v24 = vor.u32 %v89_v10, %v86_v5  ;;  %v100_v25 = vrot.slane %v98_v12, 4  ;;  %v112_v26 = vshrl.u32 %v20_v8, 16  ;;  %v3523_v60 = vld [vmem:[%s6368_s0 + $0x124] sm:$0x1]  ;;  %s4051_s9 = smov 24  }
  0x13   :  { %v322_v28 = vsel %vm4165_vm2, %v317_v37, %v321_v14  ;;  %v336_v29 = vsel %vm4165_vm2, %v4119_v32, %v335_v15  ;;  %v103_v30 = vrot.slane %v101_v17, 5  ;;  %v109_v31 = vrot.slane %v107_v18, 5  ;;  %v3524_v5 = vld [vmem:[%s6368_s0 + $0x12c] sm:$0x1]  ;;  %v3510_v15 = vld [vmem:[%s6368_s0 + $0x1c8] sm:$0xf] }
  0x14   :  { %v82_v34 = vsel %vm4165_vm2, %v77_v22, %v81_v4  ;;  %v91_v35 = vrot.slane %v90_v24, 4  ;;  %v3707_v36 = vcombine.low %v322_v28, %v336_v29  ;;  %v114_v38 = vrot.slane %v112_v26, 4  ;;  %v3539_v18 = vld [vmem:[%s6368_s0 + $0x1b4] sm:$0x1]  ;;  %s4052_s22 = smov 28   ;;  %s4053_s7 = smov 32  }
  0x15   :  { %v104_v39 = vor.u32 %v103_v30, %v100_v25  ;;  %v115_v40 = vshll.u32 %v20_v8, 16  ;;  %v121_v41 = vshll.u32 %v53_v16, 16  ;;  %v824_v37 = vshrl.u32 %v3507_v27, 16  ;;  %s4054_s12 = smov 36   ;;  %s4055_s18 = smov 40  }
  0x16   :  { %v96_v42 = vsel %vm4165_vm2, %v91_v35, %v95_v11  ;;  %2235 = vrot.lane.b32.xlu0 %v3707_v36, %s4048_s6  ;;  %v827_v32 = vshll.u32 %v3507_v27, 16  ;;  %v838_v44 = vshrl.u32 %v3508_v33, 16  ;;  %v841_v45 = vshll.u32 %v3508_v33, 16  ;;  %s4056_s19 = smov 44   ;;  %s4057_s16 = smov 48  }
  0x17   :  { %v3699_v47 = vcombine.low %v82_v34, %v96_v42  ;;  %v105_v49 = vrot.slane %v104_v39, 4  ;;  %v117_v50 = vrot.slane %v115_v40, 5  ;;  %v123_v51 = vrot.slane %v121_v41, 5  ;;  %v3526_v39 = vld [vmem:[%s6368_s0 + $0x13c] sm:$0x1]  ;;  %s4058_s23 = smov 52  }
  0x18   :  { %v826_v53 = vrot.slane %v824_v37, 4  ;;  %v829_v56 = vrot.slane %v827_v32, 5  ;;  %v4194_v57 = vrot.slane %v838_v44, 4  ;;  %v843_v59 = vrot.slane %v841_v45, 5  ;;  %s4059_s10 = smov 56   ;;  %s4060_s15 = smov 60  }
  0x19   :  { %2195 = vrot.lane.b32.xlu1 %v3699_v47, %s4049_s14  ;;  %v110_v61 = vsel %vm4165_vm2, %v105_v49, %v109_v31  ;;  %v118_v62 = vor.u32 %v117_v50, %v114_v38  ;;  %v3723_v0 = vcombine.low %v3507_v27, %v3508_v33  ;;  %v344_v1 = vor.u32 %v4107_v20, %v4105_v19  ;;  %v3509_v20 = vld [vmem:[%s6368_s0 + $0x1c0] sm:$0xf]  ;;  %v3540_v27 = vld [vmem:[%s6368_s0 + $0x1bc] sm:$0x1]  ;;  %v3525_v33 = vld [vmem:[%s6368_s0 + $0x134] sm:$0x1] }
  0x1a   :  { %v347_v2 = vshll.u32 %v3477_v46, 16  ;;  %v358_v3 = vor.u32 %v4111_v23, %v4109_v21  ;;  %v361_v4 = vshll.u32 %v3478_v52, 16  ;;  %v590_v6 = vor.u32 %v4134_v48, %v4129_v43  ;;  %v3555_v47 = vld [vmem:[%s6368_s0 + $0x8] sm:$0xf]  ;;  %v4043_v13 = vld [vmem:[%s6368_s0 + $0x70] sm:$0xf] }
  0x1b   :  { %v119_v7 = vrot.slane %v118_v62, 4  ;;  %2347 = vrot.lane.b32.xlu0 %v3723_v0, %s4050_s17  ;;  %v345_v8 = vrot.slane %v344_v1, 4  ;;  %v593_v9 = vshll.u32 %v3523_v60, 16  ;;  %v604_v19 = vor.u32 %v4144_v55, %v4142_v54 }
  0x1c   :  { %v349_v21 = vrot.slane %v347_v2, 5  ;;  %v359_v23 = vrot.slane %v358_v3, 4  ;;  %v363_v10 = vrot.slane %v361_v4, 5  ;;  %v591_v11 = vrot.slane %v590_v6, 4  ;;  %v3542_v3 = vld [vmem:[%s6368_s0 + $0x1cc] sm:$0x1] }
  0x1d   :  { %v124_v43 = vsel %vm4165_vm2, %v119_v7, %v123_v51  ;;  %v595_v48 = vrot.slane %v593_v9, 5  ;;  %v605_v12 = vrot.slane %v604_v19, 4  ;;  %v607_v14 = vshll.u32 %v3524_v5, 16  ;;  %v3556_v51 = vld [vmem:[%s6368_s0 + $0x10] sm:$0xf] }
  0x1e   :  { %v3700_v16 = vcombine.low %v110_v61, %v124_v43  ;;  %v350_v54 = vsel %vm4165_vm2, %v345_v8, %v349_v21  ;;  %v364_v55 = vsel %vm4165_vm2, %v359_v23, %v363_v10  ;;  %v852_v17 = vshrl.u32 %v3509_v20, 16  ;;  %v3541_v61 = vld [vmem:[%s6368_s0 + $0x1c4] sm:$0x1]  ;;  %v3558_v43 = vld [vmem:[%s6368_s0 + $0x20] sm:$0xf] }
  0x1f   :  { %v3708_v22 = vcombine.low %v350_v54, %v364_v55  ;;  %v596_v24 = vsel %vm4165_vm2, %v591_v11, %v595_v48  ;;  %v609_v25 = vrot.slane %v607_v14, 5  ;;  %v855_v26 = vshll.u32 %v3509_v20, 16 }
  0x20   :  { %2197 = vrot.lane.b32.xlu1 %v3700_v16, %s4049_s14  ;;  %v854_v28 = vrot.slane %v852_v17, 4  ;;  %v866_v29 = vshrl.u32 %v3510_v15, 16  ;;  %v869_v30 = vshll.u32 %v3510_v15, 16  ;;  %v3724_v31 = vcombine.low %v3509_v20, %v3510_v15  ;;  %v3463_v17 = vld [vmem:[%s6368_s0 + $0xb0] sm:$0xf] }
  0x21   :  { %v610_v34 = vsel %vm4165_vm2, %v605_v12, %v609_v25  ;;  %v857_v35 = vrot.slane %v855_v26, 5  ;;  %v830_v36 = vor.u32 %v829_v56, %v826_v53  ;;  %v833_v38 = vshll.u32 %v3539_v18, 16  ;;  %v3464_v26 = vld [vmem:[%s6368_s0 + $0xb8] sm:$0xf] }
  0x22   :  { %v3731_v40 = vcombine.low %v596_v24, %v610_v34  ;;  %v868_v41 = vrot.slane %v866_v29, 4  ;;  %v871_v37 = vrot.slane %v869_v30, 5  ;;  %v844_v42 = vor.u32 %v843_v59, %v4194_v57 }
  0x23   :  { %v831_v32 = vrot.slane %v830_v36, 4  ;;  %v835_v44 = vrot.slane %v833_v38, 5  ;;  %v847_v45 = vshll.u32 %v3540_v27, 16  ;;  %v621_v46 = vshll.u32 %v3525_v33, 16  ;;  %v3466_v33 = vld [vmem:[%s6368_s0 + $0xc8] sm:$0xf] }
  0x24   :  { %2237 = vrot.lane.b32.xlu1 %v3708_v22, %s4048_s6  ;;  %2387 = vrot.lane.b32.xlu0 %v3731_v40, %s4051_s9  ;;  %v845_v49 = vrot.slane %v844_v42, 4  ;;  %v635_v50 = vshll.u32 %v3526_v39, 16  ;;  %v1098_v52 = vshrl.u32 %v3555_v47, 16  ;;  %v1101_v53 = vshll.u32 %v3555_v47, 16  ;;  %v3571_v39 = vld [vmem:[%s6368_s0 + $0x98] sm:$0xf] }
  0x25   :  { %v836_v56 = vsel %vm4165_vm2, %v831_v32, %v835_v44  ;;  %v849_v57 = vrot.slane %v847_v45, 5  ;;  %v623_v59 = vrot.slane %v621_v46, 5  ;;  %v1112_v60 = vshrl.u32 %v3556_v51, 16  ;;  %v3572_v32 = vld [vmem:[%s6368_s0 + $0xa0] sm:$0xf] }
  0x26   :  { %v637_v62 = vrot.slane %v635_v50, 5  ;;  %v4257_v0 = vrot.slane %v1098_v52, 4  ;;  %v4259_v1 = vrot.slane %v1101_v53, 5  ;;  %v1115_v2 = vshll.u32 %v3556_v51, 16 }
  0x27   :  { %v850_v4 = vsel %vm4165_vm2, %v845_v49, %v849_v57  ;;  %v624_v5 = vsel %vm4165_vm2, %v4155_v63, %v623_v59  ;;  %v4269_v6 = vrot.slane %v1112_v60, 4  ;;  %v3747_v7 = vcombine.low %v3555_v47, %v3556_v51  ;;  %v3557_v63 = vld [vmem:[%s6368_s0 + $0x18] sm:$0xf]  ;;  %v3573_v49 = vld [vmem:[%s6368_s0 + $0xa8] sm:$0xf] }
  0x28   :  { %2349 = vrot.lane.b32.xlu1 %v3724_v31, %s4050_s17  ;;  %v3739_v8 = vcombine.low %v836_v56, %v850_v4  ;;  %v638_v9 = vsel %vm4165_vm2, %v4149_v58, %v637_v62  ;;  %v4275_v19 = vrot.slane %v1115_v2, 5  ;;  %v858_v20 = vor.u32 %v857_v35, %v854_v28  ;;  %v3465_v31 = vld [vmem:[%s6368_s0 + $0xc0] sm:$0xf]  ;;  %v3574_v56 = vld [vmem:[%s6368_s0 + $0xb0] sm:$0xf] }
  0x29   :  { %v3732_v21 = vcombine.low %v624_v5, %v638_v9  ;;  %v861_v23 = vshll.u32 %v3541_v61, 16  ;;  %v872_v10 = vor.u32 %v871_v37, %v868_v41  ;;  %v875_v11 = vshll.u32 %v3542_v3, 16  ;;  %v21_v62 = vld [vmem:[%s6368_s0 + $0x20] sm:$0xf] }
  0x2a   :  { %2427 = vrot.lane.b32.xlu0 %v3739_v8, %s4052_s22  ;;  %v859_v48 = vrot.slane %v858_v20, 4  ;;  %v1126_v58 = vshrl.u32 %v3557_v63, 16  ;;  %v1129_v12 = vshll.u32 %v3557_v63, 16  ;;  %v1140_v14 = vshrl.u32 %v3558_v43, 16 }
  0x2b   :  { %v863_v15 = vrot.slane %v861_v23, 5  ;;  %v873_v16 = vrot.slane %v872_v10, 4  ;;  %v877_v54 = vrot.slane %v875_v11, 5  ;;  %v1143_v55 = vshll.u32 %v3558_v43, 16  ;;  %v54_v23 = vld [vmem:[%s6368_s0 + $0x24] sm:$0x1] }
  0x2c   :  { %2389 = vrot.lane.b32.xlu1 %v3732_v21, %s4051_s9  ;;  %v4288_v18 = vrot.slane %v1126_v58, 4  ;;  %v4290_v22 = vrot.slane %v1129_v12, 5  ;;  %v4292_v24 = vrot.slane %v1140_v14, 4  ;;  %v3748_v25 = vcombine.low %v3557_v63, %v3558_v43 }
  0x2d   :  { %v864_v27 = vsel %vm4165_vm2, %v859_v48, %v863_v15  ;;  %v878_v28 = vsel %vm4165_vm2, %v873_v16, %v877_v54  ;;  %v4301_v29 = vrot.slane %v1143_v55, 5  ;;  %v366_v30 = vshrl.u32 %v3463_v17, 16  ;;  %v55_v48 = vld [vmem:[%s6368_s0 + $0x2c] sm:$0x1]  ;;  %v23_v16 = vld [vmem:[%s6368_s0 + $0x30] sm:$0xf] }
  0x2e   :  { %2483 = vrot.lane.b32.xlu0 %v3747_v7, %s4053_s7  ;;  %v3740_v34 = vcombine.low %v864_v27, %v878_v28  ;;  %v369_v35 = vshll.u32 %v3463_v17, 16  ;;  %v380_v36 = vshrl.u32 %v3464_v26, 16  ;;  %v383_v38 = vshll.u32 %v3464_v26, 16  ;;  %v22_v7 = vld [vmem:[%s6368_s0 + $0x28] sm:$0xf] }
  0x2f   :  { %v4313_v40 = vrot.slane %v366_v30, 4  ;;  %v3693_v41 = vcombine.low %v3463_v17, %v3464_v26  ;;  %v394_v37 = vshrl.u32 %v3465_v31, 16  ;;  %v397_v42 = vshll.u32 %v3465_v31, 16  ;;  %v56_v26 = vld [vmem:[%s6368_s0 + $0x34] sm:$0x1] }
  0x30   :  { %2429 = vrot.lane.b32.xlu1 %v3740_v34, %s4052_s22  ;;  %v4319_v44 = vrot.slane %v369_v35, 5  ;;  %v4321_v45 = vrot.slane %v380_v36, 4  ;;  %v4323_v46 = vrot.slane %v383_v38, 5  ;;  %v408_v47 = vshrl.u32 %v3466_v33, 16  ;;  %v57_v36 = vld [vmem:[%s6368_s0 + $0x3c] sm:$0x1] }
  0x31   :  { %v4328_v50 = vrot.slane %v394_v37, 4  ;;  %v4330_v51 = vrot.slane %v397_v42, 5  ;;  %v411_v52 = vshll.u32 %v3466_v33, 16  ;;  %v3694_v53 = vcombine.low %v3465_v31, %v3466_v33  ;;  %v24_v33 = vld [vmem:[%s6368_s0 + $0x38] sm:$0xf] }
  0x32   :  { %2485 = vrot.lane.b32.xlu0 %v3748_v25, %s4053_s7  ;;  %v4336_v57 = vrot.slane %v408_v47, 4  ;;  %v1338_v59 = vshrl.u32 %v3571_v39, 16  ;;  %v1341_v60 = vshll.u32 %v3571_v39, 16  ;;  %v1352_v61 = vshrl.u32 %v3572_v32, 16 }
  0x33   :  { %v4341_v2 = vrot.slane %v411_v52, 5  ;;  %v1355_v3 = vshll.u32 %v3572_v32, 16  ;;  %v3755_v4 = vcombine.low %v3571_v39, %v3572_v32  ;;  %v1366_v5 = vshrl.u32 %v3573_v49, 16 }
  0x34   :  { %2159 = vrot.lane.b32.xlu1 %v3693_v41, %s4046_s25  ;;  %v4347_v8 = vrot.slane %v1338_v59, 4  ;;  %v4349_v9 = vrot.slane %v1341_v60, 5  ;;  %v4351_v20 = vrot.slane %v1352_v61, 4  ;;  %v1369_v21 = vshll.u32 %v3573_v49, 16 }
  0x35   :  { %v4356_v10 = vrot.slane %v1355_v3, 5  ;;  %v4358_v11 = vrot.slane %v1366_v5, 4  ;;  %v1380_v63 = vshrl.u32 %v3574_v56, 16  ;;  %v1383_v43 = vshll.u32 %v3574_v56, 16 }
  0x36   :  { %2161 = vrot.lane.b32.xlu0 %v3694_v53, %s4046_s25  ;;  %v4364_v58 = vrot.slane %v1369_v21, 5  ;;  %v3756_v12 = vcombine.low %v3573_v49, %v3574_v56  ;;  %v126_v14 = vshrl.u32 %v21_v62, 16  ;;  %v129_v15 = vshll.u32 %v21_v62, 16  ;;  %v3587_v56 = vld [vmem:[%s6368_s0 + $0xc] sm:$0x1] }
  0x37   :  { %v4369_v54 = vrot.slane %v1380_v63, 4  ;;  %v4371_v55 = vrot.slane %v1383_v43, 5  ;;  %v135_v17 = vshll.u32 %v54_v23, 16  ;;  %v140_v25 = vshrl.u32 %v22_v7, 16 }
  0x38   :  { %2539 = vrot.lane.b32.xlu1 %v3755_v4, %s4054_s12  ;;  %v128_v27 = vrot.slane %v126_v14, 4  ;;  %v131_v28 = vrot.slane %v129_v15, 5  ;;  %v143_v30 = vshll.u32 %v22_v7, 16  ;;  %v149_v31 = vshll.u32 %v55_v48, 16  ;;  %v3588_v7 = vld [vmem:[%s6368_s0 + $0x14] sm:$0x1] }
  0x39   :  { %v137_v34 = vrot.slane %v135_v17, 5  ;;  %v142_v35 = vrot.slane %v140_v25, 4  ;;  %v154_v38 = vshrl.u32 %v23_v16, 16  ;;  %v157_v39 = vshll.u32 %v23_v16, 16  ;;  %v3589_v17 = vld [vmem:[%s6368_s0 + $0x1c] sm:$0x1] }
  0x3a   :  { %2541 = vrot.lane.b32.xlu0 %v3756_v12, %s4054_s12  ;;  %v132_v41 = vor.u32 %v131_v28, %v128_v27  ;;  %v145_v37 = vrot.slane %v143_v30, 5  ;;  %v151_v42 = vrot.slane %v149_v31, 5  ;;  %v163_v32 = vshll.u32 %v56_v26, 16  ;;  %v3590_v26 = vld [vmem:[%s6368_s0 + $0x24] sm:$0x1] }
  0x3b   :  { %v156_v47 = vrot.slane %v154_v38, 4  ;;  %v159_v49 = vrot.slane %v157_v39, 5  ;;  %v168_v52 = vshrl.u32 %v24_v33, 16  ;;  %v171_v53 = vshll.u32 %v24_v33, 16  ;;  %v3479_v31 = vld [vmem:[%s6368_s0 + $0xb4] sm:$0x1] }
  0x3c   :  { %v133_v59 = vrot.slane %v132_v41, 4  ;;  %v146_v60 = vor.u32 %v145_v37, %v142_v35  ;;  %v165_v61 = vrot.slane %v163_v32, 5  ;;  %v177_v62 = vshll.u32 %v57_v36, 16  ;;  %v3480_v39 = vld [vmem:[%s6368_s0 + $0xbc] sm:$0x1] }
  0x3d   :  { %v160_v3 = vor.u32 %v159_v49, %v156_v47  ;;  %v170_v4 = vrot.slane %v168_v52, 4  ;;  %v173_v5 = vrot.slane %v171_v53, 5  ;;  %v1104_v21 = vor.u32 %v4259_v1, %v4257_v0  ;;  %v3481_v49 = vld [vmem:[%s6368_s0 + $0xc4] sm:$0x1] }
  0x3e   :  { %v138_v23 = vsel %vm4165_vm2, %v133_v59, %v137_v34  ;;  %v147_v63 = vrot.slane %v146_v60, 4  ;;  %v179_v43 = vrot.slane %v177_v62, 5  ;;  %v1107_v48 = vshll.u32 %v3587_v56, 16  ;;  %v3482_v60 = vld [vmem:[%s6368_s0 + $0xcc] sm:$0x1] }
  0x3f   :  { %v161_v12 = vrot.slane %v160_v3, 4  ;;  %v174_v14 = vor.u32 %v173_v5, %v170_v4  ;;  %v1105_v15 = vrot.slane %v1104_v21, 4  ;;  %v1118_v16 = vor.u32 %v4275_v19, %v4269_v6 }
  0x40   :  { %v152_v25 = vsel %vm4165_vm2, %v147_v63, %v151_v42  ;;  %v1109_v0 = vrot.slane %v1107_v48, 5  ;;  %v1121_v1 = vshll.u32 %v3588_v7, 16  ;;  %v1132_v27 = vor.u32 %v4290_v22, %v4288_v18 }
  0x41   :  { %v3701_v28 = vcombine.low %v138_v23, %v152_v25  ;;  %v166_v6 = vsel %vm4165_vm2, %v161_v12, %v165_v61  ;;  %v175_v19 = vrot.slane %v174_v14, 4  ;;  %v1119_v30 = vrot.slane %v1118_v16, 4  ;;  %v3604_v23 = vld [vmem:[%s6368_s0 + $0xa4] sm:$0x1]  ;;  %v3605_v14 = vld [vmem:[%s6368_s0 + $0xac] sm:$0x1] }
  0x42   :  { %v1110_v33 = vsel %vm4165_vm2, %v1105_v15, %v1109_v0  ;;  %v1123_v34 = vrot.slane %v1121_v1, 5  ;;  %v1133_v35 = vrot.slane %v1132_v27, 4  ;;  %v1135_v36 = vshll.u32 %v3589_v17, 16  ;;  %v3606_v0 = vld [vmem:[%s6368_s0 + $0xb4] sm:$0x1] }
  0x43   :  { %2199 = vrot.lane.b32.xlu1 %v3701_v28, %s4049_s14  ;;  %v180_v18 = vsel %vm4165_vm2, %v175_v19, %v179_v43  ;;  %v1146_v22 = vor.u32 %v4301_v29, %v4292_v24  ;;  %v1149_v38 = vshll.u32 %v3590_v26, 16  ;;  %v372_v41 = vor.u32 %v4319_v44, %v4313_v40 }
  0x44   :  { %v3702_v37 = vcombine.low %v166_v6, %v180_v18  ;;  %v1124_v42 = vsel %vm4165_vm2, %v1119_v30, %v1123_v34  ;;  %v1137_v32 = vrot.slane %v1135_v36, 5  ;;  %v375_v47 = vshll.u32 %v3479_v31, 16 }
  0x45   :  { %v3763_v52 = vcombine.low %v1110_v33, %v1124_v42  ;;  %v1147_v24 = vrot.slane %v1146_v22, 4  ;;  %v1151_v29 = vrot.slane %v1149_v38, 5  ;;  %v373_v53 = vrot.slane %v372_v41, 4  ;;  %v3497_v42 = vld [vmem:[%s6368_s0 + $0x150] sm:$0xf] }
  0x46   :  { %2201 = vrot.lane.b32.xlu0 %v3702_v37, %s4049_s14  ;;  %v1138_v56 = vsel %vm4165_vm2, %v1133_v35, %v1137_v32  ;;  %v377_v40 = vrot.slane %v375_v47, 5  ;;  %v386_v44 = vor.u32 %v4323_v46, %v4321_v45  ;;  %v389_v59 = vshll.u32 %v3480_v39, 16  ;;  %v3603_v45 = vld [vmem:[%s6368_s0 + $0x9c] sm:$0x1]  ;;  %v3498_v32 = vld [vmem:[%s6368_s0 + $0x158] sm:$0xf] }
  0x47   :  { %2579 = vrot.lane.b32.xlu1 %v3763_v52, %s4055_s18  ;;  %v1152_v61 = vsel %vm4165_vm2, %v1147_v24, %v1151_v29  ;;  %v400_v62 = vor.u32 %v4330_v51, %v4328_v50  ;;  %v403_v3 = vshll.u32 %v3481_v49, 16  ;;  %v414_v4 = vor.u32 %v4341_v2, %v4336_v57  ;;  %v3619_v29 = vld [vmem:[%s6368_s0 + $0x128] sm:$0xf] }
  0x48   :  { %v3764_v46 = vcombine.low %v1138_v56, %v1152_v61  ;;  %v378_v5 = vsel %vm4165_vm2, %v373_v53, %v377_v40  ;;  %v387_v7 = vrot.slane %v386_v44, 4  ;;  %v391_v21 = vrot.slane %v389_v59, 5  ;;  %v3620_v59 = vld [vmem:[%s6368_s0 + $0x130] sm:$0xf] }
  0x49   :  { %v401_v63 = vrot.slane %v400_v62, 4  ;;  %v405_v50 = vrot.slane %v403_v3, 5  ;;  %v415_v51 = vrot.slane %v414_v4, 4  ;;  %v417_v43 = vshll.u32 %v3482_v60, 16  ;;  %v3621_v4 = vld [vmem:[%s6368_s0 + $0x138] sm:$0xf] }
  0x4a   :  { %2581 = vrot.lane.b32.xlu0 %v3764_v46, %s4055_s18  ;;  %v392_v57 = vsel %vm4165_vm2, %v387_v7, %v391_v21  ;;  %v1344_v2 = vor.u32 %v4349_v9, %v4347_v8  ;;  %v1347_v48 = vshll.u32 %v3603_v45, 16  ;;  %v1358_v12 = vor.u32 %v4356_v10, %v4351_v20  ;;  %v3622_v21 = vld [vmem:[%s6368_s0 + $0x140] sm:$0xf] }
  0x4b   :  { %v3709_v15 = vcombine.low %v378_v5, %v392_v57  ;;  %v406_v16 = vsel %vm4165_vm2, %v401_v63, %v405_v50  ;;  %v419_v17 = vrot.slane %v417_v43, 5  ;;  %v1361_v25 = vshll.u32 %v3604_v23, 16 }
  0x4c   :  { %v1345_v1 = vrot.slane %v1344_v2, 4  ;;  %v1349_v8 = vrot.slane %v1347_v48, 5  ;;  %v1359_v9 = vrot.slane %v1358_v12, 4  ;;  %v1372_v20 = vor.u32 %v4364_v58, %v4358_v11  ;;  %v3495_v11 = vld [vmem:[%s6368_s0 + $0x140] sm:$0xf] }
  0x4d   :  { %2239 = vrot.lane.b32.xlu1 %v3709_v15, %s4048_s6  ;;  %v420_v10 = vsel %vm4165_vm2, %v415_v51, %v419_v17  ;;  %v1363_v26 = vrot.slane %v1361_v25, 5  ;;  %v1375_v27 = vshll.u32 %v3605_v14, 16  ;;  %v1386_v28 = vor.u32 %v4371_v55, %v4369_v54  ;;  %v3496_v58 = vld [vmem:[%s6368_s0 + $0x148] sm:$0xf]  ;;  %v3511_v12 = vld [vmem:[%s6368_s0 + $0x1d0] sm:$0xf] }
  0x4e   :  { %v3710_v6 = vcombine.low %v406_v16, %v420_v10  ;;  %v1350_v19 = vsel %vm4165_vm2, %v1345_v1, %v1349_v8  ;;  %v1373_v30 = vrot.slane %v1372_v20, 4  ;;  %v1389_v31 = vshll.u32 %v3606_v0, 16  ;;  %v3512_v25 = vld [vmem:[%s6368_s0 + $0x1d8] sm:$0xf]  ;;  %v3513_v20 = vld [vmem:[%s6368_s0 + $0x1e0] sm:$0xf] }
  0x4f   :  { %v1364_v33 = vsel %vm4165_vm2, %v1359_v9, %v1363_v26  ;;  %v1377_v34 = vrot.slane %v1375_v27, 5  ;;  %v1387_v35 = vrot.slane %v1386_v28, 4  ;;  %v640_v54 = vshrl.u32 %v3495_v11, 16 }
  0x50   :  { %2241 = vrot.lane.b32.xlu0 %v3710_v6, %s4048_s6  ;;  %v3771_v55 = vcombine.low %v1350_v19, %v1364_v33  ;;  %v1391_v36 = vrot.slane %v1389_v31, 5  ;;  %v643_v18 = vshll.u32 %v3495_v11, 16  ;;  %v654_v22 = vshrl.u32 %v3496_v58, 16  ;;  %v3514_v6 = vld [vmem:[%s6368_s0 + $0x1e8] sm:$0xf] }
  0x51   :  { %v1378_v38 = vsel %vm4165_vm2, %v1373_v30, %v1377_v34  ;;  %v4486_v39 = vrot.slane %v640_v54, 4  ;;  %v657_v41 = vshll.u32 %v3496_v58, 16  ;;  %v3717_v37 = vcombine.low %v3495_v11, %v3496_v58  ;;  %v3635_v58 = vld [vmem:[%s6368_s0 + $0x1b8] sm:$0xf] }
  0x52   :  { %2619 = vrot.lane.b32.xlu1 %v3771_v55, %s4056_s19  ;;  %v1392_v47 = vsel %vm4165_vm2, %v1387_v35, %v1391_v36  ;;  %v4497_v49 = vrot.slane %v643_v18, 5  ;;  %v4499_v52 = vrot.slane %v654_v22, 4  ;;  %v668_v24 = vshrl.u32 %v3497_v42, 16  ;;  %v3636_v55 = vld [vmem:[%s6368_s0 + $0x1c0] sm:$0xf] }
  0x53   :  { %v3772_v53 = vcombine.low %v1378_v38, %v1392_v47  ;;  %v4504_v56 = vrot.slane %v657_v41, 5  ;;  %v671_v40 = vshll.u32 %v3497_v42, 16  ;;  %v682_v44 = vshrl.u32 %v3498_v32, 16  ;;  %v3637_v41 = vld [vmem:[%s6368_s0 + $0x1c8] sm:$0xf] }
  0x54   :  { %v4509_v60 = vrot.slane %v668_v24, 4  ;;  %v685_v61 = vshll.u32 %v3498_v32, 16  ;;  %v3718_v62 = vcombine.low %v3497_v42, %v3498_v32  ;;  %v1612_v3 = vshrl.u32 %v3619_v29, 16  ;;  %v3638_v24 = vld [vmem:[%s6368_s0 + $0x1d0] sm:$0xf] }
  0x55   :  { %2621 = vrot.lane.b32.xlu0 %v3772_v53, %s4056_s19  ;;  %v4515_v45 = vrot.slane %v671_v40, 5  ;;  %v4517_v46 = vrot.slane %v682_v44, 4  ;;  %v1615_v5 = vshll.u32 %v3619_v29, 16  ;;  %v1626_v7 = vshrl.u32 %v3620_v59, 16 }
  0x56   :  { %2295 = vrot.lane.b32.xlu1 %v3717_v37, %s4047_s8  ;;  %v4523_v23 = vrot.slane %v685_v61, 5  ;;  %v4525_v63 = vrot.slane %v1612_v3, 4  ;;  %v1629_v50 = vshll.u32 %v3620_v59, 16  ;;  %v3779_v51 = vcombine.low %v3619_v29, %v3620_v59  ;;  %v3527_v59 = vld [vmem:[%s6368_s0 + $0x144] sm:$0x1] }
  0x57   :  { %v4527_v43 = vrot.slane %v1615_v5, 5  ;;  %v4529_v57 = vrot.slane %v1626_v7, 4  ;;  %v1640_v2 = vshrl.u32 %v3621_v4, 16  ;;  %v1643_v48 = vshll.u32 %v3621_v4, 16  ;;  %v3528_v5 = vld [vmem:[%s6368_s0 + $0x14c] sm:$0x1] }
  0x58   :  { %v4534_v14 = vrot.slane %v1629_v50, 5  ;;  %v1654_v15 = vshrl.u32 %v3622_v21, 16  ;;  %v1657_v16 = vshll.u32 %v3622_v21, 16  ;;  %v3780_v17 = vcombine.low %v3621_v4, %v3622_v21 }
  0x59   :  { %2297 = vrot.lane.b32.xlu0 %v3718_v62, %s4047_s8  ;;  %v4540_v0 = vrot.slane %v1640_v2, 4  ;;  %v4542_v1 = vrot.slane %v1643_v48, 5  ;;  %v880_v8 = vshrl.u32 %v3511_v12, 16  ;;  %v883_v9 = vshll.u32 %v3511_v12, 16  ;;  %v3529_v2 = vld [vmem:[%s6368_s0 + $0x154] sm:$0x1] }
  0x5a   :  { %2675 = vrot.lane.b32.xlu1 %v3779_v51, %s4057_s16  ;;  %v4548_v10 = vrot.slane %v1654_v15, 4  ;;  %v4550_v26 = vrot.slane %v1657_v16, 5  ;;  %v894_v27 = vshrl.u32 %v3512_v25, 16  ;;  %v897_v28 = vshll.u32 %v3512_v25, 16 }
  0x5b   :  { %v4555_v19 = vrot.slane %v880_v8, 4  ;;  %v4557_v30 = vrot.slane %v883_v9, 5  ;;  %v3725_v31 = vcombine.low %v3511_v12, %v3512_v25  ;;  %v908_v11 = vshrl.u32 %v3513_v20, 16 }
  0x5c   :  { %v4562_v33 = vrot.slane %v894_v27, 4  ;;  %v4564_v34 = vrot.slane %v897_v28, 5  ;;  %v911_v35 = vshll.u32 %v3513_v20, 16  ;;  %v922_v54 = vshrl.u32 %v3514_v6, 16 }
  0x5d   :  { %2677 = vrot.lane.b32.xlu0 %v3780_v17, %s4057_s16  ;;  %v4570_v36 = vrot.slane %v908_v11, 4  ;;  %v925_v18 = vshll.u32 %v3514_v6, 16  ;;  %v3726_v22 = vcombine.low %v3513_v20, %v3514_v6  ;;  %v1852_v38 = vshrl.u32 %v3635_v58, 16  ;;  %v3530_v17 = vld [vmem:[%s6368_s0 + $0x15c] sm:$0x1] }
  0x5e   :  { %2351 = vrot.lane.b32.xlu1 %v3725_v31, %s4050_s17  ;;  %v4576_v37 = vrot.slane %v911_v35, 5  ;;  %v4578_v42 = vrot.slane %v922_v54, 4  ;;  %v1855_v32 = vshll.u32 %v3635_v58, 16  ;;  %v1866_v47 = vshrl.u32 %v3636_v55, 16 }
  0x5f   :  { %v4583_v29 = vrot.slane %v925_v18, 5  ;;  %v4585_v53 = vrot.slane %v1852_v38, 4  ;;  %v1869_v40 = vshll.u32 %v3636_v55, 16  ;;  %v3787_v44 = vcombine.low %v3635_v58, %v3636_v55 }
  0x60   :  { %v4590_v61 = vrot.slane %v1855_v32, 5  ;;  %v4592_v62 = vrot.slane %v1866_v47, 4  ;;  %v1880_v3 = vshrl.u32 %v3637_v41, 16  ;;  %v1883_v4 = vshll.u32 %v3637_v41, 16 }
  0x61   :  { %2353 = vrot.lane.b32.xlu0 %v3726_v22, %s4050_s17  ;;  %v4598_v7 = vrot.slane %v1869_v40, 5  ;;  %v1894_v21 = vshrl.u32 %v3638_v24, 16  ;;  %v1897_v50 = vshll.u32 %v3638_v24, 16  ;;  %v3788_v51 = vcombine.low %v3637_v41, %v3638_v24 }
  0x62   :  { %2731 = vrot.lane.b32.xlu1 %v3787_v44, %s4058_s23  ;;  %v4604_v48 = vrot.slane %v1880_v3, 4  ;;  %v4606_v12 = vrot.slane %v1883_v4, 5  ;;  %v646_v15 = vor.u32 %v4497_v49, %v4486_v39  ;;  %v649_v16 = vshll.u32 %v3527_v59, 16  ;;  %v3651_v39 = vld [vmem:[%s6368_s0 + $0x12c] sm:$0x1] }
  0x63   :  { %v4613_v25 = vrot.slane %v1894_v21, 4  ;;  %v4615_v8 = vrot.slane %v1897_v50, 5  ;;  %v660_v9 = vor.u32 %v4504_v56, %v4499_v52  ;;  %v663_v20 = vshll.u32 %v3528_v5, 16  ;;  %v3543_v59 = vld [vmem:[%s6368_s0 + $0x1d4] sm:$0x1] }
  0x64   :  { %v647_v27 = vrot.slane %v646_v15, 4  ;;  %v651_v28 = vrot.slane %v649_v16, 5  ;;  %v674_v6 = vor.u32 %v4515_v45, %v4509_v60  ;;  %v677_v31 = vshll.u32 %v3529_v2, 16  ;;  %v3652_v60 = vld [vmem:[%s6368_s0 + $0x134] sm:$0x1] }
  0x65   :  { %2733 = vrot.lane.b32.xlu0 %v3788_v51, %s4058_s23  ;;  %v661_v49 = vrot.slane %v660_v9, 4  ;;  %v665_v11 = vrot.slane %v663_v20, 5  ;;  %v688_v58 = vor.u32 %v4523_v23, %v4517_v46  ;;  %v691_v35 = vshll.u32 %v3530_v17, 16  ;;  %v3653_v46 = vld [vmem:[%s6368_s0 + $0x13c] sm:$0x1] }
  0x66   :  { %v652_v52 = vsel %vm4165_vm2, %v647_v27, %v651_v28  ;;  %v675_v56 = vrot.slane %v674_v6, 4  ;;  %v679_v54 = vrot.slane %v677_v31, 5  ;;  %v1618_v45 = vor.u32 %v4527_v43, %v4525_v63  ;;  %v3654_v63 = vld [vmem:[%s6368_s0 + $0x144] sm:$0x1]  ;;  %v3544_v5 = vld [vmem:[%s6368_s0 + $0x1dc] sm:$0x1] }
  0x67   :  { %v666_v55 = vsel %vm4165_vm2, %v661_v49, %v665_v11  ;;  %v689_v18 = vrot.slane %v688_v58, 4  ;;  %v693_v22 = vrot.slane %v691_v35, 5  ;;  %v1621_v38 = vshll.u32 %v3651_v39, 16  ;;  %v3545_v20 = vld [vmem:[%s6368_s0 + $0x1e4] sm:$0x1] }
  0x68   :  { %v3733_v23 = vcombine.low %v652_v52, %v666_v55  ;;  %v680_v41 = vsel %vm4165_vm2, %v675_v56, %v679_v54  ;;  %v1619_v32 = vrot.slane %v1618_v45, 4  ;;  %v1632_v47 = vor.u32 %v4534_v14, %v4529_v57  ;;  %v3667_v49 = vld [vmem:[%s6368_s0 + $0x1bc] sm:$0x1]  ;;  %v3668_v56 = vld [vmem:[%s6368_s0 + $0x1c4] sm:$0x1] }
  0x69   :  { %v694_v43 = vsel %vm4165_vm2, %v689_v18, %v693_v22  ;;  %v1623_v24 = vrot.slane %v1621_v38, 5  ;;  %v1635_v40 = vshll.u32 %v3652_v60, 16  ;;  %v1646_v44 = vor.u32 %v4542_v1, %v4540_v0  ;;  %v3669_v45 = vld [vmem:[%s6368_s0 + $0x1cc] sm:$0x1] }
  0x6a   :  { %2391 = vrot.lane.b32.xlu1 %v3733_v23, %s4051_s9  ;;  %v3734_v3 = vcombine.low %v680_v41, %v694_v43  ;;  %v1633_v57 = vrot.slane %v1632_v47, 4  ;;  %v1649_v14 = vshll.u32 %v3653_v46, 16  ;;  %v1660_v4 = vor.u32 %v4550_v26, %v4548_v10  ;;  %v3670_v41 = vld [vmem:[%s6368_s0 + $0x1d4] sm:$0x1] }
  0x6b   :  { %v1624_v21 = vsel %vm4165_vm2, %v1619_v32, %v1623_v24  ;;  %v1637_v0 = vrot.slane %v1635_v40, 5  ;;  %v1647_v1 = vrot.slane %v1646_v44, 4  ;;  %v1663_v50 = vshll.u32 %v3654_v63, 16 }
  0x6c   :  { %2393 = vrot.lane.b32.xlu0 %v3734_v3, %s4051_s9  ;;  %v1651_v51 = vrot.slane %v1649_v14, 5  ;;  %v1661_v2 = vrot.slane %v1660_v4, 4  ;;  %v886_v15 = vor.u32 %v4557_v30, %v4555_v19  ;;  %v889_v16 = vshll.u32 %v3543_v59, 16  ;;  %v3546_v19 = vld [vmem:[%s6368_s0 + $0x1ec] sm:$0x1] }
  0x6d   :  { %v1638_v10 = vsel %vm4165_vm2, %v1633_v57, %v1637_v0  ;;  %v1665_v26 = vrot.slane %v1663_v50, 5  ;;  %v900_v17 = vor.u32 %v4564_v34, %v4562_v33  ;;  %v903_v9 = vshll.u32 %v3544_v5, 16  ;;  %v3559_v3 = vld [vmem:[%s6368_s0 + $0x28] sm:$0xf]  ;;  %v3561_v0 = vld [vmem:[%s6368_s0 + $0x38] sm:$0xf] }
  0x6e   :  { %v3795_v27 = vcombine.low %v1624_v21, %v1638_v10  ;;  %v1652_v28 = vsel %vm4165_vm2, %v1647_v1, %v1651_v51  ;;  %v887_v6 = vrot.slane %v886_v15, 4  ;;  %v891_v31 = vrot.slane %v889_v16, 5  ;;  %v3562_v16 = vld [vmem:[%s6368_s0 + $0x40] sm:$0xf] }
  0x6f   :  { %v1666_v30 = vsel %vm4165_vm2, %v1661_v2, %v1665_v26  ;;  %v901_v39 = vrot.slane %v900_v17, 4  ;;  %v905_v33 = vrot.slane %v903_v9, 5  ;;  %v914_v34 = vor.u32 %v4576_v37, %v4570_v36 }
  0x70   :  { %2771 = vrot.lane.b32.xlu1 %v3795_v27, %s4059_s10  ;;  %v3796_v11 = vcombine.low %v1652_v28, %v1666_v30  ;;  %v892_v58 = vsel %vm4165_vm2, %v887_v6, %v891_v31  ;;  %v917_v35 = vshll.u32 %v3545_v20, 16  ;;  %v928_v52 = vor.u32 %v4583_v29, %v4578_v42  ;;  %v3467_v20 = vld [vmem:[%s6368_s0 + $0xd8] sm:$0xf] }
  0x71   :  { %v906_v36 = vsel %vm4165_vm2, %v901_v39, %v905_v33  ;;  %v915_v37 = vrot.slane %v914_v34, 4  ;;  %v931_v54 = vshll.u32 %v3546_v19, 16  ;;  %v1858_v60 = vor.u32 %v4590_v61, %v4585_v53  ;;  %v3468_v19 = vld [vmem:[%s6368_s0 + $0xe0] sm:$0xf] }
  0x72   :  { %2773 = vrot.lane.b32.xlu0 %v3796_v11, %s4059_s10  ;;  %v3741_v55 = vcombine.low %v892_v58, %v906_v36  ;;  %v919_v42 = vrot.slane %v917_v35, 5  ;;  %v929_v29 = vrot.slane %v928_v52, 4  ;;  %v1861_v18 = vshll.u32 %v3667_v49, 16  ;;  %v3469_v49 = vld [vmem:[%s6368_s0 + $0xe8] sm:$0xf] }
  0x73   :  { %v933_v22 = vrot.slane %v931_v54, 5  ;;  %v1859_v38 = vrot.slane %v1858_v60, 4  ;;  %v1872_v46 = vor.u32 %v4598_v7, %v4592_v62  ;;  %v1875_v23 = vshll.u32 %v3668_v56, 16  ;;  %v3470_v56 = vld [vmem:[%s6368_s0 + $0xf0] sm:$0xf] }
  0x74   :  { %2431 = vrot.lane.b32.xlu1 %v3741_v55, %s4052_s22  ;;  %v920_v53 = vsel %vm4165_vm2, %v915_v37, %v919_v42  ;;  %v1863_v61 = vrot.slane %v1861_v18, 5  ;;  %v1886_v32 = vor.u32 %v4606_v12, %v4604_v48  ;;  %v1889_v47 = vshll.u32 %v3669_v45, 16  ;;  %v3560_v48 = vld [vmem:[%s6368_s0 + $0x30] sm:$0xf]  ;;  %v3575_v45 = vld [vmem:[%s6368_s0 + $0xb8] sm:$0xf] }
  0x75   :  { %v934_v63 = vsel %vm4165_vm2, %v929_v29, %v933_v22  ;;  %v1873_v43 = vrot.slane %v1872_v46, 4  ;;  %v1877_v62 = vrot.slane %v1875_v23, 5  ;;  %v1900_v7 = vor.u32 %v4615_v8, %v4613_v25 }
  0x76   :  { %v3742_v24 = vcombine.low %v920_v53, %v934_v63  ;;  %v1864_v40 = vsel %vm4165_vm2, %v1859_v38, %v1863_v61  ;;  %v1887_v44 = vrot.slane %v1886_v32, 4  ;;  %v1891_v59 = vrot.slane %v1889_v47, 5  ;;  %v4729_v1 = vpop.permute.xlu0 %2155  ;;  %v3576_v38 = vld [vmem:[%s6368_s0 + $0xc0] sm:$0xf]  ;;  %v3578_v32 = vld [vmem:[%s6368_s0 + $0xd0] sm:$0xf] }
  0x77   :  { %v1878_v12 = vsel %vm4165_vm2, %v1873_v43, %v1877_v62  ;;  %v1901_v57 = vrot.slane %v1900_v7, 4  ;;  %v1903_v14 = vshll.u32 %v3670_v41, 16  ;;  %v1154_v25 = vshrl.u32 %v3559_v3, 16  ;;  %v3577_v41 = vld [vmem:[%s6368_s0 + $0xc8] sm:$0xf] }
  0x78   :  { %2433 = vrot.lane.b32.xlu0 %v3742_v24, %s4052_s22  ;;  %v3803_v8 = vcombine.low %v1864_v40, %v1878_v12  ;;  %v1892_v4 = vsel %vm4165_vm2, %v1887_v44, %v1891_v59  ;;  %v1157_v5 = vshll.u32 %v3559_v3, 16  ;;  %v1168_v21 = vshrl.u32 %v3560_v48, 16  ;;  %v25_v7 = vld [vmem:[%s6368_s0 + $0x48] sm:$0xf] }
  0x79   :  { %v1905_v50 = vrot.slane %v1903_v14, 5  ;;  %v4731_v51 = vrot.slane %v1154_v25, 4  ;;  %v1171_v2 = vshll.u32 %v3560_v48, 16  ;;  %v3749_v15 = vcombine.low %v3559_v3, %v3560_v48  ;;  %v26_v3 = vld [vmem:[%s6368_s0 + $0x50] sm:$0xf] }
  0x7a   :  { %2811 = vrot.lane.b32.xlu1 %v3803_v8, %s4060_s15  ;;  %v4737_v10 = vrot.slane %v1157_v5, 5  ;;  %v4739_v26 = vrot.slane %v1168_v21, 4  ;;  %v1182_v17 = vshrl.u32 %v3561_v0, 16  ;;  %v1185_v9 = vshll.u32 %v3561_v0, 16  ;;  %v4770_v55 = vpop.permute.xlu0 %2157  ;;  %v58_v25 = vld [vmem:[%s6368_s0 + $0x4c] sm:$0x1] }
  0x7b   :  { %v1906_v27 = vsel %vm4165_vm2, %v1901_v57, %v1905_v50  ;;  %v4746_v28 = vrot.slane %v1171_v2, 5  ;;  %v1196_v6 = vshrl.u32 %v3562_v16, 16  ;;  %v1199_v31 = vshll.u32 %v3562_v16, 16 }
  0x7c   :  { %v3804_v30 = vcombine.low %v1892_v4, %v1906_v27  ;;  %v4751_v39 = vrot.slane %v1182_v17, 4  ;;  %v4753_v33 = vrot.slane %v1185_v9, 5  ;;  %v3750_v34 = vcombine.low %v3561_v0, %v3562_v16  ;;  %v59_v0 = vld [vmem:[%s6368_s0 + $0x54] sm:$0x1]  ;;  %v27_v9 = vld [vmem:[%s6368_s0 + $0x58] sm:$0xf] }
  0x7d   :  { %v4758_v11 = vrot.slane %v1196_v6, 4  ;;  %v4760_v58 = vrot.slane %v1199_v31, 5  ;;  %v422_v35 = vshrl.u32 %v3467_v20, 16  ;;  %v425_v52 = vshll.u32 %v3467_v20, 16 }
  0x7e   :  { %2813 = vrot.lane.b32.xlu0 %v3804_v30, %s4060_s15  ;;  %2487 = vrot.lane.b32.xlu1 %v3749_v15, %s4053_s7  ;;  %v436_v36 = vshrl.u32 %v3468_v19, 16  ;;  %v439_v37 = vshll.u32 %v3468_v19, 16  ;;  %v3695_v54 = vcombine.low %v3467_v20, %v3468_v19  ;;  %v450_v60 = vshrl.u32 %v3469_v49, 16  ;;  %v28_v19 = vld [vmem:[%s6368_s0 + $0x60] sm:$0xf]  ;;  %v4835_v30 = vpop.permute.xlu1 %2293 }
  0x7f   :  { %v4772_v42 = vrot.slane %v422_v35, 4  ;;  %v4774_v29 = vrot.slane %v425_v52, 5  ;;  %v453_v18 = vshll.u32 %v3469_v49, 16  ;;  %v464_v22 = vshrl.u32 %v3470_v56, 16  ;;  %v4819_v50 = vpop.permute.xlu0 %2291 }
  0x80   :  { %v4779_v46 = vrot.slane %v436_v36, 4  ;;  %v4781_v23 = vrot.slane %v439_v37, 5  ;;  %v4783_v53 = vrot.slane %v450_v60, 4  ;;  %v467_v61 = vshll.u32 %v3470_v56, 16  ;;  %v61_v60 = vld [vmem:[%s6368_s0 + $0x64] sm:$0x1] }
  0x81   :  { %v4791_v47 = vrot.slane %v453_v18, 5  ;;  %v4793_v63 = vrot.slane %v464_v22, 4  ;;  %v3696_v43 = vcombine.low %v3469_v49, %v3470_v56  ;;  %v1394_v62 = vshrl.u32 %v3575_v45, 16  ;;  %v60_v56 = vld [vmem:[%s6368_s0 + $0x5c] sm:$0x1] }
  0x82   :  { %2489 = vrot.lane.b32.xlu0 %v3750_v34, %s4053_s7  ;;  %2163 = vrot.lane.b32.xlu1 %v3695_v54, %s4046_s25  ;;  %v4800_v24 = vrot.slane %v467_v61, 5  ;;  %v1397_v40 = vshll.u32 %v3575_v45, 16  ;;  %v1408_v44 = vshrl.u32 %v3576_v38, 16  ;;  %v1411_v59 = vshll.u32 %v3576_v38, 16 }
  0x83   :  { %v4805_v48 = vrot.slane %v1394_v62, 4  ;;  %v3757_v12 = vcombine.low %v3575_v45, %v3576_v38  ;;  %v1422_v57 = vshrl.u32 %v3577_v41, 16  ;;  %v1425_v14 = vshll.u32 %v3577_v41, 16 }
  0x84   :  { %v4810_v8 = vrot.slane %v1397_v40, 5  ;;  %v4812_v4 = vrot.slane %v1408_v44, 4  ;;  %v4814_v5 = vrot.slane %v1411_v59, 5  ;;  %v1436_v21 = vshrl.u32 %v3578_v32, 16 }
  0x85   :  { %v4821_v2 = vrot.slane %v1422_v57, 4  ;;  %v4823_v15 = vrot.slane %v1425_v14, 5  ;;  %v1439_v16 = vshll.u32 %v3578_v32, 16  ;;  %v3758_v17 = vcombine.low %v3577_v41, %v3578_v32  ;;  %v4011_v57 = vld [vmem:[%s6369_s1 + $0x18] sm:$0xff]  }
  0x86   :  { %2165 = vrot.lane.b32.xlu0 %v3696_v43, %s4046_s25  ;;  %2543 = vrot.lane.b32.xlu1 %v3757_v12, %s4054_s12  ;;  %v4830_v20 = vrot.slane %v1436_v21, 4  ;;  %v182_v27 = vshrl.u32 %v25_v7, 16  ;;  %v185_v6 = vshll.u32 %v25_v7, 16  ;;  %v191_v31 = vshll.u32 %v58_v25, 16  ;;  %v3591_v12 = vld [vmem:[%s6368_s0 + $0x2c] sm:$0x1] }
  0x87   :  { %v4837_v34 = vrot.slane %v1439_v16, 5  ;;  %v196_v49 = vshrl.u32 %v26_v3, 16  ;;  %v199_v35 = vshll.u32 %v26_v3, 16  ;;  %v205_v52 = vshll.u32 %v59_v0, 16  ;;  %v3592_v0 = vld [vmem:[%s6368_s0 + $0x34] sm:$0x1]  ;;  %3915 = vmatprep.subr.bf16.mxu0 %v4011_v57  ;;  %3939 = vmatprep.subr.bf16.mxu1 %v4011_v57 }
  0x88   :  { %v184_v36 = vrot.slane %v182_v27, 4  ;;  %v187_v37 = vrot.slane %v185_v6, 5  ;;  %v193_v54 = vrot.slane %v191_v31, 5  ;;  %v210_v45 = vshrl.u32 %v27_v9, 16  ;;  %v4846_v7 = vpop.permute.xlu0 %2235  ;;  %3916 = vmatpush3.bf16.msra.mxu0 %v4011_v57  ;;  %3943 = vmatpush3.bf16.msra.mxu1 %v4011_v57  ;;  %v4014_v57 = vld [vmem:[%s6369_s1 + $0x10] sm:$0xff]  }
  0x89   :  { %v198_v18 = vrot.slane %v196_v49, 4  ;;  %v201_v22 = vrot.slane %v199_v35, 5  ;;  %v207_v38 = vrot.slane %v205_v52, 5  ;;  %v213_v61 = vshll.u32 %v27_v9, 16  ;;  %3917 = vmatprep.subr.bf16.mxu0 %v4014_v57  ;;  %3940 = vmatprep.subr.bf16.mxu1 %v4014_v57 }
  0x8a   :  { %2545 = vrot.lane.b32.xlu0 %v3758_v17, %s4054_s12  ;;  %v188_v41 = vor.u32 %v187_v37, %v184_v36  ;;  %v212_v32 = vrot.slane %v210_v45, 4  ;;  %v219_v43 = vshll.u32 %v60_v56, 16  ;;  %v224_v62 = vshrl.u32 %v28_v19, 16 }
  0x8b   :  { %v202_v40 = vor.u32 %v201_v22, %v198_v18  ;;  %v215_v44 = vrot.slane %v213_v61, 5  ;;  %v227_v59 = vshll.u32 %v28_v19, 16  ;;  %v233_v3 = vshll.u32 %v61_v60, 16  ;;  %v4859_v17 = vpop.permute.xlu1 %2195 }
  0x8c   :  { %v189_v14 = vrot.slane %v188_v41, 4  ;;  %v221_v25 = vrot.slane %v219_v43, 5  ;;  %v226_v21 = vrot.slane %v224_v62, 4  ;;  %v1160_v16 = vor.u32 %v4737_v10, %v4731_v51  ;;  %v3593_v51 = vld [vmem:[%s6368_s0 + $0x3c] sm:$0x1]  ;;  %3918 = vmatpush3.bf16.msra.mxu0 %v4014_v57  ;;  %3944 = vmatpush3.bf16.msra.mxu1 %v4014_v57  ;;  %v4016_v57 = vld [vmem:[%s6369_s1 + $0x8] sm:$0xff]  }
  0x8d   :  { %v203_v9 = vrot.slane %v202_v40, 4  ;;  %v216_v27 = vor.u32 %v215_v44, %v212_v32  ;;  %v229_v6 = vrot.slane %v227_v59, 5  ;;  %v235_v31 = vrot.slane %v233_v3, 5  ;;  %3919 = vmatprep.subr.bf16.mxu0 %v4016_v57  ;;  %3941 = vmatprep.subr.bf16.mxu1 %v4016_v57 }
  0x8e   :  { %v194_v19 = vsel %vm4165_vm2, %v189_v14, %v193_v54  ;;  %v1161_v49 = vrot.slane %v1160_v16, 4  ;;  %v1163_v35 = vshll.u32 %v3591_v12, 16  ;;  %v1174_v52 = vor.u32 %v4746_v28, %v4739_v26  ;;  %v3594_v54 = vld [vmem:[%s6368_s0 + $0x44] sm:$0x1]  ;;  %v4875_v28 = vpop.permute.xlu0 %2347 }
  0x8f   :  { %v208_v10 = vsel %vm4165_vm2, %v203_v9, %v207_v38  ;;  %v217_v56 = vrot.slane %v216_v27, 4  ;;  %v230_v36 = vor.u32 %v229_v6, %v226_v21  ;;  %v1177_v37 = vshll.u32 %v3592_v0, 16  ;;  %v3484_v12 = vld [vmem:[%s6368_s0 + $0xe4] sm:$0x1] }
  0x90   :  { %v3703_v60 = vcombine.low %v194_v19, %v208_v10  ;;  %v1165_v45 = vrot.slane %v1163_v35, 5  ;;  %v1175_v18 = vrot.slane %v1174_v52, 4  ;;  %v1188_v26 = vor.u32 %v4753_v33, %v4751_v39  ;;  %v3483_v39 = vld [vmem:[%s6368_s0 + $0xdc] sm:$0x1]  ;;  %3920 = vmatpush3.bf16.msra.mxu0 %v4016_v57  ;;  %3945 = vmatpush3.bf16.msra.mxu1 %v4016_v57 }
  0x91   :  { %v222_v22 = vsel %vm4165_vm2, %v217_v56, %v221_v25  ;;  %v231_v61 = vrot.slane %v230_v36, 4  ;;  %v1179_v38 = vrot.slane %v1177_v37, 5  ;;  %v1191_v41 = vshll.u32 %v3593_v51, 16 }
  0x92   :  { %2203 = vrot.lane.b32.xlu1 %v3703_v60, %s4049_s14  ;;  %v1166_v32 = vsel %vm4165_vm2, %v1161_v49, %v1165_v45  ;;  %v1189_v43 = vrot.slane %v1188_v26, 4  ;;  %v1202_v62 = vor.u32 %v4760_v58, %v4758_v11  ;;  %v1205_v40 = vshll.u32 %v3594_v54, 16  ;;  %v4887_v33 = vpop.permute.xlu1 %2197  ;;  %v3485_v58 = vld [vmem:[%s6368_s0 + $0xec] sm:$0x1]  ;;  %v3608_v54 = vld [vmem:[%s6368_s0 + $0xc4] sm:$0x1] }
  0x93   :  { %v236_v44 = vsel %vm4165_vm2, %v231_v61, %v235_v31  ;;  %v1180_v59 = vsel %vm4165_vm2, %v1175_v18, %v1179_v38  ;;  %v1193_v3 = vrot.slane %v1191_v41, 5  ;;  %v428_v11 = vor.u32 %v4774_v29, %v4772_v42  ;;  %v3486_v29 = vld [vmem:[%s6368_s0 + $0xf4] sm:$0x1] }
  0x94   :  { %v3704_v14 = vcombine.low %v222_v22, %v236_v44  ;;  %v3765_v25 = vcombine.low %v1166_v32, %v1180_v59  ;;  %v1203_v21 = vrot.slane %v1202_v62, 4  ;;  %v1207_v0 = vrot.slane %v1205_v40, 5  ;;  %v3610_v62 = vld [vmem:[%s6368_s0 + $0xd4] sm:$0x1]  ;;  %v4030_v44 = vld [vmem:[%s6368_s0] sm:$0xf] }
  0x95   :  { %v1194_v16 = vsel %vm4165_vm2, %v1189_v43, %v1193_v3  ;;  %v429_v9 = vrot.slane %v428_v11, 4  ;;  %v431_v27 = vshll.u32 %v3483_v39, 16  ;;  %v442_v42 = vor.u32 %v4781_v23, %v4779_v46  ;;  %v3607_v46 = vld [vmem:[%s6368_s0 + $0xbc] sm:$0x1] }
  0x96   :  { %2205 = vrot.lane.b32.xlu0 %v3704_v14, %s4049_s14  ;;  %2583 = vrot.lane.b32.xlu1 %v3765_v25, %s4055_s18  ;;  %v1208_v6 = vsel %vm4165_vm2, %v1203_v21, %v1207_v0  ;;  %v445_v31 = vshll.u32 %v3484_v12, 16  ;;  %v456_v19 = vor.u32 %v4791_v47, %v4783_v53  ;;  %v459_v49 = vshll.u32 %v3485_v58, 16  ;;  %v4920_v23 = vpop.permute.xlu1 %2237  ;;  %v4922_v35 = vpop.permute.xlu0 %2387 }
  0x97   :  { %v3766_v52 = vcombine.low %v1194_v16, %v1208_v6  ;;  %v433_v51 = vrot.slane %v431_v27, 5  ;;  %v443_v10 = vrot.slane %v442_v42, 4  ;;  %v470_v56 = vor.u32 %v4800_v24, %v4793_v63  ;;  %v3609_v63 = vld [vmem:[%s6368_s0 + $0xcc] sm:$0x1]  ;;  %v3499_v16 = vld [vmem:[%s6368_s0 + $0x168] sm:$0xf] }
  0x98   :  { %v447_v36 = vrot.slane %v445_v31, 5  ;;  %v457_v37 = vrot.slane %v456_v19, 4  ;;  %v461_v53 = vrot.slane %v459_v49, 5  ;;  %v473_v47 = vshll.u32 %v3486_v29, 16  ;;  %v3501_v31 = vld [vmem:[%s6368_s0 + $0x178] sm:$0xf] }
  0x99   :  { %v434_v60 = vsel %vm4165_vm2, %v429_v9, %v433_v51  ;;  %v471_v45 = vrot.slane %v470_v56, 4  ;;  %v1400_v18 = vor.u32 %v4810_v8, %v4805_v48  ;;  %v1403_v26 = vshll.u32 %v3607_v46, 16 }
  0x9a   :  { %2585 = vrot.lane.b32.xlu0 %v3766_v52, %s4055_s18  ;;  %v448_v24 = vsel %vm4165_vm2, %v443_v10, %v447_v36  ;;  %v462_v22 = vsel %vm4165_vm2, %v457_v37, %v461_v53  ;;  %v475_v61 = vrot.slane %v473_v47, 5  ;;  %v1414_v38 = vor.u32 %v4814_v5, %v4812_v4  ;;  %v4943_v41 = vpop.permute.xlu1 %2349  ;;  %v4031_v4 = vld [vmem:[%s6368_s0 + $0x8] sm:$0xf]  ;;  %v3502_v10 = vld [vmem:[%s6368_s0 + $0x180] sm:$0xf] }
  0x9b   :  { %v3711_v48 = vcombine.low %v434_v60, %v448_v24  ;;  %v1401_v8 = vrot.slane %v1400_v18, 4  ;;  %v1405_v32 = vrot.slane %v1403_v26, 5  ;;  %v1417_v43 = vshll.u32 %v3608_v54, 16  ;;  %v4032_v53 = vld [vmem:[%s6368_s0 + $0x10] sm:$0xf]  ;;  %v4017_v60 = vld [vmem:[%s6369_s1] sm:$0xff]  }
  0x9c   :  { %v476_v40 = vsel %vm4165_vm2, %v471_v45, %v475_v61  ;;  %v1415_v39 = vrot.slane %v1414_v38, 4  ;;  %vm2827_vm3 = vcmask 31744   ;;  %v3683_v5 = vcombine.low %v4030_v44, %v4031_v4  ;;  %v4956_v59 = vpop.permute.xlu0 %2427  ;;  %v4033_v47 = vld [vmem:[%s6368_s0 + $0x18] sm:$0xf]  ;;  %v3623_v24 = vld [vmem:[%s6368_s0 + $0x148] sm:$0xf]  ;;  %3921 = vmatprep.subr.bf16.mxu0 %v4017_v60  ;;  %3942 = vmatprep.subr.bf16.mxu1 %v4017_v60 }
  0x9d   :  { %2243 = vrot.lane.b32.xlu1 %v3711_v48, %s4048_s6  ;;  %v3712_v3 = vcombine.low %v462_v22, %v476_v40  ;;  %v1406_v12 = vsel %vm4165_vm2, %v1401_v8, %v1405_v32  ;;  %v1419_v11 = vrot.slane %v1417_v43, 5  ;;  %v1428_v58 = vor.u32 %v4823_v15, %v4821_v2  ;;  %v3624_v32 = vld [vmem:[%s6368_s0 + $0x150] sm:$0xf]  ;;  %3922 = vmatpush3.bf16.msra.mxu0 %v4017_v60 }
  0x9e   :  { %v4968_v14 = vsel %vm2827_vm3, %v3683_v5, %v4729_v1  ;;  %v1431_v25 = vshll.u32 %v3609_v63, 16  ;;  %v1442_v21 = vor.u32 %v4837_v34, %v4830_v20  ;;  %v1445_v0 = vshll.u32 %v3610_v62, 16  ;;  %v4975_v9 = vpop.permute.xlu1 %2389  ;;  %v3500_v1 = vld [vmem:[%s6368_s0 + $0x170] sm:$0xf]  ;;  %3946 = vmatpush3.bf16.msra.mxu1 %v4017_v60 }
  0x9f   :  { %2245 = vrot.lane.b32.xlu0 %v3712_v3, %s4048_s6  ;;  %v1420_v2 = vsel %vm4165_vm2, %v1415_v39, %v1419_v11  ;;  %v1429_v15 = vrot.slane %v1428_v58, 4  ;;  %v696_v27 = vshrl.u32 %v3499_v16, 16  ;;  %v699_v42 = vshll.u32 %v3499_v16, 16  ;;  %v3625_v3 = vld [vmem:[%s6368_s0 + $0x158] sm:$0xf] }
  0xa0   :  { %v3773_v20 = vcombine.low %v1406_v12, %v1420_v2  ;;  %v1433_v34 = vrot.slane %v1431_v25, 5  ;;  %v1443_v29 = vrot.slane %v1442_v21, 4  ;;  %v1447_v6 = vrot.slane %v1445_v0, 5  ;;  %v4986_v19 = vpop.permute.xlu0 %2483  ;;  %v3626_v21 = vld [vmem:[%s6368_s0 + $0x160] sm:$0xf] }
  0xa1   :  { %v4988_v49 = vrot.slane %v696_v27, 4  ;;  %v4990_v46 = vrot.slane %v699_v42, 5  ;;  %v710_v52 = vshrl.u32 %v3500_v1, 16  ;;  %v713_v51 = vshll.u32 %v3500_v1, 16 }
  0xa2   :  { %2623 = vrot.lane.b32.xlu1 %v3773_v20, %s4056_s19  ;;  %v1434_v56 = vsel %vm4165_vm2, %v1429_v15, %v1433_v34  ;;  %v1448_v36 = vsel %vm4165_vm2, %v1443_v29, %v1447_v6  ;;  %v3719_v37 = vcombine.low %v3499_v16, %v3500_v1  ;;  %v3684_v54 = vcombine.low %v4032_v53, %v4033_v47  ;;  %v5016_v22 = vpop.permute.xlu1 %2429  ;;  %v3515_v15 = vld [vmem:[%s6368_s0 + $0x1f8] sm:$0xf]  ;;  %v3516_v34 = vld [vmem:[%s6368_s0 + $0x200] sm:$0xf] }
  0xa3   :  { %v3774_v45 = vcombine.low %v1434_v56, %v1448_v36  ;;  %v5009_v18 = vrot.slane %v710_v52, 4  ;;  %v5011_v26 = vrot.slane %v713_v51, 5  ;;  %v724_v63 = vshrl.u32 %v3501_v31, 16  ;;  %v3517_v36 = vld [vmem:[%s6368_s0 + $0x208] sm:$0xf] }
  0xa4   :  { %v2833_v61 = vsel %vm2827_vm3, %v3684_v54, %v4770_v55  ;;  %v727_v38 = vshll.u32 %v3501_v31, 16  ;;  %v738_v48 = vshrl.u32 %v3502_v10, 16  ;;  %v741_v8 = vshll.u32 %v3502_v10, 16  ;;  %v5036_v12 = vpop.permute.xlu0 %2485  ;;  %v3518_v54 = vld [vmem:[%s6368_s0 + $0x210] sm:$0xf] }
  0xa5   :  { %2625 = vrot.lane.b32.xlu0 %v3774_v45, %s4056_s19  ;;  %v5024_v43 = vrot.slane %v724_v63, 4  ;;  %v3720_v62 = vcombine.low %v3501_v31, %v3502_v10  ;;  %v1668_v40 = vshrl.u32 %v3623_v24, 16  ;;  %v1671_v39 = vshll.u32 %v3623_v24, 16 }
  0xa6   :  { %2299 = vrot.lane.b32.xlu1 %v3719_v37, %s4047_s8  ;;  %v5027_v55 = vrot.slane %v727_v38, 5  ;;  %v5029_v44 = vrot.slane %v738_v48, 4  ;;  %v5031_v4 = vrot.slane %v741_v8, 5  ;;  %v1682_v5 = vshrl.u32 %v3624_v32, 16  ;;  %v5059_v29 = vpop.permute.xlu1 %2159 }
  0xa7   :  { %v5038_v11 = vrot.slane %v1668_v40, 4  ;;  %v5040_v58 = vrot.slane %v1671_v39, 5  ;;  %v1685_v57 = vshll.u32 %v3624_v32, 16  ;;  %v3781_v25 = vcombine.low %v3623_v24, %v3624_v32  ;;  %v3639_v40 = vld [vmem:[%s6368_s0 + $0x1d8] sm:$0xf] }
  0xa8   :  { %v5045_v0 = vrot.slane %v1682_v5, 4  ;;  %vm2852_vm4 = vcmask 64512   ;;  %v1696_v16 = vshrl.u32 %v3625_v3, 16  ;;  %v1699_v2 = vshll.u32 %v3625_v3, 16  ;;  %v5078_v60 = vpop.permute.xlu0 %2161 }
  0xa9   :  { %2301 = vrot.lane.b32.xlu0 %v3720_v62, %s4047_s8  ;;  %v5051_v1 = vrot.slane %v1685_v57, 5  ;;  %v2854_v27 = vsel %vm2852_vm4, %v4968_v14, %v4859_v17  ;;  %v1710_v42 = vshrl.u32 %v3626_v21, 16  ;;  %v1713_v20 = vshll.u32 %v3626_v21, 16 }
  0xaa   :  { %2679 = vrot.lane.b32.xlu1 %v3781_v25, %s4057_s16  ;;  %v5062_v6 = vrot.slane %v1696_v16, 4  ;;  %v5064_v31 = vrot.slane %v1699_v2, 5  ;;  %v3782_v52 = vcombine.low %v3625_v3, %v3626_v21  ;;  %v936_v51 = vshrl.u32 %v3515_v15, 16  ;;  %v3641_v2 = vld [vmem:[%s6368_s0 + $0x1e8] sm:$0xf] }
  0xab   :  { %v5066_v10 = vrot.slane %v1710_v42, 4  ;;  %v5068_v56 = vrot.slane %v1713_v20, 5  ;;  %v939_v17 = vshll.u32 %v3515_v15, 16  ;;  %v950_v14 = vshrl.u32 %v3516_v34, 16 }
  0xac   :  { %v5073_v37 = vrot.slane %v936_v51, 4  ;;  %v953_v53 = vshll.u32 %v3516_v34, 16  ;;  %v3727_v47 = vcombine.low %v3515_v15, %v3516_v34  ;;  %vm2869_vm5 = vcmask 97280   ;;  %v3642_v34 = vld [vmem:[%s6368_s0 + $0x1f0] sm:$0xf] }
  0xad   :  { %2681 = vrot.lane.b32.xlu0 %v3782_v52, %s4057_s16  ;;  %v5081_v45 = vrot.slane %v939_v17, 5  ;;  %v5083_v63 = vrot.slane %v950_v14, 4  ;;  %v2871_v24 = vsel %vm2869_vm5, %v2854_v27, %v4846_v7  ;;  %v2856_v38 = vsel %vm2852_vm4, %v2833_v61, %v4887_v33  ;;  %v3640_v7 = vld [vmem:[%s6368_s0 + $0x1e0] sm:$0xf]  ;;  %v5098_v33 = vpop.permute.xlu1 %2539  ;;  %v3531_v17 = vld [vmem:[%s6368_s0 + $0x16c] sm:$0x1]  ;;  %v5124_v14 = vpop.permute.xlu0 %2541 }
  0xae   :  { %v5089_v48 = vrot.slane %v953_v53, 5  ;;  %2355 = vrot.lane.b32.xlu1 %v3727_v47, %s4050_s17  ;;  %v964_v8 = vshrl.u32 %v3517_v36, 16  ;;  %v967_v32 = vshll.u32 %v3517_v36, 16  ;;  %v978_v62 = vshrl.u32 %v3518_v54, 16 }
  0xaf   :  { %v981_v39 = vshll.u32 %v3518_v54, 16  ;;  %v3728_v5 = vcombine.low %v3517_v36, %v3518_v54  ;;  %v1908_v3 = vshrl.u32 %v3639_v40, 16  ;;  %v1911_v57 = vshll.u32 %v3639_v40, 16 }
  0xb0   :  { %v5100_v61 = vrot.slane %v964_v8, 4  ;;  %v5102_v25 = vrot.slane %v967_v32, 5  ;;  %v5104_v21 = vrot.slane %v978_v62, 4  ;;  %v1922_v16 = vshrl.u32 %v3640_v7, 16 }
  0xb1   :  { %v5109_v15 = vrot.slane %v981_v39, 5  ;;  %2357 = vrot.lane.b32.xlu0 %v3728_v5, %s4050_s17  ;;  %v5112_v27 = vrot.slane %v1908_v3, 4  ;;  %v5114_v42 = vrot.slane %v1911_v57, 5  ;;  %v1925_v20 = vshll.u32 %v3640_v7, 16  ;;  %v3532_v39 = vld [vmem:[%s6368_s0 + $0x174] sm:$0x1] }
  0xb2   :  { %v5119_v52 = vrot.slane %v1922_v16, 4  ;;  %v3789_v51 = vcombine.low %v3639_v40, %v3640_v7  ;;  %vm6375_vm6 = vcmask 130048   ;;  %vm6374_vm7 = vcmask 162816   ;;  %v3533_v16 = vld [vmem:[%s6368_s0 + $0x17c] sm:$0x1] }
  0xb3   :  { %v5126_v36 = vrot.slane %v1925_v20, 5  ;;  %v2888_v53 = vsel %vm6375_vm6, %v2871_v24, %v4819_v50  ;;  %v2873_v47 = vsel %vm2869_vm5, %v2856_v38, %v4920_v23  ;;  %v1936_v54 = vshrl.u32 %v3641_v2, 16  ;;  %v3534_v20 = vld [vmem:[%s6368_s0 + $0x184] sm:$0x1] }
  0xb4   :  { %2735 = vrot.lane.b32.xlu1 %v3789_v51, %s4058_s23  ;;  %v2905_v8 = vsel %vm6374_vm7, %v2888_v53, %v4875_v28  ;;  %v1939_v32 = vshll.u32 %v3641_v2, 16  ;;  %v1950_v62 = vshrl.u32 %v3642_v34, 16  ;;  %v1953_v40 = vshll.u32 %v3642_v34, 16 }
  0xb5   :  { %v5138_v5 = vrot.slane %v1936_v54, 4  ;;  %v3790_v7 = vcombine.low %v3641_v2, %v3642_v34  ;;  %v702_v50 = vor.u32 %v4990_v46, %v4988_v49  ;;  %v705_v23 = vshll.u32 %v3531_v17, 16  ;;  %v5142_v24 = vpop.permute.xlu1 %2199  ;;  %v3655_v17 = vld [vmem:[%s6368_s0 + $0x14c] sm:$0x1] }
  0xb6   :  { %v5144_v38 = vrot.slane %v1939_v32, 5  ;;  %v5146_v3 = vrot.slane %v1950_v62, 4  ;;  %v5148_v28 = vrot.slane %v1953_v40, 5  ;;  %v716_v57 = vor.u32 %v5011_v26, %v5009_v18 }
  0xb7   :  { %2737 = vrot.lane.b32.xlu0 %v3790_v7, %s4058_s23  ;;  %v703_v2 = vrot.slane %v702_v50, 4  ;;  %v707_v49 = vrot.slane %v705_v23, 5  ;;  %v719_v46 = vshll.u32 %v3532_v39, 16  ;;  %vm2920_vm8 = vcmask 195584  }
  0xb8   :  { %v717_v34 = vrot.slane %v716_v57, 4  ;;  %v2922_v51 = vsel %vm2920_vm8, %v2905_v8, %v4922_v35  ;;  %v2890_v18 = vsel %vm6375_vm6, %v2873_v47, %v4835_v30  ;;  %v730_v26 = vor.u32 %v5027_v55, %v5024_v43  ;;  %v5168_v53 = vpop.permute.xlu0 %2201  ;;  %v3656_v47 = vld [vmem:[%s6368_s0 + $0x154] sm:$0x1] }
  0xb9   :  { %v708_v54 = vsel %vm4165_vm2, %v703_v2, %v707_v49  ;;  %v721_v32 = vrot.slane %v719_v46, 5  ;;  %v2907_v62 = vsel %vm6374_vm7, %v2890_v18, %v4943_v41  ;;  %v733_v35 = vshll.u32 %v3533_v16, 16  ;;  %v5174_v8 = vpop.permute.xlu1 %2579  ;;  %v3547_v18 = vld [vmem:[%s6368_s0 + $0x1fc] sm:$0x1] }
  0xba   :  { %v731_v30 = vrot.slane %v730_v26, 4  ;;  %v744_v43 = vor.u32 %v5031_v4, %v5029_v44  ;;  %v747_v55 = vshll.u32 %v3534_v20, 16  ;;  %v1674_v40 = vor.u32 %v5040_v58, %v5038_v11  ;;  %v3657_v4 = vld [vmem:[%s6368_s0 + $0x15c] sm:$0x1] }
  0xbb   :  { %v722_v39 = vsel %vm4165_vm2, %v717_v34, %v721_v32  ;;  %v735_v7 = vrot.slane %v733_v35, 5  ;;  %v1677_v41 = vshll.u32 %v3655_v17, 16  ;;  %v1688_v50 = vor.u32 %v5051_v1, %v5045_v0  ;;  %v3658_v0 = vld [vmem:[%s6368_s0 + $0x164] sm:$0x1] }
  0xbc   :  { %v3735_v23 = vcombine.low %v708_v54, %v722_v39  ;;  %v745_v57 = vrot.slane %v744_v43, 4  ;;  %v749_v16 = vrot.slane %v747_v55, 5  ;;  %v1675_v44 = vrot.slane %v1674_v40, 4  ;;  %v5190_v2 = vpop.permute.xlu0 %2581  ;;  %v3549_v39 = vld [vmem:[%s6368_s0 + $0x20c] sm:$0x1] }
  0xbd   :  { %v736_v11 = vsel %vm4165_vm2, %v731_v30, %v735_v7  ;;  %v1679_v58 = vrot.slane %v1677_v41, 5  ;;  %v1689_v49 = vrot.slane %v1688_v50, 4  ;;  %v1691_v46 = vshll.u32 %v3656_v47, 16 }
  0xbe   :  { %2395 = vrot.lane.b32.xlu1 %v3735_v23, %s4051_s9  ;;  %v750_v1 = vsel %vm4165_vm2, %v745_v57, %v749_v16  ;;  %vm6373_vm9 = vcmask 228352   ;;  %v2924_v20 = vsel %vm2920_vm8, %v2907_v62, %v4975_v9  ;;  %v1702_v34 = vor.u32 %v5064_v31, %v5062_v6  ;;  %v3548_v31 = vld [vmem:[%s6368_s0 + $0x204] sm:$0x1]  ;;  %v3671_v16 = vld [vmem:[%s6368_s0 + $0x1dc] sm:$0x1] }
  0xbf   :  { %v3736_v26 = vcombine.low %v736_v11, %v750_v1  ;;  %v1680_v17 = vsel %vm4165_vm2, %v1675_v44, %v1679_v58  ;;  %v1693_v54 = vrot.slane %v1691_v46, 5  ;;  %v2939_v32 = vsel %vm6373_vm9, %v2922_v51, %v4956_v59  ;;  %v5211_v35 = vpop.permute.xlu1 %2239 }
  0xc0   :  { %v1703_v30 = vrot.slane %v1702_v34, 4  ;;  %v1705_v43 = vshll.u32 %v3657_v4, 16  ;;  %v1716_v9 = vor.u32 %v5068_v56, %v5066_v10  ;;  %v1719_v6 = vshll.u32 %v3658_v0, 16  ;;  %v3672_v34 = vld [vmem:[%s6368_s0 + $0x1e4] sm:$0x1] }
  0xc1   :  { %2397 = vrot.lane.b32.xlu0 %v3736_v26, %s4051_s9  ;;  %v1694_v62 = vsel %vm4165_vm2, %v1689_v49, %v1693_v54  ;;  %v942_v59 = vor.u32 %v5081_v45, %v5073_v37  ;;  %v945_v51 = vshll.u32 %v3547_v18, 16  ;;  %v956_v55 = vor.u32 %v5089_v48, %v5083_v63  ;;  %v3550_v37 = vld [vmem:[%s6368_s0 + $0x214] sm:$0x1]  ;;  %v3673_v54 = vld [vmem:[%s6368_s0 + $0x1ec] sm:$0x1] }
  0xc2   :  { %v3797_v47 = vcombine.low %v1680_v17, %v1694_v62  ;;  %v1707_v40 = vrot.slane %v1705_v43, 5  ;;  %v1717_v10 = vrot.slane %v1716_v9, 4  ;;  %v1721_v56 = vrot.slane %v1719_v6, 5  ;;  %v5228_v7 = vpop.permute.xlu0 %2241  ;;  %v4034_v6 = vld [vmem:[%s6368_s0 + $0x20] sm:$0xf] }
  0xc3   :  { %v943_v41 = vrot.slane %v942_v59, 4  ;;  %v947_v50 = vrot.slane %v945_v51, 5  ;;  %v957_v23 = vrot.slane %v956_v55, 4  ;;  %v959_v57 = vshll.u32 %v3548_v31, 16  ;;  %v4035_v31 = vld [vmem:[%s6368_s0 + $0x28] sm:$0xf] }
  0xc4   :  { %2775 = vrot.lane.b32.xlu1 %v3797_v47, %s4059_s10  ;;  %v1708_v45 = vsel %vm4165_vm2, %v1703_v30, %v1707_v40  ;;  %v1722_v63 = vsel %vm4165_vm2, %v1717_v10, %v1721_v56  ;;  %vm2954_vm10 = vcmask 261120   ;;  %v2941_v48 = vsel %vm6373_vm9, %v2924_v20, %v5016_v22  ;;  %v5243_v44 = vpop.permute.xlu1 %2619  ;;  %v3674_v59 = vld [vmem:[%s6368_s0 + $0x1f4] sm:$0x1] }
  0xc5   :  { %v3798_v4 = vcombine.low %v1708_v45, %v1722_v63  ;;  %v948_v11 = vsel %vm4165_vm2, %v943_v41, %v947_v50  ;;  %v961_v58 = vrot.slane %v959_v57, 5  ;;  %v5249_v49 = vsel %vm2954_vm10, %v2939_v32, %v4986_v19  ;;  %v3563_v50 = vld [vmem:[%s6368_s0 + $0x50] sm:$0xf] }
  0xc6   :  { %v970_v46 = vor.u32 %v5102_v25, %v5100_v61  ;;  %v973_v0 = vshll.u32 %v3549_v39, 16  ;;  %v984_v22 = vor.u32 %v5109_v15, %v5104_v21  ;;  %v987_v1 = vshll.u32 %v3550_v37, 16  ;;  %v3564_v37 = vld [vmem:[%s6368_s0 + $0x58] sm:$0xf] }
  0xc7   :  { %2777 = vrot.lane.b32.xlu0 %v3798_v4, %s4059_s10  ;;  %v962_v20 = vsel %vm4165_vm2, %v957_v23, %v961_v58  ;;  %v1914_v19 = vor.u32 %v5114_v42, %v5112_v27  ;;  %v1917_v18 = vshll.u32 %v3671_v16, 16  ;;  %v1928_v61 = vor.u32 %v5126_v36, %v5119_v52  ;;  %v5265_v25 = vpop.permute.xlu0 %2621 }
  0xc8   :  { %v3743_v21 = vcombine.low %v948_v11, %v962_v20  ;;  %v971_v15 = vrot.slane %v970_v46, 4  ;;  %v975_v26 = vrot.slane %v973_v0, 5  ;;  %v985_v17 = vrot.slane %v984_v22, 4  ;;  %v5270_v32 = vpop.permute.xlu1 %2295  ;;  %v3565_v20 = vld [vmem:[%s6368_s0 + $0x60] sm:$0xf] }
  0xc9   :  { %v989_v30 = vrot.slane %v987_v1, 5  ;;  %v1915_v43 = vrot.slane %v1914_v19, 4  ;;  %v1919_v9 = vrot.slane %v1917_v18, 5  ;;  %v1929_v27 = vrot.slane %v1928_v61, 4  ;;  %v4036_v18 = vld [vmem:[%s6368_s0 + $0x30] sm:$0xf] }
  0xca   :  { %2435 = vrot.lane.b32.xlu1 %v3743_v21, %s4052_s22  ;;  %v976_v42 = vsel %vm4165_vm2, %v971_v15, %v975_v26  ;;  %v1931_v52 = vshll.u32 %v3672_v34, 16  ;;  %v5277_v36 = vsel %vm2954_vm10, %v2941_v48, %v5036_v12  ;;  %v3685_v62 = vcombine.low %v4034_v6, %v4035_v31  ;;  %v4037_v61 = vld [vmem:[%s6368_s0 + $0x38] sm:$0xf]  ;;  %v3566_v15 = vld [vmem:[%s6368_s0 + $0x68] sm:$0xf] }
  0xcb   :  { %v990_v51 = vsel %vm4165_vm2, %v985_v17, %v989_v30  ;;  %v1920_v12 = vsel %vm4165_vm2, %v1915_v43, %v1919_v9  ;;  %v1942_v55 = vor.u32 %v5144_v38, %v5138_v5  ;;  %v1945_v47 = vshll.u32 %v3673_v54, 16  ;;  %v5294_v40 = vpop.permute.xlu0 %2297  ;;  %v3471_v9 = vld [vmem:[%s6368_s0 + $0xf8] sm:$0xf]  ;;  %v3472_v31 = vld [vmem:[%s6368_s0 + $0x100] sm:$0xf] }
  0xcc   :  { %v3744_v10 = vcombine.low %v976_v42, %v990_v51  ;;  %v1933_v56 = vrot.slane %v1931_v52, 5  ;;  %v5298_v39 = vsel %vm2827_vm3, %v3685_v62, %v5059_v29  ;;  %v1956_v41 = vor.u32 %v5148_v28, %v5146_v3  ;;  %v5305_v23 = vpop.permute.xlu1 %2675 }
  0xcd   :  { %v1943_v57 = vrot.slane %v1942_v55, 4  ;;  %v1947_v5 = vrot.slane %v1945_v47, 5  ;;  %v1959_v38 = vshll.u32 %v3674_v59, 16  ;;  %v1210_v45 = vshrl.u32 %v3563_v50, 16 }
  0xce   :  { %2437 = vrot.lane.b32.xlu0 %v3744_v10, %s4052_s22  ;;  %v1934_v29 = vsel %vm4165_vm2, %v1929_v27, %v1933_v56  ;;  %v1957_v3 = vrot.slane %v1956_v41, 4  ;;  %v1213_v28 = vshll.u32 %v3563_v50, 16  ;;  %v1224_v63 = vshrl.u32 %v3564_v37, 16  ;;  %v3474_v56 = vld [vmem:[%s6368_s0 + $0x110] sm:$0xf] }
  0xcf   :  { %v3805_v48 = vcombine.low %v1920_v12, %v1934_v29  ;;  %v1948_v16 = vsel %vm4165_vm2, %v1943_v57, %v1947_v5  ;;  %v1961_v4 = vrot.slane %v1959_v38, 5  ;;  %v5315_v11 = vrot.slane %v1210_v45, 4  ;;  %v5317_v58 = vpop.permute.xlu0 %2677 }
  0xd0   :  { %v5319_v46 = vrot.slane %v1213_v28, 5  ;;  %v5321_v0 = vrot.slane %v1224_v63, 4  ;;  %v1227_v22 = vshll.u32 %v3564_v37, 16  ;;  %v3751_v1 = vcombine.low %v3563_v50, %v3564_v37  ;;  %v5326_v34 = vpop.permute.xlu1 %2351  ;;  %v3579_v28 = vld [vmem:[%s6368_s0 + $0xe0] sm:$0xf] }
  0xd1   :  { %2815 = vrot.lane.b32.xlu1 %v3805_v48, %s4060_s15  ;;  %v1962_v19 = vsel %vm4165_vm2, %v1957_v3, %v1961_v4  ;;  %v3686_v21 = vcombine.low %v4036_v18, %v4037_v61  ;;  %vm2971_vm11 = vcmask 293888   ;;  %v1238_v26 = vshrl.u32 %v3565_v20, 16 }
  0xd2   :  { %v3806_v17 = vcombine.low %v1948_v16, %v1962_v19  ;;  %v5340_v54 = vrot.slane %v1227_v22, 5  ;;  %v5345_v30 = vsel %vm2971_vm11, %v5249_v49, %v5098_v33  ;;  %v1241_v43 = vshll.u32 %v3565_v20, 16  ;;  %v3580_v16 = vld [vmem:[%s6368_s0 + $0xe8] sm:$0xf]  ;;  %v3582_v19 = vld [vmem:[%s6368_s0 + $0xf8] sm:$0xf] }
  0xd3   :  { %v2839_v27 = vsel %vm2827_vm3, %v3686_v21, %v5078_v60  ;;  %v5352_v42 = vrot.slane %v1238_v26, 4  ;;  %v1252_v52 = vshrl.u32 %v3566_v15, 16  ;;  %v1255_v6 = vshll.u32 %v3566_v15, 16  ;;  %v5357_v62 = vpop.permute.xlu0 %2353  ;;  %v3473_v60 = vld [vmem:[%s6368_s0 + $0x108] sm:$0xf] }
  0xd4   :  { %2817 = vrot.lane.b32.xlu0 %v3806_v17, %s4060_s15  ;;  %v5360_v33 = vrot.slane %v1241_v43, 5  ;;  %v3752_v49 = vcombine.low %v3565_v20, %v3566_v15  ;;  %v478_v59 = vshrl.u32 %v3471_v9, 16  ;;  %v481_v51 = vshll.u32 %v3471_v9, 16  ;;  %v5382_v38 = vpop.permute.xlu1 %2731  ;;  %v3581_v20 = vld [vmem:[%s6368_s0 + $0xf0] sm:$0xf] }
  0xd5   :  { %2491 = vrot.lane.b32.xlu1 %v3751_v1, %s4053_s7  ;;  %v5366_v12 = vrot.slane %v1252_v52, 4  ;;  %v5368_v55 = vrot.slane %v1255_v6, 5  ;;  %v492_v47 = vshrl.u32 %v3472_v31, 16  ;;  %v495_v10 = vshll.u32 %v3472_v31, 16  ;;  %v29_v26 = vld [vmem:[%s6368_s0 + $0x68] sm:$0xf] }
  0xd6   :  { %v5373_v41 = vrot.slane %v478_v59, 4  ;;  %v5375_v50 = vrot.slane %v481_v51, 5  ;;  %v3697_v57 = vcombine.low %v3471_v9, %v3472_v31  ;;  %v5380_v5 = vsel %vm2971_vm11, %v5277_v36, %v5124_v14  ;;  %v30_v6 = vld [vmem:[%s6368_s0 + $0x70] sm:$0xf]  ;;  %v62_v51 = vld [vmem:[%s6368_s0 + $0x6c] sm:$0x1] }
  0xd7   :  { %v5384_v37 = vrot.slane %v492_v47, 4  ;;  %v5386_v45 = vrot.slane %v495_v10, 5  ;;  %v2858_v29 = vsel %vm2852_vm4, %v5298_v39, %v5142_v24  ;;  %v506_v3 = vshrl.u32 %v3473_v60, 16  ;;  %v5398_v4 = vpop.permute.xlu0 %2733 }
  0xd8   :  { %2493 = vrot.lane.b32.xlu0 %v3752_v49, %s4053_s7  ;;  %v509_v63 = vshll.u32 %v3473_v60, 16  ;;  %v520_v14 = vshrl.u32 %v3474_v56, 16  ;;  %v523_v36 = vshll.u32 %v3474_v56, 16  ;;  %v3698_v48 = vcombine.low %v3473_v60, %v3474_v56  ;;  %6378 = vst [vmem:[#allocation2_spill] sm:$0xff] %v5398_v4 }
  0xd9   :  { %2167 = vrot.lane.b32.xlu1 %v3697_v57, %s4046_s25  ;;  %v5401_v24 = vrot.slane %v506_v3, 4  ;;  %v1450_v39 = vshrl.u32 %v3579_v28, 16  ;;  %v1453_v22 = vshll.u32 %v3579_v28, 16  ;;  %v1464_v1 = vshrl.u32 %v3580_v16, 16 }
  0xda   :  { %v5409_v18 = vrot.slane %v509_v63, 5  ;;  %v5411_v61 = vrot.slane %v520_v14, 4  ;;  %v5413_v21 = vrot.slane %v523_v36, 5  ;;  %v1467_v15 = vshll.u32 %v3580_v16, 16  ;;  %v31_v14 = vld [vmem:[%s6368_s0 + $0x78] sm:$0xf] }
  0xdb   :  { %v5418_v17 = vrot.slane %v1450_v39, 4  ;;  %v5420_v43 = vrot.slane %v1453_v22, 5  ;;  %v5422_v9 = vrot.slane %v1464_v1, 4  ;;  %v3759_v52 = vcombine.low %v3579_v28, %v3580_v16  ;;  %v32_v39 = vld [vmem:[%s6368_s0 + $0x80] sm:$0xf] }
  0xdc   :  { %2169 = vrot.lane.b32.xlu0 %v3698_v48, %s4046_s25  ;;  %v5428_v31 = vrot.slane %v1467_v15, 5  ;;  %v5432_v49 = vsel %vm2852_vm4, %v2839_v27, %v5168_v53  ;;  %vm2988_vm12 = vcmask 326656   ;;  %v1478_v59 = vshrl.u32 %v3581_v20, 16  ;;  %v5437_v60 = vpop.permute.xlu1 %2391  ;;  %v63_v53 = vld [vmem:[%s6368_s0 + $0x74] sm:$0x1] }
  0xdd   :  { %6379 = vst [vmem:[#allocation3_spill] sm:$0xff] %v5437_v60  ;;  %2547 = vrot.lane.b32.xlu1 %v3759_v52, %s4054_s12  ;;  %v5443_v47 = vsel %vm2988_vm12, %v5345_v30, %v5174_v8  ;;  %v1481_v10 = vshll.u32 %v3581_v20, 16  ;;  %v1492_v56 = vshrl.u32 %v3582_v19, 16  ;;  %v1495_v57 = vshll.u32 %v3582_v19, 16  ;;  %v64_v15 = vld [vmem:[%s6368_s0 + $0x7c] sm:$0x1] }
  0xde   :  { %v5448_v27 = vrot.slane %v1478_v59, 4  ;;  %v3760_v3 = vcombine.low %v3581_v20, %v3582_v19  ;;  %v238_v28 = vshrl.u32 %v29_v26, 16  ;;  %v241_v63 = vshll.u32 %v29_v26, 16  ;;  %v5453_v36 = vpop.permute.xlu0 %2393 }
  0xdf   :  { %6380 = vst [vmem:[#allocation4_spill] sm:$0xff] %v5453_v36  ;;  %v5455_v8 = vrot.slane %v1481_v10, 5  ;;  %v5457_v30 = vrot.slane %v1492_v56, 4  ;;  %v5459_v48 = vrot.slane %v1495_v57, 5  ;;  %v247_v16 = vshll.u32 %v62_v51, 16 }
  0xe0   :  { %2549 = vrot.lane.b32.xlu0 %v3760_v3, %s4054_s12  ;;  %v240_v22 = vrot.slane %v238_v28, 4  ;;  %v243_v1 = vrot.slane %v241_v63, 5  ;;  %v252_v20 = vshrl.u32 %v30_v6, 16  ;;  %v255_v19 = vshll.u32 %v30_v6, 16  ;;  %v65_v6 = vld [vmem:[%s6368_s0 + $0x84] sm:$0x1] }
  0xe1   :  { %v249_v26 = vrot.slane %v247_v16, 5  ;;  %v261_v52 = vshll.u32 %v63_v53, 16  ;;  %v5471_v59 = vsel %vm2988_vm12, %v5380_v5, %v5190_v2  ;;  %v5475_v51 = vsel %vm2869_vm5, %v2858_v29, %v5211_v35  ;;  %v3595_v35 = vld [vmem:[%s6368_s0 + $0x54] sm:$0x1] }
  0xe2   :  { %v244_v10 = vor.u32 %v243_v1, %v240_v22  ;;  %v254_v56 = vrot.slane %v252_v20, 4  ;;  %v257_v57 = vrot.slane %v255_v19, 5  ;;  %v266_v3 = vshrl.u32 %v31_v14, 16  ;;  %v5480_v28 = vpop.permute.xlu1 %2771 }
  0xe3   :  { %6381 = vst [vmem:[#allocation5_spill] sm:$0xff] %v5480_v28  ;;  %v263_v53 = vrot.slane %v261_v52, 5  ;;  %v269_v63 = vshll.u32 %v31_v14, 16  ;;  %v275_v16 = vshll.u32 %v64_v15, 16  ;;  %v280_v36 = vshrl.u32 %v32_v39, 16 }
  0xe4   :  { %v245_v2 = vrot.slane %v244_v10, 4  ;;  %v258_v5 = vor.u32 %v257_v57, %v254_v56  ;;  %v268_v60 = vrot.slane %v266_v3, 4  ;;  %v283_v4 = vshll.u32 %v32_v39, 16  ;;  %v5485_v29 = vpop.permute.xlu0 %2773  ;;  %v3596_v14 = vld [vmem:[%s6368_s0 + $0x5c] sm:$0x1] }
  0xe5   :  { %6382 = vst [vmem:[#allocation6_spill] sm:$0xff] %v5485_v29  ;;  %v271_v22 = vrot.slane %v269_v63, 5  ;;  %v277_v1 = vrot.slane %v275_v16, 5  ;;  %v282_v20 = vrot.slane %v280_v36, 4  ;;  %v289_v19 = vshll.u32 %v65_v6, 16 }
  0xe6   :  { %v250_v15 = vsel %vm4165_vm2, %v245_v2, %v249_v26  ;;  %v259_v52 = vrot.slane %v258_v5, 4  ;;  %v285_v10 = vrot.slane %v283_v4, 5  ;;  %v1216_v39 = vor.u32 %v5319_v46, %v5315_v11  ;;  %v5494_v56 = vpop.permute.xlu1 %2431  ;;  %v3597_v11 = vld [vmem:[%s6368_s0 + $0x64] sm:$0x1] }
  0xe7   :  { %v272_v57 = vor.u32 %v271_v22, %v268_v60  ;;  %v291_v3 = vrot.slane %v289_v19, 5  ;;  %v1219_v63 = vshll.u32 %v3595_v35, 16  ;;  %v1230_v36 = vor.u32 %v5340_v54, %v5321_v0  ;;  %v3598_v54 = vld [vmem:[%s6368_s0 + $0x6c] sm:$0x1]  ;;  %v3487_v22 = vld [vmem:[%s6368_s0 + $0xfc] sm:$0x1] }
  0xe8   :  { %v264_v6 = vsel %vm4165_vm2, %v259_v52, %v263_v53  ;;  %v286_v16 = vor.u32 %v285_v10, %v282_v20  ;;  %v1217_v29 = vrot.slane %v1216_v39, 4  ;;  %v1233_v28 = vshll.u32 %v3596_v14, 16 }
  0xe9   :  { %v3705_v26 = vcombine.low %v250_v15, %v264_v6  ;;  %v273_v2 = vrot.slane %v272_v57, 4  ;;  %v1221_v4 = vrot.slane %v1219_v63, 5  ;;  %v1231_v5 = vrot.slane %v1230_v36, 4  ;;  %v3489_v36 = vld [vmem:[%s6368_s0 + $0x10c] sm:$0x1] }
  0xea   :  { %v287_v46 = vrot.slane %v286_v16, 4  ;;  %v1235_v60 = vrot.slane %v1233_v28, 5  ;;  %v5506_v0 = vsel %vm2869_vm5, %v5432_v49, %v5228_v7  ;;  %vm3005_vm13 = vcmask 359424   ;;  %v5511_v53 = vpop.permute.xlu0 %2433 }
  0xeb   :  { %2207 = vrot.lane.b32.xlu1 %v3705_v26, %s4049_s14  ;;  %v278_v35 = vsel %vm4165_vm2, %v273_v2, %v277_v1  ;;  %v1222_v28 = vsel %vm4165_vm2, %v1217_v29, %v1221_v4  ;;  %v5521_v7 = vsel %vm3005_vm13, %v5443_v47, %v5243_v44  ;;  %v1244_v49 = vor.u32 %v5360_v33, %v5352_v42  ;;  %v3488_v44 = vld [vmem:[%s6368_s0 + $0x104] sm:$0x1] }
  0xec   :  { %v292_v20 = vsel %vm4165_vm2, %v287_v46, %v291_v3  ;;  %v1236_v1 = vsel %vm4165_vm2, %v1231_v5, %v1235_v60  ;;  %v1247_v19 = vshll.u32 %v3597_v11, 16  ;;  %v1258_v29 = vor.u32 %v5368_v55, %v5366_v12  ;;  %v5537_v47 = vpop.permute.xlu1 %2811  ;;  %v3611_v4 = vld [vmem:[%s6368_s0 + $0xe4] sm:$0x1]  ;;  %v3612_v46 = vld [vmem:[%s6368_s0 + $0xec] sm:$0x1] }
  0xed   :  { %v3706_v42 = vcombine.low %v278_v35, %v292_v20  ;;  %v3767_v33 = vcombine.low %v1222_v28, %v1236_v1  ;;  %v1245_v14 = vrot.slane %v1244_v49, 4  ;;  %v1261_v15 = vshll.u32 %v3598_v54, 16 }
  0xee   :  { %v1249_v52 = vrot.slane %v1247_v19, 5  ;;  %v1259_v10 = vrot.slane %v1258_v29, 4  ;;  %v484_v39 = vor.u32 %v5375_v50, %v5373_v41  ;;  %v487_v57 = vshll.u32 %v3487_v22, 16  ;;  %v3613_v29 = vld [vmem:[%s6368_s0 + $0xf4] sm:$0x1] }
  0xef   :  { %2209 = vrot.lane.b32.xlu0 %v3706_v42, %s4049_s14  ;;  %2587 = vrot.lane.b32.xlu1 %v3767_v33, %s4055_s18  ;;  %v1263_v12 = vrot.slane %v1261_v15, 5  ;;  %v498_v55 = vor.u32 %v5386_v45, %v5384_v37  ;;  %v501_v3 = vshll.u32 %v3488_v44, 16  ;;  %v5548_v63 = vsel %vm3005_vm13, %v5471_v59, %v5265_v25  ;;  %v3490_v37 = vld [vmem:[%s6368_s0 + $0x114] sm:$0x1] }
  0xf0   :  { %v1250_v41 = vsel %vm4165_vm2, %v1245_v14, %v1249_v52  ;;  %v485_v50 = vrot.slane %v484_v39, 4  ;;  %v489_v6 = vrot.slane %v487_v57, 5  ;;  %v5558_v16 = vsel %vm6375_vm6, %v5475_v51, %v5270_v32  ;;  %v5563_v25 = vpop.permute.xlu0 %2813  ;;  %v5579_v60 = vpop.permute.xlu1 %2487  ;;  %v3503_v39 = vld [vmem:[%s6368_s0 + $0x188] sm:$0xf] }
  0xf1   :  { %v1264_v45 = vsel %vm4165_vm2, %v1259_v10, %v1263_v12  ;;  %v499_v59 = vrot.slane %v498_v55, 4  ;;  %v503_v26 = vrot.slane %v501_v3, 5  ;;  %v512_v2 = vor.u32 %v5409_v18, %v5401_v24  ;;  %v3504_v55 = vld [vmem:[%s6368_s0 + $0x190] sm:$0xf] }
  0xf2   :  { %v3768_v32 = vcombine.low %v1250_v41, %v1264_v45  ;;  %v490_v51 = vsel %vm4165_vm2, %v485_v50, %v489_v6  ;;  %v515_v5 = vshll.u32 %v3489_v36, 16  ;;  %v526_v11 = vor.u32 %v5413_v21, %v5411_v61 }
  0xf3   :  { %v504_v24 = vsel %vm4165_vm2, %v499_v59, %v503_v26  ;;  %v513_v18 = vrot.slane %v512_v2, 4  ;;  %v529_v54 = vshll.u32 %v3490_v37, 16  ;;  %v1456_v35 = vor.u32 %v5420_v43, %v5418_v17  ;;  %v3505_v2 = vld [vmem:[%s6368_s0 + $0x198] sm:$0xf] }
  0xf4   :  { %2589 = vrot.lane.b32.xlu0 %v3768_v32, %s4055_s18  ;;  %v3713_v28 = vcombine.low %v490_v51, %v504_v24  ;;  %v517_v49 = vrot.slane %v515_v5, 5  ;;  %v527_v22 = vrot.slane %v526_v11, 4  ;;  %v1459_v61 = vshll.u32 %v3611_v4, 16  ;;  %v5618_v57 = vpop.permute.xlu1 %2163  ;;  %v3506_v4 = vld [vmem:[%s6368_s0 + $0x1a0] sm:$0xf] }
  0xf5   :  { %v531_v21 = vrot.slane %v529_v54, 5  ;;  %v1457_v20 = vrot.slane %v1456_v35, 4  ;;  %v1470_v1 = vor.u32 %v5428_v31, %v5422_v9  ;;  %v1473_v19 = vshll.u32 %v3612_v46, 16  ;;  %v3614_v9 = vld [vmem:[%s6368_s0 + $0xfc] sm:$0x1]  ;;  %v5602_v31 = vpop.permute.xlu0 %2489 }
  0xf6   :  { %2247 = vrot.lane.b32.xlu1 %v3713_v28, %s4048_s6  ;;  %v518_v17 = vsel %vm4165_vm2, %v513_v18, %v517_v49  ;;  %v1461_v43 = vrot.slane %v1459_v61, 5  ;;  %v5597_v44 = vsel %vm6375_vm6, %v5506_v0, %v5294_v40  ;;  %vm3022_vm14 = vcmask 392192   ;;  %v3627_v28 = vld [vmem:[%s6368_s0 + $0x170] sm:$0xf] }
  0xf7   :  { %v532_v42 = vsel %vm4165_vm2, %v527_v22, %v531_v21  ;;  %v1471_v33 = vrot.slane %v1470_v1, 4  ;;  %v1475_v14 = vrot.slane %v1473_v19, 5  ;;  %v5609_v15 = vsel %vm3022_vm14, %v5521_v7, %v5305_v23 }
  0xf8   :  { %v3714_v52 = vcombine.low %v518_v17, %v532_v42  ;;  %v1462_v40 = vsel %vm4165_vm2, %v1457_v20, %v1461_v43  ;;  %v1484_v0 = vor.u32 %v5455_v8, %v5448_v27  ;;  %v1487_v10 = vshll.u32 %v3613_v29, 16  ;;  %v5662_v49 = vpop.permute.xlu1 %2543 }
  0xf9   :  { %v1476_v12 = vsel %vm4165_vm2, %v1471_v33, %v1475_v14  ;;  %v1498_v23 = vor.u32 %v5459_v48, %v5457_v30  ;;  %v1501_v7 = vshll.u32 %v3614_v9, 16  ;;  %v752_v3 = vshrl.u32 %v3503_v39, 16  ;;  %v5641_v32 = vpop.permute.xlu0 %2165 }
  0xfa   :  { %2249 = vrot.lane.b32.xlu0 %v3714_v52, %s4048_s6  ;;  %v3775_v27 = vcombine.low %v1462_v40, %v1476_v12  ;;  %v1485_v8 = vrot.slane %v1484_v0, 4  ;;  %v1489_v36 = vrot.slane %v1487_v10, 5  ;;  %v755_v41 = vshll.u32 %v3503_v39, 16  ;;  %v3629_v52 = vld [vmem:[%s6368_s0 + $0x180] sm:$0xf] }
  0xfb   :  { %v1499_v50 = vrot.slane %v1498_v23, 4  ;;  %v1503_v6 = vrot.slane %v1501_v7, 5  ;;  %v5628_v37 = vrot.slane %v752_v3, 4  ;;  %v766_v45 = vshrl.u32 %v3504_v55, 16  ;;  %v3630_v40 = vld [vmem:[%s6368_s0 + $0x188] sm:$0xf] }
  0xfc   :  { %2627 = vrot.lane.b32.xlu1 %v3775_v27, %s4056_s19  ;;  %v1490_v30 = vsel %vm4165_vm2, %v1485_v8, %v1489_v36  ;;  %v5633_v48 = vrot.slane %v755_v41, 5  ;;  %v769_v59 = vshll.u32 %v3504_v55, 16  ;;  %v3721_v26 = vcombine.low %v3503_v39, %v3504_v55  ;;  %v3519_v27 = vld [vmem:[%s6368_s0 + $0x218] sm:$0xf] }
  0xfd   :  { %v1504_v51 = vsel %vm4165_vm2, %v1499_v50, %v1503_v6  ;;  %v5645_v5 = vrot.slane %v766_v45, 4  ;;  %v5650_v11 = vsel %vm3022_vm14, %v5548_v63, %v5317_v58  ;;  %v5655_v46 = vsel %vm6374_vm7, %v5558_v16, %v5326_v34  ;;  %v3628_v63 = vld [vmem:[%s6368_s0 + $0x178] sm:$0xf]  ;;  %v5681_v0 = vpop.permute.xlu0 %2545  ;;  %v3520_v50 = vld [vmem:[%s6368_s0 + $0x220] sm:$0xf] }
  0xfe   :  { %v3776_v24 = vcombine.low %v1490_v30, %v1504_v51  ;;  %v5657_v18 = vrot.slane %v769_v59, 5  ;;  %v780_v54 = vshrl.u32 %v3505_v2, 16  ;;  %v783_v35 = vshll.u32 %v3505_v2, 16 }
  0xff   :  { %v794_v22 = vshrl.u32 %v3506_v4, 16  ;;  %v797_v61 = vshll.u32 %v3506_v4, 16  ;;  %v3722_v58 = vcombine.low %v3505_v2, %v3506_v4  ;;  %v1724_v34 = vshrl.u32 %v3627_v28, 16 }
 0x100   :  { %2629 = vrot.lane.b32.xlu0 %v3776_v24, %s4056_s19  ;;  %2303 = vrot.lane.b32.xlu1 %v3721_v26, %s4047_s8  ;;  %v782_v16 = vrot.slane %v780_v54, 4  ;;  %v785_v21 = vrot.slane %v783_v35, 5  ;;  %v1727_v20 = vshll.u32 %v3627_v28, 16  ;;  %v1738_v1 = vshrl.u32 %v3628_v63, 16 }
 0x101   :  { %v796_v19 = vrot.slane %v794_v22, 4  ;;  %v799_v29 = vrot.slane %v797_v61, 5  ;;  %v5669_v17 = vrot.slane %v1724_v34, 4  ;;  %v1741_v43 = vshll.u32 %v3628_v63, 16  ;;  %v3521_v34 = vld [vmem:[%s6368_s0 + $0x228] sm:$0xf] }
 0x102   :  { %v786_v9 = vor.u32 %v785_v21, %v782_v16  ;;  %v5671_v42 = vrot.slane %v1727_v20, 5  ;;  %v5673_v33 = vrot.slane %v1738_v1, 4  ;;  %v3783_v14 = vcombine.low %v3627_v28, %v3628_v63  ;;  %v3522_v16 = vld [vmem:[%s6368_s0 + $0x230] sm:$0xf] }
 0x103   :  { %v800_v10 = vor.u32 %v799_v29, %v796_v19  ;;  %v5683_v39 = vrot.slane %v1741_v43, 5  ;;  %v5688_v12 = vsel %vm6374_vm7, %v5597_v44, %v5357_v62  ;;  %vm3039_vm15 = vcmask 424960   ;;  %v6384_v19 = vld [vmem:[#allocation3_spill] sm:$0xff] }
 0x104   :  { %v5690_v23 = vrot.slane %v786_v9, 4  ;;  %2305 = vrot.lane.b32.xlu0 %v3722_v58, %s4047_s8  ;;  %2683 = vrot.lane.b32.xlu1 %v3783_v14, %s4057_s16  ;;  %v5697_v7 = vsel %vm3039_vm15, %v5609_v15, %v5382_v38  ;;  %v1752_v55 = vshrl.u32 %v3629_v52, 16  ;;  %v1755_v3 = vshll.u32 %v3629_v52, 16  ;;  %v5702_v62 = vpop.permute.xlu1 %2203  ;;  %v6383_v58 = vld [vmem:[#allocation2_spill] sm:$0xff] }
 0x105   :  { %v5704_v44 = vrot.slane %v800_v10, 4  ;;  %v1766_v8 = vshrl.u32 %v3630_v40, 16  ;;  %v1769_v36 = vshll.u32 %v3630_v40, 16  ;;  %v3784_v41 = vcombine.low %v3629_v52, %v3630_v40  ;;  %v3643_v40 = vld [vmem:[%s6368_s0 + $0x200] sm:$0xf] }
 0x106   :  { %v1754_v6 = vrot.slane %v1752_v55, 4  ;;  %v1757_v38 = vrot.slane %v1755_v3, 5  ;;  %v992_v15 = vshrl.u32 %v3519_v27, 16  ;;  %v995_v45 = vshll.u32 %v3519_v27, 16 }
 0x107   :  { %v1768_v30 = vrot.slane %v1766_v8, 4  ;;  %v1771_v59 = vrot.slane %v1769_v36, 5  ;;  %v1006_v26 = vshrl.u32 %v3520_v50, 16  ;;  %v1009_v2 = vshll.u32 %v3520_v50, 16 }
 0x108   :  { %v1758_v4 = vor.u32 %v1757_v38, %v1754_v6  ;;  %2685 = vrot.lane.b32.xlu0 %v3784_v41, %s4057_s16  ;;  %v994_v51 = vrot.slane %v992_v15, 4  ;;  %v997_v24 = vrot.slane %v995_v45, 5  ;;  %v3729_v54 = vcombine.low %v3519_v27, %v3520_v50  ;;  %v5710_v35 = vpop.permute.xlu0 %2205  ;;  %v5723_v21 = vpop.permute.xlu1 %2583 }
 0x109   :  { %v1772_v28 = vor.u32 %v1771_v59, %v1768_v30  ;;  %v1008_v22 = vrot.slane %v1006_v26, 4  ;;  %v1011_v61 = vrot.slane %v1009_v2, 5  ;;  %v5715_v63 = vsel %vm3039_vm15, %v5650_v11, %v6383_v58  ;;  %v3645_v58 = vld [vmem:[%s6368_s0 + $0x210] sm:$0xf] }
 0x10a   :  { %v5725_v20 = vrot.slane %v1758_v4, 4  ;;  %v998_v1 = vor.u32 %v997_v24, %v994_v51  ;;  %2359 = vrot.lane.b32.xlu1 %v3729_v54, %s4050_s17  ;;  %v5731_v11 = vsel %vm2920_vm8, %v5655_v46, %v6384_v19  ;;  %v1020_v29 = vshrl.u32 %v3521_v34, 16  ;;  %v3644_v46 = vld [vmem:[%s6368_s0 + $0x208] sm:$0xf]  ;;  %v6385_v4 = vld [vmem:[#allocation4_spill] sm:$0xff] }
 0x10b   :  { %v5733_v43 = vrot.slane %v1772_v28, 4  ;;  %v1012_v9 = vor.u32 %v1011_v61, %v1008_v22  ;;  %v1023_v14 = vshll.u32 %v3521_v34, 16  ;;  %v1034_v52 = vshrl.u32 %v3522_v16, 16 }
 0x10c   :  { %v5738_v10 = vrot.slane %v998_v1, 4  ;;  %v1022_v55 = vrot.slane %v1020_v29, 4  ;;  %v1037_v3 = vshll.u32 %v3522_v16, 16  ;;  %v3730_v27 = vcombine.low %v3521_v34, %v3522_v16  ;;  %v5745_v6 = vpop.permute.xlu0 %2585 }
 0x10d   :  { %v5743_v8 = vrot.slane %v1012_v9, 4  ;;  %v1025_v36 = vrot.slane %v1023_v14, 5  ;;  %v1036_v41 = vrot.slane %v1034_v52, 4  ;;  %v1964_v50 = vshrl.u32 %v3643_v40, 16  ;;  %v6386_v14 = vld [vmem:[#allocation5_spill] sm:$0xff] }
 0x10e   :  { %v1039_v38 = vrot.slane %v1037_v3, 5  ;;  %2361 = vrot.lane.b32.xlu0 %v3730_v27, %s4050_s17  ;;  %v1967_v15 = vshll.u32 %v3643_v40, 16  ;;  %v1978_v45 = vshrl.u32 %v3644_v46, 16  ;;  %v1981_v30 = vshll.u32 %v3644_v46, 16 }
 0x10f   :  { %v1026_v59 = vor.u32 %v1025_v36, %v1022_v55  ;;  %v1966_v26 = vrot.slane %v1964_v50, 4  ;;  %v3791_v2 = vcombine.low %v3643_v40, %v3644_v46  ;;  %v5751_v51 = vsel %vm2920_vm8, %v5688_v12, %v6385_v4  ;;  %v5753_v24 = vpop.permute.xlu1 %2243  ;;  %v3646_v12 = vld [vmem:[%s6368_s0 + $0x218] sm:$0xf]  ;;  %v3535_v40 = vld [vmem:[%s6368_s0 + $0x18c] sm:$0x1] }
 0x110   :  { %v1040_v54 = vor.u32 %v1039_v38, %v1036_v41  ;;  %v1969_v28 = vrot.slane %v1967_v15, 5  ;;  %v1980_v22 = vrot.slane %v1978_v45, 4  ;;  %v1983_v61 = vrot.slane %v1981_v30, 5  ;;  %v3536_v36 = vld [vmem:[%s6368_s0 + $0x194] sm:$0x1] }
 0x111   :  { %v5758_v34 = vrot.slane %v1026_v59, 4  ;;  %2739 = vrot.lane.b32.xlu1 %v3791_v2, %s4058_s23  ;;  %vm3056_vm0 = vcmask 457728   ;;  %v1992_v16 = vshrl.u32 %v3645_v58, 16  ;;  %v1995_v1 = vshll.u32 %v3645_v58, 16  ;;  %v5777_v41 = vpop.permute.xlu0 %2245  ;;  %v3537_v45 = vld [vmem:[%s6368_s0 + $0x19c] sm:$0x1] }
 0x112   :  { %v5764_v19 = vrot.slane %v1040_v54, 4  ;;  %v1970_v29 = vor.u32 %v1969_v28, %v1966_v26  ;;  %v1984_v9 = vor.u32 %v1983_v61, %v1980_v22  ;;  %v5769_v52 = vsel %vm3056_vm0, %v5697_v7, %v6386_v14  ;;  %v3538_v4 = vld [vmem:[%s6368_s0 + $0x1a4] sm:$0x1] }
 0x113   :  { %v1994_v55 = vrot.slane %v1992_v16, 4  ;;  %v1997_v3 = vrot.slane %v1995_v1, 5  ;;  %v2006_v27 = vshrl.u32 %v3646_v12, 16  ;;  %v2009_v46 = vshll.u32 %v3646_v12, 16  ;;  %v6387_v22 = vld [vmem:[#allocation6_spill] sm:$0xff] }
 0x114   :  { %v5779_v50 = vrot.slane %v1970_v29, 4  ;;  %v5781_v38 = vrot.slane %v1984_v9, 4  ;;  %v3792_v7 = vcombine.low %v3645_v58, %v3646_v12  ;;  %v758_v15 = vor.u32 %v5633_v48, %v5628_v37  ;;  %v5791_v54 = vpop.permute.xlu1 %2623  ;;  %v3659_v58 = vld [vmem:[%s6368_s0 + $0x174] sm:$0x1] }
 0x115   :  { %v1998_v30 = vor.u32 %v1997_v3, %v1994_v55  ;;  %v2008_v59 = vrot.slane %v2006_v27, 4  ;;  %v2011_v26 = vrot.slane %v2009_v46, 5  ;;  %v761_v2 = vshll.u32 %v3535_v40, 16 }
 0x116   :  { %2741 = vrot.lane.b32.xlu0 %v3792_v7, %s4058_s23  ;;  %v759_v28 = vrot.slane %v758_v15, 4  ;;  %v772_v37 = vor.u32 %v5657_v18, %v5645_v5  ;;  %v775_v48 = vshll.u32 %v3536_v36, 16  ;;  %v3060_v61 = vsel %vm3056_vm0, %v5715_v63, %v6387_v22  ;;  %v3660_v63 = vld [vmem:[%s6368_s0 + $0x17c] sm:$0x1] }
 0x117   :  { %v5802_v12 = vrot.slane %v1998_v30, 4  ;;  %v2012_v16 = vor.u32 %v2011_v26, %v2008_v59  ;;  %v763_v1 = vrot.slane %v761_v2, 5  ;;  %v2943_v29 = vsel %vm6373_vm9, %v5731_v11, %v5494_v56  ;;  %v3661_v56 = vld [vmem:[%s6368_s0 + $0x184] sm:$0x1]  ;;  %v5819_v11 = vpop.permute.xlu0 %2625 }
 0x118   :  { %v773_v9 = vrot.slane %v772_v37, 4  ;;  %v777_v14 = vrot.slane %v775_v48, 5  ;;  %v789_v5 = vshll.u32 %v3537_v45, 16  ;;  %v803_v18 = vshll.u32 %v3538_v4, 16  ;;  %v3662_v45 = vld [vmem:[%s6368_s0 + $0x18c] sm:$0x1]  ;;  %v5834_v4 = vpop.permute.xlu1 %2299 }
 0x119   :  { %v5810_v40 = vrot.slane %v2012_v16, 4  ;;  %v764_v55 = vsel %vm4165_vm2, %v759_v28, %v763_v1  ;;  %v1730_v3 = vor.u32 %v5671_v42, %v5669_v17  ;;  %v1733_v27 = vshll.u32 %v3659_v58, 16  ;;  %v3551_v17 = vld [vmem:[%s6368_s0 + $0x21c] sm:$0x1]  ;;  %v3552_v2 = vld [vmem:[%s6368_s0 + $0x224] sm:$0x1] }
 0x11a   :  { %v778_v46 = vsel %vm4165_vm2, %v773_v9, %v777_v14  ;;  %v791_v36 = vrot.slane %v789_v5, 5  ;;  %v805_v7 = vrot.slane %v803_v18, 5  ;;  %v1744_v15 = vor.u32 %v5683_v39, %v5673_v33  ;;  %v3554_v5 = vld [vmem:[%s6368_s0 + $0x234] sm:$0x1] }
 0x11b   :  { %v3737_v42 = vcombine.low %v764_v55, %v778_v46  ;;  %v1731_v30 = vrot.slane %v1730_v3, 4  ;;  %v1735_v59 = vrot.slane %v1733_v27, 5  ;;  %v1747_v26 = vshll.u32 %v3660_v63, 16  ;;  %v5860_v18 = vpop.permute.xlu0 %2301 }
 0x11c   :  { %v792_v33 = vsel %vm4165_vm2, %v5690_v23, %v791_v36  ;;  %v806_v39 = vsel %vm4165_vm2, %v5704_v44, %v805_v7  ;;  %v1745_v28 = vrot.slane %v1744_v15, 4  ;;  %v2945_v37 = vsel %vm6373_vm9, %v5751_v51, %v5511_v53  ;;  %v3553_v44 = vld [vmem:[%s6368_s0 + $0x22c] sm:$0x1]  ;;  %v5876_v15 = vpop.permute.xlu1 %2679 }
 0x11d   :  { %2399 = vrot.lane.b32.xlu1 %v3737_v42, %s4051_s9  ;;  %v3738_v48 = vcombine.low %v792_v33, %v806_v39  ;;  %v1736_v22 = vsel %vm4165_vm2, %v1731_v30, %v1735_v59  ;;  %v1749_v58 = vrot.slane %v1747_v26, 5  ;;  %v1761_v16 = vshll.u32 %v3661_v56, 16  ;;  %v3675_v56 = vld [vmem:[%s6368_s0 + $0x204] sm:$0x1]  ;;  %v3676_v7 = vld [vmem:[%s6368_s0 + $0x20c] sm:$0x1] }
 0x11e   :  { %v1775_v1 = vshll.u32 %v3662_v45, 16  ;;  %v1001_v9 = vshll.u32 %v3551_v17, 16  ;;  %v1015_v23 = vshll.u32 %v3552_v2, 16  ;;  %vm3073_vm1 = vcmask 490496   ;;  %v4038_v2 = vld [vmem:[%s6368_s0 + $0x48] sm:$0xf] }
 0x11f   :  { %2401 = vrot.lane.b32.xlu0 %v3738_v48, %s4051_s9  ;;  %v1750_v53 = vsel %vm4165_vm2, %v1745_v28, %v1749_v58  ;;  %v1763_v51 = vrot.slane %v1761_v16, 5  ;;  %v3075_v14 = vsel %vm3073_vm1, %v5769_v52, %v5537_v47  ;;  %vm3129_vm9 = vcmask 523264   ;;  %v4039_v33 = vld [vmem:[%s6368_s0 + $0x50] sm:$0xf] }
 0x120   :  { %v3799_v63 = vcombine.low %v1736_v22, %v1750_v53  ;;  %v1777_v55 = vrot.slane %v1775_v1, 5  ;;  %v1003_v3 = vrot.slane %v1001_v9, 5  ;;  %v1017_v27 = vrot.slane %v1015_v23, 5  ;;  %3923 = vmatprep.mubr.msk.bf16.mxu0 %vm3129_vm9, %v3075_v14  ;;  %v5929_v14 = vpop.permute.xlu1 %2355 }
 0x121   :  { %v1764_v47 = vsel %vm4165_vm2, %v5725_v20, %v1763_v51  ;;  %v3077_v52 = vsel %vm3073_vm1, %v3060_v61, %v5563_v25  ;;  %v2960_v46 = vsel %vm2954_vm10, %v2943_v29, %v5579_v60  ;;  %v1029_v36 = vshll.u32 %v3553_v44, 16  ;;  %v3677_v61 = vld [vmem:[%s6368_s0 + $0x214] sm:$0x1]  ;;  %v3678_v29 = vld [vmem:[%s6368_s0 + $0x21c] sm:$0x1] }
 0x122   :  { %2779 = vrot.lane.b32.xlu1 %v3799_v63, %s4059_s10  ;;  %v1778_v45 = vsel %vm4165_vm2, %v5733_v43, %v1777_v55  ;;  %v1004_v25 = vsel %vm4165_vm2, %v5738_v10, %v1003_v3  ;;  %v1018_v60 = vsel %vm4165_vm2, %v5743_v8, %v1017_v27  ;;  %v1043_v20 = vshll.u32 %v3554_v5, 16  ;;  %3924 = vmatmul.mubr.msk.bf16.vlgmr.msra.gmra.mxu0 %vm3129_vm9, %v3077_v52  ;;  %v5898_v10 = vld [vmem:[%s6368_s0 + $0x70] sm:$0xf] }
 0x123   :  { %v3800_v43 = vcombine.low %v1764_v47, %v1778_v45  ;;  %v3745_v17 = vcombine.low %v1004_v25, %v1018_v60  ;;  %v1031_v42 = vrot.slane %v1029_v36, 5  ;;  %v1973_v30 = vshll.u32 %v3675_v56, 16  ;;  %v3584_v56 = vld [vmem:[%s6368_s0 + $0x108] sm:$0xf]  ;;  %v3569_v45 = vld [vmem:[%s6368_s0 + $0x80] sm:$0xf] }
 0x124   :  { %v1045_v8 = vrot.slane %v1043_v20, 5  ;;  %v1987_v59 = vshll.u32 %v3676_v7, 16  ;;  %v5902_v26 = vsel %vm2954_vm10, %v2945_v37, %v5602_v31  ;;  %v3687_v39 = vcombine.low %v4038_v2, %v4039_v33  ;;  %v3568_v31 = vld [vmem:[%s6368_s0 + $0x78] sm:$0xf]  ;;  %v5917_v37 = vpop.permute.xlu0 %2681  ;;  %v4041_v25 = vld [vmem:[%s6368_s0 + $0x60] sm:$0xf] }
 0x125   :  { %2781 = vrot.lane.b32.xlu0 %v3800_v43, %s4059_s10  ;;  %v1032_v28 = vsel %vm4165_vm2, %v5758_v34, %v1031_v42  ;;  %v1975_v48 = vrot.slane %v1973_v30, 5  ;;  %v2001_v22 = vshll.u32 %v3677_v61, 16  ;;  %v2015_v58 = vshll.u32 %v3678_v29, 16  ;;  %v3570_v29 = vld [vmem:[%s6368_s0 + $0x88] sm:$0xf] }
 0x126   :  { %2439 = vrot.lane.b32.xlu1 %v3745_v17, %s4052_s22  ;;  %v1046_v16 = vsel %vm4165_vm2, %v5764_v19, %v1045_v8  ;;  %v1989_v1 = vrot.slane %v1987_v59, 5  ;;  %v2842_v9 = vsel %vm2827_vm3, %v3687_v39, %v5618_v57  ;;  %v1266_v34 = vshrl.u32 %v5898_v10, 16  ;;  %v3583_v57 = vld [vmem:[%s6368_s0 + $0x100] sm:$0xf]  ;;  %v3599_v8 = vld [vmem:[%s6368_s0 + $0x74] sm:$0x1]  ;;  %v5975_v39 = vpop.permute.xlu1 %2735 }
 0x127   :  { %v3746_v23 = vcombine.low %v1032_v28, %v1046_v16  ;;  %v1976_v44 = vsel %vm4165_vm2, %v5779_v50, %v1975_v48  ;;  %v2003_v53 = vrot.slane %v2001_v22, 5  ;;  %v2017_v51 = vrot.slane %v2015_v58, 5  ;;  %v3600_v33 = vld [vmem:[%s6368_s0 + $0x7c] sm:$0x1] }
 0x128   :  { %v1990_v5 = vsel %vm4165_vm2, %v5781_v38, %v1989_v1  ;;  %v1268_v19 = vrot.slane %v1266_v34, 4  ;;  %v1269_v63 = vshll.u32 %v5898_v10, 16  ;;  %v1280_v55 = vshrl.u32 %v3568_v31, 16  ;;  %v5964_v43 = vpop.permute.xlu0 %2357 }
 0x129   :  { %2441 = vrot.lane.b32.xlu0 %v3746_v23, %s4052_s22  ;;  %v3807_v3 = vcombine.low %v1976_v44, %v1990_v5  ;;  %v2004_v50 = vsel %vm4165_vm2, %v5802_v12, %v2003_v53  ;;  %v2018_v27 = vsel %vm4165_vm2, %v5810_v40, %v2017_v51  ;;  %v1283_v38 = vshll.u32 %v3568_v31, 16  ;;  %v4040_v40 = vld [vmem:[%s6368_s0 + $0x58] sm:$0xf] }
 0x12a   :  { %v3808_v47 = vcombine.low %v2004_v50, %v2018_v27  ;;  %v1271_v52 = vrot.slane %v1269_v63, 5  ;;  %v1282_v36 = vrot.slane %v1280_v55, 4  ;;  %v3753_v7 = vcombine.low %v5898_v10, %v3568_v31  ;;  %v3585_v31 = vld [vmem:[%s6368_s0 + $0x110] sm:$0xf]  ;;  %v3586_v23 = vld [vmem:[%s6368_s0 + $0x118] sm:$0xf] }
 0x12b   :  { %2819 = vrot.lane.b32.xlu1 %v3807_v3, %s4060_s15  ;;  %v1285_v12 = vrot.slane %v1283_v38, 5  ;;  %v3688_v60 = vcombine.low %v4040_v40, %v4041_v25  ;;  %v2977_v20 = vsel %vm2971_vm11, %v2960_v46, %v5662_v49  ;;  %v1506_v61 = vshrl.u32 %v3583_v57, 16  ;;  %v3601_v25 = vld [vmem:[%s6368_s0 + $0x84] sm:$0x1] }
 0x12c   :  { %v1509_v17 = vshll.u32 %v3583_v57, 16  ;;  %v1520_v42 = vshrl.u32 %v3584_v56, 16  ;;  %v1523_v30 = vshll.u32 %v3584_v56, 16  ;;  %v3761_v10 = vcombine.low %v3583_v57, %v3584_v56  ;;  %v5990_v50 = vpop.permute.xlu0 %2737 }
 0x12d   :  { %2821 = vrot.lane.b32.xlu0 %v3808_v47, %s4060_s15  ;;  %v2845_v49 = vsel %vm2827_vm3, %v3688_v60, %v5641_v32  ;;  %v1508_v46 = vrot.slane %v1506_v61, 4  ;;  %v1294_v59 = vshrl.u32 %v3569_v45, 16  ;;  %v1297_v2 = vshll.u32 %v3569_v45, 16 }
 0x12e   :  { %v1511_v28 = vrot.slane %v1509_v17, 5  ;;  %v1522_v48 = vrot.slane %v1520_v42, 4  ;;  %v1525_v22 = vrot.slane %v1523_v30, 5  ;;  %v1308_v58 = vshrl.u32 %v3570_v29, 16  ;;  %v3602_v42 = vld [vmem:[%s6368_s0 + $0x8c] sm:$0x1] }
 0x12f   :  { %2495 = vrot.lane.b32.xlu1 %v3753_v7, %s4053_s7  ;;  %v1296_v32 = vrot.slane %v1294_v59, 4  ;;  %v1299_v16 = vrot.slane %v1297_v2, 5  ;;  %v1311_v1 = vshll.u32 %v3570_v29, 16  ;;  %v3754_v34 = vcombine.low %v3569_v45, %v3570_v29 }
 0x130   :  { %v1310_v44 = vrot.slane %v1308_v58, 4  ;;  %v2979_v53 = vsel %vm2971_vm11, %v5902_v26, %v5681_v0  ;;  %v2862_v51 = vsel %vm2852_vm4, %v2842_v9, %v5702_v62  ;;  %v1272_v5 = vor.u32 %v1271_v52, %v1268_v19  ;;  %v3615_v0 = vld [vmem:[%s6368_s0 + $0x104] sm:$0x1]  ;;  %v3616_v52 = vld [vmem:[%s6368_s0 + $0x10c] sm:$0x1] }
 0x131   :  { %2551 = vrot.lane.b32.xlu0 %v3761_v10, %s4054_s12  ;;  %v1313_v63 = vrot.slane %v1311_v1, 5  ;;  %v1275_v55 = vshll.u32 %v3599_v8, 16  ;;  %v1286_v57 = vor.u32 %v1285_v12, %v1282_v36  ;;  %v1289_v3 = vshll.u32 %v3600_v33, 16  ;;  %v5999_v36 = vpop.permute.xlu1 %2395 }
 0x132   :  { %v1273_v27 = vrot.slane %v1272_v5, 4  ;;  %v1534_v38 = vshrl.u32 %v3585_v31, 16  ;;  %v1537_v56 = vshll.u32 %v3585_v31, 16  ;;  %v1548_v47 = vshrl.u32 %v3586_v23, 16 }
 0x133   :  { %2497 = vrot.lane.b32.xlu1 %v3754_v34, %s4053_s7  ;;  %v1277_v62 = vrot.slane %v1275_v55, 5  ;;  %v1287_v26 = vrot.slane %v1286_v57, 4  ;;  %v1291_v9 = vrot.slane %v1289_v3, 5  ;;  %v1551_v19 = vshll.u32 %v3586_v23, 16  ;;  %v6022_v1 = vpop.permute.xlu0 %2397 }
 0x134   :  { %v6001_v7 = vrot.slane %v1534_v38, 4  ;;  %v6003_v45 = vrot.slane %v1537_v56, 5  ;;  %v6005_v12 = vrot.slane %v1548_v47, 4  ;;  %v3762_v40 = vcombine.low %v3585_v31, %v3586_v23  ;;  %v3617_v38 = vld [vmem:[%s6368_s0 + $0x114] sm:$0x1] }
 0x135   :  { %v1278_v60 = vsel %vm4165_vm2, %v1273_v27, %v1277_v62  ;;  %v1292_v61 = vsel %vm4165_vm2, %v1287_v26, %v1291_v9  ;;  %v1553_v29 = vrot.slane %v1551_v19, 5  ;;  %v2864_v17 = vsel %vm2852_vm4, %v2845_v49, %v5710_v35 }
 0x136   :  { %v3769_v30 = vcombine.low %v1278_v60, %v1292_v61  ;;  %v2994_v10 = vsel %vm2988_vm12, %v2977_v20, %v5723_v21  ;;  %v1512_v8 = vor.u32 %v1511_v28, %v1508_v46  ;;  %v1515_v59 = vshll.u32 %v3615_v0, 16  ;;  %v3631_v21 = vld [vmem:[%s6368_s0 + $0x190] sm:$0xf]  ;;  %v3618_v0 = vld [vmem:[%s6368_s0 + $0x11c] sm:$0x1] }
 0x137   :  { %2553 = vrot.lane.b32.xlu1 %v3762_v40, %s4054_s12  ;;  %v1526_v2 = vor.u32 %v1525_v22, %v1522_v48  ;;  %v1529_v33 = vshll.u32 %v3616_v52, 16  ;;  %v1300_v58 = vor.u32 %v1299_v16, %v1296_v32  ;;  %v1303_v31 = vshll.u32 %v3601_v25, 16  ;;  %v3632_v48 = vld [vmem:[%s6368_s0 + $0x198] sm:$0xf]  ;;  %v6031_v22 = vpop.permute.xlu1 %2775  ;;  %v3648_v61 = vld [vmem:[%s6368_s0 + $0x228] sm:$0xf] }
 0x138   :  { %2591 = vrot.lane.b32.xlu0 %v3769_v30, %s4055_s18  ;;  %v1513_v35 = vrot.slane %v1512_v8, 4  ;;  %v1517_v49 = vrot.slane %v1515_v59, 5  ;;  %v1314_v34 = vor.u32 %v1313_v63, %v1310_v44  ;;  %v1317_v23 = vshll.u32 %v3602_v42, 16 }
 0x139   :  { %v1527_v20 = vrot.slane %v1526_v2, 4  ;;  %v1531_v46 = vrot.slane %v1529_v33, 5  ;;  %v1301_v28 = vrot.slane %v1300_v58, 4  ;;  %v1305_v5 = vrot.slane %v1303_v31, 5  ;;  %v6056_v19 = vpop.permute.xlu0 %2777  ;;  %v3633_v31 = vld [vmem:[%s6368_s0 + $0x1a0] sm:$0xf] }
 0x13a   :  { %v1518_v32 = vsel %vm4165_vm2, %v1513_v35, %v1517_v49  ;;  %v1315_v16 = vrot.slane %v1314_v34, 4  ;;  %v1319_v44 = vrot.slane %v1317_v23, 5  ;;  %v2996_v63 = vsel %vm2988_vm12, %v2979_v53, %v5745_v6 }
 0x13b   :  { %v1532_v55 = vsel %vm4165_vm2, %v1527_v20, %v1531_v46  ;;  %v1306_v57 = vsel %vm4165_vm2, %v1301_v28, %v1305_v5  ;;  %v6043_v3 = vsel %vm2869_vm5, %v2862_v51, %v5753_v24  ;;  %v1780_v27 = vshrl.u32 %v3631_v21, 16  ;;  %v3647_v51 = vld [vmem:[%s6368_s0 + $0x220] sm:$0xf]  ;;  %v3663_v28 = vld [vmem:[%s6368_s0 + $0x194] sm:$0x1] }
 0x13c   :  { %v3777_v56 = vcombine.low %v1518_v32, %v1532_v55  ;;  %v1320_v47 = vsel %vm4165_vm2, %v1315_v16, %v1319_v44  ;;  %v1783_v6 = vshll.u32 %v3631_v21, 16  ;;  %v1794_v53 = vshrl.u32 %v3632_v48, 16  ;;  %v6070_v2 = vpop.permute.xlu1 %2435  ;;  %v3664_v55 = vld [vmem:[%s6368_s0 + $0x19c] sm:$0x1] }
 0x13d   :  { %v3770_v62 = vcombine.low %v1306_v57, %v1320_v47  ;;  %v1782_v26 = vrot.slane %v1780_v27, 4  ;;  %v1797_v9 = vshll.u32 %v3632_v48, 16  ;;  %v3785_v24 = vcombine.low %v3631_v21, %v3632_v48  ;;  %v3649_v47 = vld [vmem:[%s6368_s0 + $0x230] sm:$0xf] }
 0x13e   :  { %2631 = vrot.lane.b32.xlu0 %v3777_v56, %s4056_s19  ;;  %v1785_v52 = vrot.slane %v1783_v6, 5  ;;  %v1796_v40 = vrot.slane %v1794_v53, 4  ;;  %v1540_v25 = vor.u32 %v6003_v45, %v6001_v7  ;;  %v1543_v60 = vshll.u32 %v3617_v38, 16  ;;  %v3650_v6 = vld [vmem:[%s6368_s0 + $0x238] sm:$0xf] }
 0x13f   :  { %2593 = vrot.lane.b32.xlu1 %v3770_v62, %s4055_s18  ;;  %v1799_v42 = vrot.slane %v1797_v9, 5  ;;  %v1554_v30 = vor.u32 %v1553_v29, %v6005_v12  ;;  %v1557_v8 = vshll.u32 %v3618_v0, 16  ;;  %v6068_v59 = vsel %vm2869_vm5, %v2864_v17, %v5777_v41  ;;  %v3634_v41 = vld [vmem:[%s6368_s0 + $0x1a8] sm:$0xf] }
 0x140   :  { %v1541_v33 = vrot.slane %v1540_v25, 4  ;;  %v1545_v58 = vrot.slane %v1543_v60, 5  ;;  %v6074_v7 = vsel %vm3005_vm13, %v2994_v10, %v5791_v54  ;;  %v2020_v45 = vshrl.u32 %v3647_v51, 16  ;;  %v6094_v5 = vpop.permute.xlu0 %2437 }
 0x141   :  { %v1555_v35 = vrot.slane %v1554_v30, 4  ;;  %v1559_v12 = vrot.slane %v1557_v8, 5  ;;  %v2023_v29 = vshll.u32 %v3647_v51, 16  ;;  %v2034_v49 = vshrl.u32 %v3648_v61, 16 }
 0x142   :  { %2687 = vrot.lane.b32.xlu0 %v3785_v24, %s4057_s16  ;;  %v1546_v17 = vsel %vm4165_vm2, %v1541_v33, %v1545_v58  ;;  %v6085_v54 = vrot.slane %v2020_v45, 4  ;;  %v2037_v10 = vshll.u32 %v3648_v61, 16  ;;  %v3793_v34 = vcombine.low %v3647_v51, %v3648_v61  ;;  %v3679_v33 = vld [vmem:[%s6368_s0 + $0x224] sm:$0x1] }
 0x143   :  { %v1560_v23 = vsel %vm4165_vm2, %v1555_v35, %v1559_v12  ;;  %v2025_v21 = vrot.slane %v2023_v29, 5  ;;  %v6089_v20 = vrot.slane %v2034_v49, 4  ;;  %v1808_v46 = vshrl.u32 %v3633_v31, 16  ;;  %v6107_v53 = vpop.permute.xlu1 %2815  ;;  %v3665_v12 = vld [vmem:[%s6368_s0 + $0x1a4] sm:$0x1] }
 0x144   :  { %v3778_v48 = vcombine.low %v1546_v17, %v1560_v23  ;;  %v2039_v32 = vrot.slane %v2037_v10, 5  ;;  %v1811_v16 = vshll.u32 %v3633_v31, 16  ;;  %v1822_v44 = vshrl.u32 %v3634_v41, 16  ;;  %v3666_v10 = vld [vmem:[%s6368_s0 + $0x1ac] sm:$0x1] }
 0x145   :  { %v1810_v57 = vrot.slane %v1808_v46, 4  ;;  %v1825_v27 = vshll.u32 %v3634_v41, 16  ;;  %v3786_v38 = vcombine.low %v3633_v31, %v3634_v41  ;;  %v3013_v56 = vsel %vm3005_vm13, %v2996_v63, %v5819_v11 }
 0x146   :  { %2633 = vrot.lane.b32.xlu1 %v3778_v48, %s4056_s19  ;;  %2743 = vrot.lane.b32.xlu0 %v3793_v34, %s4058_s23  ;;  %v1813_v0 = vrot.slane %v1811_v16, 5  ;;  %v1824_v62 = vrot.slane %v1822_v44, 4  ;;  %v2896_v11 = vsel %vm6375_vm6, %v6043_v3, %v5834_v4  ;;  %v1786_v63 = vor.u32 %v1785_v52, %v1782_v26  ;;  %v3680_v4 = vld [vmem:[%s6368_s0 + $0x22c] sm:$0x1]  ;;  %v6120_v3 = vpop.permute.xlu0 %2817 }
 0x147   :  { %v1827_v9 = vrot.slane %v1825_v27, 5  ;;  %v1789_v24 = vshll.u32 %v3663_v28, 16  ;;  %v1800_v51 = vor.u32 %v1799_v42, %v1796_v40  ;;  %v1803_v25 = vshll.u32 %v3664_v55, 16  ;;  %v6136_v34 = vpop.permute.xlu1 %2491 }
 0x148   :  { %v1787_v60 = vrot.slane %v1786_v63, 4  ;;  %v2048_v61 = vshrl.u32 %v3649_v47, 16  ;;  %v2051_v30 = vshll.u32 %v3649_v47, 16  ;;  %v2062_v8 = vshrl.u32 %v3650_v6, 16 }
 0x149   :  { %v1791_v58 = vrot.slane %v1789_v24, 5  ;;  %v1801_v45 = vrot.slane %v1800_v51, 4  ;;  %v1805_v31 = vrot.slane %v1803_v25, 5  ;;  %v2065_v35 = vshll.u32 %v3650_v6, 16 }
 0x14a   :  { %2689 = vrot.lane.b32.xlu1 %v3786_v38, %s4057_s16  ;;  %v2050_v26 = vrot.slane %v2048_v61, 4  ;;  %v2053_v52 = vrot.slane %v2051_v30, 5  ;;  %v2064_v40 = vrot.slane %v2062_v8, 4  ;;  %v3794_v42 = vcombine.low %v3649_v47, %v3650_v6 }
 0x14b   :  { %v1792_v29 = vsel %vm4165_vm2, %v1787_v60, %v1791_v58  ;;  %v1806_v49 = vsel %vm4165_vm2, %v1801_v45, %v1805_v31  ;;  %v2067_v41 = vrot.slane %v2065_v35, 5  ;;  %v2898_v17 = vsel %vm6375_vm6, %v6068_v59, %v5860_v18  ;;  %v2168_v60 = vpop.permute.xlu1 %2167 }
 0x14c   :  { %v3801_v23 = vcombine.low %v1792_v29, %v1806_v49  ;;  %v3028_v46 = vsel %vm3022_vm14, %v6074_v7, %v5876_v15  ;;  %v2026_v28 = vor.u32 %v2025_v21, %v6085_v54  ;;  %v2029_v48 = vshll.u32 %v3679_v33, 16  ;;  %v3681_v7 = vld [vmem:[%s6368_s0 + $0x234] sm:$0x1]  ;;  %v6148_v54 = vpop.permute.xlu0 %2493 }
 0x14d   :  { %v2040_v16 = vor.u32 %v2039_v32, %v6089_v20  ;;  %v2043_v44 = vshll.u32 %v3680_v4, 16  ;;  %v1814_v55 = vor.u32 %v1813_v0, %v1810_v57  ;;  %v1817_v27 = vshll.u32 %v3665_v12, 16  ;;  %v3682_v0 = vld [vmem:[%s6368_s0 + $0x23c] sm:$0x1] }
 0x14e   :  { %2783 = vrot.lane.b32.xlu0 %v3801_v23, %s4059_s10  ;;  %2745 = vrot.lane.b32.xlu1 %v3794_v42, %s4058_s23  ;;  %v2027_v18 = vrot.slane %v2026_v28, 4  ;;  %v2031_v59 = vrot.slane %v2029_v48, 5  ;;  %v1828_v38 = vor.u32 %v1827_v9, %v1824_v62  ;;  %v1831_v47 = vshll.u32 %v3666_v10, 16 }
 0x14f   :  { %v2041_v6 = vrot.slane %v2040_v16, 4  ;;  %v2045_v63 = vrot.slane %v2043_v44, 5  ;;  %v1815_v24 = vrot.slane %v1814_v55, 4  ;;  %v1819_v15 = vrot.slane %v1817_v27, 5  ;;  %v2548_v29 = vpop.permute.xlu1 %2547 }
 0x150   :  { %v2032_v21 = vsel %vm4165_vm2, %v2027_v18, %v2031_v59  ;;  %v1829_v20 = vrot.slane %v1828_v38, 4  ;;  %v1833_v32 = vrot.slane %v1831_v47, 5  ;;  %v3030_v57 = vsel %vm3022_vm14, %v3013_v56, %v5917_v37 }
 0x151   :  { %v2046_v62 = vsel %vm4165_vm2, %v2041_v6, %v2045_v63  ;;  %v1820_v9 = vsel %vm4165_vm2, %v1815_v24, %v1819_v15  ;;  %v2913_v51 = vsel %vm6374_vm7, %v2896_v11, %v5929_v14  ;;  %v2054_v25 = vor.u32 %v2053_v52, %v2050_v26 }
 0x152   :  { %v3809_v61 = vcombine.low %v2032_v21, %v2046_v62  ;;  %v1834_v30 = vsel %vm4165_vm2, %v1829_v20, %v1833_v32  ;;  %v2057_v37 = vshll.u32 %v3681_v7, 16  ;;  %v2068_v56 = vor.u32 %v2067_v41, %v2064_v40  ;;  %v2170_v40 = vpop.permute.xlu0 %2169  ;;  %v4045_v41 = vld [vmem:[%s6368_s0 + $0x80] sm:$0xf] }
 0x153   :  { %v3802_v8 = vcombine.low %v1820_v9, %v1834_v30  ;;  %v2055_v33 = vrot.slane %v2054_v25, 4  ;;  %v2071_v58 = vshll.u32 %v3682_v0, 16  ;;  %v2915_v45 = vsel %vm6374_vm7, %v2898_v17, %v5964_v43 }
 0x154   :  { %2823 = vrot.lane.b32.xlu0 %v3809_v61, %s4060_s15  ;;  %v2059_v31 = vrot.slane %v2057_v37, 5  ;;  %v2069_v35 = vrot.slane %v2068_v56, 4  ;;  %v3045_v14 = vsel %vm3039_vm15, %v3028_v46, %v5975_v39  ;;  %v3047_v11 = vsel %vm3039_vm15, %v3030_v57, %v5990_v50 }
 0x155   :  { %2785 = vrot.lane.b32.xlu1 %v3802_v8, %s4059_s10  ;;  %v2073_v4 = vrot.slane %v2071_v58, 5  ;;  %v2930_v26 = vsel %vm2920_vm8, %v2913_v51, %v5999_v36  ;;  %v2932_v52 = vsel %vm2920_vm8, %v2915_v45, %v6022_v1  ;;  %v3062_v43 = vsel %vm3056_vm0, %v3045_v14, %v6031_v22 }
 0x156   :  { %v2060_v42 = vsel %vm4165_vm2, %v2055_v33, %v2059_v31  ;;  %v3064_v39 = vsel %vm3056_vm0, %v3047_v11, %v6056_v19  ;;  %vm6388_vm7 = vcmask 228352   ;;  %v3079_v1 = vsel %vm3073_vm1, %v3062_v43, %v6107_v53  ;;  %v4042_v19 = vld [vmem:[%s6368_s0 + $0x68] sm:$0xf] }
 0x157   :  { %v2947_v50 = vsel %vm6388_vm7, %v2930_v26, %v6070_v2  ;;  %vm6389_vm6 = vmmov %vm6388_vm7  ;;  %v2074_v36 = vsel %vm4165_vm2, %v2069_v35, %v2073_v4  ;;  %v3081_v22 = vsel %vm3073_vm1, %v3064_v39, %v6120_v3  ;;  %3927 = vmatprep.mubr.msk.bf16.mxu0 %vm3129_vm9, %v3079_v1  ;;  %v3689_v2 = vcombine.low %v4042_v19, %v4043_v13  ;;  %v4044_v3 = vld [vmem:[%s6368_s0 + $0x78] sm:$0xf] }
 0x158   :  { %v2949_v12 = vsel %vm6389_vm6, %v2932_v52, %v6094_v5  ;;  %v3810_v49 = vcombine.low %v2060_v42, %v2074_v36  ;;  %3928 = vmatmul.mubr.msk.bf16.gmra.mxu0 %vm3129_vm9, %v3081_v22  ;;  %v2550_v5 = vpop.permute.xlu0 %2549  ;;  %v3690_v17 = vcombine.low %v4044_v3, %v4045_v41  ;;  %v2964_v9 = vsel %vm2954_vm10, %v2947_v50, %v6136_v34 }
 0x159   :  { %v2848_v53 = vsel %vm2827_vm3, %v3689_v2, %v2168_v60  ;;  %v2981_v25 = vsel %vm2971_vm11, %v2964_v9, %v2548_v29  ;;  %v2966_v61 = vsel %vm2954_vm10, %v2949_v12, %v6148_v54  ;;  %vm6390_vm2 = vcmask 130048  }
 0x15a   :  { %2825 = vrot.lane.b32.xlu1 %v3810_v49, %s4060_s15  ;;  %v2851_v46 = vsel %vm2827_vm3, %v3690_v17, %v2170_v40  ;;  %v2983_v37 = vsel %vm2971_vm11, %v2966_v61, %v2550_v5  ;;  %vm6391_vm3 = vcmask 162816  }
 0x15d   :  { %v2208_v10 = vpop.permute.xlu1 %2207 }
 0x15e   :  { %v2866_v23 = vsel %vm2852_vm4, %v2848_v53, %v2208_v10 }
 0x161   :  { %v2210_v28 = vpop.permute.xlu0 %2209  ;;  %v2588_v16 = vpop.permute.xlu1 %2587 }
 0x162   :  { %v2868_v48 = vsel %vm2852_vm4, %v2851_v46, %v2210_v28  ;;  %v2998_v30 = vsel %vm2988_vm12, %v2981_v25, %v2588_v16  ;;  %vm6392_vm4 = vmmov %vm6389_vm6 }
 0x163   :  { %vm6394_vm6 = vmmov %vm6391_vm3 }
 0x164   :  { %vm6395_vm7 = vmmov %vm6392_vm4 }
 0x166   :  { %v2590_v44 = vpop.permute.xlu0 %2589 }
 0x167   :  { %v3000_v8 = vsel %vm2988_vm12, %v2983_v37, %v2590_v44 }
 0x168   :  { %v2248_v55 = vpop.permute.xlu1 %2247 }
 0x169   :  { %v2883_v27 = vsel %vm2869_vm5, %v2866_v23, %v2248_v55 }
 0x16c   :  { %v2250_v18 = vpop.permute.xlu0 %2249 }
 0x16d   :  { %v2885_v59 = vsel %vm2869_vm5, %v2868_v48, %v2250_v18  ;;  %vm6393_vm5 = vmmov %vm6390_vm2 }
 0x16e   :  { %v2628_v38 = vpop.permute.xlu1 %2627 }
 0x16f   :  { %v3015_v56 = vsel %vm3005_vm13, %v2998_v30, %v2628_v38 }
 0x172   :  { %v2630_v47 = vpop.permute.xlu0 %2629  ;;  %v2304_v6 = vpop.permute.xlu1 %2303 }
 0x173   :  { %v3017_v34 = vsel %vm3005_vm13, %v3000_v8, %v2630_v47  ;;  %v2900_v49 = vsel %vm6390_vm2, %v2883_v27, %v2304_v6 }
 0x176   :  { %v2306_v63 = vpop.permute.xlu0 %2305  ;;  %v2684_v24 = vpop.permute.xlu1 %2683 }
 0x177   :  { %v3032_v33 = vsel %vm3022_vm14, %v3015_v56, %v2684_v24  ;;  %v2902_v10 = vsel %vm6393_vm5, %v2885_v59, %v2306_v63 }
 0x17a   :  { %v2686_v15 = vpop.permute.xlu0 %2685 }
 0x17b   :  { %v3034_v31 = vsel %vm3022_vm14, %v3017_v34, %v2686_v15 }
 0x17c   :  { %v2360_v7 = vpop.permute.xlu1 %2359 }
 0x17d   :  { %v2917_v13 = vsel %vm6391_vm3, %v2900_v49, %v2360_v7 }
 0x180   :  { %v2362_v21 = vpop.permute.xlu0 %2361 }
 0x181   :  { %v2919_v46 = vsel %vm6394_vm6, %v2902_v10, %v2362_v21 }
 0x183   :  { %v2740_v20 = vpop.permute.xlu1 %2739 }
 0x184   :  { %v3049_v45 = vsel %vm3039_vm15, %v3032_v33, %v2740_v20 }
 0x188   :  { %v2742_v32 = vpop.permute.xlu0 %2741 }
 0x189   :  { %v3051_v14 = vsel %vm3039_vm15, %v3034_v31, %v2742_v32 }
 0x18f   :  { %v2400_v57 = vpop.permute.xlu1 %2399 }
 0x190   :  { %v2934_v2 = vsel %vm2920_vm8, %v2917_v13, %v2400_v57  ;;  %v6263_v57 = vld [vmem:[%s6370_s2] ss:$0 sm:$0xff] }
 0x191   :  { %v2402_v0 = vpop.permute.xlu0 %2401 }
 0x192   :  { %v2936_v48 = vsel %vm2920_vm8, %v2919_v46, %v2402_v0 }
 0x194   :  { %v2780_v62 = vpop.permute.xlu1 %2779 }
 0x195   :  { %v3066_v35 = vsel %vm3056_vm0, %v3049_v45, %v2780_v62 }
 0x197   :  { %v2782_v51 = vpop.permute.xlu0 %2781 }
 0x198   :  { %v2440_v60 = vpop.permute.xlu1 %2439  ;;  %v3068_v4 = vsel %vm3056_vm0, %v3051_v14, %v2782_v51 }
 0x199   :  { %v2951_v5 = vsel %vm6392_vm4, %v2934_v2, %v2440_v60 }
 0x19b   :  { %v2442_v58 = vpop.permute.xlu0 %2441 }
 0x19c   :  { %v2953_v44 = vsel %vm6395_vm7, %v2936_v48, %v2442_v58 }
 0x19d   :  { %v2820_v54 = vpop.permute.xlu1 %2819 }
 0x19e   :  { %v3083_v11 = vsel %vm3073_vm1, %v3066_v35, %v2820_v54 }
 0x19f   :  { %3931 = vmatprep.mubr.msk.bf16.mxu1 %vm3129_vm9, %v3083_v11  ;;  %v2822_v26 = vpop.permute.xlu0 %2821 }
 0x1a0   :  { %v3085_v52 = vsel %vm3073_vm1, %v3068_v4, %v2822_v26 }
 0x1a1   :  { %v2496_v43 = vpop.permute.xlu1 %2495  ;;  %3932 = vmatmul.mubr.msk.bf16.vlgmr.msra.gmra.mxu1 %vm3129_vm9, %v3085_v52 }
 0x1a2   :  { %v2968_v53 = vsel %vm2954_vm10, %v2951_v5, %v2496_v43 }
 0x1a3   :  { %v2552_v40 = vpop.permute.xlu0 %2551 }
 0x1a4   :  { %v2985_v41 = vsel %vm2971_vm11, %v2968_v53, %v2552_v40 }
 0x1a5   :  { %v2498_v42 = vpop.permute.xlu1 %2497 }
 0x1a6   :  { %v2970_v27 = vsel %vm2954_vm10, %v2953_v44, %v2498_v42 }
 0x1a9   :  { %v2554_v50 = vpop.permute.xlu1 %2553 }
 0x1aa   :  { %v2592_v39 = vpop.permute.xlu0 %2591  ;;  %v2987_v59 = vsel %vm2971_vm11, %v2970_v27, %v2554_v50 }
 0x1ab   :  { %v3002_v23 = vsel %vm2988_vm12, %v2985_v41, %v2592_v39 }
 0x1b0   :  { %v2632_v12 = vpop.permute.xlu0 %2631 }
 0x1b1   :  { %v2594_v36 = vpop.permute.xlu1 %2593  ;;  %v3019_v28 = vsel %vm3005_vm13, %v3002_v23, %v2632_v12 }
 0x1b2   :  { %v3004_v63 = vsel %vm2988_vm12, %v2987_v59, %v2594_v36 }
 0x1b4   :  { %v2688_v1 = vpop.permute.xlu0 %2687 }
 0x1b5   :  { %v3036_v16 = vsel %vm3022_vm14, %v3019_v28, %v2688_v1 }
 0x1b8   :  { %v2634_v22 = vpop.permute.xlu1 %2633  ;;  %v2744_v29 = vpop.permute.xlu0 %2743 }
 0x1b9   :  { %v3053_v55 = vsel %vm3039_vm15, %v3036_v16, %v2744_v29  ;;  %v3021_v24 = vsel %vm3005_vm13, %v3004_v63, %v2634_v22 }
 0x1bc   :  { %v2690_v19 = vpop.permute.xlu1 %2689 }
 0x1bd   :  { %v3038_v15 = vsel %vm3022_vm14, %v3021_v24, %v2690_v19 }
 0x1c0   :  { %v2784_v3 = vpop.permute.xlu0 %2783  ;;  %v2746_v17 = vpop.permute.xlu1 %2745 }
 0x1c1   :  { %v3070_v18 = vsel %vm3056_vm0, %v3053_v55, %v2784_v3  ;;  %v3055_v7 = vsel %vm3039_vm15, %v3038_v15, %v2746_v17 }
 0x1c6   :  { %v2824_v38 = vpop.permute.xlu0 %2823 }
 0x1c7   :  { %v3087_v47 = vsel %vm3073_vm1, %v3070_v18, %v2824_v38  ;;  %v2786_v6 = vpop.permute.xlu1 %2785 }
 0x1c8   :  { %3935 = vmatprep.mubr.msk.bf16.mxu1 %vm3129_vm9, %v3087_v47  ;;  %v3072_v21 = vsel %vm3056_vm0, %v3055_v7, %v2786_v6 }
 0x1cc   :  { %v2826_v20 = vpop.permute.xlu1 %2825 }
 0x1cd   :  { %v3089_v32 = vsel %vm3073_vm1, %v3072_v21, %v2826_v20 }
 0x1ce   :  { %3936 = vmatmul.mubr.msk.bf16.gmra.mxu1 %vm3129_vm9, %v3089_v32 }
 0x1e2   :  { %v3925_v0 = vpop.f32.mrf.mxu0 }
 0x1e3   :  { %v3189_v62 = vadd.f32 %v3925_v0, %v6263_v57 }
 0x1e4   :  { %v3180_v9 = vpop.f32.mrf.mxu0 }
 0x1e5   :  { %v3181_v51 = vadd.f32 %v6263_v57, %v3180_v9  ;;  %v3261_v60 = vmul.f32 0.2, %v3189_v62  ;;  %vm3245_vm8 = vcmp.gt.f32.partialorder %v3189_v62, 0.0 }
 0x1e6   :  { %v3926_v25 = vpop.f32.mrf.mxu0 }
 0x1e7   :  { %v3192_v61 = vadd.f32 %v3926_v25, %v6263_v57  ;;  %v3259_v37 = vmul.f32 0.2, %v3181_v51  ;;  %vm3243_vm9 = vcmp.gt.f32.partialorder %v3181_v51, 0.0  ;;  %v6269_v33 = vsel %vm3245_vm8, %v3189_v62, %v3261_v60 }
 0x1e8   :  { %v3183_v30 = vpop.f32.mrf.mxu0  ;;  %vm3446_vm8 = vcmask 1040384  }
 0x1e9   :  { %vm3246_vm10 = vcmp.gt.f32.partialorder %v3192_v61, 0.0  ;;  %v3262_v56 = vmul.f32 0.2, %v3192_v61  ;;  %v3184_v8 = vadd.f32 %v6263_v57, %v3183_v30  ;;  %v6275_v31 = vsel %vm3243_vm9, %v3181_v51, %v3259_v37 }
 0x1eb   :  { %v6271_v58 = vsel %vm3246_vm10, %v3192_v61, %v3262_v56  ;;  %vm3244_vm11 = vcmp.gt.f32.partialorder %v3184_v8, 0.0  ;;  %v3260_v34 = vmul.f32 0.2, %v3184_v8  ;;  %vm3448_vm10 = vcmask 1041408  }
 0x1ec   :  { %v3864_v45 = vpack.c.bf16 %v6271_v58, %v6269_v33 }
 0x1ed   :  { %v6277_v35 = vsel %vm3244_vm11, %v3184_v8, %v3260_v34 }
 0x1ee   :  { %3896 = vst [vmem:[%s6371_s3 + $0x8] sm:$0xff] %v3864_v45   ;;  %v3859_v54 = vpack.c.bf16 %v6277_v35, %v6275_v31  ;;  %v3291_v47 = vadd.f32 %v6277_v35, %v6275_v31 }
 0x1f0   :  { %3860 = vst [vmem:[%s6371_s3] sm:$0xff] %v3859_v54   ;;  %v3292_v6 = vadd.f32 %v3291_v47, %v6269_v33 }
 0x1f2   :  { %v3293_v63 = vadd.f32 %v3292_v6, %v6271_v58 }
 0x218   :  { %v3929_v14 = vpop.f32.mrf.mxu0 }
 0x219   :  { %v3205_v11 = vadd.f32 %v3929_v14, %v6263_v57 }
 0x21a   :  { %v3196_v4 = vpop.f32.mrf.mxu0 }
 0x21b   :  { %v3197_v26 = vadd.f32 %v6263_v57, %v3196_v4  ;;  %v3265_v43 = vmul.f32 0.2, %v3205_v11  ;;  %vm3249_vm12 = vcmp.gt.f32.partialorder %v3205_v11, 0.0 }
 0x21c   :  { %v3930_v52 = vpop.f32.mrf.mxu0 }
 0x21d   :  { %v3208_v40 = vadd.f32 %v3930_v52, %v6263_v57  ;;  %v3263_v39 = vmul.f32 0.2, %v3197_v26  ;;  %vm3247_vm14 = vcmp.gt.f32.partialorder %v3197_v26, 0.0  ;;  %v6291_v36 = vsel %vm3249_vm12, %v3205_v11, %v3265_v43 }
 0x21e   :  { %v3199_v42 = vpop.f32.mrf.mxu0 }
 0x21f   :  { %vm3250_vm13 = vcmp.gt.f32.partialorder %v3208_v40, 0.0  ;;  %v3266_v50 = vmul.f32 0.2, %v3208_v40  ;;  %v3200_v12 = vadd.f32 %v6263_v57, %v3199_v42  ;;  %v6297_v49 = vsel %vm3247_vm14, %v3197_v26, %v3263_v39 }
 0x220   :  { %v3294_v24 = vadd.f32 %v3293_v63, %v6297_v49 }
 0x221   :  { %v6293_v1 = vsel %vm3250_vm13, %v3208_v40, %v3266_v50  ;;  %vm3248_vm15 = vcmp.gt.f32.partialorder %v3200_v12, 0.0  ;;  %v3264_v22 = vmul.f32 0.2, %v3200_v12 }
 0x222   :  { %v3874_v29 = vpack.c.bf16 %v6293_v1, %v6291_v36 }
 0x223   :  { %v6299_v19 = vsel %vm3248_vm15, %v3200_v12, %v3264_v22 }
 0x224   :  { %3898 = vst [vmem:[%s6371_s3 + $0x18] sm:$0xff] %v3874_v29   ;;  %v3869_v13 = vpack.c.bf16 %v6299_v19, %v6297_v49  ;;  %v3295_v15 = vadd.f32 %v3294_v24, %v6299_v19 }
 0x226   :  { %3897 = vst [vmem:[%s6371_s3 + $0x10] sm:$0xff] %v3869_v13   ;;  %v3296_v7 = vadd.f32 %v3295_v15, %v6291_v36 }
 0x228   :  { %v3297_v21 = vadd.f32 %v3296_v7, %v6293_v1 }
 0x261   :  { %v3933_v2 = vpop.f32.mrf.mxu1 }
 0x262   :  { %v3221_v5 = vadd.f32 %v3933_v2, %v6263_v57 }
 0x263   :  { %v3212_v53 = vpop.f32.mrf.mxu1 }
 0x264   :  { %v3213_v3 = vadd.f32 %v6263_v57, %v3212_v53  ;;  %v3269_v17 = vmul.f32 0.2, %v3221_v5  ;;  %vm3253_vm0 = vcmp.gt.f32.partialorder %v3221_v5, 0.0 }
 0x265   :  { %v3934_v41 = vpop.f32.mrf.mxu1 }
 0x266   :  { %v3224_v10 = vadd.f32 %v3934_v41, %v6263_v57  ;;  %v3267_v46 = vmul.f32 0.2, %v3213_v3  ;;  %vm3251_vm2 = vcmp.gt.f32.partialorder %v3213_v3, 0.0  ;;  %v6313_v16 = vsel %vm3253_vm0, %v3221_v5, %v3269_v17 }
 0x267   :  { %v3215_v23 = vpop.f32.mrf.mxu1 }
 0x268   :  { %vm3254_vm1 = vcmp.gt.f32.partialorder %v3224_v10, 0.0  ;;  %v3270_v28 = vmul.f32 0.2, %v3224_v10  ;;  %v3216_v48 = vadd.f32 %v6263_v57, %v3215_v23  ;;  %v6319_v18 = vsel %vm3251_vm2, %v3213_v3, %v3267_v46 }
 0x269   :  { %v3298_v20 = vadd.f32 %v3297_v21, %v6319_v18 }
 0x26a   :  { %v6315_v44 = vsel %vm3254_vm1, %v3224_v10, %v3270_v28  ;;  %vm3252_vm3 = vcmp.gt.f32.partialorder %v3216_v48, 0.0  ;;  %v3268_v55 = vmul.f32 0.2, %v3216_v48 }
 0x26b   :  { %v3884_v27 = vpack.c.bf16 %v6315_v44, %v6313_v16 }
 0x26c   :  { %v6321_v38 = vsel %vm3252_vm3, %v3216_v48, %v3268_v55 }
 0x26d   :  { %3900 = vst [vmem:[%s6371_s3 + $0x28] sm:$0xff] %v3884_v27   ;;  %v3879_v59 = vpack.c.bf16 %v6321_v38, %v6319_v18  ;;  %v3299_v32 = vadd.f32 %v3298_v20, %v6321_v38 }
 0x26f   :  { %3899 = vst [vmem:[%s6371_s3 + $0x20] sm:$0xff] %v3879_v59   ;;  %v3300_v25 = vadd.f32 %v3299_v32, %v6313_v16 }
 0x271   :  { %v3301_v54 = vadd.f32 %v3300_v25, %v6315_v44 }
 0x28e   :  { %v3937_v0 = vpop.f32.mrf.mxu1 }
 0x28f   :  { %v3237_v62 = vadd.f32 %v3937_v0, %v6263_v57 }
 0x290   :  { %v3228_v9 = vpop.f32.mrf.mxu1 }
 0x291   :  { %v3229_v51 = vadd.f32 %v6263_v57, %v3228_v9  ;;  %v3273_v61 = vmul.f32 0.2, %v3237_v62  ;;  %vm3257_vm5 = vcmp.gt.f32.partialorder %v3237_v62, 0.0 }
 0x292   :  { %v3938_v60 = vpop.f32.mrf.mxu1 }
 0x293   :  { %vm3255_vm4 = vcmp.gt.f32.partialorder %v3229_v51, 0.0  ;;  %v3271_v30 = vmul.f32 0.2, %v3229_v51  ;;  %v3240_v37 = vadd.f32 %v3938_v60, %v6263_v57  ;;  %v3289_v14 = vsel %vm3257_vm5, %v3237_v62, %v3273_v61 }
 0x294   :  { %v3231_v56 = vpop.f32.mrf.mxu1 }
 0x295   :  { %v3287_v8 = vsel %vm3255_vm4, %v3229_v51, %v3271_v30  ;;  %vm3258_vm6 = vcmp.gt.f32.partialorder %v3240_v37, 0.0  ;;  %v3274_v34 = vmul.f32 0.2, %v3240_v37  ;;  %v3232_v45 = vadd.f32 %v6263_v57, %v3231_v56 }
 0x296   :  { %v3302_v26 = vadd.f32 %v3301_v54, %v3287_v8 }
 0x297   :  { %v3290_v11 = vsel %vm3258_vm6, %v3240_v37, %v3274_v34  ;;  %vm3256_vm7 = vcmp.gt.f32.partialorder %v3232_v45, 0.0  ;;  %v3272_v4 = vmul.f32 0.2, %v3232_v45 }
 0x298   :  { %v3894_v52 = vpack.c.bf16 %v3290_v11, %v3289_v14 }
 0x299   :  { %v3288_v43 = vsel %vm3256_vm7, %v3232_v45, %v3272_v4 }
 0x29a   :  { %3902 = vst [vmem:[%s6371_s3 + $0x38] sm:$0xff] %v3894_v52   ;;  %v3303_v40 = vadd.f32 %v3302_v26, %v3288_v43  ;;  %v3889_v42 = vpack.c.bf16 %v3288_v43, %v3287_v8 }
 0x29c   :  { %v3304_v39 = vadd.f32 %v3303_v40, %v3289_v14  ;;  %3901 = vst [vmem:[%s6371_s3 + $0x30] sm:$0xff] %v3889_v42  }
 0x29e   :  { %v3305_v57 = vadd.f32 %v3304_v39, %v3290_v11 }
 0x2a0   :  { %v3306_v50 = vrot.slane %v3305_v57, 4 }
 0x2a2   :  { %v3307_v12 = vadd.f32 %v3306_v50, %v3305_v57 }
 0x2a4   :  { %v3308_v22 = vrot.slane %v3307_v12, 2 }
 0x2a6   :  { %v3309_v29 = vadd.f32 %v3308_v22, %v3307_v12 }
 0x2a8   :  { %v3310_v13 = vrot.slane %v3309_v29, 1 }
 0x2aa   :  { %v3311_v2 = vadd.f32 %v3310_v13, %v3309_v29 }
 0x2ac   :  { %v3312_v5 = vmul.f32 0.0078125, %v3311_v2 }
 0x2ae   :  { %v3313_v53 = vsub.f32 %v6275_v31, %v3312_v5  ;;  %v3314_v3 = vsub.f32 %v6277_v35, %v3312_v5  ;;  %v3315_v41 = vsub.f32 %v6269_v33, %v3312_v5  ;;  %v3316_v23 = vsub.f32 %v6271_v58, %v3312_v5 }
 0x2af   :  { %v3317_v46 = vsub.f32 %v6297_v49, %v3312_v5  ;;  %v3318_v55 = vsub.f32 %v6299_v19, %v3312_v5  ;;  %v3319_v47 = vsub.f32 %v6291_v36, %v3312_v5  ;;  %v3320_v35 = vsub.f32 %v6293_v1, %v3312_v5 }
 0x2b0   :  { %v3329_v17 = vmul.f32 %v3313_v53, %v3313_v53  ;;  %v3330_v10 = vmul.f32 %v3314_v3, %v3314_v3  ;;  %v3331_v28 = vmul.f32 %v3315_v41, %v3315_v41  ;;  %v3332_v27 = vmul.f32 %v3316_v23, %v3316_v23 }
 0x2b1   :  { %v3333_v6 = vmul.f32 %v3317_v46, %v3317_v46  ;;  %v3334_v63 = vmul.f32 %v3318_v55, %v3318_v55  ;;  %v3321_v24 = vsub.f32 %v6319_v18, %v3312_v5  ;;  %v3335_v15 = vmul.f32 %v3319_v47, %v3319_v47 }
 0x2b2   :  { %v3345_v48 = vadd.f32 %v3330_v10, %v3329_v17  ;;  %v3322_v49 = vsub.f32 %v6321_v38, %v3312_v5  ;;  %v3336_v7 = vmul.f32 %v3320_v35, %v3320_v35  ;;  %v3323_v19 = vsub.f32 %v6313_v16, %v3312_v5 }
 0x2b3   :  { %v3337_v20 = vmul.f32 %v3321_v24, %v3321_v24  ;;  %v3324_v36 = vsub.f32 %v6315_v44, %v3312_v5  ;;  %v3325_v9 = vsub.f32 %v3287_v8, %v3312_v5  ;;  %v3326_v25 = vsub.f32 %v3288_v43, %v3312_v5 }
 0x2b4   :  { %v3346_v59 = vadd.f32 %v3345_v48, %v3331_v28  ;;  %v3338_v0 = vmul.f32 %v3322_v49, %v3322_v49  ;;  %v3339_v1 = vmul.f32 %v3323_v19, %v3323_v19  ;;  %v3327_v61 = vsub.f32 %v3289_v14, %v3312_v5 }
 0x2b5   :  { %v3340_v60 = vmul.f32 %v3324_v36, %v3324_v36  ;;  %v3341_v30 = vmul.f32 %v3325_v9, %v3325_v9  ;;  %v3328_v38 = vsub.f32 %v3290_v11, %v3312_v5  ;;  %v3342_v56 = vmul.f32 %v3326_v25, %v3326_v25 }
 0x2b6   :  { %v3347_v31 = vadd.f32 %v3346_v59, %v3332_v27  ;;  %v3343_v45 = vmul.f32 %v3327_v61, %v3327_v61 }
 0x2b7   :  { %v3344_v54 = vmul.f32 %v3328_v38, %v3328_v38 }
 0x2b8   :  { %v3348_v33 = vadd.f32 %v3347_v31, %v3333_v6 }
 0x2ba   :  { %v3349_v58 = vadd.f32 %v3348_v33, %v3334_v63 }
 0x2bc   :  { %v3350_v21 = vadd.f32 %v3349_v58, %v3335_v15 }
 0x2be   :  { %v3351_v32 = vadd.f32 %v3350_v21, %v3336_v7 }
 0x2c0   :  { %v3352_v62 = vadd.f32 %v3351_v32, %v3337_v20 }
 0x2c2   :  { %v3353_v51 = vadd.f32 %v3352_v62, %v3338_v0 }
 0x2c4   :  { %v3354_v18 = vadd.f32 %v3353_v51, %v3339_v1 }
 0x2c6   :  { %v3355_v37 = vadd.f32 %v3354_v18, %v3340_v60 }
 0x2c8   :  { %v3356_v34 = vadd.f32 %v3355_v37, %v3341_v30 }
 0x2ca   :  { %v3357_v16 = vadd.f32 %v3356_v34, %v3342_v56 }
 0x2cc   :  { %v3358_v4 = vadd.f32 %v3357_v16, %v3343_v45 }
 0x2ce   :  { %v3359_v26 = vadd.f32 %v3358_v4, %v3344_v54 }
 0x2d0   :  { %v3360_v44 = vrot.slane %v3359_v26, 4 }
 0x2d2   :  { %v3361_v52 = vadd.f32 %v3360_v44, %v3359_v26 }
 0x2d4   :  { %v3362_v40 = vrot.slane %v3361_v52, 2 }
 0x2d6   :  { %v3363_v8 = vadd.f32 %v3362_v40, %v3361_v52 }
 0x2d8   :  { %v3364_v42 = vrot.slane %v3363_v8, 1 }
 0x2da   :  { %v3365_v43 = vadd.f32 %v3364_v42, %v3363_v8 }
 0x2dc   :  { %v3447_v39 = vsel %vm3446_vm8, %v3311_v2, %v3365_v43 }
 0x2dd   :  { %v3449_v14 = vsel %vm3448_vm10, %v3447_v39, 0.0 }
 0x2de   :  { %3450 = vst [vmem:[%s6372_s4] sm:$0xff] %v3449_v14 }

// kernel: encoder_forward.9
= control target key start
LH: loop header
LB: loop body
LE: loop exit
PB: predicated region body
PF: predicated region fallthrough
CT: control target
= control target key end

     0   :  { %14 = vsyncpa [#allocation3], 0  ;;  %v338_v1 = vmov 0.0   ;;  %vm339_vm0 = vmmov 0   ;;  %s440_s0 = inlined_call_operand.vmem [shape: bf16[2,128], index: 0, kind: input, shape index: {}]   ;;  %s441_s1 = inlined_call_operand.vmem [shape: f32[1,128], index: 1, kind: input, shape index: {}]   ;;  %s442_s2 = inlined_call_operand.vmem [shape: f32[1,128], index: 2, kind: input, shape index: {}]   ;;  %s443_s3 = inlined_call_operand.vmem [shape: bf16[128,32], index: 3, kind: input, shape index: {}]   ;;  %s444_s4 = inlined_call_operand.vmem [shape: f32[1,32], index: 4, kind: input, shape index: {}]   ;;  %s445_s5 = inlined_call_operand.vmem [shape: f32[2,16], index: 5, kind: input, shape index: {}]   ;;  %s446_s6 = inlined_call_operand.hbm [shape: f32[2,16], index: 6, kind: output, shape index: {0}]   ;;  %s447_s7 = inlined_call_operand.hbm [shape: f32[2,16], index: 7, kind: output, shape index: {1}]   ;;  %s448_s8 = inlined_call_operand.hbm [shape: f32[2,16], index: 8, kind: output, shape index: {2}]  }
   0x1   :  { %v264_v0 = vld [vmem:[%s443_s3 + $0x38] sm:$0xff]   ;;  %238 = vmatprep.subr.bf16.mxu0 %v338_v1  ;;  %v265_v2 = vld [vmem:[%s443_s3 + $0x30] sm:$0xff]   ;;  %254 = vmatprep.mubr.msk.bf16.mxu0 %vm339_vm0, %v338_v1  ;;  %v266_v3 = vld [vmem:[%s443_s3 + $0x28] sm:$0xff]  }
   0x2   :  { %239 = vmatpush3.bf16.msra.mxu0 %v264_v0 }
   0x3   :  { %240 = vmatprep.subr.bf16.mxu0 %v338_v1 }
   0x6   :  { %241 = vmatpush3.bf16.msra.mxu0 %v265_v2 }
   0x7   :  { %242 = vmatprep.subr.bf16.mxu0 %v338_v1 }
   0x8   :  { %15 = vsyncpa [#allocation5], 0  ;;  %v267_v4 = vld [vmem:[%s443_s3 + $0x20] sm:$0xff]   ;;  %v268_v5 = vld [vmem:[%s443_s3 + $0x18] sm:$0xff]   ;;  %vm162_vm1 = vcmask 123904  }
   0x9   :  { %v29_v6 = vld [vmem:[%s440_s0] sm:$0x1]  ;;  %v269_v8 = vld [vmem:[%s443_s3 + $0x10] sm:$0xff]   ;;  %v270_v11 = vld [vmem:[%s443_s3 + $0x8] sm:$0xff]  }
   0xa   :  { %243 = vmatpush3.bf16.msra.mxu0 %v266_v3  ;;  %v30_v7 = vunpack.c.l.bf16 %v29_v6  ;;  %v218_v9 = vld [vmem:[%s441_s1] ss:$0 sm:$0xff] }
   0xb   :  { %244 = vmatprep.subr.bf16.mxu0 %v338_v1  ;;  %v219_v12 = vld [vmem:[%s442_s2] ss:$0 sm:$0xff]  ;;  %s340_s2 = smov [#allocation4]  }
   0xc   :  { %v38_v10 = vmul.f32 %v218_v9, %v30_v7  ;;  %v271_v14 = vld [vmem:[%s443_s3] sm:$0xff]   ;;  %s193_s3 = sshll.u32 %s340_s2, 4  ;;  %s194_s3 = int_to_ptr.vmem [resolvable:$true] %s193_s3 }
   0xd   :  { %v220_v16 = vld [vmem:[%s444_s4] ss:$0 sm:$0xff]  ;;  %s274_s27 = scalar_lea.vmem %s194_s3, 32  ;;  %p279_p1 = scmp.lt.s32.totalorder %s194_s3, %s194_s3 }
   0xe   :  { %245 = vmatpush3.bf16.msra.mxu0 %v267_v4  ;;  %v46_v13 = vadd.f32 %v219_v12, %v38_v10  ;;  %p275_p0 = scmp.ne.s32.totalorder %s194_s3, %s274_s27  ;;  %p280_p2 = scmp.lt.s32.totalorder %s274_s27, %s274_s27 }
   0xf   :  { %246 = vmatprep.subr.bf16.mxu0 %v338_v1 }
  0x10   :  { %v47_v15 = vpack.c.bf16 %v46_v13, %v46_v13  ;;  %p281_p3 = por %p280_p2, %p279_p1 }
  0x12   :  { %247 = vmatpush3.bf16.msra.mxu0 %v268_v5  ;;  %p282_p4 = pnand %p281_p3, %p275_p0 }
  0x13   :  { %248 = vmatprep.subr.bf16.mxu0 %v338_v1 }
  0x16   :  { %249 = vmatpush3.bf16.msra.mxu0 %v269_v8 }
  0x17   :  { %250 = vmatprep.subr.bf16.mxu0 %v338_v1 }
  0x1a   :  { %251 = vmatpush3.bf16.msra.mxu0 %v270_v11 }
  0x1b   :  { %252 = vmatprep.subr.bf16.mxu0 %v338_v1 }
  0x1e   :  { %253 = vmatpush3.bf16.msra.mxu0 %v271_v14 }
  0x21   :  { %255 = vmatmul.mubr.bf16.vlgmr.msra.gmra.mxu0 %v47_v15 }
  0xe1   :  { %v153_v17 = vpop.f32.mrf.mxu0 }
  0xe2   :  { %v154_v18 = vadd.f32 %v220_v16, %v153_v17 }
  0xe3   :  { %v256_v19 = vpop.f32.mrf.mxu0 }
  0xe4   :  { %v159_v20 = vmul.f32 0.5, %v154_v18  ;;  %163 = vst.msk [vmem:[#allocation4] sm:$0x3] %vm162_vm1, %v154_v18 }
  0xe5   :  { %v156_v21 = vpop.f32.mrf.mxu0 }
  0xe6   :  { %v160_v22 = vmul.f32 1.442695, %v159_v20 }
  0xe7   :  { %v257_v23 = vpop.f32.mrf.mxu0 }
  0xe8   :  { %272 = vpow2.f32 %v160_v22 }
  0xe9   :  { %285 = shalt.err (!%p282_p4)
}
  0xea   :  { %196 = dma.vmem_to_hbm [thread:$0]  %s194_s3, 32, %s447_s7, [#allocation5]   ;;  %v169_v25 = vld [vmem:[%s445_s5] sm:$0x3] }
  0xeb   :  { %s341_s29 = smov 112   ;;  %s342_s10 = smov [#allocation2]  }
  0xec   :  { %s183_s11 = sshll.u32 %s342_s10, 4  ;;  %s343_s12 = smov [#allocation6]   ;;  %s184_s11 = int_to_ptr.vmem [resolvable:$true] %s183_s11 }
  0xed   :  { %s203_s13 = sshll.u32 %s343_s12, 4  ;;  %s294_s7 = scalar_lea.vmem %s184_s11, 32  ;;  %s204_s13 = int_to_ptr.vmem [resolvable:$true] %s203_s13 }
  0xee   :  { %p295_p5 = scmp.ne.s32.totalorder %s184_s11, %s294_s7  ;;  %p299_p6 = scmp.lt.s32.totalorder %s184_s11, %s184_s11 }
  0xef   :  { %p300_p7 = scmp.lt.s32.totalorder %s294_s7, %s294_s7 }
  0xf1   :  { %p301_p8 = por %p300_p7, %p299_p6 }
  0xf3   :  { %p302_p9 = pnand %p301_p8, %p295_p5 }
  0xf5   :  { %v273_v24 = vpop.eup %272 }
  0xf6   :  { %171 = vrot.lane.b32.xlu0 %v273_v24, %s341_s29 }
  0xfa   :  { %165 = vrot.lane.b32.xlu0 %v154_v18, %s341_s29 }
 0x168   :  { %v172_v26 = vpop.permute.xlu0 %171 }
 0x169   :  { %v174_v27 = vmul.f32 %v172_v26, %v169_v25 }
 0x16b   :  { %v175_v28 = vadd.f32 %v174_v27, %v154_v18 }
 0x16c   :  { %v166_v29 = vpop.permute.xlu0 %165 }
 0x16d   :  { %168 = vst.msk [vmem:[#allocation6] sm:$0x3] %vm162_vm1, %v166_v29  ;;  %176 = vst.msk [vmem:[#allocation2] sm:$0x3] %vm162_vm1, %v175_v28 }
 0x16e   :  { %305 = shalt.err (!%p302_p9)
}
 0x16f   :  { %186 = dma.vmem_to_hbm [thread:$0]  %s184_s11, 32, %s446_s6, [#allocation3]  }
 0x170   :  { %s314_s15 = scalar_lea.vmem %s204_s13, 32  ;;  %p319_p11 = scmp.lt.s32.totalorder %s204_s13, %s204_s13 }
 0x171   :  { %p315_p10 = scmp.ne.s32.totalorder %s204_s13, %s314_s15  ;;  %p320_p12 = scmp.lt.s32.totalorder %s314_s15, %s314_s15 }
 0x173   :  { %p321_p13 = por %p320_p12, %p319_p11 }
 0x175   :  { %p322_p0 = pnand %p321_p13, %p315_p10 }
 0x177   :  { %325 = shalt.err (!%p322_p0)
}
 0x178   :  { %206 = dma.vmem_to_hbm [thread:$0]  %s204_s13, 32, %s448_s8, [#allocation5]  }
 0x179   :  { %334 = dma.done.wait [#allocation3], 32  }
 0x17a   :  { %335 = vsyncadd [#allocation3], 4294967264 }
 0x17b   :  { %336 = dma.done.wait [#allocation5], 64  }
 0x17c   :  { %337 = vsyncadd [#allocation5], 4294967232 }
 0x17d   :  { %216 = vsyncpa [#allocation3], 1 }
 0x17e   :  { %217 = vsyncpa [#allocation5], 1 }

</bundles_post_ra>
